<compile_context>
chip_gen: v5e
topology: v5e:2x2
jax: 0.10.0
libtpu: 0.0.40
codegen_flags: <defaults>
</compile_context>

<pallas_src>
import jax
import jax.numpy as jnp
from jax import lax
from jax.experimental import pallas as pl
from jax.experimental.pallas import tpu as pltpu


def _round_up(x, m):
    return (x + m - 1) // m * m


# ----------------------------------------------------------------------------
# Fused conv trunk: conv1 -> ReLU -> conv2 -> ReLU -> 2x2 maxpool  (per image)
# ----------------------------------------------------------------------------
def _fused_conv_kernel(p1_ref, w1_ref, b1_ref, w2_ref, b2_ref, o_ref,
                       p2_scr, h2_scr):
    # conv1: (832,9)@(9,32) + bias + ReLU  (rows = y1*32 + x1, x1 padded to 32)
    h1 = jnp.dot(p1_ref[0], w1_ref[...], preferred_element_type=jnp.float32)
    h1 = jnp.maximum(h1 + b1_ref[...], 0.0)              # (832, 32)
    h1 = h1.reshape(26, 32, 32)                          # (y1, x1_padded, c) - tile-aligned view

    # conv2 im2col into VMEM scratch; feature order = (di*3 + dj)*32 + c_in
    for t in range(9):
        di, dj = divmod(t, 3)
        p2_scr[:, t * 32:(t + 1) * 32] = (
            h1[di:di + 24, dj:dj + 24, :].reshape(576, 32))

    # conv2: single K=288 MXU matmul + bias + ReLU; rows = y*24 + x
    h2 = jnp.dot(p2_scr[...], w2_ref[...], preferred_element_type=jnp.float32)
    h2_scr[...] = jnp.maximum(h2 + b2_ref[...], 0.0)     # (576, 64)

    # fused 2x2 max pool (stride 2):
    #   x-pairs are adjacent rows -> sublane-strided reads,
    #   y-pairs 12 rows apart     -> tile-aligned reshape + slices.
    xm = jnp.maximum(h2_scr[pl.ds(0, 288, 2), :],
                     h2_scr[pl.ds(1, 288, 2), :])        # (288, 64), row = y*12 + px
    t2 = xm.reshape(12, 24, 64)                          # (y//2, (y%2)*12 + px, c)
    pooled = jnp.maximum(t2[:, :12, :], t2[:, 12:, :])   # (12, 12, 64)
    o_ref[0] = pooled


def fused_conv_pool(p1, w1, b1, w2, b2):
    """p1:(B,832,9) conv1 patches (x padded 26->32), returns pooled (B,12,12,64)."""
    B = p1.shape[0]
    flops = 2 * B * (832 * 9 * 32 + 576 * 288 * 64)
    bytes_accessed = 4 * (p1.size + w1.size + b1.size + w2.size + b2.size
                          + B * 12 * 12 * 64)
    return pl.pallas_call(
        _fused_conv_kernel,
        out_shape=jax.ShapeDtypeStruct((B, 12, 12, 64), jnp.float32),
        grid=(B,),
        in_specs=[
            pl.BlockSpec((1, 832, 9), lambda b: (b, 0, 0)),
            pl.BlockSpec((9, 32), lambda b: (0, 0)),
            pl.BlockSpec((1, 32), lambda b: (0, 0)),
            pl.BlockSpec((288, 64), lambda b: (0, 0)),
            pl.BlockSpec((1, 64), lambda b: (0, 0)),
        ],
        out_specs=pl.BlockSpec((1, 12, 12, 64), lambda b: (b, 0, 0, 0)),
        scratch_shapes=[
            pltpu.VMEM((576, 288), jnp.float32),   # conv2 im2col patches
            pltpu.VMEM((576, 64), jnp.float32),    # conv2 output (pre-pool)
        ],
        compiler_params=pltpu.CompilerParams(dimension_semantics=("parallel",)),
        cost_estimate=pl.CostEstimate(flops=flops, transcendentals=0,
                                      bytes_accessed=bytes_accessed),
    )(p1, w1, b1, w2, b2)


# ----------------------------------------------------------------------------
# Fused MLP head: fc1 (+ReLU) K-tiled accumulation, then fc2 + log_softmax in
# the finalize branch (lane-padded to 128 output columns).
# ----------------------------------------------------------------------------
def _mlp_head_kernel(x_ref, w1_ref, b1_ref, w2_ref, b2_ref, o_ref, acc_ref):
    k = pl.program_id(1)

    @pl.when(k == 0)
    def _():
        acc_ref[...] = jnp.zeros_like(acc_ref)

    acc_ref[...] += jnp.dot(x_ref[...], w1_ref[...],
                            preferred_element_type=jnp.float32)

    @pl.when(k == pl.num_programs(1) - 1)
    def _():
        h = jnp.maximum(acc_ref[...] + b1_ref[...], 0.0)          # fc1 + ReLU
        logits = jnp.dot(h, w2_ref[...],
                         preferred_element_type=jnp.float32) + b2_ref[...]
        m = jnp.max(logits, axis=-1, keepdims=True)
        lse = jnp.log(jnp.sum(jnp.exp(logits - m), axis=-1, keepdims=True))
        o_ref[...] = (logits - m - lse).astype(o_ref.dtype)


def _choose_row_tiling(M, cap=512):
    Mp = _round_up(M, 8)
    if Mp < 16:
        return Mp, Mp
    tile_m = min(cap, _round_up(Mp // 2, 8))   # aim for >=2 row tiles (2 TCs on v7x)
    return _round_up(Mp, tile_m), tile_m


def mlp_head(x, w1, b1, w2, b2):
    """x:(M,9216) -> log-probs (M,128) (cols >=10 are -1e30 padding)."""
    M, K = x.shape
    H = w1.shape[1]          # 128
    N = w2.shape[1]          # 128 (lane-padded)
    Mp, tile_m = _choose_row_tiling(M)
    grid_m = Mp // tile_m

    # Batch-adaptive K tiling: tiny batch -> few big K steps (less per-step
    # overhead, nothing to overlap anyway); big batch -> smaller K tiles so the
    # weight DMA pipelines against MXU work and VMEM stays small everywhere.
    candidates = (4608, 2304, 1152, K) if grid_m == 1 else (1152, 2304, 4608, K)
    tile_k = next(t for t in candidates if K % t == 0)
    grid_k = K // tile_k

    xp = jnp.pad(x, ((0, Mp - M), (0, 0))) if Mp != M else x
    flops = 2 * Mp * K * H + 2 * Mp * H * N
    bytes_accessed = 4 * (Mp * K + K * H + H * N + Mp * N + 2 * N + H)

    out = pl.pallas_call(
        _mlp_head_kernel,
        out_shape=jax.ShapeDtypeStruct((Mp, N), jnp.float32),
        grid=(grid_m, grid_k),
        in_specs=[
            pl.BlockSpec((tile_m, tile_k), lambda i, k: (i, k)),
            pl.BlockSpec((tile_k, H), lambda i, k: (k, 0)),
            pl.BlockSpec((1, H), lambda i, k: (0, 0)),
            pl.BlockSpec((H, N), lambda i, k: (0, 0)),
            pl.BlockSpec((1, N), lambda i, k: (0, 0)),
        ],
        out_specs=pl.BlockSpec((tile_m, N), lambda i, k: (i, 0)),
        scratch_shapes=[pltpu.VMEM((tile_m, H), jnp.float32)],
        compiler_params=pltpu.CompilerParams(
            dimension_semantics=("parallel", "arbitrary")),
        cost_estimate=pl.CostEstimate(flops=flops,
                                      transcendentals=Mp * (N + 1),
                                      bytes_accessed=bytes_accessed),
    )(xp, w1, b1, w2, b2)
    return out[:M]


# ----------------------------------------------------------------------------
# Parameters (deterministic, PyTorch-default-style uniform init)
# ----------------------------------------------------------------------------
def init_params(key):
    def uni(k, shape, fan_in):
        bound = 1.0 / jnp.sqrt(fan_in)
        return jax.random.uniform(k, shape, jnp.float32, -bound, bound)

    ks = jax.random.split(key, 8)
    return {
        "conv1_w": uni(ks[0], (32, 1, 3, 3), 1 * 9),
        "conv1_b": uni(ks[1], (32,), 1 * 9),
        "conv2_w": uni(ks[2], (64, 32, 3, 3), 32 * 9),
        "conv2_b": uni(ks[3], (64,), 32 * 9),
        "fc1_w": uni(ks[4], (128, 9216), 9216),
        "fc1_b": uni(ks[5], (128,), 9216),
        "fc2_w": uni(ks[6], (10, 128), 128),
        "fc2_b": uni(ks[7], (10,), 128),
    }


def prepare_params(params):
    """One-time weight layout prep (hoisted out of the jitted forward).

    - conv weights pre-transposed to matmul layouts (tap-major features).
    - fc1 weight rows permuted so the pooled NHWC flatten feeds it directly
      (folds torch's NCHW flatten order into the weight).
    - fc2 weight/bias lane-padded to 128 output columns (-1e30 bias padding).
    """
    f = jnp.arange(9216)
    c = f % 64
    s = f // 64                     # s = y*12 + x  (NHWC flat spatial index)
    perm = c * 144 + s              # matching torch NCHW flatten index
    return {
        "w1": params["conv1_w"].reshape(32, 9).T.astype(jnp.float32),          # (9,32)
        "b1": params["conv1_b"].reshape(1, 32).astype(jnp.float32),
        "w2": jnp.transpose(params["conv2_w"], (2, 3, 1, 0))
                 .reshape(288, 64).astype(jnp.float32),                        # (9*32,64)
        "b2": params["conv2_b"].reshape(1, 64).astype(jnp.float32),
        "w_fc1": params["fc1_w"].T[perm, :].astype(jnp.float32),               # (9216,128)
        "b_fc1": params["fc1_b"].reshape(1, 128).astype(jnp.float32),
        "w_fc2": jnp.zeros((128, 128), jnp.float32).at[:, :10]
                    .set(params["fc2_w"].T.astype(jnp.float32)),
        "b_fc2": jnp.full((1, 128), -1e30, jnp.float32).at[0, :10]
                    .set(params["fc2_b"].astype(jnp.float32)),
    }


# ----------------------------------------------------------------------------
# Forward pass (Pallas): 2 kernel launches total.
# ----------------------------------------------------------------------------
def convnet_forward(p, x_nchw):
    B = x_nchw.shape[0]
    x = x_nchw[:, 0].astype(jnp.float32)                       # (B, 28, 28), C_in == 1

    # conv1 im2col (tiny XLA glue, ~30 KB/image); feature order t = di*3 + dj.
    # x1 padded 26 -> 32 so the in-kernel (26,32,32) view is tile-aligned.
    # TODO(synk): fold this im2col into the fused kernel (needs a lane<->sublane
    # relayout of the (26,26) image windows inside Mosaic).
    cols = [x[:, di:di + 26, dj:dj + 26] for di in range(3) for dj in range(3)]
    p1 = jnp.stack(cols, axis=-1)                              # (B, 26, 26, 9)
    p1 = jnp.pad(p1, ((0, 0), (0, 0), (0, 6), (0, 0)))         # (B, 26, 32, 9)
    p1 = p1.reshape(B, 26 * 32, 9)                             # (B, 832, 9)

    # conv1 -> ReLU -> conv2 -> ReLU -> 2x2 maxpool, fused per image
    hp = fused_conv_pool(p1, p["w1"], p["b1"], p["w2"], p["b2"])   # (B,12,12,64)

    # dropout1 / dropout2: identity at inference
    # TODO(synk): training-mode stochastic Dropout2d/Dropout not implemented (eval semantics).

    # flatten (free bitcast); torch's NCHW flatten order is folded into w_fc1 rows
    hf = hp.reshape(B, 9216)

    # fc1 + ReLU + fc2 + log_softmax fused (lane-padded to 128, sliced to 10)
    out = mlp_head(hf, p["w_fc1"], p["b_fc1"], p["w_fc2"], p["b_fc2"])  # (B,128)
    return out[:, :10]


# ----------------------------------------------------------------------------
# Pure-JAX reference for correctness checking
# ----------------------------------------------------------------------------
def convnet_reference(params, x_nchw):
    dn = ("NCHW", "OIHW", "NCHW")
    h = lax.conv_general_dilated(x_nchw, params["conv1_w"], (1, 1), "VALID",
                                 dimension_numbers=dn,
                                 precision=lax.Precision.HIGHEST)
    h = jax.nn.relu(h + params["conv1_b"][None, :, None, None])
    h = lax.conv_general_dilated(h, params["conv2_w"], (1, 1), "VALID",
                                 dimension_numbers=dn,
                                 precision=lax.Precision.HIGHEST)
    h = jax.nn.relu(h + params["conv2_b"][None, :, None, None])
    B, C, H, W = h.shape
    h = h.reshape(B, C, H // 2, 2, W // 2, 2).max(axis=(3, 5))
    h = h.reshape(B, -1)
    h = jax.nn.relu(jnp.dot(h, params["fc1_w"].T, precision=lax.Precision.HIGHEST)
                    + params["fc1_b"])
    logits = jnp.dot(h, params["fc2_w"].T,
                     precision=lax.Precision.HIGHEST) + params["fc2_b"]
    return jax.nn.log_softmax(logits, axis=1)


if __name__ == "__main__":
    key = jax.random.PRNGKey(0)
    k_x, k_p = jax.random.split(key)
    # fc1 expects 9216 = 64 * 12 * 12 features -> input must be (B, 1, 28, 28)
    x = jax.random.normal(k_x, (2, 1, 28, 28), dtype=jnp.float32)
    params = init_params(k_p)
    prepped = prepare_params(params)          # one-time weight layout prep

    fwd = jax.jit(convnet_forward)
    out = jax.block_until_ready(fwd(prepped, x))

    ref = convnet_reference(params, x)
    assert out.shape == (2, 10), out.shape
    max_err = jnp.max(jnp.abs(out - ref))
    assert jnp.allclose(out, ref, atol=1e-3, rtol=1e-3), f"max abs err {max_err}"

    print("KERNEL_OK")
</pallas_src>

<mosaic_0001>
module attributes {stable_mosaic.version = 11 : i64} {
  func.func @_fused_conv_kernel(%arg0: i32, %arg1: memref<1x832x9xf32, #tpu.memory_space<vmem>>, %arg2: memref<9x32xf32, #tpu.memory_space<vmem>>, %arg3: memref<1x32xf32, #tpu.memory_space<vmem>>, %arg4: memref<288x64xf32, #tpu.memory_space<vmem>>, %arg5: memref<1x64xf32, #tpu.memory_space<vmem>>, %arg6: memref<1x12x12x64xf32, #tpu.memory_space<vmem>>, %arg7: memref<576x288xf32, #tpu.memory_space<vmem>>, %arg8: memref<576x64xf32, #tpu.memory_space<vmem>>) attributes {dimension_semantics = [#tpu.dimension_semantics<parallel>], iteration_bounds = array<i64: 2>, scalar_prefetch = 0 : i64, scratch_operands = 2 : i64, tpu.core_type = #tpu.core_type<tc>, window_params = [{transform_indices = @transform_0, window_bounds = array<i64: 1, 832, 9>}, {pipeline_mode = #tpu.pipeline_mode<synchronous>, transform_indices = @transform_1, window_bounds = array<i64: 9, 32>}, {pipeline_mode = #tpu.pipeline_mode<synchronous>, transform_indices = @transform_2, window_bounds = array<i64: 1, 32>}, {pipeline_mode = #tpu.pipeline_mode<synchronous>, transform_indices = @transform_3, window_bounds = array<i64: 288, 64>}, {pipeline_mode = #tpu.pipeline_mode<synchronous>, transform_indices = @transform_4, window_bounds = array<i64: 1, 64>}, {transform_indices = @transform_5, window_bounds = array<i64: 1, 12, 12, 64>}]} {
    %c0 = arith.constant 0 : index
    %c0_0 = arith.constant 0 : index
    %c0_1 = arith.constant 0 : index
    %0 = vector.load %arg1[%c0, %c0_0, %c0_1] : memref<1x832x9xf32, #tpu.memory_space<vmem>>, vector<1x832x9xf32>
    %1 = vector.shape_cast %0 : vector<1x832x9xf32> to vector<832x9xf32>
    %c0_2 = arith.constant 0 : index
    %c0_3 = arith.constant 0 : index
    %2 = vector.load %arg2[%c0_2, %c0_3] : memref<9x32xf32, #tpu.memory_space<vmem>>, vector<9x32xf32>
    %cst = arith.constant dense<0.000000e+00> : vector<832x32xf32>
    %3 = tpu.matmul %1, %2, %cst {dimension_numbers = #tpu.dot_dimension_numbers<[1], [0], [0], [1], [0, 0, 1, 1], [], []>} : vector<832x9xf32>, vector<9x32xf32>, vector<832x32xf32> -> vector<832x32xf32>
    %c0_4 = arith.constant 0 : index
    %c0_5 = arith.constant 0 : index
    %4 = vector.load %arg3[%c0_4, %c0_5] : memref<1x32xf32, #tpu.memory_space<vmem>>, vector<1x32xf32>
    %5 = vector.broadcast %4 : vector<1x32xf32> to vector<832x32xf32>
    %6 = arith.addf %3, %5 : vector<832x32xf32>
    %cst_6 = arith.constant 0.000000e+00 : f32
    %7 = vector.broadcast %cst_6 : f32 to vector<832x32xf32>
    %8 = arith.maximumf %6, %7 : vector<832x32xf32>
    %9 = vector.shape_cast %8 : vector<832x32xf32> to vector<26x32x32xf32>
    %10 = vector.extract_strided_slice %9 {offsets = [0, 0, 0], sizes = [24, 24, 32], strides = [1, 1, 1]} : vector<26x32x32xf32> to vector<24x24x32xf32>
    %11 = vector.shape_cast %10 : vector<24x24x32xf32> to vector<576x32xf32>
    %c0_7 = arith.constant 0 : index
    %c0_8 = arith.constant 0 : index
    %12 = vector.load %arg7[%c0_7, %c0_8] : memref<576x288xf32, #tpu.memory_space<vmem>>, vector<576x32xf32>
    tpu.vector_store %arg7[%c0_7, %c0_8], %11 {strides = array<i32>} : memref<576x288xf32, #tpu.memory_space<vmem>>, vector<576x32xf32>,
    %13 = vector.extract_strided_slice %9 {offsets = [0, 1, 0], sizes = [24, 24, 32], strides = [1, 1, 1]} : vector<26x32x32xf32> to vector<24x24x32xf32>
    %14 = vector.shape_cast %13 : vector<24x24x32xf32> to vector<576x32xf32>
    %c0_9 = arith.constant 0 : index
    %c32 = arith.constant 32 : index
    %15 = vector.load %arg7[%c0_9, %c32] : memref<576x288xf32, #tpu.memory_space<vmem>>, vector<576x32xf32>
    tpu.vector_store %arg7[%c0_9, %c32], %14 {strides = array<i32>} : memref<576x288xf32, #tpu.memory_space<vmem>>, vector<576x32xf32>,
    %16 = vector.extract_strided_slice %9 {offsets = [0, 2, 0], sizes = [24, 24, 32], strides = [1, 1, 1]} : vector<26x32x32xf32> to vector<24x24x32xf32>
    %17 = vector.shape_cast %16 : vector<24x24x32xf32> to vector<576x32xf32>
    %c0_10 = arith.constant 0 : index
    %c64 = arith.constant 64 : index
    %18 = vector.load %arg7[%c0_10, %c64] : memref<576x288xf32, #tpu.memory_space<vmem>>, vector<576x32xf32>
    tpu.vector_store %arg7[%c0_10, %c64], %17 {strides = array<i32>} : memref<576x288xf32, #tpu.memory_space<vmem>>, vector<576x32xf32>,
    %19 = vector.extract_strided_slice %9 {offsets = [1, 0, 0], sizes = [24, 24, 32], strides = [1, 1, 1]} : vector<26x32x32xf32> to vector<24x24x32xf32>
    %20 = vector.shape_cast %19 : vector<24x24x32xf32> to vector<576x32xf32>
    %c0_11 = arith.constant 0 : index
    %c96 = arith.constant 96 : index
    %21 = vector.load %arg7[%c0_11, %c96] : memref<576x288xf32, #tpu.memory_space<vmem>>, vector<576x32xf32>
    tpu.vector_store %arg7[%c0_11, %c96], %20 {strides = array<i32>} : memref<576x288xf32, #tpu.memory_space<vmem>>, vector<576x32xf32>,
    %22 = vector.extract_strided_slice %9 {offsets = [1, 1, 0], sizes = [24, 24, 32], strides = [1, 1, 1]} : vector<26x32x32xf32> to vector<24x24x32xf32>
    %23 = vector.shape_cast %22 : vector<24x24x32xf32> to vector<576x32xf32>
    %c0_12 = arith.constant 0 : index
    %c128 = arith.constant 128 : index
    %24 = vector.load %arg7[%c0_12, %c128] : memref<576x288xf32, #tpu.memory_space<vmem>>, vector<576x32xf32>
    tpu.vector_store %arg7[%c0_12, %c128], %23 {strides = array<i32>} : memref<576x288xf32, #tpu.memory_space<vmem>>, vector<576x32xf32>,
    %25 = vector.extract_strided_slice %9 {offsets = [1, 2, 0], sizes = [24, 24, 32], strides = [1, 1, 1]} : vector<26x32x32xf32> to vector<24x24x32xf32>
    %26 = vector.shape_cast %25 : vector<24x24x32xf32> to vector<576x32xf32>
    %c0_13 = arith.constant 0 : index
    %c160 = arith.constant 160 : index
    %27 = vector.load %arg7[%c0_13, %c160] : memref<576x288xf32, #tpu.memory_space<vmem>>, vector<576x32xf32>
    tpu.vector_store %arg7[%c0_13, %c160], %26 {strides = array<i32>} : memref<576x288xf32, #tpu.memory_space<vmem>>, vector<576x32xf32>,
    %28 = vector.extract_strided_slice %9 {offsets = [2, 0, 0], sizes = [24, 24, 32], strides = [1, 1, 1]} : vector<26x32x32xf32> to vector<24x24x32xf32>
    %29 = vector.shape_cast %28 : vector<24x24x32xf32> to vector<576x32xf32>
    %c0_14 = arith.constant 0 : index
    %c192 = arith.constant 192 : index
    %30 = vector.load %arg7[%c0_14, %c192] : memref<576x288xf32, #tpu.memory_space<vmem>>, vector<576x32xf32>
    tpu.vector_store %arg7[%c0_14, %c192], %29 {strides = array<i32>} : memref<576x288xf32, #tpu.memory_space<vmem>>, vector<576x32xf32>,
    %31 = vector.extract_strided_slice %9 {offsets = [2, 1, 0], sizes = [24, 24, 32], strides = [1, 1, 1]} : vector<26x32x32xf32> to vector<24x24x32xf32>
    %32 = vector.shape_cast %31 : vector<24x24x32xf32> to vector<576x32xf32>
    %c0_15 = arith.constant 0 : index
    %c224 = arith.constant 224 : index
    %33 = vector.load %arg7[%c0_15, %c224] : memref<576x288xf32, #tpu.memory_space<vmem>>, vector<576x32xf32>
    tpu.vector_store %arg7[%c0_15, %c224], %32 {strides = array<i32>} : memref<576x288xf32, #tpu.memory_space<vmem>>, vector<576x32xf32>,
    %34 = vector.extract_strided_slice %9 {offsets = [2, 2, 0], sizes = [24, 24, 32], strides = [1, 1, 1]} : vector<26x32x32xf32> to vector<24x24x32xf32>
    %35 = vector.shape_cast %34 : vector<24x24x32xf32> to vector<576x32xf32>
    %c0_16 = arith.constant 0 : index
    %c256 = arith.constant 256 : index
    %36 = vector.load %arg7[%c0_16, %c256] : memref<576x288xf32, #tpu.memory_space<vmem>>, vector<576x32xf32>
    tpu.vector_store %arg7[%c0_16, %c256], %35 {strides = array<i32>} : memref<576x288xf32, #tpu.memory_space<vmem>>, vector<576x32xf32>,
    %c0_17 = arith.constant 0 : index
    %c0_18 = arith.constant 0 : index
    %37 = vector.load %arg7[%c0_17, %c0_18] : memref<576x288xf32, #tpu.memory_space<vmem>>, vector<576x288xf32>
    %c0_19 = arith.constant 0 : index
    %c0_20 = arith.constant 0 : index
    %38 = vector.load %arg4[%c0_19, %c0_20] : memref<288x64xf32, #tpu.memory_space<vmem>>, vector<288x64xf32>
    %cst_21 = arith.constant dense<0.000000e+00> : vector<576x64xf32>
    %39 = tpu.matmul %37, %38, %cst_21 {dimension_numbers = #tpu.dot_dimension_numbers<[1], [0], [0], [1], [0, 0, 1, 1], [], []>} : vector<576x288xf32>, vector<288x64xf32>, vector<576x64xf32> -> vector<576x64xf32>
    %c0_22 = arith.constant 0 : index
    %c0_23 = arith.constant 0 : index
    %40 = vector.load %arg5[%c0_22, %c0_23] : memref<1x64xf32, #tpu.memory_space<vmem>>, vector<1x64xf32>
    %41 = vector.broadcast %40 : vector<1x64xf32> to vector<576x64xf32>
    %42 = arith.addf %39, %41 : vector<576x64xf32>
    %cst_24 = arith.constant 0.000000e+00 : f32
    %43 = vector.broadcast %cst_24 : f32 to vector<576x64xf32>
    %44 = arith.maximumf %42, %43 : vector<576x64xf32>
    %c0_25 = arith.constant 0 : index
    %c0_26 = arith.constant 0 : index
    %45 = vector.load %arg8[%c0_25, %c0_26] : memref<576x64xf32, #tpu.memory_space<vmem>>, vector<576x64xf32>
    tpu.vector_store %arg8[%c0_25, %c0_26], %44 {strides = array<i32>} : memref<576x64xf32, #tpu.memory_space<vmem>>, vector<576x64xf32>,
    %c0_27 = arith.constant 0 : index
    %c0_28 = arith.constant 0 : index
    %46 = tpu.strided_load %arg8[%c0_27, %c0_28] {strides = array<i32: 2, 1>} : memref<576x64xf32, #tpu.memory_space<vmem>>, vector<288x64xf32>
    %c1 = arith.constant 1 : index
    %c0_29 = arith.constant 0 : index
    %47 = tpu.strided_load %arg8[%c1, %c0_29] {strides = array<i32: 2, 1>} : memref<576x64xf32, #tpu.memory_space<vmem>>, vector<288x64xf32>
    %48 = arith.maximumf %46, %47 : vector<288x64xf32>
    %49 = vector.shape_cast %48 : vector<288x64xf32> to vector<12x24x64xf32>
    %50 = vector.extract_strided_slice %49 {offsets = [0, 0, 0], sizes = [12, 12, 64], strides = [1, 1, 1]} : vector<12x24x64xf32> to vector<12x12x64xf32>
    %51 = vector.extract_strided_slice %49 {offsets = [0, 12, 0], sizes = [12, 12, 64], strides = [1, 1, 1]} : vector<12x24x64xf32> to vector<12x12x64xf32>
    %52 = arith.maximumf %50, %51 : vector<12x12x64xf32>
    %c0_30 = arith.constant 0 : index
    %c0_31 = arith.constant 0 : index
    %c0_32 = arith.constant 0 : index
    %c0_33 = arith.constant 0 : index
    %53 = vector.load %arg6[%c0_30, %c0_31, %c0_32, %c0_33] : memref<1x12x12x64xf32, #tpu.memory_space<vmem>>, vector<1x12x12x64xf32>
    %54 = vector.shape_cast %53 : vector<1x12x12x64xf32> to vector<12x12x64xf32>
    %55 = vector.shape_cast %52 : vector<12x12x64xf32> to vector<1x12x12x64xf32>
    tpu.vector_store %arg6[%c0_30, %c0_31, %c0_32, %c0_33], %55 {strides = array<i32>} : memref<1x12x12x64xf32, #tpu.memory_space<vmem>>, vector<1x12x12x64xf32>,
    return
  }
  func.func @transform_0(%arg0: i32) -> (i32, i32, i32) {
    %c0_i32 = arith.constant 0 : i32
    %c0_i32_0 = arith.constant 0 : i32
    %c0_i32_1 = arith.constant 0 : i32
    return %arg0, %c0_i32, %c0_i32_0 : i32, i32, i32
  }
  func.func @transform_1(%arg0: i32) -> (i32, i32) {
    %c0_i32 = arith.constant 0 : i32
    %c0_i32_0 = arith.constant 0 : i32
    %c0_i32_1 = arith.constant 0 : i32
    return %c0_i32, %c0_i32_0 : i32, i32
  }
  func.func @transform_2(%arg0: i32) -> (i32, i32) {
    %c0_i32 = arith.constant 0 : i32
    %c0_i32_0 = arith.constant 0 : i32
    %c0_i32_1 = arith.constant 0 : i32
    return %c0_i32, %c0_i32_0 : i32, i32
  }
  func.func @transform_3(%arg0: i32) -> (i32, i32) {
    %c0_i32 = arith.constant 0 : i32
    %c0_i32_0 = arith.constant 0 : i32
    %c0_i32_1 = arith.constant 0 : i32
    return %c0_i32, %c0_i32_0 : i32, i32
  }
  func.func @transform_4(%arg0: i32) -> (i32, i32) {
    %c0_i32 = arith.constant 0 : i32
    %c0_i32_0 = arith.constant 0 : i32
    %c0_i32_1 = arith.constant 0 : i32
    return %c0_i32, %c0_i32_0 : i32, i32
  }
  func.func @transform_5(%arg0: i32) -> (i32, i32, i32, i32) {
    %c0_i32 = arith.constant 0 : i32
    %c0_i32_0 = arith.constant 0 : i32
    %c0_i32_1 = arith.constant 0 : i32
    %c0_i32_2 = arith.constant 0 : i32
    return %arg0, %c0_i32, %c0_i32_0, %c0_i32_1 : i32, i32, i32, i32
  }
}

module attributes {stable_mosaic.version = 11 : i64} {
  func.func @_mlp_head_kernel(%arg0: i32, %arg1: i32, %arg2: memref<8x4608xf32, #tpu.memory_space<vmem>>, %arg3: memref<4608x128xf32, #tpu.memory_space<vmem>>, %arg4: memref<1x128xf32, #tpu.memory_space<vmem>>, %arg5: memref<128x128xf32, #tpu.memory_space<vmem>>, %arg6: memref<1x128xf32, #tpu.memory_space<vmem>>, %arg7: memref<8x128xf32, #tpu.memory_space<vmem>>, %arg8: memref<8x128xf32, #tpu.memory_space<vmem>>) attributes {dimension_semantics = [#tpu.dimension_semantics<parallel>, #tpu.dimension_semantics<arbitrary>], iteration_bounds = array<i64: 1, 2>, scalar_prefetch = 0 : i64, scratch_operands = 1 : i64, tpu.core_type = #tpu.core_type<tc>, window_params = [{transform_indices = @transform_0, window_bounds = array<i64: 8, 4608>}, {transform_indices = @transform_1, window_bounds = array<i64: 4608, 128>}, {pipeline_mode = #tpu.pipeline_mode<synchronous>, transform_indices = @transform_2, window_bounds = array<i64: 1, 128>}, {pipeline_mode = #tpu.pipeline_mode<synchronous>, transform_indices = @transform_3, window_bounds = array<i64: 128, 128>}, {pipeline_mode = #tpu.pipeline_mode<synchronous>, transform_indices = @transform_4, window_bounds = array<i64: 1, 128>}, {transform_indices = @transform_5, window_bounds = array<i64: 8, 128>}]} {
    %c0_i32 = arith.constant 0 : i32
    %0 = arith.cmpi eq, %arg1, %c0_i32 : i32
    %1 = arith.extui %0 : i1 to i32
    %c0_i32_0 = arith.constant 0 : i32
    %2 = arith.cmpi ne, %1, %c0_i32_0 : i32
    scf.if %2 {
      %cst_9 = arith.constant 0.000000e+00 : f32
      %12 = vector.broadcast %cst_9 : f32 to vector<8x128xf32>
      %c0_10 = arith.constant 0 : index
      %c0_11 = arith.constant 0 : index
      %13 = vector.load %arg8[%c0_10, %c0_11] : memref<8x128xf32, #tpu.memory_space<vmem>>, vector<8x128xf32>
      tpu.vector_store %arg8[%c0_10, %c0_11], %12 {strides = array<i32>} : memref<8x128xf32, #tpu.memory_space<vmem>>, vector<8x128xf32>,
    } else {
    }
    %c0 = arith.constant 0 : index
    %c0_1 = arith.constant 0 : index
    %3 = vector.load %arg8[%c0, %c0_1] : memref<8x128xf32, #tpu.memory_space<vmem>>, vector<8x128xf32>
    %c0_2 = arith.constant 0 : index
    %c0_3 = arith.constant 0 : index
    %4 = vector.load %arg2[%c0_2, %c0_3] : memref<8x4608xf32, #tpu.memory_space<vmem>>, vector<8x4608xf32>
    %c0_4 = arith.constant 0 : index
    %c0_5 = arith.constant 0 : index
    %5 = vector.load %arg3[%c0_4, %c0_5] : memref<4608x128xf32, #tpu.memory_space<vmem>>, vector<4608x128xf32>
    %cst = arith.constant dense<0.000000e+00> : vector<8x128xf32>
    %6 = tpu.matmul %4, %5, %cst {dimension_numbers = #tpu.dot_dimension_numbers<[1], [0], [0], [1], [0, 0, 1, 1], [], []>} : vector<8x4608xf32>, vector<4608x128xf32>, vector<8x128xf32> -> vector<8x128xf32>
    %7 = arith.addf %3, %6 : vector<8x128xf32>
    %c0_6 = arith.constant 0 : index
    %c0_7 = arith.constant 0 : index
    %8 = vector.load %arg8[%c0_6, %c0_7] : memref<8x128xf32, #tpu.memory_space<vmem>>, vector<8x128xf32>
    tpu.vector_store %arg8[%c0_6, %c0_7], %7 {strides = array<i32>} : memref<8x128xf32, #tpu.memory_space<vmem>>, vector<8x128xf32>,
    %c1_i32 = arith.constant 1 : i32
    %9 = arith.cmpi eq, %arg1, %c1_i32 : i32
    %10 = arith.extui %9 : i1 to i32
    %c0_i32_8 = arith.constant 0 : i32
    %11 = arith.cmpi ne, %10, %c0_i32_8 : i32
    scf.if %11 {
      %c0_9 = arith.constant 0 : index
      %c0_10 = arith.constant 0 : index
      %12 = vector.load %arg8[%c0_9, %c0_10] : memref<8x128xf32, #tpu.memory_space<vmem>>, vector<8x128xf32>
      %c0_11 = arith.constant 0 : index
      %c0_12 = arith.constant 0 : index
      %13 = vector.load %arg4[%c0_11, %c0_12] : memref<1x128xf32, #tpu.memory_space<vmem>>, vector<1x128xf32>
      %14 = vector.broadcast %13 : vector<1x128xf32> to vector<8x128xf32>
      %15 = arith.addf %12, %14 : vector<8x128xf32>
      %cst_13 = arith.constant 0.000000e+00 : f32
      %16 = vector.broadcast %cst_13 : f32 to vector<8x128xf32>
      %17 = arith.maximumf %15, %16 : vector<8x128xf32>
      %c0_14 = arith.constant 0 : index
      %c0_15 = arith.constant 0 : index
      %18 = vector.load %arg5[%c0_14, %c0_15] : memref<128x128xf32, #tpu.memory_space<vmem>>, vector<128x128xf32>
      %cst_16 = arith.constant dense<0.000000e+00> : vector<8x128xf32>
      %19 = tpu.matmul %17, %18, %cst_16 {dimension_numbers = #tpu.dot_dimension_numbers<[1], [0], [0], [1], [0, 0, 1, 1], [], []>} : vector<8x128xf32>, vector<128x128xf32>, vector<8x128xf32> -> vector<8x128xf32>
      %c0_17 = arith.constant 0 : index
      %c0_18 = arith.constant 0 : index
      %20 = vector.load %arg6[%c0_17, %c0_18] : memref<1x128xf32, #tpu.memory_space<vmem>>, vector<1x128xf32>
      %21 = vector.broadcast %20 : vector<1x128xf32> to vector<8x128xf32>
      %22 = arith.addf %19, %21 : vector<8x128xf32>
      %cst_19 = arith.constant dense<0xFF800000> : vector<8xf32>
      %23 = vector.multi_reduction <maximumf>, %22, %cst_19 [1] : vector<8x128xf32> to vector<8xf32>
      %24 = vector.shape_cast %23 : vector<8xf32> to vector<8x1xf32>
      %25 = vector.broadcast %24 : vector<8x1xf32> to vector<8x128xf32>
      %26 = arith.subf %22, %25 : vector<8x128xf32>
      %27 = math.exp %26 : vector<8x128xf32>
      %cst_20 = arith.constant dense<0.000000e+00> : vector<8xf32>
      %28 = vector.multi_reduction <add>, %27, %cst_20 [1] : vector<8x128xf32> to vector<8xf32>
      %29 = vector.shape_cast %28 : vector<8xf32> to vector<8x1xf32>
      %30 = math.log %29 : vector<8x1xf32>
      %31 = vector.broadcast %24 : vector<8x1xf32> to vector<8x128xf32>
      %32 = arith.subf %22, %31 : vector<8x128xf32>
      %33 = vector.broadcast %30 : vector<8x1xf32> to vector<8x128xf32>
      %34 = arith.subf %32, %33 : vector<8x128xf32>
      %c0_21 = arith.constant 0 : index
      %c0_22 = arith.constant 0 : index
      %35 = vector.load %arg7[%c0_21, %c0_22] : memref<8x128xf32, #tpu.memory_space<vmem>>, vector<8x128xf32>
      tpu.vector_store %arg7[%c0_21, %c0_22], %34 {strides = array<i32>} : memref<8x128xf32, #tpu.memory_space<vmem>>, vector<8x128xf32>,
    } else {
    }
    return
  }
  func.func @transform_0(%arg0: i32, %arg1: i32) -> (i32, i32) {
    %c0_i32 = arith.constant 0 : i32
    return %arg0, %arg1 : i32, i32
  }
  func.func @transform_1(%arg0: i32, %arg1: i32) -> (i32, i32) {
    %c0_i32 = arith.constant 0 : i32
    %c0_i32_0 = arith.constant 0 : i32
    return %arg1, %c0_i32 : i32, i32
  }
  func.func @transform_2(%arg0: i32, %arg1: i32) -> (i32, i32) {
    %c0_i32 = arith.constant 0 : i32
    %c0_i32_0 = arith.constant 0 : i32
    %c0_i32_1 = arith.constant 0 : i32
    return %c0_i32, %c0_i32_0 : i32, i32
  }
  func.func @transform_3(%arg0: i32, %arg1: i32) -> (i32, i32) {
    %c0_i32 = arith.constant 0 : i32
    %c0_i32_0 = arith.constant 0 : i32
    %c0_i32_1 = arith.constant 0 : i32
    return %c0_i32, %c0_i32_0 : i32, i32
  }
  func.func @transform_4(%arg0: i32, %arg1: i32) -> (i32, i32) {
    %c0_i32 = arith.constant 0 : i32
    %c0_i32_0 = arith.constant 0 : i32
    %c0_i32_1 = arith.constant 0 : i32
    return %c0_i32, %c0_i32_0 : i32, i32
  }
  func.func @transform_5(%arg0: i32, %arg1: i32) -> (i32, i32) {
    %c0_i32 = arith.constant 0 : i32
    %c0_i32_0 = arith.constant 0 : i32
    return %arg0, %c0_i32 : i32, i32
  }
}

</mosaic_0001>

<bundles_post_ra>
// kernel: convnet_forward.3
= control target key start
LH: loop header
LB: loop body
LE: loop exit
PB: predicated region body
PF: predicated region fallthrough
CT: control target
= control target key end

     0   :  { %10 = vsyncpa [#allocation4], 0  ;;  %s2941_s0 = inlined_call_operand.vmem [shape: f32[8,9216], index: 0, kind: input, shape index: {}]   ;;  %s2942_s1 = inlined_call_operand.hbm [shape: f32[9216,128], index: 1, kind: input, shape index: {}]   ;;  %s2943_s2 = inlined_call_operand.hbm [shape: f32[1,128], index: 2, kind: input, shape index: {}]   ;;  %s2944_s3 = inlined_call_operand.hbm [shape: f32[128,128], index: 3, kind: input, shape index: {}]   ;;  %s2945_s4 = inlined_call_operand.hbm [shape: f32[1,128], index: 4, kind: input, shape index: {}]   ;;  %s2946_s5 = inlined_call_operand.vmem [shape: f32[8,128], index: 5, kind: output, shape index: {}]  }
   0x1   :  { %12 = vsyncpa [#allocation4 + $0x1], 0 }
   0x2   :  { %13 = vsyncpa [#allocation6], 0 }
   0x3   :  { %14 = vsyncpa [#allocation9], 0  ;;  %s2190_s18 = smov 0   ;;  %s2192_s19 = smov 0  }
   0x4   :  { %s2194_s20 = smov 0   ;;  %s2196_s21 = smov 0  }
   0x5   :  { %s2198_s22 = smov 0   ;;  %s2200_s23 = smov 0  }
   0x6 LB: > { %s1859_s24 = sadd.s32 4294967295, %s2152_s23   ;;  %p80_p0 = scmp.ne.s32.totalorder %s2136_s19, %s2132_s18  ;;  %s2152_s23 = sphi %s2200_s23, %s20_s23   ;;  %s2148_s22 = sphi %s2198_s22, %s2955_s22   ;;  %s2144_s21 = sphi %s2196_s21, %s2954_s21   ;;  %s2140_s20 = sphi %s2194_s20, %s2953_s20   ;;  %s2136_s19 = sphi %s2192_s19, %s2952_s19   ;;  %s2132_s18 = sphi %s2190_s18, %s2951_s18  }
   0x7   : > { %p2220_p1 = scmp.eq.s32.totalorder %s1859_s24, 0  ;;  %p1860_p2 = scmp.ge.s32.totalorder %s2152_s23, 1 }
   0x8   : > { %p180_p3 = scmp.lt.s32.totalorder %s2152_s23, 3  ;;  %s192_s29 = sshll.u32 %s2943_s2, 4  ;;  %s193_s29 = int_to_ptr.hbm [resolvable:$true] %s192_s29 }
   0x9   : > { %p2228_p4 = por %p2220_p1, %p80_p0  ;;  %s2154_s6 = smov [#allocation5]  }
   0xa   : > { %p2235_p5 = pnand %p1860_p2, %p180_p3  ;;  %s194_s7 = sshll.u32 %s2154_s6, 4  ;;  %s195_s7 = int_to_ptr.vmem [resolvable:$true] %s194_s7 }
   0xb   : > { %s203_s10 = sshll.u32 %s2944_s3, 4  ;;  %s2155_s12 = smov [#allocation7]   ;;  %s204_s10 = int_to_ptr.hbm [resolvable:$true] %s203_s10 }
   0xc   : > { %p1893_p6 = pneg %p2235_p5  ;;  %s205_s13 = sshll.u32 %s2155_s12, 4  ;;  %s206_s13 = int_to_ptr.vmem [resolvable:$true] %s205_s13 }
   0xd   : > { %s2156_s14 = smov 128   ;;  %s2157_s15 = smov 8  }
   0xe   : > { %p2246_p7 = pnand %p1893_p6, %p2220_p1  ;;  %s218_s18 = sshll.u32 %s2945_s4, 4  ;;  %s219_s18 = int_to_ptr.hbm [resolvable:$true] %s218_s18 }
   0xf   : > { %s2158_s24 = smov [#allocation8]   ;;  %s67_s28 = sadd.s32 1, %s2140_s20 }
  0x10   : > { %1896 = dma.hbm_to_vmem [thread:$0]  (!%p2246_p7), %s193_s29, 16, %s195_s7, [#allocation6]  }
  0x11   : > { %1899 = dma.hbm_to_vmem [thread:$0]  (!%p2246_p7), %s204_s10, 2048, %s206_s13, [#allocation6], %s2156_s14, %s2156_s14, %s2157_s15  }
  0x12   : > { %s220_s27 = sshll.u32 %s2158_s24, 4  ;;  %s29_s29 = sadd.s32 1, %s2148_s22  ;;  %s221_s27 = int_to_ptr.vmem [resolvable:$true] %s220_s27 }
  0x13   : > { %1902 = dma.hbm_to_vmem [thread:$0]  (!%p2246_p7), %s219_s18, 16, %s221_s27, [#allocation9]  }
  0x14   : > { %p74_p8 = scmp.ne.s32.totalorder %s2140_s20, %s2136_s19  ;;  %p30_p9 = scmp.ge.s32.totalorder %s29_s29, 2 }
  0x15   : > { %p75_p10 = scmp.eq.s32.totalorder %s2152_s23, 0  ;;  %p1910_p11 = scmp.lt.s32.totalorder %s2152_s23, 2 }
  0x16   : > { %s244_s6 = sand.u32 1, %s2140_s20   ;;  %s2957_s29 = smov (%p30_p9, %s29_s29), 0 }
  0x17   : > { %p76_p12 = por %p75_p10, %p74_p8  ;;  %s64_s7 = ssub.s32 %s2148_s22, %s2957_s29 }
  0x18   : > { %s1877_s8 = smul.u32 4608, %s244_s6  ;;  %p65_p13 = scmp.eq.s32.totalorder %s64_s7, 0 }
  0x19   : > { %s1876_s9 = smul.u32 4608, %s2148_s22  ;;  %p1904_p0 = pnand %p1910_p11, %p76_p12 }
  0x1a   : > { %s2275_s10 = scalar_select %p65_p13, %s2140_s20, %s67_s28  }
  0x1b   : > { %s253_s13 = scalar_lea.hbm %s2942_s1, %s1876_s9  ;;  %s248_s16 = scalar_lea.vmem [#allocation3], %s1877_s8 }
  0x1c   : > { %s256_s17 = sshll.u32 %s248_s16, 4  ;;  %s254_s18 = sshll.u32 %s253_s13, 4  ;;  %s257_s17 = int_to_ptr.vmem [resolvable:$true] %s256_s17  ;;  %s255_s18 = int_to_ptr.hbm [resolvable:$true] %s254_s18 }
  0x1d   : > { %s245_s24 = scalar_lea.sflag [#allocation4], %s244_s6  ;;  %268 = sbr.rel (%p2235_p5) target bundleno = 908 (0x38c), region = 40 }
  0x1e   : > { %1906 = dma.hbm_to_vmem [thread:$0]  (!%p1904_p0), %s255_s18, 73728, %s257_s17, %s245_s24, %s2156_s14, %s2156_s14, %s2157_s15  }
  0x1f   : > { %s270_s27 = sand.u32 (!%p2235_p5), 1, %s2136_s19  }
  0x20   : > { %s1878_s28 = smul.u32 (!%p2235_p5), 4608, %s270_s27  ;;  %s271_s7 = scalar_lea.sflag (!%p2235_p5), [#allocation4], %s270_s27 }
  0x22   : > { %s2286_s11 = scalar_lea.vmem [#allocation3], %s1878_s28 }
  0x23   : > { %2119 = dma.done.wait (%p2228_p4), %s271_s7, 73728  }
  0x24   : > { %2121 = vsyncadd (%p2228_p4), %s271_s7, 4294893568 }
  0x25   : > { %2123 = dma.done.wait (%p2220_p1), [#allocation6], 2064  }
  0x26   : > { %2125 = vsyncadd (%p2220_p1), [#allocation6], 4294965232 }
  0x27   : > { %2127 = dma.done.wait (%p2220_p1), [#allocation9], 16  }
  0x28   : > { %2129 = vsyncadd (%p2220_p1), [#allocation9], 4294967280  ;;  %s325_s30 = smul.u32 36, %s2144_s21  ;;  %p1871_p3 = scmp.ne.s32.totalorder %s2144_s21, 0 }
  0x2a   : > { %p328_p2 = scmp.lt.s32.totalorder %s325_s30, 71  ;;  %343 = sbr.rel (%p1871_p3) target bundleno = 49 (0x31), region = 60 }
  0x2c   : > { %s2959_s30 = smov (!%p328_p2, %s325_s30), 71 }
  0x2d   : > { %s1870_s14 = sshll.u32 %s2959_s30, 3 }
  0x2e   : > { %s2304_s6 = scalar_lea.vmem %s2941_s0, %s1870_s14 }
  0x2f   : > { %v2159_v0 = vmov 0.0  }
  0x30   : > { %344 = vst [vmem:[#allocation2] sm:$0xff] %v2159_v0 }
  0x31 PF: > { %v397_v1 = vld [vmem:[%s2286_s11 + $0x78] sm:$0xff]  ;;  %v396_v3 = vld [vmem:[%s2286_s11 + $0x70] sm:$0xff]  ;;  %v395_v7 = vld [vmem:[%s2286_s11 + $0x68] sm:$0xff]  ;;  %p1872_p1 = scmp.ne.s32.totalorder %s2144_s21, 1 }
  0x32   : > { %v429_v2 = vld [vmem:[%s2286_s11 + $0x178] sm:$0xff]  ;;  %958 = vmatpush.msra.mxu0 %v397_v1  ;;  %v428_v5 = vld [vmem:[%s2286_s11 + $0x170] sm:$0xff]  ;;  %v427_v9 = vld [vmem:[%s2286_s11 + $0x168] sm:$0xff] }
  0x33   : > { %998 = vmatpush.msra.mxu2 %v429_v2  ;;  %v413_v4 = vld [vmem:[%s2286_s11 + $0xf8] sm:$0xff]  ;;  %v412_v8 = vld [vmem:[%s2286_s11 + $0xf0] sm:$0xff]  ;;  %v411_v11 = vld [vmem:[%s2286_s11 + $0xe8] sm:$0xff] }
  0x34   : > { %v445_v6 = vld [vmem:[%s2286_s11 + $0x1f8] sm:$0xff]  ;;  %978 = vmatpush.msra.mxu1 %v413_v4  ;;  %959 = vmatpush.msra.mxu0 %v396_v3  ;;  %v444_v10 = vld [vmem:[%s2286_s11 + $0x1f0] sm:$0xff]  ;;  %v394_v12 = vld [vmem:[%s2286_s11 + $0x60] sm:$0xff] }
  0x35   : > { %1018 = vmatpush.msra.mxu3 %v445_v6  ;;  %999 = vmatpush.msra.mxu2 %v428_v5  ;;  %v426_v13 = vld [vmem:[%s2286_s11 + $0x160] sm:$0xff]  ;;  %v443_v14 = vld [vmem:[%s2286_s11 + $0x1e8] sm:$0xff]  ;;  %v393_v17 = vld [vmem:[%s2286_s11 + $0x58] sm:$0xff] }
  0x36   : > { %979 = vmatpush.msra.mxu1 %v412_v8  ;;  %960 = vmatpush.msra.mxu0 %v395_v7  ;;  %v410_v15 = vld [vmem:[%s2286_s11 + $0xe0] sm:$0xff]  ;;  %v425_v18 = vld [vmem:[%s2286_s11 + $0x158] sm:$0xff]  ;;  %v392_v21 = vld [vmem:[%s2286_s11 + $0x50] sm:$0xff] }
  0x37   : > { %1019 = vmatpush.msra.mxu3 %v444_v10  ;;  %1000 = vmatpush.msra.mxu2 %v427_v9  ;;  %v442_v16 = vld [vmem:[%s2286_s11 + $0x1e0] sm:$0xff]  ;;  %v409_v19 = vld [vmem:[%s2286_s11 + $0xd8] sm:$0xff]  ;;  %v424_v22 = vld [vmem:[%s2286_s11 + $0x150] sm:$0xff] }
  0x38   : > { %980 = vmatpush.msra.mxu1 %v411_v11  ;;  %961 = vmatpush.msra.mxu0 %v394_v12  ;;  %v441_v20 = vld [vmem:[%s2286_s11 + $0x1d8] sm:$0xff]  ;;  %v408_v23 = vld [vmem:[%s2286_s11 + $0xd0] sm:$0xff]  ;;  %v391_v25 = vld [vmem:[%s2286_s11 + $0x48] sm:$0xff] }
  0x39   : > { %1020 = vmatpush.msra.mxu3 %v443_v14  ;;  %1001 = vmatpush.msra.mxu2 %v426_v13  ;;  %v440_v24 = vld [vmem:[%s2286_s11 + $0x1d0] sm:$0xff]  ;;  %v423_v26 = vld [vmem:[%s2286_s11 + $0x148] sm:$0xff]  ;;  %v390_v29 = vld [vmem:[%s2286_s11 + $0x40] sm:$0xff] }
  0x3a   : > { %981 = vmatpush.msra.mxu1 %v410_v15  ;;  %962 = vmatpush.msra.mxu0 %v393_v17  ;;  %v407_v27 = vld [vmem:[%s2286_s11 + $0xc8] sm:$0xff]  ;;  %v422_v30 = vld [vmem:[%s2286_s11 + $0x140] sm:$0xff]  ;;  %v389_v33 = vld [vmem:[%s2286_s11 + $0x38] sm:$0xff] }
  0x3b   : > { %1021 = vmatpush.msra.mxu3 %v442_v16  ;;  %1002 = vmatpush.msra.mxu2 %v425_v18  ;;  %v439_v28 = vld [vmem:[%s2286_s11 + $0x1c8] sm:$0xff]  ;;  %v406_v31 = vld [vmem:[%s2286_s11 + $0xc0] sm:$0xff]  ;;  %v421_v34 = vld [vmem:[%s2286_s11 + $0x138] sm:$0xff] }
  0x3c   : > { %982 = vmatpush.msra.mxu1 %v409_v19  ;;  %963 = vmatpush.msra.mxu0 %v392_v21  ;;  %v438_v32 = vld [vmem:[%s2286_s11 + $0x1c0] sm:$0xff]  ;;  %v405_v35 = vld [vmem:[%s2286_s11 + $0xb8] sm:$0xff]  ;;  %v388_v37 = vld [vmem:[%s2286_s11 + $0x30] sm:$0xff] }
  0x3d   : > { %1022 = vmatpush.msra.mxu3 %v441_v20  ;;  %1003 = vmatpush.msra.mxu2 %v424_v22  ;;  %v437_v36 = vld [vmem:[%s2286_s11 + $0x1b8] sm:$0xff]  ;;  %v420_v38 = vld [vmem:[%s2286_s11 + $0x130] sm:$0xff]  ;;  %v387_v41 = vld [vmem:[%s2286_s11 + $0x28] sm:$0xff] }
  0x3e   : > { %983 = vmatpush.msra.mxu1 %v408_v23  ;;  %964 = vmatpush.msra.mxu0 %v391_v25  ;;  %v404_v39 = vld [vmem:[%s2286_s11 + $0xb0] sm:$0xff]  ;;  %v419_v42 = vld [vmem:[%s2286_s11 + $0x128] sm:$0xff]  ;;  %v386_v45 = vld [vmem:[%s2286_s11 + $0x20] sm:$0xff] }
  0x3f   : > { %1023 = vmatpush.msra.mxu3 %v440_v24  ;;  %1004 = vmatpush.msra.mxu2 %v423_v26  ;;  %v436_v40 = vld [vmem:[%s2286_s11 + $0x1b0] sm:$0xff]  ;;  %v403_v43 = vld [vmem:[%s2286_s11 + $0xa8] sm:$0xff]  ;;  %v418_v46 = vld [vmem:[%s2286_s11 + $0x120] sm:$0xff] }
  0x40   : > { %984 = vmatpush.msra.mxu1 %v407_v27  ;;  %965 = vmatpush.msra.mxu0 %v390_v29  ;;  %v435_v44 = vld [vmem:[%s2286_s11 + $0x1a8] sm:$0xff]  ;;  %v402_v47 = vld [vmem:[%s2286_s11 + $0xa0] sm:$0xff]  ;;  %v385_v49 = vld [vmem:[%s2286_s11 + $0x18] sm:$0xff] }
  0x41   : > { %1024 = vmatpush.msra.mxu3 %v439_v28  ;;  %1005 = vmatpush.msra.mxu2 %v422_v30  ;;  %v434_v48 = vld [vmem:[%s2286_s11 + $0x1a0] sm:$0xff]  ;;  %v417_v50 = vld [vmem:[%s2286_s11 + $0x118] sm:$0xff]  ;;  %v384_v53 = vld [vmem:[%s2286_s11 + $0x10] sm:$0xff] }
  0x42   : > { %985 = vmatpush.msra.mxu1 %v406_v31  ;;  %966 = vmatpush.msra.mxu0 %v389_v33  ;;  %v401_v51 = vld [vmem:[%s2286_s11 + $0x98] sm:$0xff]  ;;  %v416_v54 = vld [vmem:[%s2286_s11 + $0x110] sm:$0xff]  ;;  %v383_v57 = vld [vmem:[%s2286_s11 + $0x8] sm:$0xff] }
  0x43   : > { %1025 = vmatpush.msra.mxu3 %v438_v32  ;;  %1006 = vmatpush.msra.mxu2 %v421_v34  ;;  %v433_v52 = vld [vmem:[%s2286_s11 + $0x198] sm:$0xff]  ;;  %v400_v55 = vld [vmem:[%s2286_s11 + $0x90] sm:$0xff]  ;;  %v415_v58 = vld [vmem:[%s2286_s11 + $0x108] sm:$0xff] }
  0x44   : > { %986 = vmatpush.msra.mxu1 %v405_v35  ;;  %967 = vmatpush.msra.mxu0 %v388_v37  ;;  %v432_v56 = vld [vmem:[%s2286_s11 + $0x190] sm:$0xff]  ;;  %v399_v59 = vld [vmem:[%s2286_s11 + $0x88] sm:$0xff]  ;;  %v382_v61 = vld [vmem:[%s2286_s11] sm:$0xff] }
  0x45   : > { %1026 = vmatpush.msra.mxu3 %v437_v36  ;;  %1007 = vmatpush.msra.mxu2 %v420_v38  ;;  %v431_v60 = vld [vmem:[%s2286_s11 + $0x188] sm:$0xff]  ;;  %v414_v62 = vld [vmem:[%s2286_s11 + $0x100] sm:$0xff]  ;;  %v461_v63 = vld [vmem:[%s2286_s11 + $0x278] sm:$0xff] }
  0x46   : > { %987 = vmatpush.msra.mxu1 %v404_v39  ;;  %968 = vmatpush.msra.mxu0 %v387_v41  ;;  %v493_v0 = vld [vmem:[%s2286_s11 + $0x378] sm:$0xff]  ;;  %v398_v1 = vld [vmem:[%s2286_s11 + $0x80] sm:$0xff]  ;;  %v460_v3 = vld [vmem:[%s2286_s11 + $0x270] sm:$0xff] }
  0x47   : > { %1027 = vmatpush.msra.mxu3 %v436_v40  ;;  %1008 = vmatpush.msra.mxu2 %v419_v42  ;;  %v430_v2 = vld [vmem:[%s2286_s11 + $0x180] sm:$0xff]  ;;  %v477_v4 = vld [vmem:[%s2286_s11 + $0x2f8] sm:$0xff]  ;;  %v492_v5 = vld [vmem:[%s2286_s11 + $0x370] sm:$0xff] }
  0x48   : > { %988 = vmatpush.msra.mxu1 %v403_v43  ;;  %969 = vmatpush.msra.mxu0 %v386_v45  ;;  %v509_v6 = vld [vmem:[%s2286_s11 + $0x3f8] sm:$0xff]  ;;  %v459_v7 = vld [vmem:[%s2286_s11 + $0x268] sm:$0xff]  ;;  %v476_v8 = vld [vmem:[%s2286_s11 + $0x2f0] sm:$0xff] }
  0x49   : > { %1028 = vmatpush.msra.mxu3 %v435_v44  ;;  %1009 = vmatpush.msra.mxu2 %v418_v46  ;;  %v491_v9 = vld [vmem:[%s2286_s11 + $0x368] sm:$0xff]  ;;  %v508_v10 = vld [vmem:[%s2286_s11 + $0x3f0] sm:$0xff]  ;;  %v458_v11 = vld [vmem:[%s2286_s11 + $0x260] sm:$0xff] }
  0x4a   : > { %989 = vmatpush.msra.mxu1 %v402_v47  ;;  %970 = vmatpush.msra.mxu0 %v385_v49  ;;  %v475_v12 = vld [vmem:[%s2286_s11 + $0x2e8] sm:$0xff]  ;;  %v490_v13 = vld [vmem:[%s2286_s11 + $0x360] sm:$0xff]  ;;  %v457_v15 = vld [vmem:[%s2286_s11 + $0x258] sm:$0xff] }
  0x4b   : > { %1029 = vmatpush.msra.mxu3 %v434_v48  ;;  %1010 = vmatpush.msra.mxu2 %v417_v50  ;;  %v507_v14 = vld [vmem:[%s2286_s11 + $0x3e8] sm:$0xff]  ;;  %v474_v16 = vld [vmem:[%s2286_s11 + $0x2e0] sm:$0xff]  ;;  %v489_v17 = vld [vmem:[%s2286_s11 + $0x358] sm:$0xff] }
  0x4c   : > { %990 = vmatpush.msra.mxu1 %v401_v51  ;;  %971 = vmatpush.msra.mxu0 %v384_v53  ;;  %v506_v18 = vld [vmem:[%s2286_s11 + $0x3e0] sm:$0xff]  ;;  %v456_v19 = vld [vmem:[%s2286_s11 + $0x250] sm:$0xff]  ;;  %v473_v20 = vld [vmem:[%s2286_s11 + $0x2d8] sm:$0xff] }
  0x4d   : > { %1030 = vmatpush.msra.mxu3 %v433_v52  ;;  %1011 = vmatpush.msra.mxu2 %v416_v54  ;;  %v488_v21 = vld [vmem:[%s2286_s11 + $0x350] sm:$0xff]  ;;  %v505_v22 = vld [vmem:[%s2286_s11 + $0x3d8] sm:$0xff]  ;;  %v455_v23 = vld [vmem:[%s2286_s11 + $0x248] sm:$0xff] }
  0x4e   : > { %991 = vmatpush.msra.mxu1 %v400_v55  ;;  %972 = vmatpush.msra.mxu0 %v383_v57  ;;  %v472_v24 = vld [vmem:[%s2286_s11 + $0x2d0] sm:$0xff]  ;;  %v487_v25 = vld [vmem:[%s2286_s11 + $0x348] sm:$0xff]  ;;  %v454_v27 = vld [vmem:[%s2286_s11 + $0x240] sm:$0xff] }
  0x4f   : > { %1031 = vmatpush.msra.mxu3 %v432_v56  ;;  %1012 = vmatpush.msra.mxu2 %v415_v58  ;;  %v504_v26 = vld [vmem:[%s2286_s11 + $0x3d0] sm:$0xff]  ;;  %v471_v28 = vld [vmem:[%s2286_s11 + $0x2c8] sm:$0xff]  ;;  %v486_v29 = vld [vmem:[%s2286_s11 + $0x340] sm:$0xff] }
  0x50   : > { %992 = vmatpush.msra.mxu1 %v399_v59  ;;  %973 = vmatpush.msra.mxu0 %v382_v61  ;;  %v503_v30 = vld [vmem:[%s2286_s11 + $0x3c8] sm:$0xff]  ;;  %v453_v31 = vld [vmem:[%s2286_s11 + $0x238] sm:$0xff]  ;;  %v470_v32 = vld [vmem:[%s2286_s11 + $0x2c0] sm:$0xff] }
  0x51   : > { %1032 = vmatpush.msra.mxu3 %v431_v60  ;;  %1013 = vmatpush.msra.mxu2 %v414_v62  ;;  %v485_v33 = vld [vmem:[%s2286_s11 + $0x338] sm:$0xff]  ;;  %v502_v34 = vld [vmem:[%s2286_s11 + $0x3c0] sm:$0xff]  ;;  %v452_v35 = vld [vmem:[%s2286_s11 + $0x230] sm:$0xff] }
  0x52   : > { %1038 = vmatpush.msrb.mxu0 %v461_v63  ;;  %993 = vmatpush.msra.mxu1 %v398_v1  ;;  %v469_v36 = vld [vmem:[%s2286_s11 + $0x2b8] sm:$0xff]  ;;  %v484_v37 = vld [vmem:[%s2286_s11 + $0x330] sm:$0xff]  ;;  %v451_v39 = vld [vmem:[%s2286_s11 + $0x228] sm:$0xff] }
  0x53   : > { %1078 = vmatpush.msrb.mxu2 %v493_v0  ;;  %1033 = vmatpush.msra.mxu3 %v430_v2  ;;  %v501_v38 = vld [vmem:[%s2286_s11 + $0x3b8] sm:$0xff]  ;;  %v468_v40 = vld [vmem:[%s2286_s11 + $0x2b0] sm:$0xff]  ;;  %v483_v41 = vld [vmem:[%s2286_s11 + $0x328] sm:$0xff] }
  0x54   : > { %1039 = vmatpush.msrb.mxu0 %v460_v3  ;;  %1058 = vmatpush.msrb.mxu1 %v477_v4  ;;  %v500_v42 = vld [vmem:[%s2286_s11 + $0x3b0] sm:$0xff]  ;;  %v450_v43 = vld [vmem:[%s2286_s11 + $0x220] sm:$0xff]  ;;  %v467_v44 = vld [vmem:[%s2286_s11 + $0x2a8] sm:$0xff] }
  0x55   : > { %1079 = vmatpush.msrb.mxu2 %v492_v5  ;;  %1098 = vmatpush.msrb.mxu3 %v509_v6  ;;  %v482_v45 = vld [vmem:[%s2286_s11 + $0x320] sm:$0xff]  ;;  %v499_v46 = vld [vmem:[%s2286_s11 + $0x3a8] sm:$0xff]  ;;  %v449_v47 = vld [vmem:[%s2286_s11 + $0x218] sm:$0xff] }
  0x56   : > { %1040 = vmatpush.msrb.mxu0 %v459_v7  ;;  %1059 = vmatpush.msrb.mxu1 %v476_v8  ;;  %v466_v48 = vld [vmem:[%s2286_s11 + $0x2a0] sm:$0xff]  ;;  %v481_v49 = vld [vmem:[%s2286_s11 + $0x318] sm:$0xff]  ;;  %v448_v51 = vld [vmem:[%s2286_s11 + $0x210] sm:$0xff] }
  0x57   : > { %1080 = vmatpush.msrb.mxu2 %v491_v9  ;;  %1099 = vmatpush.msrb.mxu3 %v508_v10  ;;  %v498_v50 = vld [vmem:[%s2286_s11 + $0x3a0] sm:$0xff]  ;;  %v465_v52 = vld [vmem:[%s2286_s11 + $0x298] sm:$0xff]  ;;  %v480_v53 = vld [vmem:[%s2286_s11 + $0x310] sm:$0xff] }
  0x58   : > { %1041 = vmatpush.msrb.mxu0 %v458_v11  ;;  %1060 = vmatpush.msrb.mxu1 %v475_v12  ;;  %v497_v54 = vld [vmem:[%s2286_s11 + $0x398] sm:$0xff]  ;;  %v447_v55 = vld [vmem:[%s2286_s11 + $0x208] sm:$0xff]  ;;  %v464_v56 = vld [vmem:[%s2286_s11 + $0x290] sm:$0xff] }
  0x59   : > { %1081 = vmatpush.msrb.mxu2 %v490_v13  ;;  %1100 = vmatpush.msrb.mxu3 %v507_v14  ;;  %v479_v57 = vld [vmem:[%s2286_s11 + $0x308] sm:$0xff]  ;;  %v496_v58 = vld [vmem:[%s2286_s11 + $0x390] sm:$0xff]  ;;  %v446_v60 = vld [vmem:[%s2286_s11 + $0x200] sm:$0xff] }
  0x5a   : > { %1042 = vmatpush.msrb.mxu0 %v457_v15  ;;  %1061 = vmatpush.msrb.mxu1 %v474_v16  ;;  %v348_v59 = vld [vmem:[%s2304_s6 + $0x10] sm:$0xff]  ;;  %v478_v62 = vld [vmem:[%s2286_s11 + $0x300] sm:$0xff]  ;;  %v346_v0 = vld [vmem:[%s2304_s6] sm:$0xff] }
  0x5b   : > { %1082 = vmatpush.msrb.mxu2 %v489_v17  ;;  %1101 = vmatpush.msrb.mxu3 %v506_v18  ;;  %v463_v61 = vld [vmem:[%s2286_s11 + $0x288] sm:$0xff]  ;;  %v349_v1 = vld [vmem:[%s2304_s6 + $0x18] sm:$0xff]  ;;  %v525_v2 = vld [vmem:[%s2286_s11 + $0x478] sm:$0xff] }
  0x5c   : > { %1043 = vmatpush.msrb.mxu0 %v456_v19  ;;  %1062 = vmatpush.msrb.mxu1 %v473_v20  ;;  %v495_v63 = vld [vmem:[%s2286_s11 + $0x388] sm:$0xff]  ;;  %v557_v3 = vld [vmem:[%s2286_s11 + $0x578] sm:$0xff]  ;;  %v462_v4 = vld [vmem:[%s2286_s11 + $0x280] sm:$0xff] }
  0x5d   : > { %1083 = vmatpush.msrb.mxu2 %v488_v21  ;;  %1102 = vmatpush.msrb.mxu3 %v505_v22  ;;  %v494_v5 = vld [vmem:[%s2286_s11 + $0x380] sm:$0xff]  ;;  %v524_v7 = vld [vmem:[%s2286_s11 + $0x470] sm:$0xff]  ;;  %v541_v8 = vld [vmem:[%s2286_s11 + $0x4f8] sm:$0xff] }
  0x5e   : > { %1044 = vmatpush.msrb.mxu0 %v455_v23  ;;  %1063 = vmatpush.msrb.mxu1 %v472_v24  ;;  %v347_v6 = vld [vmem:[%s2304_s6 + $0x8] sm:$0xff]  ;;  %v556_v9 = vld [vmem:[%s2286_s11 + $0x570] sm:$0xff]  ;;  %v573_v10 = vld [vmem:[%s2286_s11 + $0x5f8] sm:$0xff] }
  0x5f   : > { %1084 = vmatpush.msrb.mxu2 %v487_v25  ;;  %1103 = vmatpush.msrb.mxu3 %v504_v26  ;;  %v523_v11 = vld [vmem:[%s2286_s11 + $0x468] sm:$0xff]  ;;  %v540_v12 = vld [vmem:[%s2286_s11 + $0x4f0] sm:$0xff]  ;;  %v522_v16 = vld [vmem:[%s2286_s11 + $0x460] sm:$0xff] }
  0x60   : > { %1045 = vmatpush.msrb.mxu0 %v454_v27  ;;  %1064 = vmatpush.msrb.mxu1 %v471_v28  ;;  %v555_v13 = vld [vmem:[%s2286_s11 + $0x568] sm:$0xff]  ;;  %v572_v14 = vld [vmem:[%s2286_s11 + $0x5f0] sm:$0xff]  ;;  %v554_v18 = vld [vmem:[%s2286_s11 + $0x560] sm:$0xff] }
  0x61   : > { %1085 = vmatpush.msrb.mxu2 %v486_v29  ;;  %1104 = vmatpush.msrb.mxu3 %v503_v30  ;;  %v352_v15 = vld [vmem:[%s2304_s6 + $0x30] sm:$0xff]  ;;  %v350_v20 = vld [vmem:[%s2304_s6 + $0x20] sm:$0xff]  ;;  %v353_v21 = vld [vmem:[%s2304_s6 + $0x38] sm:$0xff] }
  0x62   : > { %1046 = vmatpush.msrb.mxu0 %v453_v31  ;;  %1065 = vmatpush.msrb.mxu1 %v470_v32  ;;  %v539_v17 = vld [vmem:[%s2286_s11 + $0x4e8] sm:$0xff]  ;;  %v521_v22 = vld [vmem:[%s2286_s11 + $0x458] sm:$0xff]  ;;  %v538_v23 = vld [vmem:[%s2286_s11 + $0x4e0] sm:$0xff] }
  0x63   : > { %1086 = vmatpush.msrb.mxu2 %v485_v33  ;;  %1105 = vmatpush.msrb.mxu3 %v502_v34  ;;  %v571_v19 = vld [vmem:[%s2286_s11 + $0x5e8] sm:$0xff]  ;;  %v553_v24 = vld [vmem:[%s2286_s11 + $0x558] sm:$0xff]  ;;  %v570_v25 = vld [vmem:[%s2286_s11 + $0x5e0] sm:$0xff] }
  0x64   : > { %1047 = vmatpush.msrb.mxu0 %v452_v35  ;;  %1066 = vmatpush.msrb.mxu1 %v469_v36  ;;  %v351_v26 = vld [vmem:[%s2304_s6 + $0x28] sm:$0xff]  ;;  %v520_v27 = vld [vmem:[%s2286_s11 + $0x450] sm:$0xff]  ;;  %v537_v28 = vld [vmem:[%s2286_s11 + $0x4d8] sm:$0xff] }
  0x65   : > { %1087 = vmatpush.msrb.mxu2 %v484_v37  ;;  %1106 = vmatpush.msrb.mxu3 %v501_v38  ;;  %v552_v29 = vld [vmem:[%s2286_s11 + $0x550] sm:$0xff]  ;;  %v569_v30 = vld [vmem:[%s2286_s11 + $0x5d8] sm:$0xff]  ;;  %v519_v31 = vld [vmem:[%s2286_s11 + $0x448] sm:$0xff] }
  0x66   : > { %1048 = vmatpush.msrb.mxu0 %v451_v39  ;;  %1067 = vmatpush.msrb.mxu1 %v468_v40  ;;  %v536_v32 = vld [vmem:[%s2286_s11 + $0x4d0] sm:$0xff]  ;;  %v551_v33 = vld [vmem:[%s2286_s11 + $0x548] sm:$0xff]  ;;  %v518_v35 = vld [vmem:[%s2286_s11 + $0x440] sm:$0xff] }
  0x67   : > { %1088 = vmatpush.msrb.mxu2 %v483_v41  ;;  %1107 = vmatpush.msrb.mxu3 %v500_v42  ;;  %v568_v34 = vld [vmem:[%s2286_s11 + $0x5d0] sm:$0xff]  ;;  %v535_v36 = vld [vmem:[%s2286_s11 + $0x4c8] sm:$0xff]  ;;  %v550_v37 = vld [vmem:[%s2286_s11 + $0x540] sm:$0xff] }
  0x68   : > { %1049 = vmatpush.msrb.mxu0 %v450_v43  ;;  %1068 = vmatpush.msrb.mxu1 %v467_v44  ;;  %v567_v38 = vld [vmem:[%s2286_s11 + $0x5c8] sm:$0xff]  ;;  %v517_v39 = vld [vmem:[%s2286_s11 + $0x438] sm:$0xff]  ;;  %v534_v40 = vld [vmem:[%s2286_s11 + $0x4c0] sm:$0xff] }
  0x69   : > { %1089 = vmatpush.msrb.mxu2 %v482_v45  ;;  %1108 = vmatpush.msrb.mxu3 %v499_v46  ;;  %v549_v41 = vld [vmem:[%s2286_s11 + $0x538] sm:$0xff]  ;;  %v566_v42 = vld [vmem:[%s2286_s11 + $0x5c0] sm:$0xff]  ;;  %v516_v43 = vld [vmem:[%s2286_s11 + $0x430] sm:$0xff] }
  0x6a   : > { %1050 = vmatpush.msrb.mxu0 %v449_v47  ;;  %1069 = vmatpush.msrb.mxu1 %v466_v48  ;;  %v533_v44 = vld [vmem:[%s2286_s11 + $0x4b8] sm:$0xff]  ;;  %v548_v45 = vld [vmem:[%s2286_s11 + $0x530] sm:$0xff]  ;;  %v515_v47 = vld [vmem:[%s2286_s11 + $0x428] sm:$0xff] }
  0x6b   : > { %1090 = vmatpush.msrb.mxu2 %v481_v49  ;;  %1109 = vmatpush.msrb.mxu3 %v498_v50  ;;  %v565_v46 = vld [vmem:[%s2286_s11 + $0x5b8] sm:$0xff]  ;;  %v532_v48 = vld [vmem:[%s2286_s11 + $0x4b0] sm:$0xff]  ;;  %v547_v49 = vld [vmem:[%s2286_s11 + $0x528] sm:$0xff] }
  0x6c   : > { %1051 = vmatpush.msrb.mxu0 %v448_v51  ;;  %1070 = vmatpush.msrb.mxu1 %v465_v52  ;;  %v564_v50 = vld [vmem:[%s2286_s11 + $0x5b0] sm:$0xff]  ;;  %v514_v51 = vld [vmem:[%s2286_s11 + $0x420] sm:$0xff]  ;;  %v531_v52 = vld [vmem:[%s2286_s11 + $0x4a8] sm:$0xff] }
  0x6d   : > { %1091 = vmatpush.msrb.mxu2 %v480_v53  ;;  %1110 = vmatpush.msrb.mxu3 %v497_v54  ;;  %v546_v53 = vld [vmem:[%s2286_s11 + $0x520] sm:$0xff]  ;;  %v563_v54 = vld [vmem:[%s2286_s11 + $0x5a8] sm:$0xff] }
  0x6e   : > { %1052 = vmatpush.msrb.mxu0 %v447_v55  ;;  %1071 = vmatpush.msrb.mxu1 %v464_v56  ;;  %v513_v55 = vld [vmem:[%s2286_s11 + $0x418] sm:$0xff]  ;;  %v530_v56 = vld [vmem:[%s2286_s11 + $0x4a0] sm:$0xff] }
  0x6f   : > { %1092 = vmatpush.msrb.mxu2 %v479_v57  ;;  %1111 = vmatpush.msrb.mxu3 %v496_v58  ;;  %v545_v57 = vld [vmem:[%s2286_s11 + $0x518] sm:$0xff]  ;;  %v562_v58 = vld [vmem:[%s2286_s11 + $0x5a0] sm:$0xff] }
  0x70   : > { %1014 = vmatmul.f32.vlgmr.msra.gmra.mxu2 %v348_v59  ;;  %1053 = vmatpush.msrb.mxu0 %v446_v60  ;;  %v512_v59 = vld [vmem:[%s2286_s11 + $0x410] sm:$0xff]  ;;  %v529_v60 = vld [vmem:[%s2286_s11 + $0x498] sm:$0xff] }
  0x71   : > { %1072 = vmatpush.msrb.mxu1 %v463_v61  ;;  %1093 = vmatpush.msrb.mxu2 %v478_v62  ;;  %v544_v61 = vld [vmem:[%s2286_s11 + $0x510] sm:$0xff]  ;;  %v561_v62 = vld [vmem:[%s2286_s11 + $0x598] sm:$0xff] }
  0x72   : > { %1112 = vmatpush.msrb.mxu3 %v495_v63  ;;  %974 = vmatmul.f32.vlgmr.msra.gmra.mxu0 %v346_v0  ;;  %v511_v63 = vld [vmem:[%s2286_s11 + $0x408] sm:$0xff]  ;;  %v528_v0 = vld [vmem:[%s2286_s11 + $0x490] sm:$0xff] }
  0x73   : > { %1034 = vmatmul.f32.vlgmr.msra.gmra.mxu3 %v349_v1  ;;  %1118 = vmatpush.msra.mxu0 %v525_v2  ;;  %v543_v1 = vld [vmem:[%s2286_s11 + $0x508] sm:$0xff]  ;;  %v560_v2 = vld [vmem:[%s2286_s11 + $0x590] sm:$0xff] }
  0x74   : > { %1158 = vmatpush.msra.mxu2 %v557_v3  ;;  %1073 = vmatpush.msrb.mxu1 %v462_v4  ;;  %v510_v3 = vld [vmem:[%s2286_s11 + $0x400] sm:$0xff]  ;;  %v527_v4 = vld [vmem:[%s2286_s11 + $0x488] sm:$0xff] }
  0x75   : > { %1113 = vmatpush.msrb.mxu3 %v494_v5  ;;  %994 = vmatmul.f32.vlgmr.msra.gmra.mxu1 %v347_v6  ;;  %v542_v5 = vld [vmem:[%s2286_s11 + $0x500] sm:$0xff]  ;;  %v559_v6 = vld [vmem:[%s2286_s11 + $0x588] sm:$0xff] }
  0x76   : > { %1119 = vmatpush.msra.mxu0 %v524_v7  ;;  %1138 = vmatpush.msra.mxu1 %v541_v8  ;;  %v354_v7 = vld [vmem:[%s2304_s6 + $0x40] sm:$0xff]  ;;  %v356_v8 = vld [vmem:[%s2304_s6 + $0x50] sm:$0xff] }
  0x77   : > { %1159 = vmatpush.msra.mxu2 %v556_v9  ;;  %1178 = vmatpush.msra.mxu3 %v573_v10  ;;  %v589_v9 = vld [vmem:[%s2286_s11 + $0x678] sm:$0xff] }
  0x78   : > { %1120 = vmatpush.msra.mxu0 %v523_v11  ;;  %1139 = vmatpush.msra.mxu1 %v540_v12  ;;  %v621_v10 = vld [vmem:[%s2286_s11 + $0x778] sm:$0xff]  ;;  %v526_v11 = vld [vmem:[%s2286_s11 + $0x480] sm:$0xff] }
  0x79   : > { %1160 = vmatpush.msra.mxu2 %v555_v13  ;;  %1179 = vmatpush.msra.mxu3 %v572_v14  ;;  %v558_v12 = vld [vmem:[%s2286_s11 + $0x580] sm:$0xff]  ;;  %v357_v14 = vld [vmem:[%s2304_s6 + $0x58] sm:$0xff] }
  0x7a   : > { %1094 = vmatmul.f32.vlgmr.msrb.gmra.mxu2 %v352_v15  ;;  %1121 = vmatpush.msra.mxu0 %v522_v16  ;;  %v355_v13 = vld [vmem:[%s2304_s6 + $0x48] sm:$0xff]  ;;  %v588_v15 = vld [vmem:[%s2286_s11 + $0x670] sm:$0xff]  ;;  %v605_v16 = vld [vmem:[%s2286_s11 + $0x6f8] sm:$0xff] }
  0x7b   : > { %1140 = vmatpush.msra.mxu1 %v539_v17  ;;  %1161 = vmatpush.msra.mxu2 %v554_v18  ;;  %v620_v17 = vld [vmem:[%s2286_s11 + $0x770] sm:$0xff]  ;;  %v637_v18 = vld [vmem:[%s2286_s11 + $0x7f8] sm:$0xff] }
  0x7c   : > { %1180 = vmatpush.msra.mxu3 %v571_v19  ;;  %1054 = vmatmul.f32.vlgmr.msrb.gmra.mxu0 %v350_v20  ;;  %v587_v19 = vld [vmem:[%s2286_s11 + $0x668] sm:$0xff]  ;;  %v604_v20 = vld [vmem:[%s2286_s11 + $0x6f0] sm:$0xff] }
  0x7d   : > { %1114 = vmatmul.f32.vlgmr.msrb.gmra.mxu3 %v353_v21  ;;  %1122 = vmatpush.msra.mxu0 %v521_v22  ;;  %v619_v21 = vld [vmem:[%s2286_s11 + $0x768] sm:$0xff]  ;;  %v636_v22 = vld [vmem:[%s2286_s11 + $0x7f0] sm:$0xff] }
  0x7e   : > { %1141 = vmatpush.msra.mxu1 %v538_v23  ;;  %1162 = vmatpush.msra.mxu2 %v553_v24  ;;  %v586_v23 = vld [vmem:[%s2286_s11 + $0x660] sm:$0xff]  ;;  %v603_v24 = vld [vmem:[%s2286_s11 + $0x6e8] sm:$0xff] }
  0x7f   : > { %1181 = vmatpush.msra.mxu3 %v570_v25  ;;  %1074 = vmatmul.f32.vlgmr.msrb.gmra.mxu1 %v351_v26  ;;  %v618_v25 = vld [vmem:[%s2286_s11 + $0x760] sm:$0xff]  ;;  %v635_v26 = vld [vmem:[%s2286_s11 + $0x7e8] sm:$0xff] }
  0x80   : > { %1123 = vmatpush.msra.mxu0 %v520_v27  ;;  %1142 = vmatpush.msra.mxu1 %v537_v28  ;;  %v585_v27 = vld [vmem:[%s2286_s11 + $0x658] sm:$0xff]  ;;  %v602_v28 = vld [vmem:[%s2286_s11 + $0x6e0] sm:$0xff] }
  0x81   : > { %1163 = vmatpush.msra.mxu2 %v552_v29  ;;  %1182 = vmatpush.msra.mxu3 %v569_v30  ;;  %v617_v29 = vld [vmem:[%s2286_s11 + $0x758] sm:$0xff]  ;;  %v634_v30 = vld [vmem:[%s2286_s11 + $0x7e0] sm:$0xff] }
  0x82   : > { %1124 = vmatpush.msra.mxu0 %v519_v31  ;;  %1143 = vmatpush.msra.mxu1 %v536_v32  ;;  %v584_v31 = vld [vmem:[%s2286_s11 + $0x650] sm:$0xff]  ;;  %v601_v32 = vld [vmem:[%s2286_s11 + $0x6d8] sm:$0xff] }
  0x83   : > { %1164 = vmatpush.msra.mxu2 %v551_v33  ;;  %1183 = vmatpush.msra.mxu3 %v568_v34  ;;  %v616_v33 = vld [vmem:[%s2286_s11 + $0x750] sm:$0xff]  ;;  %v633_v34 = vld [vmem:[%s2286_s11 + $0x7d8] sm:$0xff] }
  0x84   : > { %1125 = vmatpush.msra.mxu0 %v518_v35  ;;  %1144 = vmatpush.msra.mxu1 %v535_v36  ;;  %v583_v35 = vld [vmem:[%s2286_s11 + $0x648] sm:$0xff]  ;;  %v600_v36 = vld [vmem:[%s2286_s11 + $0x6d0] sm:$0xff] }
  0x85   : > { %1165 = vmatpush.msra.mxu2 %v550_v37  ;;  %1184 = vmatpush.msra.mxu3 %v567_v38  ;;  %v615_v37 = vld [vmem:[%s2286_s11 + $0x748] sm:$0xff]  ;;  %v632_v38 = vld [vmem:[%s2286_s11 + $0x7d0] sm:$0xff] }
  0x86   : > { %1126 = vmatpush.msra.mxu0 %v517_v39  ;;  %1145 = vmatpush.msra.mxu1 %v534_v40  ;;  %v582_v39 = vld [vmem:[%s2286_s11 + $0x640] sm:$0xff]  ;;  %v599_v40 = vld [vmem:[%s2286_s11 + $0x6c8] sm:$0xff] }
  0x87   : > { %1166 = vmatpush.msra.mxu2 %v549_v41  ;;  %1185 = vmatpush.msra.mxu3 %v566_v42  ;;  %v614_v41 = vld [vmem:[%s2286_s11 + $0x740] sm:$0xff]  ;;  %v631_v42 = vld [vmem:[%s2286_s11 + $0x7c8] sm:$0xff] }
  0x88   : > { %1127 = vmatpush.msra.mxu0 %v516_v43  ;;  %1146 = vmatpush.msra.mxu1 %v533_v44  ;;  %v581_v43 = vld [vmem:[%s2286_s11 + $0x638] sm:$0xff]  ;;  %v598_v44 = vld [vmem:[%s2286_s11 + $0x6c0] sm:$0xff] }
  0x89   : > { %1167 = vmatpush.msra.mxu2 %v548_v45  ;;  %1186 = vmatpush.msra.mxu3 %v565_v46  ;;  %v613_v45 = vld [vmem:[%s2286_s11 + $0x738] sm:$0xff]  ;;  %v630_v46 = vld [vmem:[%s2286_s11 + $0x7c0] sm:$0xff] }
  0x8a   : > { %1128 = vmatpush.msra.mxu0 %v515_v47  ;;  %1147 = vmatpush.msra.mxu1 %v532_v48  ;;  %v580_v47 = vld [vmem:[%s2286_s11 + $0x630] sm:$0xff]  ;;  %v597_v48 = vld [vmem:[%s2286_s11 + $0x6b8] sm:$0xff] }
  0x8b   : > { %1168 = vmatpush.msra.mxu2 %v547_v49  ;;  %1187 = vmatpush.msra.mxu3 %v564_v50  ;;  %v612_v49 = vld [vmem:[%s2286_s11 + $0x730] sm:$0xff]  ;;  %v629_v50 = vld [vmem:[%s2286_s11 + $0x7b8] sm:$0xff] }
  0x8c   : > { %1129 = vmatpush.msra.mxu0 %v514_v51  ;;  %1148 = vmatpush.msra.mxu1 %v531_v52  ;;  %v579_v51 = vld [vmem:[%s2286_s11 + $0x628] sm:$0xff]  ;;  %v596_v52 = vld [vmem:[%s2286_s11 + $0x6b0] sm:$0xff] }
  0x8d   : > { %1169 = vmatpush.msra.mxu2 %v546_v53  ;;  %1188 = vmatpush.msra.mxu3 %v563_v54  ;;  %v611_v53 = vld [vmem:[%s2286_s11 + $0x728] sm:$0xff]  ;;  %v628_v54 = vld [vmem:[%s2286_s11 + $0x7b0] sm:$0xff] }
  0x8e   : > { %1130 = vmatpush.msra.mxu0 %v513_v55  ;;  %1149 = vmatpush.msra.mxu1 %v530_v56  ;;  %v578_v55 = vld [vmem:[%s2286_s11 + $0x620] sm:$0xff]  ;;  %v595_v56 = vld [vmem:[%s2286_s11 + $0x6a8] sm:$0xff] }
  0x8f   : > { %1170 = vmatpush.msra.mxu2 %v545_v57  ;;  %1189 = vmatpush.msra.mxu3 %v562_v58  ;;  %v610_v57 = vld [vmem:[%s2286_s11 + $0x720] sm:$0xff]  ;;  %v627_v58 = vld [vmem:[%s2286_s11 + $0x7a8] sm:$0xff] }
  0x90   : > { %1131 = vmatpush.msra.mxu0 %v512_v59  ;;  %1150 = vmatpush.msra.mxu1 %v529_v60  ;;  %v577_v59 = vld [vmem:[%s2286_s11 + $0x618] sm:$0xff]  ;;  %v594_v60 = vld [vmem:[%s2286_s11 + $0x6a0] sm:$0xff] }
  0x91   : > { %1171 = vmatpush.msra.mxu2 %v544_v61  ;;  %1190 = vmatpush.msra.mxu3 %v561_v62  ;;  %v609_v61 = vld [vmem:[%s2286_s11 + $0x718] sm:$0xff]  ;;  %v626_v62 = vld [vmem:[%s2286_s11 + $0x7a0] sm:$0xff] }
  0x92   : > { %1132 = vmatpush.msra.mxu0 %v511_v63  ;;  %1151 = vmatpush.msra.mxu1 %v528_v0  ;;  %v576_v63 = vld [vmem:[%s2286_s11 + $0x610] sm:$0xff]  ;;  %v593_v0 = vld [vmem:[%s2286_s11 + $0x698] sm:$0xff] }
  0x93   : > { %1172 = vmatpush.msra.mxu2 %v543_v1  ;;  %1191 = vmatpush.msra.mxu3 %v560_v2  ;;  %v608_v1 = vld [vmem:[%s2286_s11 + $0x710] sm:$0xff]  ;;  %v625_v2 = vld [vmem:[%s2286_s11 + $0x798] sm:$0xff] }
  0x94   : > { %1133 = vmatpush.msra.mxu0 %v510_v3  ;;  %1152 = vmatpush.msra.mxu1 %v527_v4  ;;  %v575_v3 = vld [vmem:[%s2286_s11 + $0x608] sm:$0xff]  ;;  %v592_v4 = vld [vmem:[%s2286_s11 + $0x690] sm:$0xff] }
  0x95   : > { %1173 = vmatpush.msra.mxu2 %v542_v5  ;;  %1192 = vmatpush.msra.mxu3 %v559_v6  ;;  %v607_v5 = vld [vmem:[%s2286_s11 + $0x708] sm:$0xff]  ;;  %v624_v6 = vld [vmem:[%s2286_s11 + $0x790] sm:$0xff] }
  0x96   : > { %1134 = vmatmul.f32.vlgmr.msra.gmra.mxu0 %v354_v7  ;;  %1174 = vmatmul.f32.vlgmr.msra.gmra.mxu2 %v356_v8  ;;  %v574_v7 = vld [vmem:[%s2286_s11 + $0x600] sm:$0xff]  ;;  %v591_v8 = vld [vmem:[%s2286_s11 + $0x688] sm:$0xff] }
  0x97   : > { %1198 = vmatpush.msrb.mxu0 %v589_v9  ;;  %1238 = vmatpush.msrb.mxu2 %v621_v10  ;;  %v606_v9 = vld [vmem:[%s2286_s11 + $0x700] sm:$0xff]  ;;  %v623_v10 = vld [vmem:[%s2286_s11 + $0x788] sm:$0xff] }
  0x98   : > { %1153 = vmatpush.msra.mxu1 %v526_v11  ;;  %1193 = vmatpush.msra.mxu3 %v558_v12  ;;  %v358_v11 = vld [vmem:[%s2304_s6 + $0x60] sm:$0xff]  ;;  %v360_v12 = vld [vmem:[%s2304_s6 + $0x70] sm:$0xff] }
  0x99   : > { %1154 = vmatmul.f32.vlgmr.msra.gmra.mxu1 %v355_v13  ;;  %1194 = vmatmul.f32.vlgmr.msra.gmra.mxu3 %v357_v14  ;;  %v653_v13 = vld [vmem:[%s2286_s11 + $0x878] sm:$0xff] }
  0x9a   : > { %1199 = vmatpush.msrb.mxu0 %v588_v15  ;;  %1218 = vmatpush.msrb.mxu1 %v605_v16  ;;  %v685_v14 = vld [vmem:[%s2286_s11 + $0x978] sm:$0xff]  ;;  %v590_v15 = vld [vmem:[%s2286_s11 + $0x680] sm:$0xff] }
  0x9b   : > { %1239 = vmatpush.msrb.mxu2 %v620_v17  ;;  %1258 = vmatpush.msrb.mxu3 %v637_v18  ;;  %v622_v16 = vld [vmem:[%s2286_s11 + $0x780] sm:$0xff]  ;;  %v361_v18 = vld [vmem:[%s2304_s6 + $0x78] sm:$0xff] }
  0x9c   : > { %1200 = vmatpush.msrb.mxu0 %v587_v19  ;;  %1219 = vmatpush.msrb.mxu1 %v604_v20  ;;  %v359_v17 = vld [vmem:[%s2304_s6 + $0x68] sm:$0xff]  ;;  %v652_v19 = vld [vmem:[%s2286_s11 + $0x870] sm:$0xff]  ;;  %v669_v20 = vld [vmem:[%s2286_s11 + $0x8f8] sm:$0xff] }
  0x9d   : > { %1240 = vmatpush.msrb.mxu2 %v619_v21  ;;  %1259 = vmatpush.msrb.mxu3 %v636_v22  ;;  %v684_v21 = vld [vmem:[%s2286_s11 + $0x970] sm:$0xff]  ;;  %v701_v22 = vld [vmem:[%s2286_s11 + $0x9f8] sm:$0xff] }
  0x9e   : > { %1201 = vmatpush.msrb.mxu0 %v586_v23  ;;  %1220 = vmatpush.msrb.mxu1 %v603_v24  ;;  %v651_v23 = vld [vmem:[%s2286_s11 + $0x868] sm:$0xff]  ;;  %v668_v24 = vld [vmem:[%s2286_s11 + $0x8f0] sm:$0xff] }
  0x9f   : > { %1241 = vmatpush.msrb.mxu2 %v618_v25  ;;  %1260 = vmatpush.msrb.mxu3 %v635_v26  ;;  %v683_v25 = vld [vmem:[%s2286_s11 + $0x968] sm:$0xff]  ;;  %v700_v26 = vld [vmem:[%s2286_s11 + $0x9f0] sm:$0xff] }
  0xa0   : > { %1202 = vmatpush.msrb.mxu0 %v585_v27  ;;  %1221 = vmatpush.msrb.mxu1 %v602_v28  ;;  %v650_v27 = vld [vmem:[%s2286_s11 + $0x860] sm:$0xff]  ;;  %v667_v28 = vld [vmem:[%s2286_s11 + $0x8e8] sm:$0xff] }
  0xa1   : > { %1242 = vmatpush.msrb.mxu2 %v617_v29  ;;  %1261 = vmatpush.msrb.mxu3 %v634_v30  ;;  %v682_v29 = vld [vmem:[%s2286_s11 + $0x960] sm:$0xff]  ;;  %v699_v30 = vld [vmem:[%s2286_s11 + $0x9e8] sm:$0xff] }
  0xa2   : > { %1203 = vmatpush.msrb.mxu0 %v584_v31  ;;  %1222 = vmatpush.msrb.mxu1 %v601_v32  ;;  %v649_v31 = vld [vmem:[%s2286_s11 + $0x858] sm:$0xff]  ;;  %v666_v32 = vld [vmem:[%s2286_s11 + $0x8e0] sm:$0xff] }
  0xa3   : > { %1243 = vmatpush.msrb.mxu2 %v616_v33  ;;  %1262 = vmatpush.msrb.mxu3 %v633_v34  ;;  %v681_v33 = vld [vmem:[%s2286_s11 + $0x958] sm:$0xff]  ;;  %v698_v34 = vld [vmem:[%s2286_s11 + $0x9e0] sm:$0xff] }
  0xa4   : > { %1204 = vmatpush.msrb.mxu0 %v583_v35  ;;  %1223 = vmatpush.msrb.mxu1 %v600_v36  ;;  %v648_v35 = vld [vmem:[%s2286_s11 + $0x850] sm:$0xff]  ;;  %v665_v36 = vld [vmem:[%s2286_s11 + $0x8d8] sm:$0xff] }
  0xa5   : > { %1244 = vmatpush.msrb.mxu2 %v615_v37  ;;  %1263 = vmatpush.msrb.mxu3 %v632_v38  ;;  %v680_v37 = vld [vmem:[%s2286_s11 + $0x950] sm:$0xff]  ;;  %v697_v38 = vld [vmem:[%s2286_s11 + $0x9d8] sm:$0xff] }
  0xa6   : > { %1205 = vmatpush.msrb.mxu0 %v582_v39  ;;  %1224 = vmatpush.msrb.mxu1 %v599_v40  ;;  %v647_v39 = vld [vmem:[%s2286_s11 + $0x848] sm:$0xff]  ;;  %v664_v40 = vld [vmem:[%s2286_s11 + $0x8d0] sm:$0xff] }
  0xa7   : > { %1245 = vmatpush.msrb.mxu2 %v614_v41  ;;  %1264 = vmatpush.msrb.mxu3 %v631_v42  ;;  %v679_v41 = vld [vmem:[%s2286_s11 + $0x948] sm:$0xff]  ;;  %v696_v42 = vld [vmem:[%s2286_s11 + $0x9d0] sm:$0xff] }
  0xa8   : > { %1206 = vmatpush.msrb.mxu0 %v581_v43  ;;  %1225 = vmatpush.msrb.mxu1 %v598_v44  ;;  %v646_v43 = vld [vmem:[%s2286_s11 + $0x840] sm:$0xff]  ;;  %v663_v44 = vld [vmem:[%s2286_s11 + $0x8c8] sm:$0xff] }
  0xa9   : > { %1246 = vmatpush.msrb.mxu2 %v613_v45  ;;  %1265 = vmatpush.msrb.mxu3 %v630_v46  ;;  %v678_v45 = vld [vmem:[%s2286_s11 + $0x940] sm:$0xff]  ;;  %v695_v46 = vld [vmem:[%s2286_s11 + $0x9c8] sm:$0xff] }
  0xaa   : > { %1207 = vmatpush.msrb.mxu0 %v580_v47  ;;  %1226 = vmatpush.msrb.mxu1 %v597_v48  ;;  %v645_v47 = vld [vmem:[%s2286_s11 + $0x838] sm:$0xff]  ;;  %v662_v48 = vld [vmem:[%s2286_s11 + $0x8c0] sm:$0xff] }
  0xab   : > { %1247 = vmatpush.msrb.mxu2 %v612_v49  ;;  %1266 = vmatpush.msrb.mxu3 %v629_v50  ;;  %v677_v49 = vld [vmem:[%s2286_s11 + $0x938] sm:$0xff]  ;;  %v694_v50 = vld [vmem:[%s2286_s11 + $0x9c0] sm:$0xff] }
  0xac   : > { %1208 = vmatpush.msrb.mxu0 %v579_v51  ;;  %1227 = vmatpush.msrb.mxu1 %v596_v52  ;;  %v644_v51 = vld [vmem:[%s2286_s11 + $0x830] sm:$0xff]  ;;  %v661_v52 = vld [vmem:[%s2286_s11 + $0x8b8] sm:$0xff] }
  0xad   : > { %1248 = vmatpush.msrb.mxu2 %v611_v53  ;;  %1267 = vmatpush.msrb.mxu3 %v628_v54  ;;  %v676_v53 = vld [vmem:[%s2286_s11 + $0x930] sm:$0xff]  ;;  %v693_v54 = vld [vmem:[%s2286_s11 + $0x9b8] sm:$0xff] }
  0xae   : > { %1209 = vmatpush.msrb.mxu0 %v578_v55  ;;  %1228 = vmatpush.msrb.mxu1 %v595_v56  ;;  %v643_v55 = vld [vmem:[%s2286_s11 + $0x828] sm:$0xff]  ;;  %v660_v56 = vld [vmem:[%s2286_s11 + $0x8b0] sm:$0xff] }
  0xaf   : > { %1249 = vmatpush.msrb.mxu2 %v610_v57  ;;  %1268 = vmatpush.msrb.mxu3 %v627_v58  ;;  %v675_v57 = vld [vmem:[%s2286_s11 + $0x928] sm:$0xff]  ;;  %v692_v58 = vld [vmem:[%s2286_s11 + $0x9b0] sm:$0xff] }
  0xb0   : > { %1210 = vmatpush.msrb.mxu0 %v577_v59  ;;  %1229 = vmatpush.msrb.mxu1 %v594_v60  ;;  %v642_v59 = vld [vmem:[%s2286_s11 + $0x820] sm:$0xff]  ;;  %v659_v60 = vld [vmem:[%s2286_s11 + $0x8a8] sm:$0xff] }
  0xb1   : > { %1250 = vmatpush.msrb.mxu2 %v609_v61  ;;  %1269 = vmatpush.msrb.mxu3 %v626_v62  ;;  %v674_v61 = vld [vmem:[%s2286_s11 + $0x920] sm:$0xff]  ;;  %v691_v62 = vld [vmem:[%s2286_s11 + $0x9a8] sm:$0xff] }
  0xb2   : > { %1211 = vmatpush.msrb.mxu0 %v576_v63  ;;  %1230 = vmatpush.msrb.mxu1 %v593_v0  ;;  %v641_v63 = vld [vmem:[%s2286_s11 + $0x818] sm:$0xff]  ;;  %v658_v0 = vld [vmem:[%s2286_s11 + $0x8a0] sm:$0xff] }
  0xb3   : > { %1251 = vmatpush.msrb.mxu2 %v608_v1  ;;  %1270 = vmatpush.msrb.mxu3 %v625_v2  ;;  %v673_v1 = vld [vmem:[%s2286_s11 + $0x918] sm:$0xff]  ;;  %v690_v2 = vld [vmem:[%s2286_s11 + $0x9a0] sm:$0xff] }
  0xb4   : > { %1212 = vmatpush.msrb.mxu0 %v575_v3  ;;  %1231 = vmatpush.msrb.mxu1 %v592_v4  ;;  %v640_v3 = vld [vmem:[%s2286_s11 + $0x810] sm:$0xff]  ;;  %v657_v4 = vld [vmem:[%s2286_s11 + $0x898] sm:$0xff] }
  0xb5   : > { %1252 = vmatpush.msrb.mxu2 %v607_v5  ;;  %1271 = vmatpush.msrb.mxu3 %v624_v6  ;;  %v672_v5 = vld [vmem:[%s2286_s11 + $0x910] sm:$0xff]  ;;  %v689_v6 = vld [vmem:[%s2286_s11 + $0x998] sm:$0xff] }
  0xb6   : > { %1213 = vmatpush.msrb.mxu0 %v574_v7  ;;  %1232 = vmatpush.msrb.mxu1 %v591_v8  ;;  %v639_v7 = vld [vmem:[%s2286_s11 + $0x808] sm:$0xff]  ;;  %v656_v8 = vld [vmem:[%s2286_s11 + $0x890] sm:$0xff] }
  0xb7   : > { %1253 = vmatpush.msrb.mxu2 %v606_v9  ;;  %1272 = vmatpush.msrb.mxu3 %v623_v10  ;;  %v671_v9 = vld [vmem:[%s2286_s11 + $0x908] sm:$0xff]  ;;  %v688_v10 = vld [vmem:[%s2286_s11 + $0x990] sm:$0xff] }
  0xb8   : > { %1214 = vmatmul.f32.vlgmr.msrb.gmra.mxu0 %v358_v11  ;;  %1254 = vmatmul.f32.vlgmr.msrb.gmra.mxu2 %v360_v12  ;;  %v638_v11 = vld [vmem:[%s2286_s11 + $0x800] sm:$0xff]  ;;  %v655_v12 = vld [vmem:[%s2286_s11 + $0x888] sm:$0xff] }
  0xb9   : > { %1278 = vmatpush.msra.mxu0 %v653_v13  ;;  %1318 = vmatpush.msra.mxu2 %v685_v14  ;;  %v670_v13 = vld [vmem:[%s2286_s11 + $0x900] sm:$0xff]  ;;  %v687_v14 = vld [vmem:[%s2286_s11 + $0x988] sm:$0xff] }
  0xba   : > { %1233 = vmatpush.msrb.mxu1 %v590_v15  ;;  %1273 = vmatpush.msrb.mxu3 %v622_v16  ;;  %v362_v15 = vld [vmem:[%s2304_s6 + $0x80] sm:$0xff]  ;;  %v364_v16 = vld [vmem:[%s2304_s6 + $0x90] sm:$0xff] }
  0xbb   : > { %1234 = vmatmul.f32.vlgmr.msrb.gmra.mxu1 %v359_v17  ;;  %1274 = vmatmul.f32.vlgmr.msrb.gmra.mxu3 %v361_v18  ;;  %v717_v17 = vld [vmem:[%s2286_s11 + $0xa78] sm:$0xff] }
  0xbc   : > { %1279 = vmatpush.msra.mxu0 %v652_v19  ;;  %1298 = vmatpush.msra.mxu1 %v669_v20  ;;  %v749_v18 = vld [vmem:[%s2286_s11 + $0xb78] sm:$0xff]  ;;  %v654_v19 = vld [vmem:[%s2286_s11 + $0x880] sm:$0xff] }
  0xbd   : > { %1319 = vmatpush.msra.mxu2 %v684_v21  ;;  %1338 = vmatpush.msra.mxu3 %v701_v22  ;;  %v686_v20 = vld [vmem:[%s2286_s11 + $0x980] sm:$0xff]  ;;  %v365_v22 = vld [vmem:[%s2304_s6 + $0x98] sm:$0xff] }
  0xbe   : > { %1280 = vmatpush.msra.mxu0 %v651_v23  ;;  %1299 = vmatpush.msra.mxu1 %v668_v24  ;;  %v363_v21 = vld [vmem:[%s2304_s6 + $0x88] sm:$0xff]  ;;  %v716_v23 = vld [vmem:[%s2286_s11 + $0xa70] sm:$0xff]  ;;  %v733_v24 = vld [vmem:[%s2286_s11 + $0xaf8] sm:$0xff] }
  0xbf   : > { %1320 = vmatpush.msra.mxu2 %v683_v25  ;;  %1339 = vmatpush.msra.mxu3 %v700_v26  ;;  %v748_v25 = vld [vmem:[%s2286_s11 + $0xb70] sm:$0xff]  ;;  %v765_v26 = vld [vmem:[%s2286_s11 + $0xbf8] sm:$0xff] }
  0xc0   : > { %1281 = vmatpush.msra.mxu0 %v650_v27  ;;  %1300 = vmatpush.msra.mxu1 %v667_v28  ;;  %v715_v27 = vld [vmem:[%s2286_s11 + $0xa68] sm:$0xff]  ;;  %v732_v28 = vld [vmem:[%s2286_s11 + $0xaf0] sm:$0xff] }
  0xc1   : > { %1321 = vmatpush.msra.mxu2 %v682_v29  ;;  %1340 = vmatpush.msra.mxu3 %v699_v30  ;;  %v747_v29 = vld [vmem:[%s2286_s11 + $0xb68] sm:$0xff]  ;;  %v764_v30 = vld [vmem:[%s2286_s11 + $0xbf0] sm:$0xff] }
  0xc2   : > { %1282 = vmatpush.msra.mxu0 %v649_v31  ;;  %1301 = vmatpush.msra.mxu1 %v666_v32  ;;  %v714_v31 = vld [vmem:[%s2286_s11 + $0xa60] sm:$0xff]  ;;  %v731_v32 = vld [vmem:[%s2286_s11 + $0xae8] sm:$0xff] }
  0xc3   : > { %1322 = vmatpush.msra.mxu2 %v681_v33  ;;  %1341 = vmatpush.msra.mxu3 %v698_v34  ;;  %v746_v33 = vld [vmem:[%s2286_s11 + $0xb60] sm:$0xff]  ;;  %v763_v34 = vld [vmem:[%s2286_s11 + $0xbe8] sm:$0xff] }
  0xc4   : > { %1283 = vmatpush.msra.mxu0 %v648_v35  ;;  %1302 = vmatpush.msra.mxu1 %v665_v36  ;;  %v713_v35 = vld [vmem:[%s2286_s11 + $0xa58] sm:$0xff]  ;;  %v730_v36 = vld [vmem:[%s2286_s11 + $0xae0] sm:$0xff] }
  0xc5   : > { %1323 = vmatpush.msra.mxu2 %v680_v37  ;;  %1342 = vmatpush.msra.mxu3 %v697_v38  ;;  %v745_v37 = vld [vmem:[%s2286_s11 + $0xb58] sm:$0xff]  ;;  %v762_v38 = vld [vmem:[%s2286_s11 + $0xbe0] sm:$0xff] }
  0xc6   : > { %1284 = vmatpush.msra.mxu0 %v647_v39  ;;  %1303 = vmatpush.msra.mxu1 %v664_v40  ;;  %v712_v39 = vld [vmem:[%s2286_s11 + $0xa50] sm:$0xff]  ;;  %v729_v40 = vld [vmem:[%s2286_s11 + $0xad8] sm:$0xff] }
  0xc7   : > { %1324 = vmatpush.msra.mxu2 %v679_v41  ;;  %1343 = vmatpush.msra.mxu3 %v696_v42  ;;  %v744_v41 = vld [vmem:[%s2286_s11 + $0xb50] sm:$0xff]  ;;  %v761_v42 = vld [vmem:[%s2286_s11 + $0xbd8] sm:$0xff] }
  0xc8   : > { %1285 = vmatpush.msra.mxu0 %v646_v43  ;;  %1304 = vmatpush.msra.mxu1 %v663_v44  ;;  %v711_v43 = vld [vmem:[%s2286_s11 + $0xa48] sm:$0xff]  ;;  %v728_v44 = vld [vmem:[%s2286_s11 + $0xad0] sm:$0xff] }
  0xc9   : > { %1325 = vmatpush.msra.mxu2 %v678_v45  ;;  %1344 = vmatpush.msra.mxu3 %v695_v46  ;;  %v743_v45 = vld [vmem:[%s2286_s11 + $0xb48] sm:$0xff]  ;;  %v760_v46 = vld [vmem:[%s2286_s11 + $0xbd0] sm:$0xff] }
  0xca   : > { %1286 = vmatpush.msra.mxu0 %v645_v47  ;;  %1305 = vmatpush.msra.mxu1 %v662_v48  ;;  %v710_v47 = vld [vmem:[%s2286_s11 + $0xa40] sm:$0xff]  ;;  %v727_v48 = vld [vmem:[%s2286_s11 + $0xac8] sm:$0xff] }
  0xcb   : > { %1326 = vmatpush.msra.mxu2 %v677_v49  ;;  %1345 = vmatpush.msra.mxu3 %v694_v50  ;;  %v742_v49 = vld [vmem:[%s2286_s11 + $0xb40] sm:$0xff]  ;;  %v759_v50 = vld [vmem:[%s2286_s11 + $0xbc8] sm:$0xff] }
  0xcc   : > { %1287 = vmatpush.msra.mxu0 %v644_v51  ;;  %1306 = vmatpush.msra.mxu1 %v661_v52  ;;  %v709_v51 = vld [vmem:[%s2286_s11 + $0xa38] sm:$0xff]  ;;  %v726_v52 = vld [vmem:[%s2286_s11 + $0xac0] sm:$0xff] }
  0xcd   : > { %1327 = vmatpush.msra.mxu2 %v676_v53  ;;  %1346 = vmatpush.msra.mxu3 %v693_v54  ;;  %v741_v53 = vld [vmem:[%s2286_s11 + $0xb38] sm:$0xff]  ;;  %v758_v54 = vld [vmem:[%s2286_s11 + $0xbc0] sm:$0xff] }
  0xce   : > { %1288 = vmatpush.msra.mxu0 %v643_v55  ;;  %1307 = vmatpush.msra.mxu1 %v660_v56  ;;  %v708_v55 = vld [vmem:[%s2286_s11 + $0xa30] sm:$0xff]  ;;  %v725_v56 = vld [vmem:[%s2286_s11 + $0xab8] sm:$0xff] }
  0xcf   : > { %1328 = vmatpush.msra.mxu2 %v675_v57  ;;  %1347 = vmatpush.msra.mxu3 %v692_v58  ;;  %v740_v57 = vld [vmem:[%s2286_s11 + $0xb30] sm:$0xff]  ;;  %v757_v58 = vld [vmem:[%s2286_s11 + $0xbb8] sm:$0xff] }
  0xd0   : > { %1289 = vmatpush.msra.mxu0 %v642_v59  ;;  %1308 = vmatpush.msra.mxu1 %v659_v60  ;;  %v707_v59 = vld [vmem:[%s2286_s11 + $0xa28] sm:$0xff]  ;;  %v724_v60 = vld [vmem:[%s2286_s11 + $0xab0] sm:$0xff] }
  0xd1   : > { %1329 = vmatpush.msra.mxu2 %v674_v61  ;;  %1348 = vmatpush.msra.mxu3 %v691_v62  ;;  %v739_v61 = vld [vmem:[%s2286_s11 + $0xb28] sm:$0xff]  ;;  %v756_v62 = vld [vmem:[%s2286_s11 + $0xbb0] sm:$0xff] }
  0xd2   : > { %1290 = vmatpush.msra.mxu0 %v641_v63  ;;  %1309 = vmatpush.msra.mxu1 %v658_v0  ;;  %v706_v63 = vld [vmem:[%s2286_s11 + $0xa20] sm:$0xff]  ;;  %v723_v0 = vld [vmem:[%s2286_s11 + $0xaa8] sm:$0xff] }
  0xd3   : > { %1330 = vmatpush.msra.mxu2 %v673_v1  ;;  %1349 = vmatpush.msra.mxu3 %v690_v2  ;;  %v738_v1 = vld [vmem:[%s2286_s11 + $0xb20] sm:$0xff]  ;;  %v755_v2 = vld [vmem:[%s2286_s11 + $0xba8] sm:$0xff] }
  0xd4   : > { %1291 = vmatpush.msra.mxu0 %v640_v3  ;;  %1310 = vmatpush.msra.mxu1 %v657_v4  ;;  %v705_v3 = vld [vmem:[%s2286_s11 + $0xa18] sm:$0xff]  ;;  %v722_v4 = vld [vmem:[%s2286_s11 + $0xaa0] sm:$0xff] }
  0xd5   : > { %1331 = vmatpush.msra.mxu2 %v672_v5  ;;  %1350 = vmatpush.msra.mxu3 %v689_v6  ;;  %v737_v5 = vld [vmem:[%s2286_s11 + $0xb18] sm:$0xff]  ;;  %v754_v6 = vld [vmem:[%s2286_s11 + $0xba0] sm:$0xff] }
  0xd6   : > { %1292 = vmatpush.msra.mxu0 %v639_v7  ;;  %1311 = vmatpush.msra.mxu1 %v656_v8  ;;  %v704_v7 = vld [vmem:[%s2286_s11 + $0xa10] sm:$0xff]  ;;  %v721_v8 = vld [vmem:[%s2286_s11 + $0xa98] sm:$0xff] }
  0xd7   : > { %1332 = vmatpush.msra.mxu2 %v671_v9  ;;  %1351 = vmatpush.msra.mxu3 %v688_v10  ;;  %v736_v9 = vld [vmem:[%s2286_s11 + $0xb10] sm:$0xff]  ;;  %v753_v10 = vld [vmem:[%s2286_s11 + $0xb98] sm:$0xff] }
  0xd8   : > { %1293 = vmatpush.msra.mxu0 %v638_v11  ;;  %1312 = vmatpush.msra.mxu1 %v655_v12  ;;  %v703_v11 = vld [vmem:[%s2286_s11 + $0xa08] sm:$0xff]  ;;  %v720_v12 = vld [vmem:[%s2286_s11 + $0xa90] sm:$0xff] }
  0xd9   : > { %1333 = vmatpush.msra.mxu2 %v670_v13  ;;  %1352 = vmatpush.msra.mxu3 %v687_v14  ;;  %v735_v13 = vld [vmem:[%s2286_s11 + $0xb08] sm:$0xff]  ;;  %v752_v14 = vld [vmem:[%s2286_s11 + $0xb90] sm:$0xff] }
  0xda   : > { %1294 = vmatmul.f32.vlgmr.msra.gmra.mxu0 %v362_v15  ;;  %1334 = vmatmul.f32.vlgmr.msra.gmra.mxu2 %v364_v16  ;;  %v702_v15 = vld [vmem:[%s2286_s11 + $0xa00] sm:$0xff]  ;;  %v719_v16 = vld [vmem:[%s2286_s11 + $0xa88] sm:$0xff] }
  0xdb   : > { %1358 = vmatpush.msrb.mxu0 %v717_v17  ;;  %1398 = vmatpush.msrb.mxu2 %v749_v18  ;;  %v734_v17 = vld [vmem:[%s2286_s11 + $0xb00] sm:$0xff]  ;;  %v751_v18 = vld [vmem:[%s2286_s11 + $0xb88] sm:$0xff] }
  0xdc   : > { %1313 = vmatpush.msra.mxu1 %v654_v19  ;;  %1353 = vmatpush.msra.mxu3 %v686_v20  ;;  %v366_v19 = vld [vmem:[%s2304_s6 + $0xa0] sm:$0xff]  ;;  %v368_v20 = vld [vmem:[%s2304_s6 + $0xb0] sm:$0xff] }
  0xdd   : > { %1314 = vmatmul.f32.vlgmr.msra.gmra.mxu1 %v363_v21  ;;  %1354 = vmatmul.f32.vlgmr.msra.gmra.mxu3 %v365_v22  ;;  %v781_v21 = vld [vmem:[%s2286_s11 + $0xc78] sm:$0xff] }
  0xde   : > { %1359 = vmatpush.msrb.mxu0 %v716_v23  ;;  %1378 = vmatpush.msrb.mxu1 %v733_v24  ;;  %v813_v22 = vld [vmem:[%s2286_s11 + $0xd78] sm:$0xff]  ;;  %v718_v23 = vld [vmem:[%s2286_s11 + $0xa80] sm:$0xff] }
  0xdf   : > { %1399 = vmatpush.msrb.mxu2 %v748_v25  ;;  %1418 = vmatpush.msrb.mxu3 %v765_v26  ;;  %v750_v24 = vld [vmem:[%s2286_s11 + $0xb80] sm:$0xff]  ;;  %v369_v26 = vld [vmem:[%s2304_s6 + $0xb8] sm:$0xff] }
  0xe0   : > { %1360 = vmatpush.msrb.mxu0 %v715_v27  ;;  %1379 = vmatpush.msrb.mxu1 %v732_v28  ;;  %v367_v25 = vld [vmem:[%s2304_s6 + $0xa8] sm:$0xff]  ;;  %v780_v27 = vld [vmem:[%s2286_s11 + $0xc70] sm:$0xff]  ;;  %v797_v28 = vld [vmem:[%s2286_s11 + $0xcf8] sm:$0xff] }
  0xe1   : > { %1400 = vmatpush.msrb.mxu2 %v747_v29  ;;  %1419 = vmatpush.msrb.mxu3 %v764_v30  ;;  %v812_v29 = vld [vmem:[%s2286_s11 + $0xd70] sm:$0xff]  ;;  %v829_v30 = vld [vmem:[%s2286_s11 + $0xdf8] sm:$0xff] }
  0xe2   : > { %1361 = vmatpush.msrb.mxu0 %v714_v31  ;;  %1380 = vmatpush.msrb.mxu1 %v731_v32  ;;  %v779_v31 = vld [vmem:[%s2286_s11 + $0xc68] sm:$0xff]  ;;  %v796_v32 = vld [vmem:[%s2286_s11 + $0xcf0] sm:$0xff] }
  0xe3   : > { %1401 = vmatpush.msrb.mxu2 %v746_v33  ;;  %1420 = vmatpush.msrb.mxu3 %v763_v34  ;;  %v811_v33 = vld [vmem:[%s2286_s11 + $0xd68] sm:$0xff]  ;;  %v828_v34 = vld [vmem:[%s2286_s11 + $0xdf0] sm:$0xff] }
  0xe4   : > { %1362 = vmatpush.msrb.mxu0 %v713_v35  ;;  %1381 = vmatpush.msrb.mxu1 %v730_v36  ;;  %v778_v35 = vld [vmem:[%s2286_s11 + $0xc60] sm:$0xff]  ;;  %v795_v36 = vld [vmem:[%s2286_s11 + $0xce8] sm:$0xff] }
  0xe5   : > { %1402 = vmatpush.msrb.mxu2 %v745_v37  ;;  %1421 = vmatpush.msrb.mxu3 %v762_v38  ;;  %v810_v37 = vld [vmem:[%s2286_s11 + $0xd60] sm:$0xff]  ;;  %v827_v38 = vld [vmem:[%s2286_s11 + $0xde8] sm:$0xff] }
  0xe6   : > { %1363 = vmatpush.msrb.mxu0 %v712_v39  ;;  %1382 = vmatpush.msrb.mxu1 %v729_v40  ;;  %v777_v39 = vld [vmem:[%s2286_s11 + $0xc58] sm:$0xff]  ;;  %v794_v40 = vld [vmem:[%s2286_s11 + $0xce0] sm:$0xff] }
  0xe7   : > { %1403 = vmatpush.msrb.mxu2 %v744_v41  ;;  %1422 = vmatpush.msrb.mxu3 %v761_v42  ;;  %v809_v41 = vld [vmem:[%s2286_s11 + $0xd58] sm:$0xff]  ;;  %v826_v42 = vld [vmem:[%s2286_s11 + $0xde0] sm:$0xff] }
  0xe8   : > { %1364 = vmatpush.msrb.mxu0 %v711_v43  ;;  %1383 = vmatpush.msrb.mxu1 %v728_v44  ;;  %v776_v43 = vld [vmem:[%s2286_s11 + $0xc50] sm:$0xff]  ;;  %v793_v44 = vld [vmem:[%s2286_s11 + $0xcd8] sm:$0xff] }
  0xe9   : > { %1404 = vmatpush.msrb.mxu2 %v743_v45  ;;  %1423 = vmatpush.msrb.mxu3 %v760_v46  ;;  %v808_v45 = vld [vmem:[%s2286_s11 + $0xd50] sm:$0xff]  ;;  %v825_v46 = vld [vmem:[%s2286_s11 + $0xdd8] sm:$0xff] }
  0xea   : > { %1365 = vmatpush.msrb.mxu0 %v710_v47  ;;  %1384 = vmatpush.msrb.mxu1 %v727_v48  ;;  %v775_v47 = vld [vmem:[%s2286_s11 + $0xc48] sm:$0xff]  ;;  %v792_v48 = vld [vmem:[%s2286_s11 + $0xcd0] sm:$0xff] }
  0xeb   : > { %1405 = vmatpush.msrb.mxu2 %v742_v49  ;;  %1424 = vmatpush.msrb.mxu3 %v759_v50  ;;  %v807_v49 = vld [vmem:[%s2286_s11 + $0xd48] sm:$0xff]  ;;  %v824_v50 = vld [vmem:[%s2286_s11 + $0xdd0] sm:$0xff] }
  0xec   : > { %1366 = vmatpush.msrb.mxu0 %v709_v51  ;;  %1385 = vmatpush.msrb.mxu1 %v726_v52  ;;  %v774_v51 = vld [vmem:[%s2286_s11 + $0xc40] sm:$0xff]  ;;  %v791_v52 = vld [vmem:[%s2286_s11 + $0xcc8] sm:$0xff] }
  0xed   : > { %1406 = vmatpush.msrb.mxu2 %v741_v53  ;;  %1425 = vmatpush.msrb.mxu3 %v758_v54  ;;  %v806_v53 = vld [vmem:[%s2286_s11 + $0xd40] sm:$0xff]  ;;  %v823_v54 = vld [vmem:[%s2286_s11 + $0xdc8] sm:$0xff] }
  0xee   : > { %1367 = vmatpush.msrb.mxu0 %v708_v55  ;;  %1386 = vmatpush.msrb.mxu1 %v725_v56  ;;  %v773_v55 = vld [vmem:[%s2286_s11 + $0xc38] sm:$0xff]  ;;  %v790_v56 = vld [vmem:[%s2286_s11 + $0xcc0] sm:$0xff] }
  0xef   : > { %1407 = vmatpush.msrb.mxu2 %v740_v57  ;;  %1426 = vmatpush.msrb.mxu3 %v757_v58  ;;  %v805_v57 = vld [vmem:[%s2286_s11 + $0xd38] sm:$0xff]  ;;  %v822_v58 = vld [vmem:[%s2286_s11 + $0xdc0] sm:$0xff] }
  0xf0   : > { %1368 = vmatpush.msrb.mxu0 %v707_v59  ;;  %1387 = vmatpush.msrb.mxu1 %v724_v60  ;;  %v772_v59 = vld [vmem:[%s2286_s11 + $0xc30] sm:$0xff]  ;;  %v789_v60 = vld [vmem:[%s2286_s11 + $0xcb8] sm:$0xff] }
  0xf1   : > { %1408 = vmatpush.msrb.mxu2 %v739_v61  ;;  %1427 = vmatpush.msrb.mxu3 %v756_v62  ;;  %v804_v61 = vld [vmem:[%s2286_s11 + $0xd30] sm:$0xff]  ;;  %v821_v62 = vld [vmem:[%s2286_s11 + $0xdb8] sm:$0xff] }
  0xf2   : > { %1369 = vmatpush.msrb.mxu0 %v706_v63  ;;  %1388 = vmatpush.msrb.mxu1 %v723_v0  ;;  %v771_v63 = vld [vmem:[%s2286_s11 + $0xc28] sm:$0xff]  ;;  %v788_v0 = vld [vmem:[%s2286_s11 + $0xcb0] sm:$0xff] }
  0xf3   : > { %1409 = vmatpush.msrb.mxu2 %v738_v1  ;;  %1428 = vmatpush.msrb.mxu3 %v755_v2  ;;  %v803_v1 = vld [vmem:[%s2286_s11 + $0xd28] sm:$0xff]  ;;  %v820_v2 = vld [vmem:[%s2286_s11 + $0xdb0] sm:$0xff] }
  0xf4   : > { %1370 = vmatpush.msrb.mxu0 %v705_v3  ;;  %1389 = vmatpush.msrb.mxu1 %v722_v4  ;;  %v770_v3 = vld [vmem:[%s2286_s11 + $0xc20] sm:$0xff]  ;;  %v787_v4 = vld [vmem:[%s2286_s11 + $0xca8] sm:$0xff] }
  0xf5   : > { %1410 = vmatpush.msrb.mxu2 %v737_v5  ;;  %1429 = vmatpush.msrb.mxu3 %v754_v6  ;;  %v802_v5 = vld [vmem:[%s2286_s11 + $0xd20] sm:$0xff]  ;;  %v819_v6 = vld [vmem:[%s2286_s11 + $0xda8] sm:$0xff] }
  0xf6   : > { %1371 = vmatpush.msrb.mxu0 %v704_v7  ;;  %1390 = vmatpush.msrb.mxu1 %v721_v8  ;;  %v769_v7 = vld [vmem:[%s2286_s11 + $0xc18] sm:$0xff]  ;;  %v786_v8 = vld [vmem:[%s2286_s11 + $0xca0] sm:$0xff] }
  0xf7   : > { %1411 = vmatpush.msrb.mxu2 %v736_v9  ;;  %1430 = vmatpush.msrb.mxu3 %v753_v10  ;;  %v801_v9 = vld [vmem:[%s2286_s11 + $0xd18] sm:$0xff]  ;;  %v818_v10 = vld [vmem:[%s2286_s11 + $0xda0] sm:$0xff] }
  0xf8   : > { %1372 = vmatpush.msrb.mxu0 %v703_v11  ;;  %1391 = vmatpush.msrb.mxu1 %v720_v12  ;;  %v768_v11 = vld [vmem:[%s2286_s11 + $0xc10] sm:$0xff]  ;;  %v785_v12 = vld [vmem:[%s2286_s11 + $0xc98] sm:$0xff] }
  0xf9   : > { %1412 = vmatpush.msrb.mxu2 %v735_v13  ;;  %1431 = vmatpush.msrb.mxu3 %v752_v14  ;;  %v800_v13 = vld [vmem:[%s2286_s11 + $0xd10] sm:$0xff]  ;;  %v817_v14 = vld [vmem:[%s2286_s11 + $0xd98] sm:$0xff] }
  0xfa   : > { %1373 = vmatpush.msrb.mxu0 %v702_v15  ;;  %1392 = vmatpush.msrb.mxu1 %v719_v16  ;;  %v767_v15 = vld [vmem:[%s2286_s11 + $0xc08] sm:$0xff]  ;;  %v784_v16 = vld [vmem:[%s2286_s11 + $0xc90] sm:$0xff] }
  0xfb   : > { %1413 = vmatpush.msrb.mxu2 %v734_v17  ;;  %1432 = vmatpush.msrb.mxu3 %v751_v18  ;;  %v799_v17 = vld [vmem:[%s2286_s11 + $0xd08] sm:$0xff]  ;;  %v816_v18 = vld [vmem:[%s2286_s11 + $0xd90] sm:$0xff] }
  0xfc   : > { %1374 = vmatmul.f32.vlgmr.msrb.gmra.mxu0 %v366_v19  ;;  %1414 = vmatmul.f32.vlgmr.msrb.gmra.mxu2 %v368_v20  ;;  %v766_v19 = vld [vmem:[%s2286_s11 + $0xc00] sm:$0xff]  ;;  %v783_v20 = vld [vmem:[%s2286_s11 + $0xc88] sm:$0xff] }
  0xfd   : > { %1438 = vmatpush.msra.mxu0 %v781_v21  ;;  %1478 = vmatpush.msra.mxu2 %v813_v22  ;;  %v798_v21 = vld [vmem:[%s2286_s11 + $0xd00] sm:$0xff]  ;;  %v815_v22 = vld [vmem:[%s2286_s11 + $0xd88] sm:$0xff] }
  0xfe   : > { %1393 = vmatpush.msrb.mxu1 %v718_v23  ;;  %1433 = vmatpush.msrb.mxu3 %v750_v24  ;;  %v370_v23 = vld [vmem:[%s2304_s6 + $0xc0] sm:$0xff]  ;;  %v372_v24 = vld [vmem:[%s2304_s6 + $0xd0] sm:$0xff] }
  0xff   : > { %1394 = vmatmul.f32.vlgmr.msrb.gmra.mxu1 %v367_v25  ;;  %1434 = vmatmul.f32.vlgmr.msrb.gmra.mxu3 %v369_v26  ;;  %v845_v25 = vld [vmem:[%s2286_s11 + $0xe78] sm:$0xff] }
 0x100   : > { %1439 = vmatpush.msra.mxu0 %v780_v27  ;;  %1458 = vmatpush.msra.mxu1 %v797_v28  ;;  %v877_v26 = vld [vmem:[%s2286_s11 + $0xf78] sm:$0xff]  ;;  %v782_v27 = vld [vmem:[%s2286_s11 + $0xc80] sm:$0xff] }
 0x101   : > { %1479 = vmatpush.msra.mxu2 %v812_v29  ;;  %1498 = vmatpush.msra.mxu3 %v829_v30  ;;  %v814_v28 = vld [vmem:[%s2286_s11 + $0xd80] sm:$0xff]  ;;  %v373_v30 = vld [vmem:[%s2304_s6 + $0xd8] sm:$0xff] }
 0x102   : > { %1440 = vmatpush.msra.mxu0 %v779_v31  ;;  %1459 = vmatpush.msra.mxu1 %v796_v32  ;;  %v371_v29 = vld [vmem:[%s2304_s6 + $0xc8] sm:$0xff]  ;;  %v844_v31 = vld [vmem:[%s2286_s11 + $0xe70] sm:$0xff]  ;;  %v861_v32 = vld [vmem:[%s2286_s11 + $0xef8] sm:$0xff] }
 0x103   : > { %1480 = vmatpush.msra.mxu2 %v811_v33  ;;  %1499 = vmatpush.msra.mxu3 %v828_v34  ;;  %v876_v33 = vld [vmem:[%s2286_s11 + $0xf70] sm:$0xff]  ;;  %v893_v34 = vld [vmem:[%s2286_s11 + $0xff8] sm:$0xff] }
 0x104   : > { %1441 = vmatpush.msra.mxu0 %v778_v35  ;;  %1460 = vmatpush.msra.mxu1 %v795_v36  ;;  %v843_v35 = vld [vmem:[%s2286_s11 + $0xe68] sm:$0xff]  ;;  %v860_v36 = vld [vmem:[%s2286_s11 + $0xef0] sm:$0xff] }
 0x105   : > { %1481 = vmatpush.msra.mxu2 %v810_v37  ;;  %1500 = vmatpush.msra.mxu3 %v827_v38  ;;  %v875_v37 = vld [vmem:[%s2286_s11 + $0xf68] sm:$0xff]  ;;  %v892_v38 = vld [vmem:[%s2286_s11 + $0xff0] sm:$0xff] }
 0x106   : > { %1442 = vmatpush.msra.mxu0 %v777_v39  ;;  %1461 = vmatpush.msra.mxu1 %v794_v40  ;;  %v842_v39 = vld [vmem:[%s2286_s11 + $0xe60] sm:$0xff]  ;;  %v859_v40 = vld [vmem:[%s2286_s11 + $0xee8] sm:$0xff] }
 0x107   : > { %1482 = vmatpush.msra.mxu2 %v809_v41  ;;  %1501 = vmatpush.msra.mxu3 %v826_v42  ;;  %v874_v41 = vld [vmem:[%s2286_s11 + $0xf60] sm:$0xff]  ;;  %v891_v42 = vld [vmem:[%s2286_s11 + $0xfe8] sm:$0xff] }
 0x108   : > { %1443 = vmatpush.msra.mxu0 %v776_v43  ;;  %1462 = vmatpush.msra.mxu1 %v793_v44  ;;  %v841_v43 = vld [vmem:[%s2286_s11 + $0xe58] sm:$0xff]  ;;  %v858_v44 = vld [vmem:[%s2286_s11 + $0xee0] sm:$0xff] }
 0x109   : > { %1483 = vmatpush.msra.mxu2 %v808_v45  ;;  %1502 = vmatpush.msra.mxu3 %v825_v46  ;;  %v873_v45 = vld [vmem:[%s2286_s11 + $0xf58] sm:$0xff]  ;;  %v890_v46 = vld [vmem:[%s2286_s11 + $0xfe0] sm:$0xff] }
 0x10a   : > { %1444 = vmatpush.msra.mxu0 %v775_v47  ;;  %1463 = vmatpush.msra.mxu1 %v792_v48  ;;  %v840_v47 = vld [vmem:[%s2286_s11 + $0xe50] sm:$0xff]  ;;  %v857_v48 = vld [vmem:[%s2286_s11 + $0xed8] sm:$0xff] }
 0x10b   : > { %1484 = vmatpush.msra.mxu2 %v807_v49  ;;  %1503 = vmatpush.msra.mxu3 %v824_v50  ;;  %v872_v49 = vld [vmem:[%s2286_s11 + $0xf50] sm:$0xff]  ;;  %v889_v50 = vld [vmem:[%s2286_s11 + $0xfd8] sm:$0xff] }
 0x10c   : > { %1445 = vmatpush.msra.mxu0 %v774_v51  ;;  %1464 = vmatpush.msra.mxu1 %v791_v52  ;;  %v839_v51 = vld [vmem:[%s2286_s11 + $0xe48] sm:$0xff]  ;;  %v856_v52 = vld [vmem:[%s2286_s11 + $0xed0] sm:$0xff] }
 0x10d   : > { %1485 = vmatpush.msra.mxu2 %v806_v53  ;;  %1504 = vmatpush.msra.mxu3 %v823_v54  ;;  %v871_v53 = vld [vmem:[%s2286_s11 + $0xf48] sm:$0xff]  ;;  %v888_v54 = vld [vmem:[%s2286_s11 + $0xfd0] sm:$0xff] }
 0x10e   : > { %1446 = vmatpush.msra.mxu0 %v773_v55  ;;  %1465 = vmatpush.msra.mxu1 %v790_v56  ;;  %v838_v55 = vld [vmem:[%s2286_s11 + $0xe40] sm:$0xff]  ;;  %v855_v56 = vld [vmem:[%s2286_s11 + $0xec8] sm:$0xff] }
 0x10f   : > { %1486 = vmatpush.msra.mxu2 %v805_v57  ;;  %1505 = vmatpush.msra.mxu3 %v822_v58  ;;  %v870_v57 = vld [vmem:[%s2286_s11 + $0xf40] sm:$0xff]  ;;  %v887_v58 = vld [vmem:[%s2286_s11 + $0xfc8] sm:$0xff] }
 0x110   : > { %1447 = vmatpush.msra.mxu0 %v772_v59  ;;  %1466 = vmatpush.msra.mxu1 %v789_v60  ;;  %v837_v59 = vld [vmem:[%s2286_s11 + $0xe38] sm:$0xff]  ;;  %v854_v60 = vld [vmem:[%s2286_s11 + $0xec0] sm:$0xff] }
 0x111   : > { %1487 = vmatpush.msra.mxu2 %v804_v61  ;;  %1506 = vmatpush.msra.mxu3 %v821_v62  ;;  %v869_v61 = vld [vmem:[%s2286_s11 + $0xf38] sm:$0xff]  ;;  %v886_v62 = vld [vmem:[%s2286_s11 + $0xfc0] sm:$0xff] }
 0x112   : > { %1448 = vmatpush.msra.mxu0 %v771_v63  ;;  %1467 = vmatpush.msra.mxu1 %v788_v0  ;;  %v836_v63 = vld [vmem:[%s2286_s11 + $0xe30] sm:$0xff]  ;;  %v853_v0 = vld [vmem:[%s2286_s11 + $0xeb8] sm:$0xff] }
 0x113   : > { %1488 = vmatpush.msra.mxu2 %v803_v1  ;;  %1507 = vmatpush.msra.mxu3 %v820_v2  ;;  %v868_v1 = vld [vmem:[%s2286_s11 + $0xf30] sm:$0xff]  ;;  %v885_v2 = vld [vmem:[%s2286_s11 + $0xfb8] sm:$0xff] }
 0x114   : > { %1449 = vmatpush.msra.mxu0 %v770_v3  ;;  %1468 = vmatpush.msra.mxu1 %v787_v4  ;;  %v835_v3 = vld [vmem:[%s2286_s11 + $0xe28] sm:$0xff]  ;;  %v852_v4 = vld [vmem:[%s2286_s11 + $0xeb0] sm:$0xff] }
 0x115   : > { %1489 = vmatpush.msra.mxu2 %v802_v5  ;;  %1508 = vmatpush.msra.mxu3 %v819_v6  ;;  %v867_v5 = vld [vmem:[%s2286_s11 + $0xf28] sm:$0xff]  ;;  %v884_v6 = vld [vmem:[%s2286_s11 + $0xfb0] sm:$0xff] }
 0x116   : > { %1450 = vmatpush.msra.mxu0 %v769_v7  ;;  %1469 = vmatpush.msra.mxu1 %v786_v8  ;;  %v834_v7 = vld [vmem:[%s2286_s11 + $0xe20] sm:$0xff]  ;;  %v851_v8 = vld [vmem:[%s2286_s11 + $0xea8] sm:$0xff] }
 0x117   : > { %1490 = vmatpush.msra.mxu2 %v801_v9  ;;  %1509 = vmatpush.msra.mxu3 %v818_v10  ;;  %v866_v9 = vld [vmem:[%s2286_s11 + $0xf20] sm:$0xff]  ;;  %v883_v10 = vld [vmem:[%s2286_s11 + $0xfa8] sm:$0xff] }
 0x118   : > { %1451 = vmatpush.msra.mxu0 %v768_v11  ;;  %1470 = vmatpush.msra.mxu1 %v785_v12  ;;  %v833_v11 = vld [vmem:[%s2286_s11 + $0xe18] sm:$0xff]  ;;  %v850_v12 = vld [vmem:[%s2286_s11 + $0xea0] sm:$0xff] }
 0x119   : > { %1491 = vmatpush.msra.mxu2 %v800_v13  ;;  %1510 = vmatpush.msra.mxu3 %v817_v14  ;;  %v865_v13 = vld [vmem:[%s2286_s11 + $0xf18] sm:$0xff]  ;;  %v882_v14 = vld [vmem:[%s2286_s11 + $0xfa0] sm:$0xff] }
 0x11a   : > { %1452 = vmatpush.msra.mxu0 %v767_v15  ;;  %1471 = vmatpush.msra.mxu1 %v784_v16  ;;  %v832_v15 = vld [vmem:[%s2286_s11 + $0xe10] sm:$0xff]  ;;  %v849_v16 = vld [vmem:[%s2286_s11 + $0xe98] sm:$0xff] }
 0x11b   : > { %1492 = vmatpush.msra.mxu2 %v799_v17  ;;  %1511 = vmatpush.msra.mxu3 %v816_v18  ;;  %v864_v17 = vld [vmem:[%s2286_s11 + $0xf10] sm:$0xff]  ;;  %v881_v18 = vld [vmem:[%s2286_s11 + $0xf98] sm:$0xff] }
 0x11c   : > { %1453 = vmatpush.msra.mxu0 %v766_v19  ;;  %1472 = vmatpush.msra.mxu1 %v783_v20  ;;  %v831_v19 = vld [vmem:[%s2286_s11 + $0xe08] sm:$0xff]  ;;  %v848_v20 = vld [vmem:[%s2286_s11 + $0xe90] sm:$0xff] }
 0x11d   : > { %1493 = vmatpush.msra.mxu2 %v798_v21  ;;  %1512 = vmatpush.msra.mxu3 %v815_v22  ;;  %v863_v21 = vld [vmem:[%s2286_s11 + $0xf08] sm:$0xff]  ;;  %v880_v22 = vld [vmem:[%s2286_s11 + $0xf90] sm:$0xff] }
 0x11e   : > { %1454 = vmatmul.f32.vlgmr.msra.gmra.mxu0 %v370_v23  ;;  %1494 = vmatmul.f32.vlgmr.msra.gmra.mxu2 %v372_v24  ;;  %v830_v23 = vld [vmem:[%s2286_s11 + $0xe00] sm:$0xff]  ;;  %v847_v24 = vld [vmem:[%s2286_s11 + $0xe88] sm:$0xff] }
 0x11f   : > { %1518 = vmatpush.msrb.mxu0 %v845_v25  ;;  %1558 = vmatpush.msrb.mxu2 %v877_v26  ;;  %v862_v25 = vld [vmem:[%s2286_s11 + $0xf00] sm:$0xff]  ;;  %v879_v26 = vld [vmem:[%s2286_s11 + $0xf88] sm:$0xff] }
 0x120   : > { %1473 = vmatpush.msra.mxu1 %v782_v27  ;;  %1513 = vmatpush.msra.mxu3 %v814_v28  ;;  %v374_v27 = vld [vmem:[%s2304_s6 + $0xe0] sm:$0xff]  ;;  %v376_v28 = vld [vmem:[%s2304_s6 + $0xf0] sm:$0xff] }
 0x121   : > { %1474 = vmatmul.f32.vlgmr.msra.gmra.mxu1 %v371_v29  ;;  %1514 = vmatmul.f32.vlgmr.msra.gmra.mxu3 %v373_v30  ;;  %v909_v29 = vld [vmem:[%s2286_s11 + $0x1078] sm:$0xff] }
 0x122   : > { %1519 = vmatpush.msrb.mxu0 %v844_v31  ;;  %1538 = vmatpush.msrb.mxu1 %v861_v32  ;;  %v941_v30 = vld [vmem:[%s2286_s11 + $0x1178] sm:$0xff]  ;;  %v846_v31 = vld [vmem:[%s2286_s11 + $0xe80] sm:$0xff] }
 0x123   : > { %1559 = vmatpush.msrb.mxu2 %v876_v33  ;;  %1578 = vmatpush.msrb.mxu3 %v893_v34  ;;  %v878_v32 = vld [vmem:[%s2286_s11 + $0xf80] sm:$0xff]  ;;  %v377_v34 = vld [vmem:[%s2304_s6 + $0xf8] sm:$0xff] }
 0x124   : > { %1520 = vmatpush.msrb.mxu0 %v843_v35  ;;  %1539 = vmatpush.msrb.mxu1 %v860_v36  ;;  %v375_v33 = vld [vmem:[%s2304_s6 + $0xe8] sm:$0xff]  ;;  %v908_v35 = vld [vmem:[%s2286_s11 + $0x1070] sm:$0xff]  ;;  %v925_v36 = vld [vmem:[%s2286_s11 + $0x10f8] sm:$0xff] }
 0x125   : > { %1560 = vmatpush.msrb.mxu2 %v875_v37  ;;  %1579 = vmatpush.msrb.mxu3 %v892_v38  ;;  %v940_v37 = vld [vmem:[%s2286_s11 + $0x1170] sm:$0xff]  ;;  %v957_v38 = vld [vmem:[%s2286_s11 + $0x11f8] sm:$0xff] }
 0x126   : > { %1521 = vmatpush.msrb.mxu0 %v842_v39  ;;  %1540 = vmatpush.msrb.mxu1 %v859_v40  ;;  %v907_v39 = vld [vmem:[%s2286_s11 + $0x1068] sm:$0xff]  ;;  %v924_v40 = vld [vmem:[%s2286_s11 + $0x10f0] sm:$0xff] }
 0x127   : > { %1561 = vmatpush.msrb.mxu2 %v874_v41  ;;  %1580 = vmatpush.msrb.mxu3 %v891_v42  ;;  %v939_v41 = vld [vmem:[%s2286_s11 + $0x1168] sm:$0xff]  ;;  %v956_v42 = vld [vmem:[%s2286_s11 + $0x11f0] sm:$0xff] }
 0x128   : > { %1522 = vmatpush.msrb.mxu0 %v841_v43  ;;  %1541 = vmatpush.msrb.mxu1 %v858_v44  ;;  %v906_v43 = vld [vmem:[%s2286_s11 + $0x1060] sm:$0xff]  ;;  %v923_v44 = vld [vmem:[%s2286_s11 + $0x10e8] sm:$0xff] }
 0x129   : > { %1562 = vmatpush.msrb.mxu2 %v873_v45  ;;  %1581 = vmatpush.msrb.mxu3 %v890_v46  ;;  %v938_v45 = vld [vmem:[%s2286_s11 + $0x1160] sm:$0xff]  ;;  %v955_v46 = vld [vmem:[%s2286_s11 + $0x11e8] sm:$0xff] }
 0x12a   : > { %1523 = vmatpush.msrb.mxu0 %v840_v47  ;;  %1542 = vmatpush.msrb.mxu1 %v857_v48  ;;  %v905_v47 = vld [vmem:[%s2286_s11 + $0x1058] sm:$0xff]  ;;  %v922_v48 = vld [vmem:[%s2286_s11 + $0x10e0] sm:$0xff] }
 0x12b   : > { %1563 = vmatpush.msrb.mxu2 %v872_v49  ;;  %1582 = vmatpush.msrb.mxu3 %v889_v50  ;;  %v937_v49 = vld [vmem:[%s2286_s11 + $0x1158] sm:$0xff]  ;;  %v954_v50 = vld [vmem:[%s2286_s11 + $0x11e0] sm:$0xff] }
 0x12c   : > { %1524 = vmatpush.msrb.mxu0 %v839_v51  ;;  %1543 = vmatpush.msrb.mxu1 %v856_v52  ;;  %v904_v51 = vld [vmem:[%s2286_s11 + $0x1050] sm:$0xff]  ;;  %v921_v52 = vld [vmem:[%s2286_s11 + $0x10d8] sm:$0xff] }
 0x12d   : > { %1564 = vmatpush.msrb.mxu2 %v871_v53  ;;  %1583 = vmatpush.msrb.mxu3 %v888_v54  ;;  %v936_v53 = vld [vmem:[%s2286_s11 + $0x1150] sm:$0xff]  ;;  %v953_v54 = vld [vmem:[%s2286_s11 + $0x11d8] sm:$0xff] }
 0x12e   : > { %1525 = vmatpush.msrb.mxu0 %v838_v55  ;;  %1544 = vmatpush.msrb.mxu1 %v855_v56  ;;  %v903_v55 = vld [vmem:[%s2286_s11 + $0x1048] sm:$0xff]  ;;  %v920_v56 = vld [vmem:[%s2286_s11 + $0x10d0] sm:$0xff] }
 0x12f   : > { %1565 = vmatpush.msrb.mxu2 %v870_v57  ;;  %1584 = vmatpush.msrb.mxu3 %v887_v58  ;;  %v935_v57 = vld [vmem:[%s2286_s11 + $0x1148] sm:$0xff]  ;;  %v952_v58 = vld [vmem:[%s2286_s11 + $0x11d0] sm:$0xff] }
 0x130   : > { %1526 = vmatpush.msrb.mxu0 %v837_v59  ;;  %1545 = vmatpush.msrb.mxu1 %v854_v60  ;;  %v902_v59 = vld [vmem:[%s2286_s11 + $0x1040] sm:$0xff]  ;;  %v919_v60 = vld [vmem:[%s2286_s11 + $0x10c8] sm:$0xff] }
 0x131   : > { %1566 = vmatpush.msrb.mxu2 %v869_v61  ;;  %1585 = vmatpush.msrb.mxu3 %v886_v62  ;;  %v934_v61 = vld [vmem:[%s2286_s11 + $0x1140] sm:$0xff]  ;;  %v951_v62 = vld [vmem:[%s2286_s11 + $0x11c8] sm:$0xff] }
 0x132   : > { %1527 = vmatpush.msrb.mxu0 %v836_v63  ;;  %1546 = vmatpush.msrb.mxu1 %v853_v0  ;;  %v901_v63 = vld [vmem:[%s2286_s11 + $0x1038] sm:$0xff]  ;;  %v918_v0 = vld [vmem:[%s2286_s11 + $0x10c0] sm:$0xff] }
 0x133   : > { %1567 = vmatpush.msrb.mxu2 %v868_v1  ;;  %1586 = vmatpush.msrb.mxu3 %v885_v2  ;;  %v933_v1 = vld [vmem:[%s2286_s11 + $0x1138] sm:$0xff]  ;;  %v950_v2 = vld [vmem:[%s2286_s11 + $0x11c0] sm:$0xff] }
 0x134   : > { %1528 = vmatpush.msrb.mxu0 %v835_v3  ;;  %1547 = vmatpush.msrb.mxu1 %v852_v4  ;;  %v900_v3 = vld [vmem:[%s2286_s11 + $0x1030] sm:$0xff]  ;;  %v917_v4 = vld [vmem:[%s2286_s11 + $0x10b8] sm:$0xff] }
 0x135   : > { %1568 = vmatpush.msrb.mxu2 %v867_v5  ;;  %1587 = vmatpush.msrb.mxu3 %v884_v6  ;;  %v932_v5 = vld [vmem:[%s2286_s11 + $0x1130] sm:$0xff]  ;;  %v949_v6 = vld [vmem:[%s2286_s11 + $0x11b8] sm:$0xff] }
 0x136   : > { %1529 = vmatpush.msrb.mxu0 %v834_v7  ;;  %1548 = vmatpush.msrb.mxu1 %v851_v8  ;;  %v899_v7 = vld [vmem:[%s2286_s11 + $0x1028] sm:$0xff]  ;;  %v916_v8 = vld [vmem:[%s2286_s11 + $0x10b0] sm:$0xff] }
 0x137   : > { %1569 = vmatpush.msrb.mxu2 %v866_v9  ;;  %1588 = vmatpush.msrb.mxu3 %v883_v10  ;;  %v931_v9 = vld [vmem:[%s2286_s11 + $0x1128] sm:$0xff]  ;;  %v948_v10 = vld [vmem:[%s2286_s11 + $0x11b0] sm:$0xff] }
 0x138   : > { %1530 = vmatpush.msrb.mxu0 %v833_v11  ;;  %1549 = vmatpush.msrb.mxu1 %v850_v12  ;;  %v898_v11 = vld [vmem:[%s2286_s11 + $0x1020] sm:$0xff]  ;;  %v915_v12 = vld [vmem:[%s2286_s11 + $0x10a8] sm:$0xff] }
 0x139   : > { %1570 = vmatpush.msrb.mxu2 %v865_v13  ;;  %1589 = vmatpush.msrb.mxu3 %v882_v14  ;;  %v930_v13 = vld [vmem:[%s2286_s11 + $0x1120] sm:$0xff]  ;;  %v947_v14 = vld [vmem:[%s2286_s11 + $0x11a8] sm:$0xff] }
 0x13a   : > { %1531 = vmatpush.msrb.mxu0 %v832_v15  ;;  %1550 = vmatpush.msrb.mxu1 %v849_v16  ;;  %v897_v15 = vld [vmem:[%s2286_s11 + $0x1018] sm:$0xff]  ;;  %v914_v16 = vld [vmem:[%s2286_s11 + $0x10a0] sm:$0xff] }
 0x13b   : > { %1571 = vmatpush.msrb.mxu2 %v864_v17  ;;  %1590 = vmatpush.msrb.mxu3 %v881_v18  ;;  %v929_v17 = vld [vmem:[%s2286_s11 + $0x1118] sm:$0xff]  ;;  %v946_v18 = vld [vmem:[%s2286_s11 + $0x11a0] sm:$0xff] }
 0x13c   : > { %1532 = vmatpush.msrb.mxu0 %v831_v19  ;;  %1551 = vmatpush.msrb.mxu1 %v848_v20  ;;  %v896_v19 = vld [vmem:[%s2286_s11 + $0x1010] sm:$0xff]  ;;  %v913_v20 = vld [vmem:[%s2286_s11 + $0x1098] sm:$0xff] }
 0x13d   : > { %1572 = vmatpush.msrb.mxu2 %v863_v21  ;;  %1591 = vmatpush.msrb.mxu3 %v880_v22  ;;  %v928_v21 = vld [vmem:[%s2286_s11 + $0x1110] sm:$0xff]  ;;  %v945_v22 = vld [vmem:[%s2286_s11 + $0x1198] sm:$0xff] }
 0x13e   : > { %1533 = vmatpush.msrb.mxu0 %v830_v23  ;;  %1552 = vmatpush.msrb.mxu1 %v847_v24  ;;  %v895_v23 = vld [vmem:[%s2286_s11 + $0x1008] sm:$0xff]  ;;  %v912_v24 = vld [vmem:[%s2286_s11 + $0x1090] sm:$0xff] }
 0x13f   : > { %1573 = vmatpush.msrb.mxu2 %v862_v25  ;;  %1592 = vmatpush.msrb.mxu3 %v879_v26  ;;  %v927_v25 = vld [vmem:[%s2286_s11 + $0x1108] sm:$0xff]  ;;  %v944_v26 = vld [vmem:[%s2286_s11 + $0x1190] sm:$0xff] }
 0x140   : > { %1534 = vmatmul.f32.vlgmr.msrb.gmra.mxu0 %v374_v27  ;;  %1574 = vmatmul.f32.vlgmr.msrb.gmra.mxu2 %v376_v28  ;;  %v894_v27 = vld [vmem:[%s2286_s11 + $0x1000] sm:$0xff]  ;;  %v911_v28 = vld [vmem:[%s2286_s11 + $0x1088] sm:$0xff] }
 0x141   : > { %1598 = vmatpush.msra.mxu0 %v909_v29  ;;  %1638 = vmatpush.msra.mxu2 %v941_v30  ;;  %v926_v29 = vld [vmem:[%s2286_s11 + $0x1100] sm:$0xff]  ;;  %v943_v30 = vld [vmem:[%s2286_s11 + $0x1188] sm:$0xff] }
 0x142   : > { %1553 = vmatpush.msrb.mxu1 %v846_v31  ;;  %1593 = vmatpush.msrb.mxu3 %v878_v32  ;;  %v378_v31 = vld [vmem:[%s2304_s6 + $0x100] sm:$0xff]  ;;  %v380_v32 = vld [vmem:[%s2304_s6 + $0x110] sm:$0xff] }
 0x143   : > { %1554 = vmatmul.f32.vlgmr.msrb.gmra.mxu1 %v375_v33  ;;  %1594 = vmatmul.f32.vlgmr.msrb.gmra.mxu3 %v377_v34  ;;  %v910_v33 = vld [vmem:[%s2286_s11 + $0x1080] sm:$0xff] }
 0x144   : > { %1599 = vmatpush.msra.mxu0 %v908_v35  ;;  %1618 = vmatpush.msra.mxu1 %v925_v36  ;;  %v942_v34 = vld [vmem:[%s2286_s11 + $0x1180] sm:$0xff]  ;;  %v381_v36 = vld [vmem:[%s2304_s6 + $0x118] sm:$0xff] }
 0x145   : > { %1639 = vmatpush.msra.mxu2 %v940_v37  ;;  %1658 = vmatpush.msra.mxu3 %v957_v38  ;;  %v379_v35 = vld [vmem:[%s2304_s6 + $0x108] sm:$0xff]  ;;  %v995_v37 = vpop.f32.mrf.mxu1  ;;  %v975_v38 = vpop.f32.mrf.mxu0 }
 0x146   : > { %1600 = vmatpush.msra.mxu0 %v907_v39  ;;  %1619 = vmatpush.msra.mxu1 %v924_v40  ;;  %v996_v39 = vadd.f32 %v995_v37, %v975_v38  ;;  %v1015_v40 = vpop.f32.mrf.mxu2 }
 0x147   : > { %1640 = vmatpush.msra.mxu2 %v939_v41  ;;  %1659 = vmatpush.msra.mxu3 %v956_v42  ;;  %v1035_v42 = vpop.f32.mrf.mxu3 }
 0x148   : > { %1601 = vmatpush.msra.mxu0 %v906_v43  ;;  %1620 = vmatpush.msra.mxu1 %v923_v44  ;;  %v1016_v41 = vadd.f32 %v1015_v40, %v996_v39 }
 0x149   : > { %1641 = vmatpush.msra.mxu2 %v938_v45  ;;  %1660 = vmatpush.msra.mxu3 %v955_v46 }
 0x14a   : > { %1602 = vmatpush.msra.mxu0 %v905_v47  ;;  %1621 = vmatpush.msra.mxu1 %v922_v48  ;;  %v1036_v43 = vadd.f32 %v1035_v42, %v1016_v41  ;;  %v345_v42 = vld [vmem:[#allocation2] sm:$0xff] }
 0x14b   : > { %1642 = vmatpush.msra.mxu2 %v937_v49  ;;  %1661 = vmatpush.msra.mxu3 %v954_v50 }
 0x14c   : > { %1603 = vmatpush.msra.mxu0 %v904_v51  ;;  %1622 = vmatpush.msra.mxu1 %v921_v52 }
 0x14d   : > { %1643 = vmatpush.msra.mxu2 %v936_v53  ;;  %1662 = vmatpush.msra.mxu3 %v953_v54  ;;  %v1055_v44 = vpop.f32.mrf.mxu0  ;;  %v1075_v46 = vpop.f32.mrf.mxu1 }
 0x14e   : > { %1604 = vmatpush.msra.mxu0 %v903_v55  ;;  %1623 = vmatpush.msra.mxu1 %v920_v56  ;;  %v1056_v45 = vadd.f32 %v1055_v44, %v1036_v43  ;;  %v1095_v48 = vpop.f32.mrf.mxu2 }
 0x14f   : > { %1644 = vmatpush.msra.mxu2 %v935_v57  ;;  %1663 = vmatpush.msra.mxu3 %v952_v58  ;;  %v1115_v50 = vpop.f32.mrf.mxu3 }
 0x150   : > { %1605 = vmatpush.msra.mxu0 %v902_v59  ;;  %1624 = vmatpush.msra.mxu1 %v919_v60  ;;  %v1076_v47 = vadd.f32 %v1075_v46, %v1056_v45 }
 0x151   : > { %1645 = vmatpush.msra.mxu2 %v934_v61  ;;  %1664 = vmatpush.msra.mxu3 %v951_v62 }
 0x152   : > { %1606 = vmatpush.msra.mxu0 %v901_v63  ;;  %1625 = vmatpush.msra.mxu1 %v918_v0  ;;  %v1096_v49 = vadd.f32 %v1095_v48, %v1076_v47 }
 0x153   : > { %1646 = vmatpush.msra.mxu2 %v933_v1  ;;  %1665 = vmatpush.msra.mxu3 %v950_v2 }
 0x154   : > { %1607 = vmatpush.msra.mxu0 %v900_v3  ;;  %1626 = vmatpush.msra.mxu1 %v917_v4  ;;  %v1116_v52 = vadd.f32 %v1115_v50, %v1096_v49 }
 0x155   : > { %1647 = vmatpush.msra.mxu2 %v932_v5  ;;  %1666 = vmatpush.msra.mxu3 %v949_v6  ;;  %v1135_v51 = vpop.f32.mrf.mxu0  ;;  %v1155_v54 = vpop.f32.mrf.mxu1 }
 0x156   : > { %1608 = vmatpush.msra.mxu0 %v899_v7  ;;  %1627 = vmatpush.msra.mxu1 %v916_v8  ;;  %v1136_v53 = vadd.f32 %v1135_v51, %v1116_v52  ;;  %v1175_v55 = vpop.f32.mrf.mxu2 }
 0x157   : > { %1648 = vmatpush.msra.mxu2 %v931_v9  ;;  %1667 = vmatpush.msra.mxu3 %v948_v10  ;;  %v1195_v58 = vpop.f32.mrf.mxu3 }
 0x158   : > { %1609 = vmatpush.msra.mxu0 %v898_v11  ;;  %1628 = vmatpush.msra.mxu1 %v915_v12  ;;  %v1156_v56 = vadd.f32 %v1155_v54, %v1136_v53 }
 0x159   : > { %1649 = vmatpush.msra.mxu2 %v930_v13  ;;  %1668 = vmatpush.msra.mxu3 %v947_v14 }
 0x15a   : > { %1610 = vmatpush.msra.mxu0 %v897_v15  ;;  %1629 = vmatpush.msra.mxu1 %v914_v16  ;;  %v1176_v57 = vadd.f32 %v1175_v55, %v1156_v56 }
 0x15b   : > { %1650 = vmatpush.msra.mxu2 %v929_v17  ;;  %1669 = vmatpush.msra.mxu3 %v946_v18 }
 0x15c   : > { %1611 = vmatpush.msra.mxu0 %v896_v19  ;;  %1630 = vmatpush.msra.mxu1 %v913_v20  ;;  %v1196_v60 = vadd.f32 %v1195_v58, %v1176_v57 }
 0x15d   : > { %1651 = vmatpush.msra.mxu2 %v928_v21  ;;  %1670 = vmatpush.msra.mxu3 %v945_v22  ;;  %v1215_v59 = vpop.f32.mrf.mxu0  ;;  %v1235_v62 = vpop.f32.mrf.mxu1 }
 0x15e   : > { %1612 = vmatpush.msra.mxu0 %v895_v23  ;;  %1631 = vmatpush.msra.mxu1 %v912_v24  ;;  %v1216_v61 = vadd.f32 %v1215_v59, %v1196_v60  ;;  %v1255_v63 = vpop.f32.mrf.mxu2 }
 0x15f   : > { %1652 = vmatpush.msra.mxu2 %v927_v25  ;;  %1671 = vmatpush.msra.mxu3 %v944_v26  ;;  %v1275_v2 = vpop.f32.mrf.mxu3 }
 0x160   : > { %1613 = vmatpush.msra.mxu0 %v894_v27  ;;  %1632 = vmatpush.msra.mxu1 %v911_v28  ;;  %v1236_v0 = vadd.f32 %v1235_v62, %v1216_v61 }
 0x161   : > { %1653 = vmatpush.msra.mxu2 %v926_v29  ;;  %1672 = vmatpush.msra.mxu3 %v943_v30 }
 0x162   : > { %1614 = vmatmul.f32.vlgmr.msra.gmra.mxu0 %v378_v31  ;;  %1654 = vmatmul.f32.vlgmr.msra.gmra.mxu2 %v380_v32  ;;  %v1256_v1 = vadd.f32 %v1255_v63, %v1236_v0 }
 0x163   : > { %1633 = vmatpush.msra.mxu1 %v910_v33  ;;  %1673 = vmatpush.msra.mxu3 %v942_v34 }
 0x164   : > { %1634 = vmatmul.f32.vlgmr.msra.gmra.mxu1 %v379_v35  ;;  %1674 = vmatmul.f32.vlgmr.msra.gmra.mxu3 %v381_v36  ;;  %v1276_v4 = vadd.f32 %v1275_v2, %v1256_v1 }
 0x165   : > { %v1295_v3 = vpop.f32.mrf.mxu0  ;;  %v1315_v6 = vpop.f32.mrf.mxu1 }
 0x166   : > { %v1296_v5 = vadd.f32 %v1295_v3, %v1276_v4  ;;  %v1335_v7 = vpop.f32.mrf.mxu2 }
 0x167   : > { %v1355_v10 = vpop.f32.mrf.mxu3 }
 0x168   : > { %v1316_v8 = vadd.f32 %v1315_v6, %v1296_v5 }
 0x16a   : > { %v1336_v9 = vadd.f32 %v1335_v7, %v1316_v8 }
 0x16c   : > { %v1356_v12 = vadd.f32 %v1355_v10, %v1336_v9 }
 0x179   : > { %v1375_v11 = vpop.f32.mrf.mxu0 }
 0x17a   : > { %v1376_v13 = vadd.f32 %v1375_v11, %v1356_v12 }
 0x17c   : > { %v1395_v14 = vpop.f32.mrf.mxu1 }
 0x17d   : > { %v1396_v16 = vadd.f32 %v1395_v14, %v1376_v13 }
 0x17f   : > { %v1415_v15 = vpop.f32.mrf.mxu2 }
 0x180   : > { %v1416_v17 = vadd.f32 %v1415_v15, %v1396_v16 }
 0x182   : > { %v1435_v18 = vpop.f32.mrf.mxu3 }
 0x183   : > { %v1436_v20 = vadd.f32 %v1435_v18, %v1416_v17 }
 0x19b   : > { %v1455_v19 = vpop.f32.mrf.mxu0 }
 0x19c   : > { %v1456_v21 = vadd.f32 %v1455_v19, %v1436_v20 }
 0x19e   : > { %v1475_v22 = vpop.f32.mrf.mxu1 }
 0x19f   : > { %v1476_v24 = vadd.f32 %v1475_v22, %v1456_v21 }
 0x1a1   : > { %v1495_v23 = vpop.f32.mrf.mxu2 }
 0x1a2   : > { %v1496_v25 = vadd.f32 %v1495_v23, %v1476_v24 }
 0x1a4   : > { %v1515_v26 = vpop.f32.mrf.mxu3 }
 0x1a5   : > { %v1516_v28 = vadd.f32 %v1515_v26, %v1496_v25 }
 0x1bd   : > { %v1535_v27 = vpop.f32.mrf.mxu0 }
 0x1be   : > { %v1536_v29 = vadd.f32 %v1535_v27, %v1516_v28 }
 0x1c0   : > { %v1555_v30 = vpop.f32.mrf.mxu1 }
 0x1c1   : > { %v1556_v32 = vadd.f32 %v1555_v30, %v1536_v29 }
 0x1c3   : > { %v1575_v31 = vpop.f32.mrf.mxu2 }
 0x1c4   : > { %v1576_v33 = vadd.f32 %v1575_v31, %v1556_v32 }
 0x1c6   : > { %v1595_v34 = vpop.f32.mrf.mxu3 }
 0x1c7   : > { %v1596_v35 = vadd.f32 %v1595_v34, %v1576_v33 }
 0x1df   : > { %v1615_v36 = vpop.f32.mrf.mxu0 }
 0x1e0   : > { %v1616_v37 = vadd.f32 %v1615_v36, %v1596_v35 }
 0x1e1   : > { %v1635_v38 = vpop.f32.mrf.mxu1 }
 0x1e2   : > { %v1636_v39 = vadd.f32 %v1635_v38, %v1616_v37 }
 0x1e5   : > { %v1655_v40 = vpop.f32.mrf.mxu2 }
 0x1e6   : > { %v1656_v41 = vadd.f32 %v1655_v40, %v1636_v39 }
 0x1e7   : > { %v1675_v43 = vpop.f32.mrf.mxu3 }
 0x1e8   : > { %v1676_v44 = vadd.f32 %v1675_v43, %v1656_v41  ;;  %1683 = sbr.rel (%p1872_p1) target bundleno = 908 (0x38c), region = 64 }
 0x1ea   : > { %v1678_v45 = vadd.f32 %v1676_v44, %v345_v42 }
 0x1ec   : > { %1679 = vst [vmem:[#allocation2] sm:$0xff] %v1678_v45 }
 0x1ed   : > { %v1706_v46 = vld [vmem:[#allocation7 + $0x78] sm:$0xff]  ;;  %v1705_v47 = vld [vmem:[#allocation7 + $0x70] sm:$0xff]  ;;  %v1704_v48 = vld [vmem:[#allocation7 + $0x68] sm:$0xff] }
 0x1ee   : > { %1711 = vmatpush.msra.mxu0 %v1706_v46  ;;  %v1703_v49 = vld [vmem:[#allocation7 + $0x60] sm:$0xff]  ;;  %v1702_v50 = vld [vmem:[#allocation7 + $0x58] sm:$0xff]  ;;  %v1701_v51 = vld [vmem:[#allocation7 + $0x50] sm:$0xff] }
 0x1ef   : > { %v1700_v52 = vld [vmem:[#allocation7 + $0x48] sm:$0xff]  ;;  %v1699_v53 = vld [vmem:[#allocation7 + $0x40] sm:$0xff]  ;;  %v1698_v54 = vld [vmem:[#allocation7 + $0x38] sm:$0xff] }
 0x1f0   : > { %1712 = vmatpush.msra.mxu0 %v1705_v47  ;;  %v1697_v55 = vld [vmem:[#allocation7 + $0x30] sm:$0xff]  ;;  %v1696_v56 = vld [vmem:[#allocation7 + $0x28] sm:$0xff]  ;;  %v1695_v57 = vld [vmem:[#allocation7 + $0x20] sm:$0xff] }
 0x1f1   : > { %v1968_v58 = vld [vmem:[#allocation5] ss:$0 sm:$0xff]  ;;  %v1693_v61 = vld [vmem:[#allocation7 + $0x10] sm:$0xff]  ;;  %v1692_v63 = vld [vmem:[#allocation7 + $0x8] sm:$0xff] }
 0x1f2   : > { %1713 = vmatpush.msra.mxu0 %v1704_v48  ;;  %v1694_v60 = vld [vmem:[#allocation7 + $0x18] sm:$0xff]  ;;  %v1691_v0 = vld [vmem:[#allocation7] sm:$0xff] }
 0x1f3   : > { %v1684_v59 = vld [vmem:[#allocation2] sm:$0xff]  ;;  %v1969_v2 = vld [vmem:[#allocation8] ss:$0 sm:$0xff] }
 0x1f4   : > { %1714 = vmatpush.msra.mxu0 %v1703_v49  ;;  %v1689_v62 = vadd.f32 %v1968_v58, %v1684_v59 }
 0x1f6   : > { %1715 = vmatpush.msra.mxu0 %v1702_v50  ;;  %v1690_v1 = vmax.f32 %v1689_v62, 0.0 }
 0x1f8   : > { %1716 = vmatpush.msra.mxu0 %v1701_v51 }
 0x1fa   : > { %1717 = vmatpush.msra.mxu0 %v1700_v52 }
 0x1fc   : > { %1718 = vmatpush.msra.mxu0 %v1699_v53 }
 0x1fe   : > { %1719 = vmatpush.msra.mxu0 %v1698_v54 }
 0x200   : > { %1720 = vmatpush.msra.mxu0 %v1697_v55 }
 0x202   : > { %1721 = vmatpush.msra.mxu0 %v1696_v56 }
 0x204   : > { %1722 = vmatpush.msra.mxu0 %v1695_v57 }
 0x206   : > { %1723 = vmatpush.msra.mxu0 %v1694_v60 }
 0x208   : > { %1724 = vmatpush.msra.mxu0 %v1693_v61 }
 0x20a   : > { %1725 = vmatpush.msra.mxu0 %v1692_v63 }
 0x20c   : > { %1726 = vmatpush.msra.mxu0 %v1691_v0 }
 0x20d   : > { %1727 = vmatmul.f32.vlgmr.msra.gmra.mxu0 %v1690_v1 }
 0x28a   : > { %v1728_v3 = vpop.f32.mrf.mxu0 }
 0x28b   : > { %v1729_v4 = vadd.f32 %v1969_v2, %v1728_v3 }
 0x28d   : > { %1731 = vmax.xlane.f32.xlu0 %v1729_v4 }
 0x300   : > { %v1732_v5 = vpop.xlane.xlu0 %1731 }
 0x301   : > { %v1733_v6 = vsub.f32 %v1729_v4, %v1732_v5 }
 0x303   : > { %v1734_v7 = vmul.f32 1.442695, %v1733_v6 }
 0x305   : > { %1970 = vpow2.f32 %v1734_v7 }
 0x30b   : > { %v1971_v8 = vpop.eup %1970 }
 0x30c   : > { %1736 = vadd.xlane.f32.xlu0 %v1971_v8 }
 0x37f   : > { %v1737_v9 = vpop.xlane.xlu0 %1736 }
 0x380   : > { %1972 = vlog2.f32 %v1737_v9 }
 0x386   : > { %v1973_v10 = vpop.eup %1972 }
 0x387   : > { %v1739_v11 = vmul.f32 0.6931472, %v1973_v10 }
 0x389   : > { %v1740_v12 = vsub.f32 %v1733_v6, %v1739_v11 }
 0x38b   : > { %1741 = vst [vmem:[%s2946_s5] sm:$0xff] %v1740_v12 }
 0x38c PF: > { %s20_s23 = sadd.s32 1, %s2152_s23   ;;  %s2951_s18 = smov %s2136_s19 }
 0x38d   : > { %p17_p4 = scmp.ge.s32.totalorder %s20_s23, 4   ;;  %s2952_s19 = smov %s2140_s20 }
 0x38e   : > { %s2953_s20 = smov %s2275_s10  ;;  %s2954_s21 = smov %s2148_s22 }
 0x38f   : > { %s2955_s22 = smov %s2957_s29  ;;  %19 = sbr.rel (!%p17_p4) target bundleno = 6 (0x6), region = 103 }
 0x394   :  { %1761 = vsyncpa [#allocation4], 1 }
 0x395   :  { %1763 = vsyncpa [#allocation4 + $0x1], 1 }
 0x396   :  { %1764 = vsyncpa [#allocation6], 1 }
 0x397   :  { %1765 = vsyncpa [#allocation9], 1 }

// kernel: convnet_forward.2
= control target key start
LH: loop header
LB: loop body
LE: loop exit
PB: predicated region body
PF: predicated region fallthrough
CT: control target
= control target key end

     0   :  { %10 = vsyncpa [#allocation5], 0  ;;  %s9417_s0 = inlined_call_operand.vmem [shape: f32[2,832,9], index: 0, kind: input, shape index: {}]   ;;  %s9418_s1 = inlined_call_operand.hbm [shape: f32[9,32], index: 1, kind: input, shape index: {}]   ;;  %s9419_s2 = inlined_call_operand.hbm [shape: f32[1,32], index: 2, kind: input, shape index: {}]   ;;  %s9420_s3 = inlined_call_operand.vmem [shape: f32[288,64], index: 3, kind: input, shape index: {}]   ;;  %s9421_s4 = inlined_call_operand.hbm [shape: f32[1,64], index: 4, kind: input, shape index: {}]   ;;  %s9422_s5 = inlined_call_operand.vmem [shape: f32[2,12,12,64], index: 5, kind: output, shape index: {}]  }
   0x1   :  { %11 = vsyncpa [#allocation7], 0  ;;  %s5805_s18 = smov 0  }
   0x2 LB: > { %s184_s21 = sshll.u32 %s9419_s2, 4  ;;  %s5814_s22 = sadd.s32 4294967295, %s5765_s18   ;;  %s5765_s18 = sphi %s5805_s18, %s17_s18   ;;  %s185_s21 = int_to_ptr.hbm [resolvable:$true] %s184_s21 }
   0x3   : > { %p5410_p0 = scmp.ge.s32.totalorder %s5765_s18, 1  ;;  %p158_p1 = scmp.lt.s32.totalorder %s5765_s18, 3 }
   0x4   : > { %p5630_p2 = scmp.eq.s32.totalorder %s5814_s22, 0  ;;  %s5767_s24 = smov [#allocation6]  }
   0x5   : > { %p5819_p3 = pnand %p5410_p0, %p158_p1  ;;  %s186_s25 = sshll.u32 %s5767_s24, 4  ;;  %s187_s25 = int_to_ptr.vmem [resolvable:$true] %s186_s25 }
   0x6   : > { %s169_s28 = sshll.u32 %s9418_s1, 4  ;;  %s5768_s29 = smov [#allocation4]   ;;  %s170_s28 = int_to_ptr.hbm [resolvable:$true] %s169_s28 }
   0x7   : > { %p5620_p4 = pneg %p5819_p3  ;;  %s171_s30 = sshll.u32 %s5768_s29, 4  ;;  %s172_s30 = int_to_ptr.vmem [resolvable:$true] %s171_s30 }
   0x8   : > { %s199_s8 = sshll.u32 %s9421_s4, 4  ;;  %s5769_s9 = smov 128   ;;  %s200_s8 = int_to_ptr.hbm [resolvable:$true] %s199_s8 }
   0x9   : > { %p5621_p5 = pnand %p5630_p2, %p5620_p4  ;;  %s5770_s10 = smov 8  }
   0xa   : > { %s5771_s11 = smov [#allocation8]   ;;  %222 = sbr.rel (%p5819_p3) target bundleno = 1596 (0x63c), region = 40 }
   0xb   : > { %5626 = dma.hbm_to_vmem [thread:$0]  (!%p5621_p5), %s185_s21, 16, %s187_s25, [#allocation7]  }
   0xc   : > { %5623 = dma.hbm_to_vmem [thread:$0]  (!%p5621_p5), %s170_s28, 256, %s172_s30, [#allocation5], %s5769_s9, %s5769_s9, %s5770_s10  }
   0xd   : > { %s201_s12 = sshll.u32 %s5771_s11, 4  ;;  %s202_s12 = int_to_ptr.vmem [resolvable:$true] %s201_s12 }
   0xe   : > { %5629 = dma.hbm_to_vmem [thread:$0]  (!%p5621_p5), %s200_s8, 16, %s202_s12, [#allocation7]  }
   0xf   : > { %5756 = dma.done.wait (%p5630_p2), [#allocation5], 256  }
  0x10   : > { %5758 = vsyncadd (%p5630_p2), [#allocation5], 4294967040 }
  0x11   : > { %5760 = dma.done.wait (%p5630_p2), [#allocation7], 32  }
  0x12   : > { %5762 = vsyncadd (%p5630_p2), [#allocation7], 4294967264  ;;  %p261_p6 = scmp.lt.s32.totalorder %s5814_s22, 1  ;;  %vm694_vm0 = vcmask 1040384   ;;  %v376_v0 = vld [vmem:[#allocation4 + $0x8] sm:$0x1] }
  0x13   : > { %v375_v1 = vld [vmem:[#allocation4] sm:$0xff]  ;;  %5421 = vmatpush.msk.msra.mxu0 %vm694_vm0, %v376_v0  ;;  %5600 = vmatpush.msk.msra.mxu1 %vm694_vm0, %v376_v0  ;;  %vm381_vm1 = vcmask 72704   ;;  %v5913_v32 = vld [vmem:[#allocation6] ss:$0 sm:$0xff]  ;;  %vm1131_vm2 = vcmask 261120   ;;  %vm1300_vm3 = vcmask 1046528  }
  0x14   : > { %s9812_s22 = smov (!%p261_p6, %s5814_s22), 1  ;;  %5601 = vmatpush.msk.msra.mxu2 %vm694_vm0, %v376_v0  ;;  %5602 = vmatpush.msk.msra.mxu3 %vm694_vm0, %v376_v0  ;;  %vm1758_vm4 = vcmask 1045504   ;;  %s5772_s17 = smov 32   ;;  %vm1685_vm5 = vcmask 523520   ;;  %vm2143_vm6 = vcmask 785920   ;;  %vm2435_vm7 = vcmask 1048320  }
  0x15   : > { %s5606_s13 = smul.u32 832, %s9812_s22  ;;  %713 = vmatpush.msra.mxu0 %v375_v1  ;;  %5603 = vmatpush.msra.mxu1 %v375_v1  ;;  %s5773_s19 = smov 64   ;;  %vm4936_vm8 = vcmask 523264   ;;  %vm5212_vm9 = vcmask 1043456   ;;  %vm5298_vm10 = vcmask 519168  }
  0x16   : > { %5604 = vmatpush.msra.mxu2 %v375_v1  ;;  %5605 = vmatpush.msra.mxu3 %v375_v1  ;;  %s5774_s20 = smov 96   ;;  %s5607_s12 = smul.u32 192, %s9812_s22 }
  0x17   : > { %s5851_s16 = scalar_lea.vmem %s9417_s0, %s5606_s13 }
  0x18   : > { %v271_v2 = vld [vmem:[%s5851_s16] sm:$0xff]  ;;  %v353_v3 = vld [vmem:[%s5851_s16 + $0x290] sm:$0xff]  ;;  %v272_v5 = vld [vmem:[%s5851_s16 + $0x8] sm:$0xff]  ;;  %s7717_s14 = scalar_lea.vmem %s9422_s5, %s5607_s12 }
  0x19   : > { %v361_v4 = vld [vmem:[%s5851_s16 + $0x2d0] sm:$0xff]  ;;  %5422 = vmatmul.msk.f32.vlgmr.msra.gmra.mxu0 %vm381_vm1, %v271_v2  ;;  %5504 = vmatmul.msk.f32.vlgmr.msra.gmra.mxu1 %vm381_vm1, %v353_v3  ;;  %v354_v6 = vld [vmem:[%s5851_s16 + $0x298] sm:$0xff]  ;;  %v355_v10 = vld [vmem:[%s5851_s16 + $0x2a0] sm:$0xff] }
  0x1a   : > { %5512 = vmatmul.msk.f32.vlgmr.msra.gmra.mxu2 %vm381_vm1, %v361_v4  ;;  %v362_v7 = vld [vmem:[%s5851_s16 + $0x2d8] sm:$0xff]  ;;  %v273_v9 = vld [vmem:[%s5851_s16 + $0x10] sm:$0xff]  ;;  %v363_v11 = vld [vmem:[%s5851_s16 + $0x2e0] sm:$0xff] }
  0x1b   : > { %v366_v8 = vld [vmem:[%s5851_s16 + $0x2f8] sm:$0xff]  ;;  %v356_v13 = vld [vmem:[%s5851_s16 + $0x2a8] sm:$0xff]  ;;  %v275_v15 = vld [vmem:[%s5851_s16 + $0x20] sm:$0xff] }
  0x1c   : > { %5517 = vmatmul.msk.f32.vlgmr.msra.gmra.mxu3 %vm381_vm1, %v366_v8  ;;  %v274_v12 = vld [vmem:[%s5851_s16 + $0x18] sm:$0xff]  ;;  %v364_v14 = vld [vmem:[%s5851_s16 + $0x2e8] sm:$0xff]  ;;  %v357_v16 = vld [vmem:[%s5851_s16 + $0x2b0] sm:$0xff] }
  0x1d   : > { %v365_v17 = vld [vmem:[%s5851_s16 + $0x2f0] sm:$0xff]  ;;  %v276_v18 = vld [vmem:[%s5851_s16 + $0x28] sm:$0xff]  ;;  %v358_v19 = vld [vmem:[%s5851_s16 + $0x2b8] sm:$0xff] }
  0x1e   : > { %v277_v20 = vld [vmem:[%s5851_s16 + $0x30] sm:$0xff]  ;;  %v359_v21 = vld [vmem:[%s5851_s16 + $0x2c0] sm:$0xff]  ;;  %v278_v22 = vld [vmem:[%s5851_s16 + $0x38] sm:$0xff] }
  0x1f   : > { %v360_v23 = vld [vmem:[%s5851_s16 + $0x2c8] sm:$0xff]  ;;  %v279_v24 = vld [vmem:[%s5851_s16 + $0x40] sm:$0xff]  ;;  %v281_v26 = vld [vmem:[%s5851_s16 + $0x50] sm:$0xff] }
  0x20   : > { %v280_v25 = vld [vmem:[%s5851_s16 + $0x48] sm:$0xff]  ;;  %v282_v27 = vld [vmem:[%s5851_s16 + $0x58] sm:$0xff]  ;;  %v283_v28 = vld [vmem:[%s5851_s16 + $0x60] sm:$0xff] }
  0x21   : > { %5423 = vmatmul.msk.f32.gmra.mxu0 %vm381_vm1, %v272_v5  ;;  %5505 = vmatmul.msk.f32.gmra.mxu1 %vm381_vm1, %v354_v6  ;;  %v284_v29 = vld [vmem:[%s5851_s16 + $0x68] sm:$0xff]  ;;  %v285_v30 = vld [vmem:[%s5851_s16 + $0x70] sm:$0xff]  ;;  %v286_v31 = vld [vmem:[%s5851_s16 + $0x78] sm:$0xff] }
  0x22   : > { %5513 = vmatmul.msk.f32.gmra.mxu2 %vm381_vm1, %v362_v7  ;;  %v287_v35 = vld [vmem:[%s5851_s16 + $0x80] sm:$0xff]  ;;  %v288_v42 = vld [vmem:[%s5851_s16 + $0x88] sm:$0xff]  ;;  %v289_v61 = vld [vmem:[%s5851_s16 + $0x90] sm:$0xff] }
  0x23   : > { %v367_v4 = vld [vmem:[%s5851_s16 + $0x300] sm:$0xff] }
  0x24   : > { %5518 = vmatmul.msk.f32.gmra.mxu3 %vm381_vm1, %v367_v4 }
  0x29   : > { %5424 = vmatmul.msk.f32.gmra.mxu0 %vm381_vm1, %v273_v9  ;;  %5506 = vmatmul.msk.f32.gmra.mxu1 %vm381_vm1, %v355_v10 }
  0x2a   : > { %5514 = vmatmul.msk.f32.gmra.mxu2 %vm381_vm1, %v363_v11 }
  0x31   : > { %5425 = vmatmul.msk.f32.gmra.mxu0 %vm381_vm1, %v274_v12  ;;  %5507 = vmatmul.msk.f32.gmra.mxu1 %vm381_vm1, %v356_v13 }
  0x32   : > { %5515 = vmatmul.msk.f32.gmra.mxu2 %vm381_vm1, %v364_v14 }
  0x39   : > { %5426 = vmatmul.msk.f32.gmra.mxu0 %vm381_vm1, %v275_v15  ;;  %5508 = vmatmul.msk.f32.gmra.mxu1 %vm381_vm1, %v357_v16 }
  0x3a   : > { %5516 = vmatmul.msk.f32.gmra.mxu2 %vm381_vm1, %v365_v17  ;;  %v290_v17 = vld [vmem:[%s5851_s16 + $0x98] sm:$0xff] }
  0x41   : > { %5427 = vmatmul.msk.f32.gmra.mxu0 %vm381_vm1, %v276_v18  ;;  %5509 = vmatmul.msk.f32.gmra.mxu1 %vm381_vm1, %v358_v19 }
  0x49   : > { %5428 = vmatmul.msk.f32.gmra.mxu0 %vm381_vm1, %v277_v20  ;;  %5510 = vmatmul.msk.f32.gmra.mxu1 %vm381_vm1, %v359_v21 }
  0x51   : > { %5429 = vmatmul.msk.f32.gmra.mxu0 %vm381_vm1, %v278_v22  ;;  %5511 = vmatmul.msk.f32.gmra.mxu1 %vm381_vm1, %v360_v23 }
  0x59   : > { %5430 = vmatmul.msk.f32.gmra.mxu0 %vm381_vm1, %v279_v24 }
  0x61   : > { %5431 = vmatmul.msk.f32.gmra.mxu0 %vm381_vm1, %v280_v25 }
  0x69   : > { %5432 = vmatmul.msk.f32.gmra.mxu0 %vm381_vm1, %v281_v26  ;;  %v368_v26 = vld [vmem:[%s5851_s16 + $0x308] sm:$0xff] }
  0x6a   : > { %5519 = vmatmul.msk.f32.gmra.mxu3 %vm381_vm1, %v368_v26 }
  0x71   : > { %5433 = vmatmul.msk.f32.gmra.mxu0 %vm381_vm1, %v282_v27 }
  0x79   : > { %5434 = vmatmul.msk.f32.gmra.mxu0 %vm381_vm1, %v283_v28 }
  0x81   : > { %5435 = vmatmul.msk.f32.gmra.mxu0 %vm381_vm1, %v284_v29 }
  0x89   : > { %5436 = vmatmul.msk.f32.gmra.mxu0 %vm381_vm1, %v285_v30 }
  0x91   : > { %5437 = vmatmul.msk.f32.gmra.mxu0 %vm381_vm1, %v286_v31 }
  0x96   : > { %v715_v33 = vpop.f32.mrf.mxu0  ;;  %v961_v34 = vpop.f32.mrf.mxu1 }
  0x97   : > { %v716_v36 = vadd.f32 %v5913_v32, %v715_v33  ;;  %v962_v37 = vadd.f32 %v5913_v32, %v961_v34 }
  0x99   : > { %v5918_v38 = vmax.f32 %v716_v36, 0.0  ;;  %v5920_v39 = vmax.f32 %v962_v37, 0.0  ;;  %5438 = vmatmul.msk.f32.gmra.mxu0 %vm381_vm1, %v287_v35 }
  0x9b   : > { %9568 = vst [vmem:[#allocation11_spill] sm:$0xff] %v5920_v39  ;;  %v9423_v50 = vrot.slane %v5920_v39, 1  ;;  %v1301_v51 = vrot.slane %v5918_v38, 1  ;;  %v9424_v55 = vrot.slane %v5920_v39, 2  ;;  %v1759_v12 = vrot.slane %v5918_v38, 2 }
  0x9c   : > { %1132 = vst.msk [vmem:[#allocation2] sm:$0xff] %vm1131_vm2, %v5918_v38 }
  0x9d   : > { %1194 = vst.msk [vmem:[#allocation2 + $0x5d0] sm:$0xff] %vm1131_vm2, %v5920_v39  ;;  %v985_v45 = vpop.f32.mrf.mxu2 }
  0x9e   : > { %v718_v40 = vpop.f32.mrf.mxu0  ;;  %v964_v41 = vpop.f32.mrf.mxu1  ;;  %v986_v46 = vadd.f32 %v5913_v32, %v985_v45 }
  0x9f   : > { %v719_v43 = vadd.f32 %v5913_v32, %v718_v40  ;;  %v965_v44 = vadd.f32 %v5913_v32, %v964_v41 }
  0xa0   : > { %v5934_v49 = vmax.f32 %v986_v46, 0.0  ;;  %v1000_v46 = vpop.f32.mrf.mxu3 }
  0xa1   : > { %v5931_v47 = vmax.f32 %v719_v43, 0.0  ;;  %v1110_v48 = vmax.f32 %v965_v44, 0.0  ;;  %5439 = vmatmul.msk.f32.gmra.mxu0 %vm381_vm1, %v288_v42  ;;  %v291_v42 = vld [vmem:[%s5851_s16 + $0xa0] sm:$0xff] }
  0xa2   : > { %9569 = vst [vmem:[#allocation12_spill] sm:$0xff] %v5934_v49  ;;  %v1458_v7 = vrot.slane %v5934_v49, 1  ;;  %v1916_v8 = vrot.slane %v5934_v49, 2 }
  0xa3   : > { %1133 = vst.msk [vmem:[#allocation2 + $0x18] sm:$0xff] %vm1131_vm2, %v5931_v47  ;;  %v1446_v52 = vrot.slane %v1110_v48, 1  ;;  %v1904_v53 = vrot.slane %v1110_v48, 2  ;;  %v1302_v54 = vrot.slane %v5931_v47, 1  ;;  %v1760_v6 = vrot.slane %v5931_v47, 2 }
  0xa4   : > { %1200 = vst.msk [vmem:[#allocation2 + $0x660] sm:$0xff] %vm1131_vm2, %v5934_v49 }
  0xa5   : > { %v5947_v56 = vsel %vm1300_vm3, %v9423_v50, %v1446_v52  ;;  %v1303_v57 = vsel %vm1300_vm3, %v1301_v51, %v1302_v54  ;;  %v5955_v58 = vsel %vm1758_vm4, %v9424_v55, %v1904_v53  ;;  %v988_v0 = vpop.f32.mrf.mxu2  ;;  %v1761_v16 = vsel %vm1758_vm4, %v1759_v12, %v1760_v6  ;;  %v369_v52 = vld [vmem:[%s5851_s16 + $0x310] sm:$0xff] }
  0xa6   : > { %9570 = vst [vmem:[#allocation13_spill] sm:$0xff] %v5947_v56  ;;  %v967_v59 = vpop.f32.mrf.mxu1  ;;  %1593 = vrot.lane.b32.xlu2 %v5947_v56, %s5772_s17  ;;  %v721_v60 = vpop.f32.mrf.mxu0  ;;  %1469 = vrot.lane.b32.xlu0 %v1303_v57, %s5772_s17  ;;  %v989_v1 = vadd.f32 %v5913_v32, %v988_v0 }
  0xa7   : > { %9571 = vst [vmem:[#allocation14_spill] sm:$0xff] %v5955_v58  ;;  %v968_v62 = vadd.f32 %v5913_v32, %v967_v59  ;;  %v722_v63 = vadd.f32 %v5913_v32, %v721_v60  ;;  %5520 = vmatmul.msk.f32.gmra.mxu3 %vm381_vm1, %v369_v52 }
  0xa8   : > { %2647 = vst.msk [vmem:[#allocation2 + $0x590] sm:$0xff] %vm1131_vm2, %v5947_v56  ;;  %v1118_v5 = vmax.f32 %v989_v1, 0.0 }
  0xa9   : > { %3677 = vst.msk [vmem:[#allocation2 + $0x550] sm:$0xff] %vm1131_vm2, %v5955_v58  ;;  %v5968_v2 = vmax.f32 %v968_v62, 0.0  ;;  %v5970_v3 = vmax.f32 %v722_v63, 0.0  ;;  %5440 = vmatmul.msk.f32.gmra.mxu0 %vm381_vm1, %v289_v61 }
  0xaa   : > { %v1460_v10 = vrot.slane %v1118_v5, 1  ;;  %v1918_v11 = vrot.slane %v1118_v5, 2 }
  0xab   : > { %9572 = vst [vmem:[#allocation15_spill] sm:$0xff] %v5968_v2  ;;  %v1762_v9 = vrot.slane %v5970_v3, 2  ;;  %v1304_v28 = vrot.slane %v5970_v3, 1  ;;  %v1448_v29 = vrot.slane %v5968_v2, 1  ;;  %v1906_v34 = vrot.slane %v5968_v2, 2 }
  0xac   : > { %1195 = vst.msk [vmem:[#allocation2 + $0x5e8] sm:$0xff] %vm1131_vm2, %v5968_v2  ;;  %v5995_v18 = vsel %vm1300_vm3, %v1458_v7, %v1460_v10  ;;  %v6000_v19 = vsel %vm1758_vm4, %v1916_v8, %v1918_v11 }
  0xad   : > { %1134 = vst.msk [vmem:[#allocation2 + $0x30] sm:$0xff] %vm1131_vm2, %v5970_v3  ;;  %v1763_v13 = vsel %vm1758_vm4, %v1760_v6, %v1762_v9  ;;  %v991_v22 = vpop.f32.mrf.mxu2  ;;  %v1305_v41 = vsel %vm1300_vm3, %v1302_v54, %v1304_v28  ;;  %v1001_v54 = vadd.f32 %v5913_v32, %v1000_v46  ;;  %v292_v6 = vld [vmem:[%s5851_s16 + $0xa8] sm:$0xff] }
  0xae   : > { %v970_v14 = vpop.f32.mrf.mxu1  ;;  %2051 = vrot.lane.b32.xlu2 %v5955_v58, %s5773_s19  ;;  %v724_v15 = vpop.f32.mrf.mxu0  ;;  %1929 = vrot.lane.b32.xlu1 %v1763_v13, %s5773_s19  ;;  %9573 = vst [vmem:[#allocation16_spill] sm:$0xff] %v5995_v18  ;;  %v992_v23 = vadd.f32 %v5913_v32, %v991_v22 }
  0xaf   : > { %9574 = vst [vmem:[#allocation17_spill] sm:$0xff] %v6000_v19  ;;  %v971_v20 = vadd.f32 %v5913_v32, %v970_v14  ;;  %v6004_v21 = vadd.f32 %v5913_v32, %v724_v15  ;;  %1927 = vrot.lane.b32.xlu0 %v1761_v16, %s5773_s19  ;;  %v1122_v10 = vmax.f32 %v1001_v54, 0.0 }
  0xb0   : > { %2653 = vst.msk [vmem:[#allocation2 + $0x620] sm:$0xff] %vm1131_vm2, %v5995_v18  ;;  %v6017_v27 = vmax.f32 %v992_v23, 0.0  ;;  %v370_v23 = vld [vmem:[%s5851_s16 + $0x318] sm:$0xff] }
  0xb1   : > { %3683 = vst.msk [vmem:[#allocation2 + $0x5e0] sm:$0xff] %vm1131_vm2, %v6000_v19  ;;  %v6012_v24 = vmax.f32 %v971_v20, 0.0  ;;  %v1030_v25 = vmax.f32 %v6004_v21, 0.0  ;;  %5441 = vmatmul.msk.f32.gmra.mxu0 %vm381_vm1, %v290_v17  ;;  %5521 = vmatmul.msk.f32.gmra.mxu3 %vm381_vm1, %v370_v23 }
  0xb2   : > { %9576 = vst [vmem:[#allocation19_spill] sm:$0xff] %v6017_v27  ;;  %v1462_v57 = vrot.slane %v6017_v27, 1  ;;  %v1920_v59 = vrot.slane %v6017_v27, 2 }
  0xb3   : > { %9575 = vst [vmem:[#allocation18_spill] sm:$0xff] %v6012_v24  ;;  %v1306_v30 = vrot.slane %v1030_v25, 1  ;;  %v1449_v31 = vrot.slane %v6012_v24, 1  ;;  %v1907_v33 = vrot.slane %v6012_v24, 2  ;;  %v1764_v17 = vrot.slane %v1030_v25, 2 }
  0xb4   : > { %1196 = vst.msk [vmem:[#allocation2 + $0x600] sm:$0xff] %vm1131_vm2, %v6012_v24 }
  0xb5   : > { %1201 = vst.msk [vmem:[#allocation2 + $0x678] sm:$0xff] %vm1131_vm2, %v6017_v27  ;;  %v1307_v35 = vsel %vm1300_vm3, %v1304_v28, %v1306_v30  ;;  %v6033_v36 = vsel %vm1300_vm3, %v1448_v29, %v1449_v31  ;;  %v6036_v37 = vsel %vm1758_vm4, %v1906_v34, %v1907_v33  ;;  %v994_v45 = vpop.f32.mrf.mxu2  ;;  %v1467_v28 = vrot.slane %v1122_v10, 1 }
  0xb6   : > { %9577 = vst [vmem:[#allocation20_spill] sm:$0xff] %v6033_v36  ;;  %v973_v38 = vpop.f32.mrf.mxu1  ;;  %1605 = vrot.lane.b32.xlu2 %v5995_v18, %s5772_s17  ;;  %v727_v40 = vpop.f32.mrf.mxu0  ;;  %1473 = vrot.lane.b32.xlu1 %v1307_v35, %s5772_s17  ;;  %v995_v48 = vadd.f32 %v5913_v32, %v994_v45  ;;  %v1925_v29 = vrot.slane %v1122_v10, 2 }
  0xb7   : > { %9578 = vst [vmem:[#allocation21_spill] sm:$0xff] %v6036_v37  ;;  %v974_v43 = vadd.f32 %v5913_v32, %v973_v38  ;;  %v728_v44 = vadd.f32 %v5913_v32, %v727_v40  ;;  %1471 = vrot.lane.b32.xlu0 %v1305_v41, %s5772_s17  ;;  %v293_v41 = vld [vmem:[%s5851_s16 + $0xb0] sm:$0xff] }
  0xb8   : > { %2648 = vst.msk [vmem:[#allocation2 + $0x5a8] sm:$0xff] %vm1131_vm2, %v6033_v36  ;;  %v6059_v53 = vmax.f32 %v995_v48, 0.0 }
  0xb9   : > { %3678 = vst.msk [vmem:[#allocation2 + $0x568] sm:$0xff] %vm1131_vm2, %v6036_v37  ;;  %v6053_v47 = vmax.f32 %v974_v43, 0.0  ;;  %v6055_v51 = vmax.f32 %v728_v44, 0.0  ;;  %5442 = vmatmul.msk.f32.gmra.mxu0 %vm381_vm1, %v291_v42 }
  0xba   : > { %9580 = vst [vmem:[#allocation23_spill] sm:$0xff] %v6059_v53  ;;  %v1463_v62 = vrot.slane %v6059_v53, 1  ;;  %v1921_v63 = vrot.slane %v6059_v53, 2 }
  0xbb   : > { %9579 = vst [vmem:[#allocation22_spill] sm:$0xff] %v6053_v47  ;;  %v1451_v60 = vrot.slane %v6053_v47, 1  ;;  %v1909_v61 = vrot.slane %v6053_v47, 2  ;;  %v1308_v35 = vrot.slane %v6055_v51, 1 }
  0xbc   : > { %1197 = vst.msk [vmem:[#allocation2 + $0x618] sm:$0xff] %vm1131_vm2, %v6053_v47  ;;  %v6091_v11 = vsel %vm1300_vm3, %v1462_v57, %v1463_v62  ;;  %v6094_v12 = vsel %vm1758_vm4, %v1920_v59, %v1921_v63  ;;  %v371_v59 = vld [vmem:[%s5851_s16 + $0x320] sm:$0xff] }
  0xbd   : > { %1135 = vst.msk [vmem:[#allocation2 + $0x48] sm:$0xff] %vm1131_vm2, %v6055_v51  ;;  %v6076_v0 = vsel %vm1300_vm3, %v1449_v31, %v1451_v60  ;;  %v6081_v1 = vsel %vm1758_vm4, %v1907_v33, %v1909_v61  ;;  %v997_v15 = vpop.f32.mrf.mxu2  ;;  %v1765_v33 = vsel %vm1758_vm4, %v1762_v9, %v1764_v17  ;;  %5522 = vmatmul.msk.f32.gmra.mxu3 %vm381_vm1, %v371_v59 }
  0xbe   : > { %1202 = vst.msk [vmem:[#allocation2 + $0x690] sm:$0xff] %vm1131_vm2, %v6059_v53  ;;  %v976_v4 = vpop.f32.mrf.mxu1  ;;  %2063 = vrot.lane.b32.xlu2 %v6000_v19, %s5773_s19  ;;  %v730_v5 = vpop.f32.mrf.mxu0  ;;  %1597 = vrot.lane.b32.xlu1 %v6076_v0, %s5772_s17  ;;  %v998_v16 = vadd.f32 %v5913_v32, %v997_v15 }
  0xbf   : > { %9581 = vst [vmem:[#allocation24_spill] sm:$0xff] %v6076_v0  ;;  %v977_v13 = vadd.f32 %v5913_v32, %v976_v4  ;;  %v731_v14 = vadd.f32 %v5913_v32, %v730_v5  ;;  %1595 = vrot.lane.b32.xlu0 %v6033_v36, %s5772_s17  ;;  %v294_v4 = vld [vmem:[%s5851_s16 + $0xb8] sm:$0xff] }
  0xc0   : > { %9582 = vst [vmem:[#allocation25_spill] sm:$0xff] %v6081_v1  ;;  %v6113_v26 = vmax.f32 %v998_v16, 0.0 }
  0xc1   : > { %2649 = vst.msk [vmem:[#allocation2 + $0x5c0] sm:$0xff] %vm1131_vm2, %v6076_v0  ;;  %v1114_v20 = vmax.f32 %v977_v13, 0.0  ;;  %v6107_v22 = vmax.f32 %v731_v14, 0.0  ;;  %5443 = vmatmul.msk.f32.gmra.mxu0 %vm381_vm1, %v292_v6 }
  0xc2   : > { %9583 = vst [vmem:[#allocation26_spill] sm:$0xff] %v6091_v11  ;;  %v1465_v21 = vrot.slane %v6113_v26, 1  ;;  %v1923_v25 = vrot.slane %v6113_v26, 2 }
  0xc3   : > { %9584 = vst [vmem:[#allocation27_spill] sm:$0xff] %v6094_v12  ;;  %v1453_v30 = vrot.slane %v1114_v20, 1  ;;  %v1911_v31 = vrot.slane %v1114_v20, 2  ;;  %v1309_v46 = vrot.slane %v6107_v22, 1  ;;  %v1767_v59 = vrot.slane %v6107_v22, 2 }
  0xc4   : > { %3679 = vst.msk [vmem:[#allocation2 + $0x580] sm:$0xff] %vm1131_vm2, %v6081_v1  ;;  %v6134_v42 = vsel %vm1300_vm3, %v1465_v21, %v1467_v28  ;;  %v6137_v3 = vsel %vm1758_vm4, %v1923_v25, %v1925_v29  ;;  %v6140_v9 = vsel %vm1300_vm3, %v1463_v62, %v1465_v21  ;;  %v6151_v45 = vsel %vm1758_vm4, %v1921_v63, %v1923_v25  ;;  %v295_v21 = vld [vmem:[%s5851_s16 + $0xc0] sm:$0xff]  ;;  %v372_v25 = vld [vmem:[%s5851_s16 + $0x328] sm:$0xff] }
  0xc5   : > { %2654 = vst.msk [vmem:[#allocation2 + $0x638] sm:$0xff] %vm1131_vm2, %v6091_v11  ;;  %v6126_v34 = vsel %vm1300_vm3, %v1451_v60, %v1453_v30  ;;  %v6168_v54 = vsel %vm1758_vm4, %v1909_v61, %v1911_v31  ;;  %v6173_v57 = vsel %vm1300_vm3, %v1308_v35, %v1309_v46  ;;  %5523 = vmatmul.msk.f32.gmra.mxu3 %vm381_vm1, %v372_v25  ;;  %v3942_v25 = vld [vmem:[%s9420_s3 + $0x108] sm:$0xff] }
  0xc6   : > { %3684 = vst.msk [vmem:[#allocation2 + $0x5f8] sm:$0xff] %vm1131_vm2, %v6094_v12  ;;  %v733_v38 = vpop.f32.mrf.mxu0  ;;  %v979_v40 = vpop.f32.mrf.mxu1  ;;  %1931 = vrot.lane.b32.xlu2 %v1765_v33, %s5773_s19  ;;  %2055 = vrot.lane.b32.xlu1 %v6081_v1, %s5773_s19 }
  0xc7   : > { %9585 = vst [vmem:[#allocation28_spill] sm:$0xff] %v6113_v26  ;;  %v734_v43 = vadd.f32 %v5913_v32, %v733_v38  ;;  %v980_v44 = vadd.f32 %v5913_v32, %v979_v40  ;;  %2053 = vrot.lane.b32.xlu0 %v6036_v37, %s5773_s19  ;;  %v296_v40 = vld [vmem:[%s5851_s16 + $0xc8] sm:$0xff] }
  0xc8   : > { %1136 = vst.msk [vmem:[#allocation2 + $0x60] sm:$0xff] %vm1131_vm2, %v6107_v22 }
  0xc9   : > { %1203 = vst.msk [vmem:[#allocation2 + $0x6a8] sm:$0xff] %vm1131_vm2, %v6113_v26  ;;  %v6156_v48 = vmax.f32 %v734_v43, 0.0  ;;  %v6158_v52 = vmax.f32 %v980_v44, 0.0  ;;  %5444 = vmatmul.msk.f32.gmra.mxu0 %vm381_vm1, %v293_v41 }
  0xca   : > { %9586 = vst [vmem:[#allocation29_spill] sm:$0xff] %v6126_v34 }
  0xcb   : > { %9587 = vst [vmem:[#allocation30_spill] sm:$0xff] %v6134_v42  ;;  %v1311_v60 = vrot.slane %v6156_v48, 1  ;;  %v1455_v14 = vrot.slane %v6158_v52, 1  ;;  %v1913_v15 = vrot.slane %v6158_v52, 2 }
  0xcc   : > { %9588 = vst [vmem:[#allocation31_spill] sm:$0xff] %v6137_v3 }
  0xcd   : > { %9589 = vst [vmem:[#allocation32_spill] sm:$0xff] %v6140_v9  ;;  %v6183_v61 = vsel %vm1300_vm3, %v1309_v46, %v1311_v60  ;;  %v1766_v46 = vrot.slane %v6055_v51, 2 }
  0xce   : > { %2650 = vst.msk [vmem:[#allocation2 + $0x5d8] sm:$0xff] %vm1131_vm2, %v6126_v34  ;;  %v736_v62 = vpop.f32.mrf.mxu0  ;;  %v982_v63 = vpop.f32.mrf.mxu1  ;;  %1611 = vrot.lane.b32.xlu2 %v6134_v42, %s5772_s17  ;;  %2221 = vrot.lane.b32.xlu1 %v6107_v22, %s5774_s20  ;;  %v297_v22 = vld [vmem:[%s5851_s16 + $0xd0] sm:$0xff] }
  0xcf   : > { %2656 = vst.msk [vmem:[#allocation2 + $0x668] sm:$0xff] %vm1131_vm2, %v6134_v42  ;;  %v6193_v5 = vadd.f32 %v5913_v32, %v736_v62  ;;  %v983_v6 = vadd.f32 %v5913_v32, %v982_v63  ;;  %2219 = vrot.lane.b32.xlu0 %v6055_v51, %s5774_s20  ;;  %v1768_v51 = vsel %vm1758_vm4, %v1766_v46, %v1767_v59  ;;  %v298_v46 = vld [vmem:[%s5851_s16 + $0xd8] sm:$0xff] }
  0xd0   : > { %9590 = vst [vmem:[#allocation33_spill] sm:$0xff] %v6151_v45 }
  0xd1   : > { %3686 = vst.msk [vmem:[#allocation2 + $0x628] sm:$0xff] %vm1131_vm2, %v6137_v3  ;;  %v1034_v10 = vmax.f32 %v6193_v5, 0.0  ;;  %v6201_v13 = vmax.f32 %v983_v6, 0.0  ;;  %5445 = vmatmul.msk.f32.gmra.mxu0 %vm381_vm1, %v294_v4 }
  0xd2   : > { %9591 = vst [vmem:[#allocation34_spill] sm:$0xff] %v6158_v52 }
  0xd3   : > { %2655 = vst.msk [vmem:[#allocation2 + $0x650] sm:$0xff] %vm1131_vm2, %v6140_v9  ;;  %v1313_v16 = vrot.slane %v1034_v10, 1  ;;  %v1456_v17 = vrot.slane %v6201_v13, 1  ;;  %v1914_v20 = vrot.slane %v6201_v13, 2 }
  0xd4   : > { %3685 = vst.msk [vmem:[#allocation2 + $0x610] sm:$0xff] %vm1131_vm2, %v6151_v45 }
  0xd5   : > { %9592 = vst [vmem:[#allocation35_spill] sm:$0xff] %v6168_v54  ;;  %v6213_v23 = vsel %vm1300_vm3, %v1455_v14, %v1456_v17  ;;  %v6218_v28 = vsel %vm1300_vm3, %v1456_v17, %v1458_v7  ;;  %v6221_v29 = vsel %vm1758_vm4, %v1913_v15, %v1914_v20  ;;  %v6234_v7 = vsel %vm1758_vm4, %v1914_v20, %v1916_v8  ;;  %v373_v8 = vld [vmem:[%s5851_s16 + $0x330] sm:$0xff]  ;;  %v374_v14 = vld [vmem:[%s5851_s16 + $0x338] sm:$0xff] }
  0xd6   : > { %1137 = vst.msk [vmem:[#allocation2 + $0x78] sm:$0xff] %vm1131_vm2, %v6156_v48  ;;  %v739_v30 = vpop.f32.mrf.mxu0  ;;  %2069 = vrot.lane.b32.xlu2 %v6137_v3, %s5773_s19  ;;  %1609 = vrot.lane.b32.xlu1 %v6140_v9, %s5772_s17  ;;  %v6243_v33 = vsel %vm1300_vm3, %v1311_v60, %v1313_v16  ;;  %v3944_v16 = vld [vmem:[%s9420_s3 + $0x118] sm:$0xff]  ;;  %v3943_v17 = vld [vmem:[%s9420_s3 + $0x110] sm:$0xff] }
  0xd7   : > { %1198 = vst.msk [vmem:[#allocation2 + $0x630] sm:$0xff] %vm1131_vm2, %v6158_v52  ;;  %v740_v31 = vadd.f32 %v5913_v32, %v739_v30  ;;  %1607 = vrot.lane.b32.xlu0 %v6091_v11, %s5772_s17  ;;  %5524 = vmatmul.msk.f32.gmra.mxu3 %vm381_vm1, %v373_v8  ;;  %v1769_v30 = vrot.slane %v6156_v48, 2 }
  0xd8   : > { %3680 = vst.msk [vmem:[#allocation2 + $0x598] sm:$0xff] %vm1131_vm2, %v6168_v54  ;;  %4643 = vmatpush.msrb.mxu3 %v3944_v16 }
  0xd9   : > { %2588 = vst.msk [vmem:[#allocation2 + $0x8] sm:$0xff] %vm1131_vm2, %v6173_v57  ;;  %v6247_v35 = vmax.f32 %v740_v31, 0.0  ;;  %5446 = vmatmul.msk.f32.gmra.mxu0 %vm381_vm1, %v295_v21  ;;  %v3941_v31 = vld [vmem:[%s9420_s3 + $0x100] sm:$0xff] }
  0xda   : > { %2589 = vst.msk [vmem:[#allocation2 + $0x20] sm:$0xff] %vm1131_vm2, %v6183_v61  ;;  %4644 = vmatpush.msrb.mxu3 %v3943_v17 }
  0xdb   : > { %9593 = vst [vmem:[#allocation36_spill] sm:$0xff] %v6201_v13  ;;  %v1773_v43 = vrot.slane %v6247_v35, 2  ;;  %v1315_v63 = vrot.slane %v6247_v35, 1 }
  0xdc   : > { %1199 = vst.msk [vmem:[#allocation2 + $0x648] sm:$0xff] %vm1131_vm2, %v6201_v13  ;;  %4645 = vmatpush.msrb.mxu3 %v3942_v25 }
  0xdd   : > { %9594 = vst [vmem:[#allocation37_spill] sm:$0xff] %v6213_v23 }
  0xde   : > { %9595 = vst [vmem:[#allocation38_spill] sm:$0xff] %v6218_v28  ;;  %v742_v38 = vpop.f32.mrf.mxu0  ;;  %1599 = vrot.lane.b32.xlu2 %v6126_v34, %s5772_s17  ;;  %2067 = vrot.lane.b32.xlu1 %v6151_v45, %s5773_s19 }
  0xdf   : > { %9596 = vst [vmem:[#allocation39_spill] sm:$0xff] %v6221_v29  ;;  %v743_v41 = vadd.f32 %v5913_v32, %v742_v38  ;;  %2065 = vrot.lane.b32.xlu0 %v6094_v12, %s5773_s19  ;;  %5525 = vmatmul.msk.f32.gmra.mxu3 %vm381_vm1, %v374_v14  ;;  %v1770_v38 = vsel %vm1758_vm4, %v1767_v59, %v1769_v30 }
  0xe0   : > { %2651 = vst.msk [vmem:[#allocation2 + $0x5f0] sm:$0xff] %vm1131_vm2, %v6213_v23  ;;  %4646 = vmatpush.msrb.mxu3 %v3941_v31  ;;  %v300_v31 = vld [vmem:[%s5851_s16 + $0xe8] sm:$0xff] }
  0xe1   : > { %9597 = vst [vmem:[#allocation40_spill] sm:$0xff] %v6234_v7  ;;  %v6267_v44 = vmax.f32 %v743_v41, 0.0  ;;  %5447 = vmatmul.msk.f32.gmra.mxu0 %vm381_vm1, %v296_v40 }
  0xe2   : > { %2652 = vst.msk [vmem:[#allocation2 + $0x608] sm:$0xff] %vm1131_vm2, %v6218_v28 }
  0xe3   : > { %3681 = vst.msk [vmem:[#allocation2 + $0x5b0] sm:$0xff] %vm1131_vm2, %v6221_v29  ;;  %v1774_v60 = vrot.slane %v6267_v44, 2  ;;  %v1316_v4 = vrot.slane %v6267_v44, 1 }
  0xe4   : > { %3682 = vst.msk [vmem:[#allocation2 + $0x5c8] sm:$0xff] %vm1131_vm2, %v6234_v7 }
  0xe5   : > { %2590 = vst.msk [vmem:[#allocation2 + $0x38] sm:$0xff] %vm1131_vm2, %v6243_v33  ;;  %v6276_v62 = vsel %vm1758_vm4, %v1773_v43, %v1774_v60 }
  0xe6   : > { %1138 = vst.msk [vmem:[#allocation2 + $0x90] sm:$0xff] %vm1131_vm2, %v6247_v35  ;;  %v745_v6 = vpop.f32.mrf.mxu0  ;;  %2057 = vrot.lane.b32.xlu2 %v6168_v54, %s5773_s19  ;;  %1475 = vrot.lane.b32.xlu1 %v6173_v57, %s5772_s17  ;;  %v6299_v57 = vsel %vm1300_vm3, %v1315_v63, %v1316_v4 }
  0xe7   : > { %1139 = vst.msk [vmem:[#allocation2 + $0xa8] sm:$0xff] %vm1131_vm2, %v6267_v44  ;;  %v746_v15 = vadd.f32 %v5913_v32, %v745_v6  ;;  %1933 = vrot.lane.b32.xlu0 %v1768_v51, %s5773_s19 }
  0xe8   : > { %3621 = vst.msk [vmem:[#allocation2 + $0x10] sm:$0xff] %vm1131_vm2, %v6276_v62 }
  0xe9   : > { %2591 = vst.msk [vmem:[#allocation2 + $0x50] sm:$0xff] %vm1131_vm2, %v6299_v57  ;;  %v6303_v20 = vmax.f32 %v746_v15, 0.0  ;;  %5448 = vmatmul.msk.f32.gmra.mxu0 %vm381_vm1, %v297_v22 }
  0xeb   : > { %1140 = vst.msk [vmem:[#allocation2 + $0xc0] sm:$0xff] %vm1131_vm2, %v6303_v20  ;;  %v1776_v21 = vrot.slane %v6303_v20, 2  ;;  %v1318_v41 = vrot.slane %v6303_v20, 1 }
  0xed   : > { %v6317_v8 = vsel %vm1758_vm4, %v1774_v60, %v1776_v21  ;;  %v6332_v59 = vsel %vm1300_vm3, %v1316_v4, %v1318_v41  ;;  %v299_v4 = vld [vmem:[%s5851_s16 + $0xe0] sm:$0xff] }
  0xee   : > { %v748_v43 = vpop.f32.mrf.mxu0  ;;  %3622 = vst.msk [vmem:[#allocation2 + $0x28] sm:$0xff] %vm1131_vm2, %v6317_v8  ;;  %2667 = vrot.lane.b32.xlu2 %v1768_v51, %s5772_s17  ;;  %1935 = vrot.lane.b32.xlu1 %v1770_v38, %s5773_s19 }
  0xef   : > { %v3695_v40 = vld [vmem:[#allocation2 + $0x10] sm:$0xff]  ;;  %v749_v60 = vadd.f32 %v5913_v32, %v748_v43  ;;  %1601 = vrot.lane.b32.xlu0 %v6213_v23, %s5772_s17  ;;  %2592 = vst.msk [vmem:[#allocation2 + $0x68] sm:$0xff] %vm1131_vm2, %v6332_v59 }
  0xf0   : > { %5526 = vmatmul.msk.f32.vlgmr.msrb.gmra.mxu3 %vm1131_vm2, %v3695_v40 }
  0xf1   : > { %v1038_v63 = vmax.f32 %v749_v60, 0.0  ;;  %5449 = vmatmul.msk.f32.gmra.mxu0 %vm381_vm1, %v298_v46 }
  0xf3   : > { %v1778_v6 = vrot.slane %v1038_v63, 2  ;;  %v1320_v16 = vrot.slane %v1038_v63, 1 }
  0xf5   : > { %v6339_v51 = vsel %vm1758_vm4, %v1776_v21, %v1778_v6  ;;  %v3698_v14 = vld [vmem:[#allocation2 + $0x28] sm:$0xff]  ;;  %v6358_v21 = vsel %vm1300_vm3, %v1318_v41, %v1320_v16 }
  0xf6   : > { %3623 = vst.msk [vmem:[#allocation2 + $0x40] sm:$0xff] %vm1131_vm2, %v6339_v51  ;;  %v751_v22 = vpop.f32.mrf.mxu0  ;;  %2223 = vrot.lane.b32.xlu2 %v6156_v48, %s5774_s20  ;;  %1603 = vrot.lane.b32.xlu1 %v6218_v28, %s5772_s17  ;;  %v3921_v48 = vld [vmem:[%s9420_s3 + $0x60] sm:$0xff] }
  0xf7   : > { %v752_v15 = vadd.f32 %v5913_v32, %v751_v22  ;;  %2059 = vrot.lane.b32.xlu0 %v6221_v29, %s5773_s19  ;;  %2593 = vst.msk [vmem:[#allocation2 + $0x80] sm:$0xff] %vm1131_vm2, %v6358_v21  ;;  %v301_v22 = vld [vmem:[%s5851_s16 + $0xf0] sm:$0xff] }
  0xf8   : > { %5527 = vmatmul.msk.f32.gmra.mxu3 %vm1131_vm2, %v3698_v14 }
  0xf9   : > { %v6352_v17 = vmax.f32 %v752_v15, 0.0  ;;  %5450 = vmatmul.msk.f32.gmra.mxu0 %vm381_vm1, %v299_v4 }
  0xfb   : > { %1141 = vst.msk [vmem:[#allocation2 + $0xd8] sm:$0xff] %vm1131_vm2, %v6352_v17  ;;  %v1780_v43 = vrot.slane %v6352_v17, 2 }
  0xfd   : > { %v3701_v60 = vld [vmem:[#allocation2 + $0x40] sm:$0xff] }
  0xfe   : > { %v754_v25 = vpop.f32.mrf.mxu0  ;;  %1477 = vrot.lane.b32.xlu2 %v6183_v61, %s5772_s17  ;;  %2061 = vrot.lane.b32.xlu1 %v6234_v7, %s5773_s19 }
  0xff   : > { %v755_v40 = vadd.f32 %v5913_v32, %v754_v25  ;;  %2225 = vrot.lane.b32.xlu0 %v6247_v35, %s5774_s20 }
 0x100   : > { %v1594_v41 = vpop.permute.xlu2 %1593  ;;  %5528 = vmatmul.msk.f32.gmra.mxu3 %vm1131_vm2, %v3701_v60  ;;  %v3922_v60 = vld [vmem:[%s9420_s3 + $0x68] sm:$0xff] }
 0x101   : > { %v6371_v46 = vmax.f32 %v755_v40, 0.0  ;;  %1748 = vst.msk [vmem:[#allocation2 + $0x5d0] sm:$0xff] %vm1685_vm5, %v1594_v41  ;;  %5451 = vmatmul.msk.f32.gmra.mxu0 %vm381_vm1, %v300_v31  ;;  %v3924_v31 = vld [vmem:[%s9420_s3 + $0x78] sm:$0xff]  ;;  %v3923_v41 = vld [vmem:[%s9420_s3 + $0x70] sm:$0xff] }
 0x102   : > { %4165 = vmatpush.msrb.mxu1 %v3924_v31 }
 0x103   : > { %v1781_v61 = vrot.slane %v6371_v46, 2  ;;  %1142 = vst.msk [vmem:[#allocation2 + $0xf0] sm:$0xff] %vm1131_vm2, %v6371_v46 }
 0x104   : > { %4166 = vmatpush.msrb.mxu1 %v3923_v41  ;;  %v3919_v41 = vld [vmem:[%s9420_s3 + $0x50] sm:$0xff] }
 0x105   : > { %v6379_v63 = vsel %vm1758_vm4, %v1780_v43, %v1781_v61  ;;  %v1771_v43 = vrot.slane %v1034_v10, 2  ;;  %v1322_v10 = vrot.slane %v6352_v17, 1 }
 0x106   : > { %3624 = vst.msk [vmem:[#allocation2 + $0x58] sm:$0xff] %vm1131_vm2, %v6379_v63  ;;  %v757_v6 = vpop.f32.mrf.mxu0  ;;  %2669 = vrot.lane.b32.xlu2 %v1770_v38, %s5772_s17  ;;  %2227 = vrot.lane.b32.xlu1 %v6267_v44, %s5774_s20 }
 0x107   : > { %v758_v4 = vadd.f32 %v5913_v32, %v757_v6  ;;  %2958 = vrot.lane.b32.xlu0 %v6247_v35, %s5773_s19  ;;  %v302_v35 = vld [vmem:[%s5851_s16 + $0xf8] sm:$0xff]  ;;  %v1772_v5 = vsel %vm1758_vm4, %v1769_v30, %v1771_v43  ;;  %4167 = vmatpush.msrb.mxu1 %v3922_v60  ;;  %v3917_v43 = vld [vmem:[%s9420_s3 + $0x40] sm:$0xff] }
 0x108   : > { %v2052_v14 = vpop.permute.xlu2 %2051 }
 0x109   : > { %v6391_v15 = vmax.f32 %v758_v4, 0.0  ;;  %2206 = vst.msk [vmem:[#allocation2 + $0x5d0] sm:$0xff] %vm2143_vm6, %v2052_v14  ;;  %5452 = vmatmul.msk.f32.gmra.mxu0 %vm381_vm1, %v301_v22  ;;  %v1323_v22 = vrot.slane %v6371_v46, 1  ;;  %v303_v14 = vld [vmem:[%s5851_s16 + $0x100] sm:$0xff]  ;;  %4168 = vmatpush.msrb.mxu1 %v3921_v48 }
 0x10b   : > { %1143 = vst.msk [vmem:[#allocation2 + $0x108] sm:$0xff] %vm1131_vm2, %v6391_v15  ;;  %v1783_v38 = vrot.slane %v6391_v15, 2  ;;  %v1325_v60 = vrot.slane %v6391_v15, 1 }
 0x10d   : > { %v6399_v16 = vsel %vm1758_vm4, %v1781_v61, %v1783_v38 }
 0x10e   : > { %v760_v25 = vpop.f32.mrf.mxu0  ;;  %3625 = vst.msk [vmem:[#allocation2 + $0x70] sm:$0xff] %vm1131_vm2, %v6399_v16  ;;  %1479 = vrot.lane.b32.xlu2 %v6243_v33, %s5772_s17  ;;  %3254 = vrot.lane.b32.xlu1 %v6299_v57, %s5774_s20 }
 0x10f   : > { %v6412_v40 = vadd.f32 %v5913_v32, %v760_v25  ;;  %2960 = vrot.lane.b32.xlu0 %v6267_v44, %s5773_s19  ;;  %v6453_v25 = vsel %vm1300_vm3, %v1322_v10, %v1323_v22 }
 0x110   : > { %v1606_v33 = vpop.permute.xlu2 %1605  ;;  %2594 = vst.msk [vmem:[#allocation2 + $0x98] sm:$0xff] %vm1131_vm2, %v6453_v25 }
 0x111   : > { %v1042_v61 = vmax.f32 %v6412_v40, 0.0  ;;  %1754 = vst.msk [vmem:[#allocation2 + $0x660] sm:$0xff] %vm1685_vm5, %v1606_v33  ;;  %5453 = vmatmul.msk.f32.gmra.mxu0 %vm381_vm1, %v302_v35  ;;  %v3910_v40 = vld [vmem:[%s9420_s3 + $0x8] sm:$0xff] }
 0x113   : > { %v1785_v44 = vrot.slane %v1042_v61, 2 }
 0x115   : > { %v6430_v6 = vsel %vm1758_vm4, %v1783_v38, %v1785_v44  ;;  %v3920_v38 = vld [vmem:[%s9420_s3 + $0x58] sm:$0xff] }
 0x116   : > { %3626 = vst.msk [vmem:[#allocation2 + $0x88] sm:$0xff] %vm1131_vm2, %v6430_v6  ;;  %v763_v4 = vpop.f32.mrf.mxu0  ;;  %1937 = vrot.lane.b32.xlu2 %v1772_v5, %s5773_s19  ;;  %1483 = vrot.lane.b32.xlu1 %v6332_v59, %s5772_s17  ;;  %v3704_v44 = vld [vmem:[#allocation2 + $0x58] sm:$0xff] }
 0x117   : > { %v764_v30 = vadd.f32 %v5913_v32, %v763_v4  ;;  %1481 = vrot.lane.b32.xlu0 %v6299_v57, %s5772_s17  ;;  %4169 = vmatpush.msrb.mxu1 %v3920_v38  ;;  %v3918_v57 = vld [vmem:[%s9420_s3 + $0x48] sm:$0xff] }
 0x118   : > { %v2064_v35 = vpop.permute.xlu2 %2063  ;;  %v1470_v31 = vpop.permute.xlu0 %1469  ;;  %5529 = vmatmul.msk.f32.gmra.mxu3 %vm1131_vm2, %v3704_v44  ;;  %v304_v4 = vld [vmem:[%s5851_s16 + $0x108] sm:$0xff] }
 0x119   : > { %v6460_v33 = vmax.f32 %v764_v30, 0.0  ;;  %2212 = vst.msk [vmem:[#allocation2 + $0x660] sm:$0xff] %vm2143_vm6, %v2064_v35  ;;  %5454 = vmatmul.msk.f32.gmra.mxu0 %vm381_vm1, %v303_v14  ;;  %4170 = vmatpush.msrb.mxu1 %v3919_v41  ;;  %v3916_v14 = vld [vmem:[%s9420_s3 + $0x38] sm:$0xff]  ;;  %v6486_v30 = vsel %vm1300_vm3, %v1323_v22, %v1325_v60 }
 0x11a   : > { %1686 = vst.msk [vmem:[#allocation2] sm:$0xff] %vm1685_vm5, %v1470_v31 }
 0x11b   : > { %1144 = vst.msk [vmem:[#allocation2 + $0x120] sm:$0xff] %vm1131_vm2, %v6460_v33  ;;  %4171 = vmatpush.msrb.mxu1 %v3918_v57  ;;  %v1787_v31 = vrot.slane %v6460_v33, 2 }
 0x11c   : > { %2595 = vst.msk [vmem:[#allocation2 + $0xb0] sm:$0xff] %vm1131_vm2, %v6486_v30 }
 0x11d   : > { %4172 = vmatpush.msrb.mxu1 %v3917_v43  ;;  %v3914_v43 = vld [vmem:[%s9420_s3 + $0x28] sm:$0xff] }
 0x11e   : > { %v766_v10 = vpop.f32.mrf.mxu0  ;;  %2671 = vrot.lane.b32.xlu2 %v1772_v5, %s5772_s17  ;;  %1941 = vrot.lane.b32.xlu1 %v6317_v8, %s5773_s19  ;;  %v3915_v5 = vld [vmem:[%s9420_s3 + $0x30] sm:$0xff] }
 0x11f   : > { %v767_v48 = vadd.f32 %v5913_v32, %v766_v10  ;;  %1939 = vrot.lane.b32.xlu0 %v6276_v62, %s5773_s19  ;;  %4173 = vmatpush.msrb.mxu1 %v3916_v14  ;;  %v3913_v14 = vld [vmem:[%s9420_s3 + $0x20] sm:$0xff] }
 0x120   : > { %v1932_v38 = vpop.permute.xlu2 %1931  ;;  %v1930_v35 = vpop.permute.xlu1 %1929 }
 0x121   : > { %v6494_v41 = vmax.f32 %v767_v48, 0.0  ;;  %v1928_v57 = vpop.permute.xlu0 %1927  ;;  %5455 = vmatmul.msk.f32.gmra.mxu0 %vm381_vm1, %v304_v4  ;;  %4174 = vmatpush.msrb.mxu1 %v3915_v5  ;;  %v305_v4 = vld [vmem:[%s5851_s16 + $0x110] sm:$0xff] }
 0x122   : > { %2144 = vst.msk [vmem:[#allocation2] sm:$0xff] %vm2143_vm6, %v1928_v57  ;;  %v3707_v48 = vld [vmem:[#allocation2 + $0x70] sm:$0xff] }
 0x123   : > { %v1788_v22 = vrot.slane %v6494_v41, 2  ;;  %1145 = vst.msk [vmem:[#allocation2 + $0x138] sm:$0xff] %vm1131_vm2, %v6494_v41  ;;  %4175 = vmatpush.msrb.mxu1 %v3914_v43  ;;  %5530 = vmatmul.msk.f32.gmra.mxu3 %vm1131_vm2, %v3707_v48  ;;  %v1327_v43 = vrot.slane %v1042_v61, 1  ;;  %v3909_v61 = vld [vmem:[%s9420_s3] sm:$0xff] }
 0x125   : > { %v6505_v44 = vsel %vm1758_vm4, %v1787_v31, %v1788_v22  ;;  %4176 = vmatpush.msrb.mxu1 %v3913_v14  ;;  %v3912_v31 = vld [vmem:[%s9420_s3 + $0x18] sm:$0xff] }
 0x126   : > { %3627 = vst.msk [vmem:[#allocation2 + $0xa0] sm:$0xff] %vm1131_vm2, %v6505_v44  ;;  %v769_v10 = vpop.f32.mrf.mxu0  ;;  %2673 = vrot.lane.b32.xlu2 %v6276_v62, %s5772_s17  ;;  %3256 = vrot.lane.b32.xlu1 %v6332_v59, %s5774_s20  ;;  %v3911_v59 = vld [vmem:[%s9420_s3 + $0x10] sm:$0xff] }
 0x127   : > { %v770_v5 = vadd.f32 %v5913_v32, %v769_v10  ;;  %2962 = vrot.lane.b32.xlu0 %v6303_v20, %s5773_s19  ;;  %4177 = vmatpush.msrb.mxu1 %v3912_v31  ;;  %v6549_v31 = vsel %vm1300_vm3, %v1325_v60, %v1327_v43 }
 0x128   : > { %v1612_v62 = vpop.permute.xlu2 %1611  ;;  %v1474_v57 = vpop.permute.xlu1 %1473  ;;  %2596 = vst.msk [vmem:[#allocation2 + $0xc8] sm:$0xff] %vm1131_vm2, %v6549_v31 }
 0x129   : > { %v6529_v10 = vmax.f32 %v770_v5, 0.0  ;;  %1757 = vst.msk [vmem:[#allocation2 + $0x6a8] sm:$0xff] %vm1685_vm5, %v1612_v62  ;;  %v1472_v14 = vpop.permute.xlu0 %1471  ;;  %5456 = vmatmul.msk.f32.gmra.mxu0 %vm381_vm1, %v305_v4  ;;  %4178 = vmatpush.msrb.mxu1 %v3911_v59  ;;  %v1003_v5 = vpop.f32.mrf.mxu3 }
 0x12a   : > { %1688 = vst.msk [vmem:[#allocation2 + $0x30] sm:$0xff] %vm1685_vm5, %v1474_v57  ;;  %v1004_v59 = vadd.f32 %v5913_v32, %v1003_v5  ;;  %v307_v5 = vld [vmem:[%s5851_s16 + $0x120] sm:$0xff] }
 0x12b   : > { %1146 = vst.msk [vmem:[#allocation2 + $0x150] sm:$0xff] %vm1131_vm2, %v6529_v10  ;;  %v1790_v48 = vrot.slane %v6529_v10, 2  ;;  %4179 = vmatpush.msrb.mxu1 %v3910_v40 }
 0x12c   : > { %2146 = vst.msk [vmem:[#allocation2 + $0x30] sm:$0xff] %vm2143_vm6, %v1932_v38  ;;  %v306_v38 = vld [vmem:[%s5851_s16 + $0x118] sm:$0xff] }
 0x12d   : > { %1687 = vst.msk [vmem:[#allocation2 + $0x18] sm:$0xff] %vm1685_vm5, %v1472_v14  ;;  %v6546_v4 = vsel %vm1758_vm4, %v1788_v22, %v1790_v48  ;;  %4180 = vmatpush.msrb.mxu1 %v3909_v61  ;;  %v3710_v14 = vld [vmem:[#allocation2 + $0x88] sm:$0xff]  ;;  %v6577_v61 = vmax.f32 %v1004_v59, 0.0 }
 0x12e   : > { %2145 = vst.msk [vmem:[#allocation2 + $0x18] sm:$0xff] %vm2143_vm6, %v1930_v35  ;;  %v772_v62 = vpop.f32.mrf.mxu0  ;;  %2229 = vrot.lane.b32.xlu2 %v6303_v20, %s5774_s20  ;;  %3258 = vrot.lane.b32.xlu1 %v6358_v21, %s5774_s20 }
 0x12f   : > { %v6558_v57 = vadd.f32 %v5913_v32, %v772_v62  ;;  %3628 = vst.msk [vmem:[#allocation2 + $0xb8] sm:$0xff] %vm1131_vm2, %v6546_v4  ;;  %2231 = vrot.lane.b32.xlu0 %v6352_v17, %s5774_s20  ;;  %5531 = vmatmul.msk.f32.gmra.mxu3 %vm1131_vm2, %v3710_v14 }
 0x130   : > { %v2070_v60 = vpop.permute.xlu2 %2069  ;;  %v1598_v35 = vpop.permute.xlu1 %1597  ;;  %9598 = vst [vmem:[#allocation41_spill] sm:$0xff] %v6577_v61 }
 0x131   : > { %v9425_v20 = vmax.f32 %v6558_v57, 0.0  ;;  %2215 = vst.msk [vmem:[#allocation2 + $0x6a8] sm:$0xff] %vm2143_vm6, %v2070_v60  ;;  %v1596_v22 = vpop.permute.xlu0 %1595  ;;  %5457 = vmatmul.msk.f32.gmra.mxu0 %vm381_vm1, %v306_v38  ;;  %v1006_v38 = vpop.f32.mrf.mxu3 }
 0x132   : > { %1750 = vst.msk [vmem:[#allocation2 + $0x600] sm:$0xff] %vm1685_vm5, %v1598_v35 }
 0x133   : > { %v1792_v43 = vrot.slane %v9425_v20, 2  ;;  %1749 = vst.msk [vmem:[#allocation2 + $0x5e8] sm:$0xff] %vm1685_vm5, %v1596_v22 }
 0x135   : > { %v6575_v40 = vsel %vm1758_vm4, %v1790_v48, %v1792_v43  ;;  %v1007_v48 = vadd.f32 %v5913_v32, %v1006_v38  ;;  %v2660_v43 = vrot.slane %v6577_v61, 2 }
 0x136   : > { %3629 = vst.msk [vmem:[#allocation2 + $0xd0] sm:$0xff] %vm1131_vm2, %v6575_v40  ;;  %v775_v62 = vpop.f32.mrf.mxu0  ;;  %2675 = vrot.lane.b32.xlu2 %v6317_v8, %s5772_s17  ;;  %2233 = vrot.lane.b32.xlu1 %v6371_v46, %s5774_s20 }
 0x137   : > { %v776_v60 = vadd.f32 %v5913_v32, %v775_v62  ;;  %2964 = vrot.lane.b32.xlu0 %v6352_v17, %s5773_s19  ;;  %v6596_v14 = vmax.f32 %v1007_v48, 0.0 }
 0x138   : > { %v1600_v35 = vpop.permute.xlu2 %1599  ;;  %v2056_v22 = vpop.permute.xlu1 %2055 }
 0x139   : > { %v6591_v59 = vmax.f32 %v776_v60, 0.0  ;;  %1751 = vst.msk [vmem:[#allocation2 + $0x618] sm:$0xff] %vm1685_vm5, %v1600_v35  ;;  %v2054_v8 = vpop.permute.xlu0 %2053  ;;  %5458 = vmatmul.msk.f32.gmra.mxu0 %vm381_vm1, %v307_v5  ;;  %v2661_v17 = vrot.slane %v6596_v14, 2  ;;  %v308_v5 = vld [vmem:[%s5851_s16 + $0x128] sm:$0xff]  ;;  %v1009_v60 = vpop.f32.mrf.mxu3 }
 0x13a   : > { %9599 = vst [vmem:[#allocation42_spill] sm:$0xff] %v6596_v14  ;;  %v1010_v35 = vadd.f32 %v5913_v32, %v1009_v60 }
 0x13b   : > { %2208 = vst.msk [vmem:[#allocation2 + $0x600] sm:$0xff] %vm2143_vm6, %v2056_v22  ;;  %v6604_v62 = vsel %vm1758_vm4, %v2660_v43, %v2661_v17 }
 0x13c   : > { %1147 = vst.msk [vmem:[#allocation2 + $0x168] sm:$0xff] %vm1131_vm2, %v6591_v59  ;;  %v6622_v55 = vmax.f32 %v1010_v35, 0.0 }
 0x13d   : > { %2207 = vst.msk [vmem:[#allocation2 + $0x5e8] sm:$0xff] %vm2143_vm6, %v2054_v8 }
 0x13e   : > { %9600 = vst [vmem:[#allocation43_spill] sm:$0xff] %v6604_v62  ;;  %v778_v38 = vpop.f32.mrf.mxu0  ;;  %1485 = vrot.lane.b32.xlu2 %v6358_v21, %s5772_s17  ;;  %3260 = vrot.lane.b32.xlu1 %v6453_v25, %s5774_s20  ;;  %v1794_v21 = vrot.slane %v6591_v59, 2 }
 0x13f   : > { %3687 = vst.msk [vmem:[#allocation2 + $0x640] sm:$0xff] %vm1131_vm2, %v6604_v62  ;;  %v779_v48 = vadd.f32 %v5913_v32, %v778_v38  ;;  %2966 = vrot.lane.b32.xlu0 %v6371_v46, %s5773_s19  ;;  %v2663_v32 = vrot.slane %v6622_v55, 2 }
 0x140   : > { %v2058_v22 = vpop.permute.xlu2 %2057  ;;  %v2222_v8 = vpop.permute.xlu1 %2221  ;;  %9601 = vst [vmem:[#allocation44_spill] sm:$0xff] %v6622_v55 }
 0x141   : > { %v6618_v43 = vmax.f32 %v779_v48, 0.0  ;;  %2209 = vst.msk [vmem:[#allocation2 + $0x618] sm:$0xff] %vm2143_vm6, %v2058_v22  ;;  %v2220_v50 = vpop.permute.xlu0 %2219  ;;  %5459 = vmatmul.msk.f32.gmra.mxu0 %vm381_vm1, %v308_v5  ;;  %v6634_v60 = vsel %vm1758_vm4, %v2661_v17, %v2663_v32  ;;  %v1329_v5 = vrot.slane %v6460_v33, 1  ;;  %v1330_v48 = vrot.slane %v6494_v41, 1  ;;  %v1012_v22 = vpop.f32.mrf.mxu3 }
 0x142   : > { %2437 = vst.msk [vmem:[#allocation2 + $0x18] sm:$0xff] %vm2435_vm7, %v2222_v8  ;;  %v6645_v8 = vld [vmem:[#allocation6] ss:$0 sm:$0xff] }
 0x143   : > { %v1795_v46 = vrot.slane %v6618_v43, 2  ;;  %1148 = vst.msk [vmem:[#allocation2 + $0x180] sm:$0xff] %vm1131_vm2, %v6618_v43  ;;  %v6656_v20 = vsel %vm1300_vm3, %v1329_v5, %v1330_v48 }
 0x144   : > { %2436 = vst.msk [vmem:[#allocation2] sm:$0xff] %vm2435_vm7, %v2220_v50  ;;  %v309_v50 = vld [vmem:[%s5851_s16 + $0x130] sm:$0xff] }
 0x145   : > { %v6631_v38 = vsel %vm1758_vm4, %v1794_v21, %v1795_v46  ;;  %9602 = vst [vmem:[#allocation45_spill] sm:$0xff] %v6634_v60  ;;  %v6653_v21 = vadd.f32 %v6645_v8, %v1012_v22 }
 0x146   : > { %3630 = vst.msk [vmem:[#allocation2 + $0xe8] sm:$0xff] %vm1131_vm2, %v6631_v38  ;;  %v781_v35 = vpop.f32.mrf.mxu0  ;;  %1943 = vrot.lane.b32.xlu2 %v6339_v51, %s5773_s19  ;;  %1489 = vrot.lane.b32.xlu1 %v6486_v30, %s5772_s17 }
 0x147   : > { %v782_v17 = vadd.f32 %v6645_v8, %v781_v35  ;;  %1487 = vrot.lane.b32.xlu0 %v6453_v25, %s5772_s17  ;;  %3688 = vst.msk [vmem:[#allocation2 + $0x658] sm:$0xff] %vm1131_vm2, %v6634_v60  ;;  %v9430_v25 = vmax.f32 %v6653_v21, 0.0 }
 0x148   : > { %9603 = vst [vmem:[#allocation46_spill] sm:$0xff] %v6653_v21  ;;  %v2668_v62 = vpop.permute.xlu2 %2667  ;;  %v1610_v45 = vpop.permute.xlu1 %1609 }
 0x149   : > { %2597 = vst.msk [vmem:[#allocation2 + $0xe0] sm:$0xff] %vm1131_vm2, %v6656_v20  ;;  %v6660_v3 = vmax.f32 %v782_v17, 0.0  ;;  %v1608_v35 = vpop.permute.xlu0 %1607  ;;  %5460 = vmatmul.msk.f32.gmra.mxu0 %vm381_vm1, %v309_v50  ;;  %v2665_v17 = vrot.slane %v9430_v25, 2  ;;  %v3940_v50 = vld [vmem:[%s9420_s3 + $0xf8] sm:$0xff]  ;;  %v3939_v25 = vld [vmem:[%s9420_s3 + $0xf0] sm:$0xff] }
 0x14a   : > { %2883 = vst.msk [vmem:[#allocation2 + $0x8] sm:$0xff] %vm1685_vm5, %v2668_v62  ;;  %v3713_v62 = vld [vmem:[#allocation2 + $0xa0] sm:$0xff]  ;;  %4398 = vmatpush.msrb.mxu2 %v3940_v50 }
 0x14b   : > { %1756 = vst.msk [vmem:[#allocation2 + $0x690] sm:$0xff] %vm1685_vm5, %v1610_v45  ;;  %v3693_v5 = vld [vmem:[#allocation2] sm:$0xff]  ;;  %v1797_v22 = vrot.slane %v6660_v3, 2  ;;  %v6679_v60 = vsel %vm1758_vm4, %v2663_v32, %v2665_v17  ;;  %5532 = vmatmul.msk.f32.gmra.mxu3 %vm1131_vm2, %v3713_v62  ;;  %v1015_v17 = vpop.f32.mrf.mxu3 }
 0x14c   : > { %1149 = vst.msk [vmem:[#allocation2 + $0x198] sm:$0xff] %vm1131_vm2, %v6660_v3  ;;  %4181 = vmatmul.f32.vlgmr.msrb.gmra.mxu1 %v3693_v5  ;;  %4399 = vmatpush.msrb.mxu2 %v3939_v25 }
 0x14d   : > { %1755 = vst.msk [vmem:[#allocation2 + $0x678] sm:$0xff] %vm1685_vm5, %v1608_v35  ;;  %v6676_v45 = vsel %vm1758_vm4, %v1795_v46, %v1797_v22  ;;  %v1332_v35 = vrot.slane %v6529_v10, 1  ;;  %v310_v46 = vld [vmem:[%s5851_s16 + $0x138] sm:$0xff] }
 0x14e   : > { %9604 = vst [vmem:[#allocation47_spill] sm:$0xff] %v6679_v60  ;;  %v784_v5 = vpop.f32.mrf.mxu0  ;;  %2677 = vrot.lane.b32.xlu2 %v6339_v51, %s5772_s17  ;;  %1947 = vrot.lane.b32.xlu1 %v6399_v16, %s5773_s19 }
 0x14f   : > { %3631 = vst.msk [vmem:[#allocation2 + $0x100] sm:$0xff] %vm1131_vm2, %v6676_v45  ;;  %v6694_v32 = vadd.f32 %v6645_v8, %v784_v5  ;;  %1945 = vrot.lane.b32.xlu0 %v6379_v63, %s5773_s19  ;;  %v6701_v62 = vsel %vm1300_vm3, %v1330_v48, %v1332_v35  ;;  %v3696_v48 = vld [vmem:[#allocation2 + $0x18] sm:$0xff] }
 0x150   : > { %3689 = vst.msk [vmem:[#allocation2 + $0x670] sm:$0xff] %vm1131_vm2, %v6679_v60  ;;  %v2224_v50 = vpop.permute.xlu2 %2223  ;;  %v2068_v51 = vpop.permute.xlu1 %2067  ;;  %v3938_v60 = vld [vmem:[%s9420_s3 + $0xe8] sm:$0xff] }
 0x151   : > { %2598 = vst.msk [vmem:[#allocation2 + $0xf8] sm:$0xff] %vm1131_vm2, %v6701_v62  ;;  %v9434_v12 = vmax.f32 %v6694_v32, 0.0  ;;  %v2066_v5 = vpop.permute.xlu0 %2065  ;;  %5461 = vmatmul.msk.f32.gmra.mxu0 %vm381_vm1, %v310_v46  ;;  %4400 = vmatpush.msrb.mxu2 %v3938_v60 }
 0x152   : > { %2438 = vst.msk [vmem:[#allocation2 + $0x30] sm:$0xff] %vm2435_vm7, %v2224_v50  ;;  %v311_v50 = vld [vmem:[%s5851_s16 + $0x140] sm:$0xff] }
 0x153   : > { %2214 = vst.msk [vmem:[#allocation2 + $0x690] sm:$0xff] %vm2143_vm6, %v2068_v51  ;;  %v1799_v25 = vrot.slane %v9434_v12, 2  ;;  %v1016_v51 = vadd.f32 %v6645_v8, %v1015_v17  ;;  %v3935_v12 = vld [vmem:[%s9420_s3 + $0xd0] sm:$0xff] }
 0x154   : > { %2213 = vst.msk [vmem:[#allocation2 + $0x678] sm:$0xff] %vm2143_vm6, %v2066_v5  ;;  %4184 = vmatmul.f32.gmra.mxu1 %v3696_v48  ;;  %v3937_v5 = vld [vmem:[%s9420_s3 + $0xe0] sm:$0xff] }
 0x155   : > { %v6716_v42 = vsel %vm1758_vm4, %v1797_v22, %v1799_v25  ;;  %v3716_v22 = vld [vmem:[#allocation2 + $0xb8] sm:$0xff]  ;;  %4401 = vmatpush.msrb.mxu2 %v3937_v5 }
 0x156   : > { %3632 = vst.msk [vmem:[#allocation2 + $0x118] sm:$0xff] %vm1131_vm2, %v6716_v42  ;;  %v787_v46 = vpop.f32.mrf.mxu0  ;;  %2679 = vrot.lane.b32.xlu2 %v6379_v63, %s5772_s17  ;;  %3262 = vrot.lane.b32.xlu1 %v6486_v30, %s5774_s20  ;;  %v3936_v63 = vld [vmem:[%s9420_s3 + $0xd8] sm:$0xff]  ;;  %v9605_v30 = vmax.f32 %v6558_v57, 0.0  ;;  %v6746_v57 = vmax.f32 %v1016_v51, 0.0 }
 0x157   : > { %v788_v60 = vadd.f32 %v6645_v8, %v787_v46  ;;  %2968 = vrot.lane.b32.xlu0 %v6391_v15, %s5773_s19  ;;  %5533 = vmatmul.msk.f32.gmra.mxu3 %vm1131_vm2, %v3716_v22 }
 0x158   : > { %v1334_v25 = vrot.slane %v9605_v30, 1  ;;  %v1478_v48 = vpop.permute.xlu2 %1477  ;;  %v1476_v17 = vpop.permute.xlu1 %1475  ;;  %4402 = vmatpush.msrb.mxu2 %v3936_v63  ;;  %9606 = vst [vmem:[#allocation48_spill] sm:$0xff] %v6746_v57 }
 0x159   : > { %v6741_v46 = vmax.f32 %v788_v60, 0.0  ;;  %1690 = vst.msk [vmem:[#allocation2 + $0x60] sm:$0xff] %vm1685_vm5, %v1478_v48  ;;  %v1934_v5 = vpop.permute.xlu0 %1933  ;;  %5462 = vmatmul.msk.f32.gmra.mxu0 %vm381_vm1, %v311_v50  ;;  %v3699_v26 = vld [vmem:[#allocation2 + $0x30] sm:$0xff]  ;;  %v1018_v30 = vpop.f32.mrf.mxu3  ;;  %v3934_v60 = vld [vmem:[%s9420_s3 + $0xc8] sm:$0xff]  ;;  %v3933_v50 = vld [vmem:[%s9420_s3 + $0xc0] sm:$0xff]  ;;  %v3542_v48 = vrot.slane %v6746_v57, 2 }
 0x15a   : > { %1689 = vst.msk [vmem:[#allocation2 + $0x48] sm:$0xff] %vm1685_vm5, %v1476_v17  ;;  %v1019_v22 = vadd.f32 %v6645_v8, %v1018_v30  ;;  %4403 = vmatpush.msrb.mxu2 %v3935_v12  ;;  %v6759_v51 = vsel %vm1300_vm3, %v1332_v35, %v1334_v25  ;;  %v3932_v35 = vld [vmem:[%s9420_s3 + $0xb8] sm:$0xff]  ;;  %v3931_v30 = vld [vmem:[%s9420_s3 + $0xb0] sm:$0xff] }
 0x15b   : > { %1150 = vst.msk [vmem:[#allocation2 + $0x1b0] sm:$0xff] %vm1131_vm2, %v6741_v46 }
 0x15c   : > { %2147 = vst.msk [vmem:[#allocation2 + $0x48] sm:$0xff] %vm2143_vm6, %v1934_v5  ;;  %4187 = vmatmul.f32.gmra.mxu1 %v3699_v26  ;;  %v6761_v63 = vmax.f32 %v1019_v22, 0.0  ;;  %4404 = vmatpush.msrb.mxu2 %v3934_v60  ;;  %v312_v26 = vld [vmem:[%s5851_s16 + $0x148] sm:$0xff]  ;;  %v1801_v22 = vrot.slane %v6741_v46, 2 }
 0x15d   : > { %2599 = vst.msk [vmem:[#allocation2 + $0x110] sm:$0xff] %vm1131_vm2, %v6759_v51 }
 0x15e   : > { %9607 = vst [vmem:[#allocation49_spill] sm:$0xff] %v6761_v63  ;;  %v790_v12 = vpop.f32.mrf.mxu0  ;;  %2235 = vrot.lane.b32.xlu2 %v6391_v15, %s5774_s20  ;;  %3264 = vrot.lane.b32.xlu1 %v6549_v31, %s5774_s20  ;;  %v3543_v17 = vrot.slane %v6761_v63, 2 }
 0x15f   : > { %v791_v25 = vadd.f32 %v6645_v8, %v790_v12  ;;  %2237 = vrot.lane.b32.xlu0 %v6460_v33, %s5774_s20  ;;  %4405 = vmatpush.msrb.mxu2 %v3933_v50 }
 0x160   : > { %v2670_v5 = vpop.permute.xlu2 %2669  ;;  %v1936_v15 = vpop.permute.xlu1 %1935  ;;  %v3544_v50 = vsel %vm1758_vm4, %v3542_v48, %v3543_v17 }
 0x161   : > { %v6782_v60 = vmax.f32 %v791_v25, 0.0  ;;  %2884 = vst.msk [vmem:[#allocation2 + $0x20] sm:$0xff] %vm1685_vm5, %v2670_v5  ;;  %v1602_v57 = vpop.permute.xlu0 %1601  ;;  %5463 = vmatmul.msk.f32.gmra.mxu0 %vm381_vm1, %v312_v26  ;;  %4406 = vmatpush.msrb.mxu2 %v3932_v35  ;;  %v1021_v12 = vpop.f32.mrf.mxu3  ;;  %v3930_v26 = vld [vmem:[%s9420_s3 + $0xa8] sm:$0xff]  ;;  %v3719_v35 = vld [vmem:[#allocation2 + $0xd0] sm:$0xff] }
 0x162   : > { %2148 = vst.msk [vmem:[#allocation2 + $0x60] sm:$0xff] %vm2143_vm6, %v1936_v15  ;;  %v1022_v25 = vadd.f32 %v6645_v8, %v1021_v12  ;;  %5534 = vmatmul.msk.f32.gmra.mxu3 %vm1131_vm2, %v3719_v35 }
 0x163   : > { %v1802_v63 = vrot.slane %v6782_v60, 2  ;;  %1151 = vst.msk [vmem:[#allocation2 + $0x1c8] sm:$0xff] %vm1131_vm2, %v6782_v60  ;;  %4407 = vmatpush.msrb.mxu2 %v3931_v30  ;;  %v3929_v30 = vld [vmem:[%s9420_s3 + $0xa0] sm:$0xff] }
 0x164   : > { %1752 = vst.msk [vmem:[#allocation2 + $0x630] sm:$0xff] %vm1685_vm5, %v1602_v57  ;;  %v6800_v48 = vmax.f32 %v1022_v25, 0.0  ;;  %v313_v57 = vld [vmem:[%s5851_s16 + $0x150] sm:$0xff] }
 0x165   : > { %v6797_v5 = vsel %vm1758_vm4, %v1801_v22, %v1802_v63  ;;  %3690 = vst.msk [vmem:[#allocation2 + $0x688] sm:$0xff] %vm1131_vm2, %v3544_v50  ;;  %4408 = vmatpush.msrb.mxu2 %v3930_v26  ;;  %v3927_v26 = vld [vmem:[%s9420_s3 + $0x90] sm:$0xff] }
 0x166   : > { %9608 = vst [vmem:[#allocation50_spill] sm:$0xff] %v6800_v48  ;;  %v793_v15 = vpop.f32.mrf.mxu0  ;;  %2681 = vrot.lane.b32.xlu2 %v6399_v16, %s5772_s17  ;;  %2239 = vrot.lane.b32.xlu1 %v6494_v41, %s5774_s20  ;;  %v3545_v50 = vrot.slane %v6800_v48, 2  ;;  %v3928_v16 = vld [vmem:[%s9420_s3 + $0x98] sm:$0xff] }
 0x167   : > { %3633 = vst.msk [vmem:[#allocation2 + $0x130] sm:$0xff] %vm1131_vm2, %v6797_v5  ;;  %v794_v22 = vadd.f32 %v6645_v8, %v793_v15  ;;  %2970 = vrot.lane.b32.xlu0 %v6460_v33, %s5773_s19  ;;  %4409 = vmatpush.msrb.mxu2 %v3929_v30 }
 0x168   : > { %v1480_v12 = vpop.permute.xlu2 %1479  ;;  %v1604_v25 = vpop.permute.xlu1 %1603  ;;  %v3546_v33 = vsel %vm1758_vm4, %v3543_v17, %v3545_v50  ;;  %v3925_v17 = vld [vmem:[%s9420_s3 + $0x80] sm:$0xff] }
 0x169   : > { %v6823_v35 = vmax.f32 %v794_v22, 0.0  ;;  %1691 = vst.msk [vmem:[#allocation2 + $0x78] sm:$0xff] %vm1685_vm5, %v1480_v12  ;;  %v2060_v15 = vpop.permute.xlu0 %2059  ;;  %5464 = vmatmul.msk.f32.gmra.mxu0 %vm381_vm1, %v313_v57  ;;  %4410 = vmatpush.msrb.mxu2 %v3928_v16  ;;  %v1024_v30 = vpop.f32.mrf.mxu3  ;;  %v3926_v57 = vld [vmem:[%s9420_s3 + $0x88] sm:$0xff] }
 0x16a   : > { %1753 = vst.msk [vmem:[#allocation2 + $0x648] sm:$0xff] %vm1685_vm5, %v1604_v25  ;;  %v6833_v22 = vadd.f32 %v6645_v8, %v1024_v30 }
 0x16b   : > { %1152 = vst.msk [vmem:[#allocation2 + $0x1e0] sm:$0xff] %vm1131_vm2, %v6823_v35  ;;  %v1804_v48 = vrot.slane %v6823_v35, 2  ;;  %4411 = vmatpush.msrb.mxu2 %v3927_v26  ;;  %v314_v26 = vld [vmem:[%s5851_s16 + $0x158] sm:$0xff] }
 0x16c   : > { %9609 = vst [vmem:[#allocation51_spill] sm:$0xff] %v6833_v22  ;;  %v9443_v12 = vmax.f32 %v6833_v22, 0.0 }
 0x16d   : > { %2210 = vst.msk [vmem:[#allocation2 + $0x630] sm:$0xff] %vm2143_vm6, %v2060_v15  ;;  %v6843_v16 = vsel %vm1758_vm4, %v1802_v63, %v1804_v48  ;;  %4412 = vmatpush.msrb.mxu2 %v3926_v57 }
 0x16e   : > { %3691 = vst.msk [vmem:[#allocation2 + $0x6a0] sm:$0xff] %vm1131_vm2, %v3546_v33  ;;  %v796_v25 = vpop.f32.mrf.mxu0  ;;  %1491 = vrot.lane.b32.xlu2 %v6549_v31, %s5772_s17  ;;  %3266 = vrot.lane.b32.xlu1 %v6656_v20, %s5774_s20  ;;  %v3547_v63 = vrot.slane %v9443_v12, 2  ;;  %v1336_v12 = vrot.slane %v6591_v59, 1 }
 0x16f   : > { %3634 = vst.msk [vmem:[#allocation2 + $0x148] sm:$0xff] %vm1131_vm2, %v6843_v16  ;;  %v6855_v15 = vadd.f32 %v6645_v8, %v796_v25  ;;  %2972 = vrot.lane.b32.xlu0 %v6494_v41, %s5773_s19  ;;  %4413 = vmatpush.msrb.mxu2 %v3925_v17 }
 0x170   : > { %v1938_v33 = vpop.permute.xlu2 %1937  ;;  %v2062_v30 = vpop.permute.xlu1 %2061  ;;  %v3548_v25 = vsel %vm1758_vm4, %v3545_v50, %v3547_v63 }
 0x171   : > { %v9444_v57 = vmax.f32 %v6855_v15, 0.0  ;;  %2149 = vst.msk [vmem:[#allocation2 + $0x78] sm:$0xff] %vm2143_vm6, %v1938_v33  ;;  %v2226_v31 = vpop.permute.xlu0 %2225  ;;  %5465 = vmatmul.msk.f32.gmra.mxu0 %vm381_vm1, %v314_v26  ;;  %v1337_v33 = vrot.slane %v6618_v43, 1  ;;  %v315_v26 = vld [vmem:[%s5851_s16 + $0x160] sm:$0xff] }
 0x172   : > { %2211 = vst.msk [vmem:[#allocation2 + $0x648] sm:$0xff] %vm2143_vm6, %v2062_v30 }
 0x173   : > { %v1806_v41 = vrot.slane %v9444_v57, 2  ;;  %2439 = vst.msk [vmem:[#allocation2 + $0x48] sm:$0xff] %vm2435_vm7, %v2226_v31 }
 0x174   : > { %3692 = vst.msk [vmem:[#allocation2 + $0x6b8] sm:$0xff] %vm1131_vm2, %v3548_v25 }
 0x175   : > { %v6871_v17 = vsel %vm1758_vm4, %v1804_v48, %v1806_v41  ;;  %v6886_v48 = vsel %vm1300_vm3, %v1336_v12, %v1337_v33  ;;  %v1339_v12 = vrot.slane %v6660_v3, 1 }
 0x176   : > { %3635 = vst.msk [vmem:[#allocation2 + $0x160] sm:$0xff] %vm1131_vm2, %v6871_v17  ;;  %v799_v50 = vpop.f32.mrf.mxu0  ;;  %1949 = vrot.lane.b32.xlu2 %v6430_v6, %s5773_s19  ;;  %1495 = vrot.lane.b32.xlu1 %v6701_v62, %s5772_s17 }
 0x177   : > { %v800_v63 = vadd.f32 %v6645_v8, %v799_v50  ;;  %1493 = vrot.lane.b32.xlu0 %v6656_v20, %s5772_s17  ;;  %2600 = vst.msk [vmem:[#allocation2 + $0x128] sm:$0xff] %vm1131_vm2, %v6886_v48  ;;  %v3722_v20 = vld [vmem:[#allocation2 + $0xe8] sm:$0xff] }
 0x178   : > { %v2672_v30 = vpop.permute.xlu2 %2671  ;;  %v2228_v31 = vpop.permute.xlu1 %2227  ;;  %5535 = vmatmul.msk.f32.gmra.mxu3 %vm1131_vm2, %v3722_v20 }
 0x179   : > { %v6890_v25 = vmax.f32 %v800_v63, 0.0  ;;  %2885 = vst.msk [vmem:[#allocation2 + $0x38] sm:$0xff] %vm1685_vm5, %v2672_v30  ;;  %v2959_v41 = vpop.permute.xlu0 %2958  ;;  %5466 = vmatmul.msk.f32.gmra.mxu0 %vm381_vm1, %v315_v26  ;;  %v316_v26 = vld [vmem:[%s5851_s16 + $0x168] sm:$0xff] }
 0x17a   : > { %2440 = vst.msk [vmem:[#allocation2 + $0x60] sm:$0xff] %vm2435_vm7, %v2228_v31  ;;  %v3702_v50 = vld [vmem:[#allocation2 + $0x48] sm:$0xff]  ;;  %v6909_v31 = vsel %vm1300_vm3, %v1337_v33, %v1339_v12 }
 0x17b   : > { %1153 = vst.msk [vmem:[#allocation2 + $0x1f8] sm:$0xff] %vm1131_vm2, %v6890_v25  ;;  %4190 = vmatmul.f32.gmra.mxu1 %v3702_v50  ;;  %v1808_v20 = vrot.slane %v6890_v25, 2 }
 0x17c   : > { %3174 = vst.msk [vmem:[#allocation2 + $0x8] sm:$0xff] %vm2143_vm6, %v2959_v41 }
 0x17d   : > { %2601 = vst.msk [vmem:[#allocation2 + $0x140] sm:$0xff] %vm1131_vm2, %v6909_v31 }
 0x17e   : > { %v802_v63 = vpop.f32.mrf.mxu0  ;;  %2683 = vrot.lane.b32.xlu2 %v6430_v6, %s5772_s17  ;;  %1953 = vrot.lane.b32.xlu1 %v6546_v4, %s5773_s19 }
 0x17f   : > { %v803_v30 = vadd.f32 %v6645_v8, %v802_v63  ;;  %1951 = vrot.lane.b32.xlu0 %v6505_v44, %s5773_s19 }
 0x180   : > { %v2674_v41 = vpop.permute.xlu2 %2673  ;;  %v3255_v50 = vpop.permute.xlu1 %3254 }
 0x181   : > { %v6914_v6 = vmax.f32 %v803_v30, 0.0  ;;  %2886 = vst.msk [vmem:[#allocation2 + $0x50] sm:$0xff] %vm1685_vm5, %v2674_v41  ;;  %v2961_v57 = vpop.permute.xlu0 %2960  ;;  %5467 = vmatmul.msk.f32.gmra.mxu0 %vm381_vm1, %v316_v26  ;;  %v3705_v63 = vld [vmem:[#allocation2 + $0x60] sm:$0xff]  ;;  %v317_v26 = vld [vmem:[%s5851_s16 + $0x170] sm:$0xff] }
 0x182   : > { %3470 = vst.msk [vmem:[#allocation2 + $0x8] sm:$0xff] %vm2435_vm7, %v3255_v50  ;;  %v3725_v41 = vld [vmem:[#allocation2 + $0x100] sm:$0xff] }
 0x183   : > { %v1809_v33 = vrot.slane %v6914_v6, 2  ;;  %1154 = vst.msk [vmem:[#allocation2 + $0x210] sm:$0xff] %vm1131_vm2, %v6914_v6  ;;  %4193 = vmatmul.f32.gmra.mxu1 %v3705_v63  ;;  %5536 = vmatmul.msk.f32.gmra.mxu3 %vm1131_vm2, %v3725_v41 }
 0x184   : > { %3175 = vst.msk [vmem:[#allocation2 + $0x20] sm:$0xff] %vm2143_vm6, %v2961_v57  ;;  %v9610_v57 = vmax.f32 %v6694_v32, 0.0 }
 0x185   : > { %v6924_v22 = vsel %vm1758_vm4, %v1808_v20, %v1809_v33 }
 0x186   : > { %3636 = vst.msk [vmem:[#allocation2 + $0x178] sm:$0xff] %vm1131_vm2, %v6924_v22  ;;  %v805_v30 = vpop.f32.mrf.mxu0  ;;  %2685 = vrot.lane.b32.xlu2 %v6505_v44, %s5772_s17  ;;  %3268 = vrot.lane.b32.xlu1 %v6701_v62, %s5774_s20  ;;  %v1341_v20 = vrot.slane %v9610_v57, 1 }
 0x187   : > { %v806_v50 = vadd.f32 %v6645_v8, %v805_v30  ;;  %2974 = vrot.lane.b32.xlu0 %v6529_v10, %s5773_s19 }
 0x188   : > { %v2230_v63 = vpop.permute.xlu2 %2229  ;;  %v1484_v9 = vpop.permute.xlu1 %1483  ;;  %v6949_v30 = vsel %vm1300_vm3, %v1339_v12, %v1341_v20 }
 0x189   : > { %v6939_v7 = vmax.f32 %v806_v50, 0.0  ;;  %2441 = vst.msk [vmem:[#allocation2 + $0x78] sm:$0xff] %vm2435_vm7, %v2230_v63  ;;  %v1482_v44 = vpop.permute.xlu0 %1481  ;;  %5468 = vmatmul.msk.f32.gmra.mxu0 %vm381_vm1, %v317_v26  ;;  %v3694_v62 = vld [vmem:[#allocation2 + $0x8] sm:$0xff] }
 0x18a   : > { %1693 = vst.msk [vmem:[#allocation2 + $0xa8] sm:$0xff] %vm1685_vm5, %v1484_v9  ;;  %4414 = vmatmul.f32.vlgmr.msrb.gmra.mxu2 %v3694_v62  ;;  %v318_v9 = vld [vmem:[%s5851_s16 + $0x178] sm:$0xff] }
 0x18b   : > { %1155 = vst.msk [vmem:[#allocation2 + $0x228] sm:$0xff] %vm1131_vm2, %v6939_v7  ;;  %v1811_v32 = vrot.slane %v6939_v7, 2 }
 0x18c   : > { %1692 = vst.msk [vmem:[#allocation2 + $0x90] sm:$0xff] %vm1685_vm5, %v1482_v44  ;;  %v3728_v44 = vld [vmem:[#allocation2 + $0x118] sm:$0xff] }
 0x18d   : > { %v6952_v41 = vsel %vm1758_vm4, %v1809_v33, %v1811_v32  ;;  %2602 = vst.msk [vmem:[#allocation2 + $0x158] sm:$0xff] %vm1131_vm2, %v6949_v30  ;;  %5537 = vmatmul.msk.f32.gmra.mxu3 %vm1131_vm2, %v3728_v44 }
 0x18e   : > { %v808_v26 = vpop.f32.mrf.mxu0  ;;  %3637 = vst.msk [vmem:[#allocation2 + $0x190] sm:$0xff] %vm1131_vm2, %v6952_v41  ;;  %2241 = vrot.lane.b32.xlu2 %v6529_v10, %s5774_s20  ;;  %3270 = vrot.lane.b32.xlu1 %v6759_v51, %s5774_s20 }
 0x18f   : > { %v6964_v12 = vadd.f32 %v6645_v8, %v808_v26  ;;  %2243 = vrot.lane.b32.xlu0 %v6591_v59, %s5774_s20 }
 0x190   : > { %v2676_v33 = vpop.permute.xlu2 %2675  ;;  %v1942_v50 = vpop.permute.xlu1 %1941  ;;  %v3708_v57 = vld [vmem:[#allocation2 + $0x78] sm:$0xff] }
 0x191   : > { %v9448_v20 = vmax.f32 %v6964_v12, 0.0  ;;  %2887 = vst.msk [vmem:[#allocation2 + $0x68] sm:$0xff] %vm1685_vm5, %v2676_v33  ;;  %v1940_v63 = vpop.permute.xlu0 %1939  ;;  %5469 = vmatmul.msk.f32.gmra.mxu0 %vm381_vm1, %v318_v9  ;;  %4196 = vmatmul.f32.gmra.mxu1 %v3708_v57  ;;  %v319_v9 = vld [vmem:[%s5851_s16 + $0x180] sm:$0xff] }
 0x192   : > { %2151 = vst.msk [vmem:[#allocation2 + $0xa8] sm:$0xff] %vm2143_vm6, %v1942_v50 }
 0x193   : > { %v1813_v10 = vrot.slane %v9448_v20, 2  ;;  %2150 = vst.msk [vmem:[#allocation2 + $0x90] sm:$0xff] %vm2143_vm6, %v1940_v63 }
 0x195   : > { %v6976_v62 = vsel %vm1758_vm4, %v1811_v32, %v1813_v10  ;;  %v3743_v18 = vld [vmem:[#allocation2 + $0x190] sm:$0xff] }
 0x196   : > { %3638 = vst.msk [vmem:[#allocation2 + $0x1a8] sm:$0xff] %vm1131_vm2, %v6976_v62  ;;  %v811_v26 = vpop.f32.mrf.mxu0  ;;  %2687 = vrot.lane.b32.xlu2 %v6546_v4, %s5772_s17  ;;  %2245 = vrot.lane.b32.xlu1 %v6618_v43, %s5774_s20 }
 0x197   : > { %v812_v33 = vadd.f32 %v6645_v8, %v811_v26  ;;  %2976 = vrot.lane.b32.xlu0 %v6591_v59, %s5773_s19  ;;  %v320_v59 = vld [vmem:[%s5851_s16 + $0x188] sm:$0xff] }
 0x198   : > { %v1486_v32 = vpop.permute.xlu2 %1485  ;;  %v3257_v50 = vpop.permute.xlu1 %3256 }
 0x199   : > { %v6989_v57 = vmax.f32 %v812_v33, 0.0  ;;  %1694 = vst.msk [vmem:[#allocation2 + $0xc0] sm:$0xff] %vm1685_vm5, %v1486_v32  ;;  %v2963_v63 = vpop.permute.xlu0 %2962  ;;  %5470 = vmatmul.msk.f32.gmra.mxu0 %vm381_vm1, %v319_v9 }
 0x19a   : > { %3471 = vst.msk [vmem:[#allocation2 + $0x20] sm:$0xff] %vm2435_vm7, %v3257_v50 }
 0x19b   : > { %1156 = vst.msk [vmem:[#allocation2 + $0x240] sm:$0xff] %vm1131_vm2, %v6989_v57  ;;  %v1815_v9 = vrot.slane %v6989_v57, 2 }
 0x19c   : > { %3176 = vst.msk [vmem:[#allocation2 + $0x38] sm:$0xff] %vm2143_vm6, %v2963_v63  ;;  %v1343_v63 = vrot.slane %v6741_v46, 1 }
 0x19e   : > { %v814_v4 = vpop.f32.mrf.mxu0  ;;  %1497 = vrot.lane.b32.xlu2 %v6759_v51, %s5772_s17  ;;  %3272 = vrot.lane.b32.xlu1 %v6886_v48, %s5774_s20 }
 0x19f   : > { %v815_v10 = vadd.f32 %v6645_v8, %v814_v4  ;;  %2978 = vrot.lane.b32.xlu0 %v6618_v43, %s5773_s19  ;;  %v1344_v4 = vrot.slane %v6782_v60, 1 }
 0x1a0   : > { %v1944_v44 = vpop.permute.xlu2 %1943  ;;  %v3259_v26 = vpop.permute.xlu1 %3258 }
 0x1a1   : > { %v7006_v33 = vmax.f32 %v815_v10, 0.0  ;;  %2152 = vst.msk [vmem:[#allocation2 + $0xc0] sm:$0xff] %vm2143_vm6, %v1944_v44  ;;  %v2232_v32 = vpop.permute.xlu0 %2231  ;;  %5471 = vmatmul.msk.f32.gmra.mxu0 %vm381_vm1, %v320_v59  ;;  %v3697_v51 = vld [vmem:[#allocation2 + $0x20] sm:$0xff]  ;;  %v321_v10 = vld [vmem:[%s5851_s16 + $0x190] sm:$0xff] }
 0x1a2   : > { %3472 = vst.msk [vmem:[#allocation2 + $0x38] sm:$0xff] %vm2435_vm7, %v3259_v26  ;;  %4417 = vmatmul.f32.gmra.mxu2 %v3697_v51  ;;  %v7031_v26 = vsel %vm1300_vm3, %v1343_v63, %v1344_v4 }
 0x1a3   : > { %v1816_v50 = vrot.slane %v7006_v33, 2  ;;  %1157 = vst.msk [vmem:[#allocation2 + $0x258] sm:$0xff] %vm1131_vm2, %v7006_v33 }
 0x1a4   : > { %2442 = vst.msk [vmem:[#allocation2 + $0x90] sm:$0xff] %vm2435_vm7, %v2232_v32 }
 0x1a5   : > { %v7016_v43 = vsel %vm1758_vm4, %v1815_v9, %v1816_v50  ;;  %2603 = vst.msk [vmem:[#allocation2 + $0x170] sm:$0xff] %vm1131_vm2, %v7031_v26 }
 0x1a6   : > { %3639 = vst.msk [vmem:[#allocation2 + $0x1c0] sm:$0xff] %vm1131_vm2, %v7016_v43  ;;  %v817_v59 = vpop.f32.mrf.mxu0  ;;  %1955 = vrot.lane.b32.xlu2 %v6575_v40, %s5773_s19  ;;  %1501 = vrot.lane.b32.xlu1 %v6909_v31, %s5772_s17 }
 0x1a7   : > { %v818_v44 = vadd.f32 %v6645_v8, %v817_v59  ;;  %1499 = vrot.lane.b32.xlu0 %v6886_v48, %s5772_s17  ;;  %v3731_v59 = vld [vmem:[#allocation2 + $0x130] sm:$0xff] }
 0x1a8   : > { %v2678_v9 = vpop.permute.xlu2 %2677  ;;  %v2234_v32 = vpop.permute.xlu1 %2233  ;;  %5538 = vmatmul.msk.f32.gmra.mxu3 %vm1131_vm2, %v3731_v59 }
 0x1a9   : > { %v7035_v51 = vmax.f32 %v818_v44, 0.0  ;;  %2888 = vst.msk [vmem:[#allocation2 + $0x80] sm:$0xff] %vm1685_vm5, %v2678_v9  ;;  %v2965_v20 = vpop.permute.xlu0 %2964  ;;  %5472 = vmatmul.msk.f32.gmra.mxu0 %vm381_vm1, %v321_v10  ;;  %v3700_v19 = vld [vmem:[#allocation2 + $0x38] sm:$0xff]  ;;  %v1346_v10 = vrot.slane %v6823_v35, 1 }
 0x1aa   : > { %2443 = vst.msk [vmem:[#allocation2 + $0xa8] sm:$0xff] %vm2435_vm7, %v2234_v32  ;;  %4420 = vmatmul.f32.gmra.mxu2 %v3700_v19  ;;  %v322_v19 = vld [vmem:[%s5851_s16 + $0x198] sm:$0xff] }
 0x1ab   : > { %1158 = vst.msk [vmem:[#allocation2 + $0x270] sm:$0xff] %vm1131_vm2, %v7035_v51  ;;  %v3711_v48 = vld [vmem:[#allocation2 + $0x90] sm:$0xff]  ;;  %v1818_v63 = vrot.slane %v7035_v51, 2 }
 0x1ac   : > { %3177 = vst.msk [vmem:[#allocation2 + $0x50] sm:$0xff] %vm2143_vm6, %v2965_v20  ;;  %4199 = vmatmul.f32.gmra.mxu1 %v3711_v48 }
 0x1ad   : > { %v7045_v44 = vsel %vm1758_vm4, %v1816_v50, %v1818_v63  ;;  %v7062_v50 = vsel %vm1300_vm3, %v1344_v4, %v1346_v10 }
 0x1ae   : > { %v820_v9 = vpop.f32.mrf.mxu0  ;;  %3640 = vst.msk [vmem:[#allocation2 + $0x1d8] sm:$0xff] %vm1131_vm2, %v7045_v44  ;;  %2689 = vrot.lane.b32.xlu2 %v6575_v40, %s5772_s17  ;;  %1959 = vrot.lane.b32.xlu1 %v6676_v45, %s5773_s19 }
 0x1af   : > { %v7057_v20 = vadd.f32 %v6645_v8, %v820_v9  ;;  %1957 = vrot.lane.b32.xlu0 %v6631_v38, %s5773_s19  ;;  %2604 = vst.msk [vmem:[#allocation2 + $0x188] sm:$0xff] %vm1131_vm2, %v7062_v50 }
 0x1b0   : > { %v2680_v32 = vpop.permute.xlu2 %2679  ;;  %v3261_v48 = vpop.permute.xlu1 %3260 }
 0x1b1   : > { %v9454_v40 = vmax.f32 %v7057_v20, 0.0  ;;  %2889 = vst.msk [vmem:[#allocation2 + $0x98] sm:$0xff] %vm1685_vm5, %v2680_v32  ;;  %v2967_v59 = vpop.permute.xlu0 %2966  ;;  %5473 = vmatmul.msk.f32.gmra.mxu0 %vm381_vm1, %v322_v19  ;;  %v3714_v9 = vld [vmem:[#allocation2 + $0xa8] sm:$0xff]  ;;  %v323_v19 = vld [vmem:[%s5851_s16 + $0x1a0] sm:$0xff] }
 0x1b2   : > { %3473 = vst.msk [vmem:[#allocation2 + $0x50] sm:$0xff] %vm2435_vm7, %v3261_v48  ;;  %v3734_v32 = vld [vmem:[#allocation2 + $0x148] sm:$0xff] }
 0x1b3   : > { %v1820_v4 = vrot.slane %v9454_v40, 2  ;;  %3178 = vst.msk [vmem:[#allocation2 + $0x68] sm:$0xff] %vm2143_vm6, %v2967_v59  ;;  %5539 = vmatmul.msk.f32.gmra.mxu3 %vm1131_vm2, %v3734_v32 }
 0x1b4   : > { %4202 = vmatmul.f32.gmra.mxu1 %v3714_v9 }
 0x1b5   : > { %v7074_v27 = vsel %vm1758_vm4, %v1818_v63, %v1820_v4  ;;  %v9611_v63 = vmax.f32 %v6855_v15, 0.0 }
 0x1b6   : > { %3641 = vst.msk [vmem:[#allocation2 + $0x1f0] sm:$0xff] %vm1131_vm2, %v7074_v27  ;;  %v823_v53 = vpop.f32.mrf.mxu0  ;;  %2691 = vrot.lane.b32.xlu2 %v6631_v38, %s5772_s17  ;;  %3274 = vrot.lane.b32.xlu1 %v6909_v31, %s5774_s20 }
 0x1b7   : > { %v824_v48 = vadd.f32 %v6645_v8, %v823_v53  ;;  %2980 = vrot.lane.b32.xlu0 %v6660_v3, %s5773_s19  ;;  %v1348_v59 = vrot.slane %v9611_v63, 1 }
 0x1b8   : > { %v2236_v9 = vpop.permute.xlu2 %2235  ;;  %v1490_v4 = vpop.permute.xlu1 %1489 }
 0x1b9   : > { %v7089_v40 = vmax.f32 %v824_v48, 0.0  ;;  %2444 = vst.msk [vmem:[#allocation2 + $0xc0] sm:$0xff] %vm2435_vm7, %v2236_v9  ;;  %v1488_v38 = vpop.permute.xlu0 %1487  ;;  %5474 = vmatmul.msk.f32.gmra.mxu0 %vm381_vm1, %v323_v19  ;;  %v3703_v31 = vld [vmem:[#allocation2 + $0x50] sm:$0xff]  ;;  %v7098_v53 = vsel %vm1300_vm3, %v1346_v10, %v1348_v59  ;;  %v324_v19 = vld [vmem:[%s5851_s16 + $0x1a8] sm:$0xff] }
 0x1ba   : > { %1696 = vst.msk [vmem:[#allocation2 + $0xf0] sm:$0xff] %vm1685_vm5, %v1490_v4  ;;  %4423 = vmatmul.f32.gmra.mxu2 %v3703_v31 }
 0x1bb   : > { %1159 = vst.msk [vmem:[#allocation2 + $0x288] sm:$0xff] %vm1131_vm2, %v7089_v40  ;;  %v1822_v59 = vrot.slane %v7089_v40, 2 }
 0x1bc   : > { %1695 = vst.msk [vmem:[#allocation2 + $0xd8] sm:$0xff] %vm1685_vm5, %v1488_v38  ;;  %v3737_v38 = vld [vmem:[#allocation2 + $0x160] sm:$0xff] }
 0x1bd   : > { %2605 = vst.msk [vmem:[#allocation2 + $0x1a0] sm:$0xff] %vm1131_vm2, %v7098_v53  ;;  %5540 = vmatmul.msk.f32.gmra.mxu3 %vm1131_vm2, %v3737_v38  ;;  %v326_v38 = vld [vmem:[%s5851_s16 + $0x1b8] sm:$0xff] }
 0x1be   : > { %v826_v15 = vpop.f32.mrf.mxu0  ;;  %2247 = vrot.lane.b32.xlu2 %v6660_v3, %s5774_s20  ;;  %3276 = vrot.lane.b32.xlu1 %v6949_v30, %s5774_s20 }
 0x1bf   : > { %v827_v32 = vadd.f32 %v6645_v8, %v826_v15  ;;  %2249 = vrot.lane.b32.xlu0 %v6741_v46, %s5774_s20 }
 0x1c0   : > { %v2682_v48 = vpop.permute.xlu2 %2681  ;;  %v1948_v63 = vpop.permute.xlu1 %1947  ;;  %v3717_v10 = vld [vmem:[#allocation2 + $0xc0] sm:$0xff] }
 0x1c1   : > { %v7111_v9 = vmax.f32 %v827_v32, 0.0  ;;  %2890 = vst.msk [vmem:[#allocation2 + $0xb0] sm:$0xff] %vm1685_vm5, %v2682_v48  ;;  %v1946_v3 = vpop.permute.xlu0 %1945  ;;  %5475 = vmatmul.msk.f32.gmra.mxu0 %vm381_vm1, %v324_v19  ;;  %4205 = vmatmul.f32.gmra.mxu1 %v3717_v10  ;;  %v325_v19 = vld [vmem:[%s5851_s16 + $0x1b0] sm:$0xff] }
 0x1c2   : > { %2154 = vst.msk [vmem:[#allocation2 + $0xf0] sm:$0xff] %vm2143_vm6, %v1948_v63 }
 0x1c3   : > { %v1823_v4 = vrot.slane %v7111_v9, 2  ;;  %1160 = vst.msk [vmem:[#allocation2 + $0x2a0] sm:$0xff] %vm1131_vm2, %v7111_v9 }
 0x1c4   : > { %2153 = vst.msk [vmem:[#allocation2 + $0xd8] sm:$0xff] %vm2143_vm6, %v1946_v3 }
 0x1c5   : > { %v7121_v31 = vsel %vm1758_vm4, %v1822_v59, %v1823_v4 }
 0x1c6   : > { %3642 = vst.msk [vmem:[#allocation2 + $0x208] sm:$0xff] %vm1131_vm2, %v7121_v31  ;;  %v829_v15 = vpop.f32.mrf.mxu0  ;;  %2693 = vrot.lane.b32.xlu2 %v6676_v45, %s5772_s17  ;;  %2251 = vrot.lane.b32.xlu1 %v6782_v60, %s5774_s20 }
 0x1c7   : > { %v830_v32 = vadd.f32 %v6645_v8, %v829_v15  ;;  %2982 = vrot.lane.b32.xlu0 %v6741_v46, %s5773_s19 }
 0x1c8   : > { %v1492_v48 = vpop.permute.xlu2 %1491  ;;  %v3263_v63 = vpop.permute.xlu1 %3262 }
 0x1c9   : > { %v7134_v10 = vmax.f32 %v830_v32, 0.0  ;;  %1697 = vst.msk [vmem:[#allocation2 + $0x108] sm:$0xff] %vm1685_vm5, %v1492_v48  ;;  %v2969_v59 = vpop.permute.xlu0 %2968  ;;  %5476 = vmatmul.msk.f32.gmra.mxu0 %vm381_vm1, %v325_v19 }
 0x1ca   : > { %3474 = vst.msk [vmem:[#allocation2 + $0x68] sm:$0xff] %vm2435_vm7, %v3263_v63 }
 0x1cb   : > { %1161 = vst.msk [vmem:[#allocation2 + $0x2b8] sm:$0xff] %vm1131_vm2, %v7134_v10  ;;  %v1825_v45 = vrot.slane %v7134_v10, 2 }
 0x1cc   : > { %3179 = vst.msk [vmem:[#allocation2 + $0x80] sm:$0xff] %vm2143_vm6, %v2969_v59  ;;  %v1350_v59 = vrot.slane %v6890_v25, 1 }
 0x1cd   : > { %v7144_v46 = vsel %vm1758_vm4, %v1823_v4, %v1825_v45 }
 0x1ce   : > { %v832_v3 = vpop.f32.mrf.mxu0  ;;  %3643 = vst.msk [vmem:[#allocation2 + $0x220] sm:$0xff] %vm1131_vm2, %v7144_v46  ;;  %1503 = vrot.lane.b32.xlu2 %v6949_v30, %s5772_s17  ;;  %3278 = vrot.lane.b32.xlu1 %v7031_v26, %s5774_s20 }
 0x1cf   : > { %v7154_v15 = vadd.f32 %v6645_v8, %v832_v3  ;;  %2984 = vrot.lane.b32.xlu0 %v6782_v60, %s5773_s19  ;;  %v1351_v3 = vrot.slane %v6914_v6, 1 }
 0x1d0   : > { %v1950_v19 = vpop.permute.xlu2 %1949  ;;  %v3265_v4 = vpop.permute.xlu1 %3264 }
 0x1d1   : > { %v9455_v32 = vmax.f32 %v7154_v15, 0.0  ;;  %2155 = vst.msk [vmem:[#allocation2 + $0x108] sm:$0xff] %vm2143_vm6, %v1950_v19  ;;  %v2238_v48 = vpop.permute.xlu0 %2237  ;;  %5477 = vmatmul.msk.f32.gmra.mxu0 %vm381_vm1, %v326_v38  ;;  %v3706_v30 = vld [vmem:[#allocation2 + $0x68] sm:$0xff]  ;;  %v327_v19 = vld [vmem:[%s5851_s16 + $0x1c0] sm:$0xff] }
 0x1d2   : > { %3475 = vst.msk [vmem:[#allocation2 + $0x80] sm:$0xff] %vm2435_vm7, %v3265_v4  ;;  %4426 = vmatmul.f32.gmra.mxu2 %v3706_v30 }
 0x1d3   : > { %v1827_v63 = vrot.slane %v9455_v32, 2  ;;  %2445 = vst.msk [vmem:[#allocation2 + $0xd8] sm:$0xff] %vm2435_vm7, %v2238_v48 }
 0x1d5   : > { %v7166_v60 = vsel %vm1758_vm4, %v1825_v45, %v1827_v63  ;;  %v7181_v45 = vsel %vm1300_vm3, %v1350_v59, %v1351_v3  ;;  %v3740_v59 = vld [vmem:[#allocation2 + $0x178] sm:$0xff] }
 0x1d6   : > { %3644 = vst.msk [vmem:[#allocation2 + $0x238] sm:$0xff] %vm1131_vm2, %v7166_v60  ;;  %v835_v38 = vpop.f32.mrf.mxu0  ;;  %1961 = vrot.lane.b32.xlu2 %v6716_v42, %s5773_s19  ;;  %1507 = vrot.lane.b32.xlu1 %v7062_v50, %s5772_s17 }
 0x1d7   : > { %v836_v4 = vadd.f32 %v6645_v8, %v835_v38  ;;  %1505 = vrot.lane.b32.xlu0 %v7031_v26, %s5772_s17  ;;  %2606 = vst.msk [vmem:[#allocation2 + $0x1b8] sm:$0xff] %vm1131_vm2, %v7181_v45  ;;  %5541 = vmatmul.msk.f32.gmra.mxu3 %vm1131_vm2, %v3740_v59 }
 0x1d8   : > { %v2684_v48 = vpop.permute.xlu2 %2683  ;;  %v2240_v30 = vpop.permute.xlu1 %2239 }
 0x1d9   : > { %v7185_v63 = vmax.f32 %v836_v4, 0.0  ;;  %2891 = vst.msk [vmem:[#allocation2 + $0xc8] sm:$0xff] %vm1685_vm5, %v2684_v48  ;;  %v2971_v32 = vpop.permute.xlu0 %2970  ;;  %5478 = vmatmul.msk.f32.gmra.mxu0 %vm381_vm1, %v327_v19  ;;  %v3709_v38 = vld [vmem:[#allocation2 + $0x80] sm:$0xff]  ;;  %v1353_v4 = vrot.slane %v6939_v7, 1  ;;  %v328_v19 = vld [vmem:[%s5851_s16 + $0x1c8] sm:$0xff] }
 0x1da   : > { %2446 = vst.msk [vmem:[#allocation2 + $0xf0] sm:$0xff] %vm2435_vm7, %v2240_v30  ;;  %v3720_v26 = vld [vmem:[#allocation2 + $0xd8] sm:$0xff]  ;;  %4429 = vmatmul.f32.gmra.mxu2 %v3709_v38 }
 0x1db   : > { %1162 = vst.msk [vmem:[#allocation2 + $0x2d0] sm:$0xff] %vm1131_vm2, %v7185_v63  ;;  %4208 = vmatmul.f32.gmra.mxu1 %v3720_v26  ;;  %v7204_v38 = vsel %vm1300_vm3, %v1351_v3, %v1353_v4  ;;  %v1829_v59 = vrot.slane %v7185_v63, 2 }
 0x1dc   : > { %3180 = vst.msk [vmem:[#allocation2 + $0x98] sm:$0xff] %vm2143_vm6, %v2971_v32 }
 0x1dd   : > { %2607 = vst.msk [vmem:[#allocation2 + $0x1d0] sm:$0xff] %vm1131_vm2, %v7204_v38 }
 0x1de   : > { %v838_v48 = vpop.f32.mrf.mxu0  ;;  %2695 = vrot.lane.b32.xlu2 %v6716_v42, %s5772_s17  ;;  %1965 = vrot.lane.b32.xlu1 %v6843_v16, %s5773_s19 }
 0x1df   : > { %v839_v30 = vadd.f32 %v6645_v8, %v838_v48  ;;  %1963 = vrot.lane.b32.xlu0 %v6797_v5, %s5773_s19  ;;  %5542 = vmatmul.msk.f32.gmra.mxu3 %vm1131_vm2, %v3743_v18 }
 0x1e0   : > { %v2686_v32 = vpop.permute.xlu2 %2685  ;;  %v3267_v26 = vpop.permute.xlu1 %3266 }
 0x1e1   : > { %v7209_v42 = vmax.f32 %v839_v30, 0.0  ;;  %2892 = vst.msk [vmem:[#allocation2 + $0xe0] sm:$0xff] %vm1685_vm5, %v2686_v32  ;;  %v2973_v29 = vpop.permute.xlu0 %2972  ;;  %5479 = vmatmul.msk.f32.gmra.mxu0 %vm381_vm1, %v328_v19  ;;  %v3723_v48 = vld [vmem:[#allocation2 + $0xf0] sm:$0xff] }
 0x1e2   : > { %3476 = vst.msk [vmem:[#allocation2 + $0x98] sm:$0xff] %vm2435_vm7, %v3267_v26  ;;  %v329_v32 = vld [vmem:[%s5851_s16 + $0x1d0] sm:$0xff] }
 0x1e3   : > { %v1830_v3 = vrot.slane %v7209_v42, 2  ;;  %1163 = vst.msk [vmem:[#allocation2 + $0x2e8] sm:$0xff] %vm1131_vm2, %v7209_v42  ;;  %4211 = vmatmul.f32.gmra.mxu1 %v3723_v48 }
 0x1e4   : > { %3181 = vst.msk [vmem:[#allocation2 + $0xb0] sm:$0xff] %vm2143_vm6, %v2973_v29  ;;  %v9612_v29 = vmax.f32 %v6964_v12, 0.0  ;;  %v3746_v12 = vld [vmem:[#allocation2 + $0x1a8] sm:$0xff] }
 0x1e5   : > { %v7219_v30 = vsel %vm1758_vm4, %v1829_v59, %v1830_v3 }
 0x1e6   : > { %3645 = vst.msk [vmem:[#allocation2 + $0x250] sm:$0xff] %vm1131_vm2, %v7219_v30  ;;  %v841_v19 = vpop.f32.mrf.mxu0  ;;  %2697 = vrot.lane.b32.xlu2 %v6797_v5, %s5772_s17  ;;  %3280 = vrot.lane.b32.xlu1 %v7062_v50, %s5774_s20  ;;  %v1355_v59 = vrot.slane %v9612_v29, 1 }
 0x1e7   : > { %v842_v26 = vadd.f32 %v6645_v8, %v841_v19  ;;  %2986 = vrot.lane.b32.xlu0 %v6823_v35, %s5773_s19  ;;  %5543 = vmatmul.msk.f32.gmra.mxu3 %vm1131_vm2, %v3746_v12 }
 0x1e8   : > { %v2242_v18 = vpop.permute.xlu2 %2241  ;;  %v1496_v48 = vpop.permute.xlu1 %1495  ;;  %v7244_v50 = vsel %vm1300_vm3, %v1353_v4, %v1355_v59  ;;  %v7259_v4 = vld [vmem:[#allocation6] ss:$0 sm:$0xff] }
 0x1e9   : > { %v7234_v11 = vmax.f32 %v842_v26, 0.0  ;;  %2447 = vst.msk [vmem:[#allocation2 + $0x108] sm:$0xff] %vm2435_vm7, %v2242_v18  ;;  %v1494_v49 = vpop.permute.xlu0 %1493  ;;  %5480 = vmatmul.msk.f32.gmra.mxu0 %vm381_vm1, %v329_v32  ;;  %v3712_v5 = vld [vmem:[#allocation2 + $0x98] sm:$0xff] }
 0x1ea   : > { %1699 = vst.msk [vmem:[#allocation2 + $0x138] sm:$0xff] %vm1685_vm5, %v1496_v48  ;;  %4432 = vmatmul.f32.gmra.mxu2 %v3712_v5  ;;  %v3749_v5 = vld [vmem:[#allocation2 + $0x1c0] sm:$0xff] }
 0x1eb   : > { %1164 = vst.msk [vmem:[#allocation2 + $0x300] sm:$0xff] %vm1131_vm2, %v7234_v11  ;;  %v1832_v8 = vrot.slane %v7234_v11, 2  ;;  %v1374_v14 = vrot.slane %v7234_v11, 1 }
 0x1ec   : > { %1698 = vst.msk [vmem:[#allocation2 + $0x120] sm:$0xff] %vm1685_vm5, %v1494_v49  ;;  %v330_v49 = vld [vmem:[%s5851_s16 + $0x1d8] sm:$0xff] }
 0x1ed   : > { %v7247_v19 = vsel %vm1758_vm4, %v1830_v3, %v1832_v8  ;;  %2608 = vst.msk [vmem:[#allocation2 + $0x1e8] sm:$0xff] %vm1131_vm2, %v7244_v50 }
 0x1ee   : > { %v844_v32 = vpop.f32.mrf.mxu0  ;;  %3646 = vst.msk [vmem:[#allocation2 + $0x268] sm:$0xff] %vm1131_vm2, %v7247_v19  ;;  %2253 = vrot.lane.b32.xlu2 %v6823_v35, %s5774_s20  ;;  %3282 = vrot.lane.b32.xlu1 %v7098_v53, %s5774_s20 }
 0x1ef   : > { %v7262_v3 = vadd.f32 %v7259_v4, %v844_v32  ;;  %2255 = vrot.lane.b32.xlu0 %v6890_v25, %s5774_s20  ;;  %5544 = vmatmul.msk.f32.gmra.mxu3 %vm1131_vm2, %v3749_v5 }
 0x1f0   : > { %v2688_v26 = vpop.permute.xlu2 %2687  ;;  %v1954_v29 = vpop.permute.xlu1 %1953  ;;  %v3726_v59 = vld [vmem:[#allocation2 + $0x108] sm:$0xff] }
 0x1f1   : > { %v9461_v18 = vmax.f32 %v7262_v3, 0.0  ;;  %2893 = vst.msk [vmem:[#allocation2 + $0xf8] sm:$0xff] %vm1685_vm5, %v2688_v26  ;;  %v1952_v35 = vpop.permute.xlu0 %1951  ;;  %5481 = vmatmul.msk.f32.gmra.mxu0 %vm381_vm1, %v330_v49  ;;  %4214 = vmatmul.f32.gmra.mxu1 %v3726_v59  ;;  %v331_v49 = vld [vmem:[%s5851_s16 + $0x1e0] sm:$0xff] }
 0x1f2   : > { %2157 = vst.msk [vmem:[#allocation2 + $0x138] sm:$0xff] %vm2143_vm6, %v1954_v29 }
 0x1f3   : > { %v1834_v48 = vrot.slane %v9461_v18, 2  ;;  %2156 = vst.msk [vmem:[#allocation2 + $0x120] sm:$0xff] %vm2143_vm6, %v1952_v35 }
 0x1f5   : > { %v7274_v12 = vsel %vm1758_vm4, %v1832_v8, %v1834_v48  ;;  %v332_v48 = vld [vmem:[%s5851_s16 + $0x1e8] sm:$0xff] }
 0x1f6   : > { %3647 = vst.msk [vmem:[#allocation2 + $0x280] sm:$0xff] %vm1131_vm2, %v7274_v12  ;;  %v847_v32 = vpop.f32.mrf.mxu0  ;;  %2699 = vrot.lane.b32.xlu2 %v6843_v16, %s5772_s17  ;;  %2257 = vrot.lane.b32.xlu1 %v6914_v6, %s5774_s20  ;;  %v3752_v16 = vld [vmem:[#allocation2 + $0x1d8] sm:$0xff] }
 0x1f7   : > { %v848_v26 = vadd.f32 %v7259_v4, %v847_v32  ;;  %2988 = vrot.lane.b32.xlu0 %v6890_v25, %s5773_s19  ;;  %5545 = vmatmul.msk.f32.gmra.mxu3 %vm1131_vm2, %v3752_v16  ;;  %v4648_v32 = vpop.f32.mrf.mxu3 }
 0x1f8   : > { %v1498_v8 = vpop.permute.xlu2 %1497  ;;  %v3269_v59 = vpop.permute.xlu1 %3268 }
 0x1f9   : > { %v7287_v29 = vmax.f32 %v848_v26, 0.0  ;;  %1700 = vst.msk [vmem:[#allocation2 + $0x150] sm:$0xff] %vm1685_vm5, %v1498_v8  ;;  %v2975_v35 = vpop.permute.xlu0 %2974  ;;  %5482 = vmatmul.msk.f32.gmra.mxu0 %vm381_vm1, %v331_v49 }
 0x1fa   : > { %3477 = vst.msk [vmem:[#allocation2 + $0xb0] sm:$0xff] %vm2435_vm7, %v3269_v59 }
 0x1fb   : > { %1165 = vst.msk [vmem:[#allocation2 + $0x318] sm:$0xff] %vm1131_vm2, %v7287_v29  ;;  %v1836_v26 = vrot.slane %v7287_v29, 2 }
 0x1fc   : > { %3182 = vst.msk [vmem:[#allocation2 + $0xc8] sm:$0xff] %vm2143_vm6, %v2975_v35 }
 0x1fe   : > { %v850_v25 = vpop.f32.mrf.mxu0  ;;  %1509 = vrot.lane.b32.xlu2 %v7098_v53, %s5772_s17  ;;  %3284 = vrot.lane.b32.xlu1 %v7181_v45, %s5774_s20 }
 0x1ff   : > { %v851_v5 = vadd.f32 %v7259_v4, %v850_v25  ;;  %2990 = vrot.lane.b32.xlu0 %v6914_v6, %s5773_s19  ;;  %v3755_v6 = vld [vmem:[#allocation2 + $0x1f0] sm:$0xff] }
 0x200   : > { %v1956_v49 = vpop.permute.xlu2 %1955  ;;  %v3271_v59 = vpop.permute.xlu1 %3270  ;;  %5546 = vmatmul.msk.f32.gmra.mxu3 %vm1131_vm2, %v3755_v6 }
 0x201   : > { %v7305_v8 = vmax.f32 %v851_v5, 0.0  ;;  %2158 = vst.msk [vmem:[#allocation2 + $0x150] sm:$0xff] %vm2143_vm6, %v1956_v49  ;;  %v2244_v35 = vpop.permute.xlu0 %2243  ;;  %5483 = vmatmul.msk.f32.gmra.mxu0 %vm381_vm1, %v332_v48  ;;  %v3715_v53 = vld [vmem:[#allocation2 + $0xb0] sm:$0xff]  ;;  %v1357_v48 = vrot.slane %v6989_v57, 1  ;;  %v1358_v5 = vrot.slane %v7006_v33, 1  ;;  %v4182_v6 = vpop.f32.mrf.mxu1 }
 0x202   : > { %3478 = vst.msk [vmem:[#allocation2 + $0xc8] sm:$0xff] %vm2435_vm7, %v3271_v59  ;;  %4435 = vmatmul.f32.gmra.mxu2 %v3715_v53  ;;  %v333_v59 = vld [vmem:[%s5851_s16 + $0x1f0] sm:$0xff] }
 0x203   : > { %v1837_v16 = vrot.slane %v7305_v8, 2  ;;  %1166 = vst.msk [vmem:[#allocation2 + $0x330] sm:$0xff] %vm1131_vm2, %v7305_v8  ;;  %v7333_v53 = vld [vmem:[#allocation8] ss:$0 sm:$0xff] }
 0x204   : > { %2448 = vst.msk [vmem:[#allocation2 + $0x120] sm:$0xff] %vm2435_vm7, %v2244_v35  ;;  %v7331_v35 = vsel %vm1300_vm3, %v1357_v48, %v1358_v5  ;;  %v4183_v52 = vadd.f32 %v7333_v53, %v4182_v6 }
 0x205   : > { %v7315_v25 = vsel %vm1758_vm4, %v1836_v26, %v1837_v16  ;;  %2609 = vst.msk [vmem:[#allocation2 + $0x200] sm:$0xff] %vm1131_vm2, %v7331_v35 }
 0x206   : > { %3648 = vst.msk [vmem:[#allocation2 + $0x298] sm:$0xff] %vm1131_vm2, %v7315_v25  ;;  %v853_v49 = vpop.f32.mrf.mxu0  ;;  %1967 = vrot.lane.b32.xlu2 %v6871_v17, %s5773_s19  ;;  %1513 = vrot.lane.b32.xlu1 %v7204_v38, %s5772_s17 }
 0x207   : > { %v854_v26 = vadd.f32 %v7259_v4, %v853_v49  ;;  %1511 = vrot.lane.b32.xlu0 %v7181_v45, %s5772_s17  ;;  %v7341_v45 = vpop.f32.mrf.mxu3 }
 0x208   : > { %v2690_v18 = vpop.permute.xlu2 %2689  ;;  %v2246_v1 = vpop.permute.xlu1 %2245 }
 0x209   : > { %v7337_v28 = vmax.f32 %v854_v26, 0.0  ;;  %2894 = vst.msk [vmem:[#allocation2 + $0x110] sm:$0xff] %vm1685_vm5, %v2690_v18  ;;  %v2977_v54 = vpop.permute.xlu0 %2976  ;;  %5484 = vmatmul.msk.f32.gmra.mxu0 %vm381_vm1, %v333_v59  ;;  %v3718_v49 = vld [vmem:[#allocation2 + $0xc8] sm:$0xff] }
 0x20a   : > { %2449 = vst.msk [vmem:[#allocation2 + $0x138] sm:$0xff] %vm2435_vm7, %v2246_v1  ;;  %4438 = vmatmul.f32.gmra.mxu2 %v3718_v49  ;;  %v3758_v18 = vld [vmem:[#allocation2 + $0x208] sm:$0xff]  ;;  %v1360_v1 = vrot.slane %v7035_v51, 1 }
 0x20b   : > { %1167 = vst.msk [vmem:[#allocation2 + $0x348] sm:$0xff] %vm1131_vm2, %v7337_v28  ;;  %v3729_v48 = vld [vmem:[#allocation2 + $0x120] sm:$0xff]  ;;  %v1839_v26 = vrot.slane %v7337_v28, 2  ;;  %5547 = vmatmul.msk.f32.gmra.mxu3 %vm1131_vm2, %v3758_v18 }
 0x20c   : > { %3183 = vst.msk [vmem:[#allocation2 + $0xe0] sm:$0xff] %vm2143_vm6, %v2977_v54  ;;  %4217 = vmatmul.f32.gmra.mxu1 %v3729_v48  ;;  %v334_v54 = vld [vmem:[%s5851_s16 + $0x1f8] sm:$0xff] }
 0x20d   : > { %v4415_v59 = vpop.f32.mrf.mxu2  ;;  %v7350_v13 = vsel %vm1758_vm4, %v1837_v16, %v1839_v26  ;;  %v7367_v16 = vsel %vm1300_vm3, %v1358_v5, %v1360_v1 }
 0x20e   : > { %v4416_v49 = vadd.f32 %v4415_v59, %v4183_v52  ;;  %v856_v37 = vpop.f32.mrf.mxu0  ;;  %3649 = vst.msk [vmem:[#allocation2 + $0x2b0] sm:$0xff] %vm1131_vm2, %v7350_v13  ;;  %2701 = vrot.lane.b32.xlu2 %v6871_v17, %s5772_s17  ;;  %1971 = vrot.lane.b32.xlu1 %v6952_v41, %s5773_s19 }
 0x20f   : > { %v7362_v6 = vadd.f32 %v7259_v4, %v856_v37  ;;  %1969 = vrot.lane.b32.xlu0 %v6924_v22, %s5773_s19  ;;  %2610 = vst.msk [vmem:[#allocation2 + $0x218] sm:$0xff] %vm1131_vm2, %v7367_v16  ;;  %v7374_v34 = vpop.f32.mrf.mxu3 }
 0x210   : > { %v4649_v52 = vadd.f32 %v4648_v32, %v4416_v49  ;;  %v2692_v48 = vpop.permute.xlu2 %2691  ;;  %v3273_v18 = vpop.permute.xlu1 %3272  ;;  %v3761_v49 = vld [vmem:[#allocation2 + $0x220] sm:$0xff] }
 0x211   : > { %v9471_v17 = vmax.f32 %v7362_v6, 0.0  ;;  %2895 = vst.msk [vmem:[#allocation2 + $0x128] sm:$0xff] %vm1685_vm5, %v2692_v48  ;;  %v2979_v59 = vpop.permute.xlu0 %2978  ;;  %5485 = vmatmul.msk.f32.gmra.mxu0 %vm381_vm1, %v334_v54  ;;  %v3732_v37 = vld [vmem:[#allocation2 + $0x138] sm:$0xff] }
 0x212   : > { %v4864_v5 = vmax.f32 %v4649_v52, 0.0  ;;  %3479 = vst.msk [vmem:[#allocation2 + $0xe0] sm:$0xff] %vm2435_vm7, %v3273_v18  ;;  %v335_v52 = vld [vmem:[%s5851_s16 + $0x200] sm:$0xff] }
 0x213   : > { %v1841_v32 = vrot.slane %v9471_v17, 2  ;;  %3184 = vst.msk [vmem:[#allocation2 + $0xf8] sm:$0xff] %vm2143_vm6, %v2979_v59  ;;  %5548 = vmatmul.msk.f32.gmra.mxu3 %vm1131_vm2, %v3761_v49 }
 0x214   : > { %4937 = vst.msk [vmem:[#allocation3] sm:$0xff] %vm4936_vm8, %v4864_v5  ;;  %4220 = vmatmul.f32.gmra.mxu1 %v3732_v37 }
 0x215   : > { %v7382_v48 = vsel %vm1758_vm4, %v1839_v26, %v1841_v32  ;;  %v9613_v26 = vmax.f32 %v7057_v20, 0.0  ;;  %v3764_v20 = vld [vmem:[#allocation2 + $0x238] sm:$0xff] }
 0x216   : > { %3650 = vst.msk [vmem:[#allocation2 + $0x2c8] sm:$0xff] %vm1131_vm2, %v7382_v48  ;;  %v859_v54 = vpop.f32.mrf.mxu0  ;;  %2703 = vrot.lane.b32.xlu2 %v6924_v22, %s5772_s17  ;;  %3286 = vrot.lane.b32.xlu1 %v7204_v38, %s5774_s20 }
 0x217   : > { %v860_v18 = vadd.f32 %v7259_v4, %v859_v54  ;;  %2992 = vrot.lane.b32.xlu0 %v6939_v7, %s5773_s19  ;;  %v1362_v59 = vrot.slane %v9613_v26, 1  ;;  %v7401_v49 = vpop.f32.mrf.mxu3  ;;  %v4185_v26 = vpop.f32.mrf.mxu1 }
 0x218   : > { %v2248_v37 = vpop.permute.xlu2 %2247  ;;  %v1502_v32 = vpop.permute.xlu1 %1501 }
 0x219   : > { %v7397_v5 = vmax.f32 %v860_v18, 0.0  ;;  %2450 = vst.msk [vmem:[#allocation2 + $0x150] sm:$0xff] %vm2435_vm7, %v2248_v37  ;;  %v1500_v22 = vpop.permute.xlu0 %1499  ;;  %5486 = vmatmul.msk.f32.gmra.mxu0 %vm381_vm1, %v335_v52  ;;  %v3721_v38 = vld [vmem:[#allocation2 + $0xe0] sm:$0xff]  ;;  %v7408_v54 = vsel %vm1300_vm3, %v1360_v1, %v1362_v59  ;;  %v336_v18 = vld [vmem:[%s5851_s16 + $0x208] sm:$0xff] }
 0x21a   : > { %1702 = vst.msk [vmem:[#allocation2 + $0x180] sm:$0xff] %vm1685_vm5, %v1502_v32  ;;  %4441 = vmatmul.f32.gmra.mxu2 %v3721_v38 }
 0x21b   : > { %1168 = vst.msk [vmem:[#allocation2 + $0x360] sm:$0xff] %vm1131_vm2, %v7397_v5  ;;  %5549 = vmatmul.msk.f32.gmra.mxu3 %vm1131_vm2, %v3764_v20  ;;  %v1843_v32 = vrot.slane %v7397_v5, 2 }
 0x21c   : > { %1701 = vst.msk [vmem:[#allocation2 + $0x168] sm:$0xff] %vm1685_vm5, %v1500_v22 }
 0x21d   : > { %2611 = vst.msk [vmem:[#allocation2 + $0x230] sm:$0xff] %vm1131_vm2, %v7408_v54 }
 0x21e   : > { %v862_v52 = vpop.f32.mrf.mxu0  ;;  %2259 = vrot.lane.b32.xlu2 %v6939_v7, %s5774_s20  ;;  %3288 = vrot.lane.b32.xlu1 %v7244_v50, %s5774_s20 }
 0x21f   : > { %v863_v37 = vadd.f32 %v7259_v4, %v862_v52  ;;  %2261 = vrot.lane.b32.xlu0 %v6989_v57, %s5774_s20  ;;  %v7430_v52 = vpop.f32.mrf.mxu3  ;;  %v4188_v23 = vpop.f32.mrf.mxu1 }
 0x220   : > { %v2694_v1 = vpop.permute.xlu2 %2693  ;;  %v3735_v59 = vld [vmem:[#allocation2 + $0x150] sm:$0xff]  ;;  %v1960_v38 = vpop.permute.xlu1 %1959 }
 0x221   : > { %v7422_v22 = vmax.f32 %v863_v37, 0.0  ;;  %2896 = vst.msk [vmem:[#allocation2 + $0x140] sm:$0xff] %vm1685_vm5, %v2694_v1  ;;  %v1958_v7 = vpop.permute.xlu0 %1957  ;;  %5487 = vmatmul.msk.f32.gmra.mxu0 %vm381_vm1, %v336_v18  ;;  %4223 = vmatmul.f32.gmra.mxu1 %v3735_v59  ;;  %v4186_v37 = vadd.f32 %v7333_v53, %v4185_v26  ;;  %v3767_v1 = vld [vmem:[#allocation2 + $0x250] sm:$0xff] }
 0x222   : > { %2160 = vst.msk [vmem:[#allocation2 + $0x180] sm:$0xff] %vm2143_vm6, %v1960_v38  ;;  %v337_v26 = vld [vmem:[%s5851_s16 + $0x210] sm:$0xff] }
 0x223   : > { %v1844_v20 = vrot.slane %v7422_v22, 2  ;;  %1169 = vst.msk [vmem:[#allocation2 + $0x378] sm:$0xff] %vm1131_vm2, %v7422_v22  ;;  %5550 = vmatmul.msk.f32.gmra.mxu3 %vm1131_vm2, %v3767_v1 }
 0x224   : > { %2159 = vst.msk [vmem:[#allocation2 + $0x168] sm:$0xff] %vm2143_vm6, %v1958_v7 }
 0x225   : > { %v7435_v17 = vsel %vm1758_vm4, %v1843_v32, %v1844_v20  ;;  %v4418_v18 = vpop.f32.mrf.mxu2 }
 0x226   : > { %9614 = vst [vmem:[#allocation52_spill] sm:$0xff] %v7435_v17  ;;  %v4419_v59 = vadd.f32 %v4418_v18, %v4186_v37  ;;  %v865_v38 = vpop.f32.mrf.mxu0  ;;  %1515 = vrot.lane.b32.xlu2 %v7244_v50, %s5772_s17  ;;  %2263 = vrot.lane.b32.xlu1 %v7006_v33, %s5774_s20 }
 0x227   : > { %3651 = vst.msk [vmem:[#allocation2 + $0x2e0] sm:$0xff] %vm1131_vm2, %v7435_v17  ;;  %v866_v7 = vadd.f32 %v7259_v4, %v865_v38  ;;  %2994 = vrot.lane.b32.xlu0 %v6989_v57, %s5773_s19  ;;  %v3770_v38 = vld [vmem:[#allocation2 + $0x268] sm:$0xff] }
 0x228   : > { %v4652_v32 = vadd.f32 %v7341_v45, %v4419_v59  ;;  %v1504_v1 = vpop.permute.xlu2 %1503  ;;  %v3275_v37 = vpop.permute.xlu1 %3274  ;;  %v4189_v59 = vadd.f32 %v7333_v53, %v4188_v23  ;;  %v338_v23 = vld [vmem:[%s5851_s16 + $0x218] sm:$0xff] }
 0x229   : > { %v7449_v47 = vmax.f32 %v866_v7, 0.0  ;;  %1703 = vst.msk [vmem:[#allocation2 + $0x198] sm:$0xff] %vm1685_vm5, %v1504_v1  ;;  %5488 = vmatmul.msk.f32.gmra.mxu0 %vm381_vm1, %v337_v26  ;;  %v2981_v18 = vpop.permute.xlu0 %2980  ;;  %v7457_v45 = vpop.f32.mrf.mxu3 }
 0x22a   : > { %v4865_v50 = vmax.f32 %v4652_v32, 0.0  ;;  %3480 = vst.msk [vmem:[#allocation2 + $0xf8] sm:$0xff] %vm2435_vm7, %v3275_v37 }
 0x22b   : > { %1170 = vst.msk [vmem:[#allocation2 + $0x390] sm:$0xff] %vm1131_vm2, %v7449_v47  ;;  %v1846_v57 = vrot.slane %v7449_v47, 2  ;;  %5551 = vmatmul.msk.f32.gmra.mxu3 %vm1131_vm2, %v3770_v38 }
 0x22c   : > { %4938 = vst.msk [vmem:[#allocation3 + $0x8] sm:$0xff] %vm4936_vm8, %v4865_v50 }
 0x22d   : > { %3185 = vst.msk [vmem:[#allocation2 + $0x110] sm:$0xff] %vm2143_vm6, %v2981_v18  ;;  %v4421_v26 = vpop.f32.mrf.mxu2  ;;  %v7463_v7 = vsel %vm1758_vm4, %v1844_v20, %v1846_v57 }
 0x22e   : > { %9615 = vst [vmem:[#allocation53_spill] sm:$0xff] %v7463_v7  ;;  %v4422_v32 = vadd.f32 %v4421_v26, %v4189_v59  ;;  %v868_v1 = vpop.f32.mrf.mxu0  ;;  %1973 = vrot.lane.b32.xlu2 %v6976_v62, %s5773_s19  ;;  %3290 = vrot.lane.b32.xlu1 %v7331_v35, %s5774_s20 }
 0x22f   : > { %3652 = vst.msk [vmem:[#allocation2 + $0x2f8] sm:$0xff] %vm1131_vm2, %v7463_v7  ;;  %v7474_v37 = vadd.f32 %v7259_v4, %v868_v1  ;;  %2996 = vrot.lane.b32.xlu0 %v7006_v33, %s5773_s19  ;;  %v1364_v1 = vrot.slane %v7089_v40, 1  ;;  %v1365_v33 = vrot.slane %v7111_v9, 1 }
 0x230   : > { %v4655_v20 = vadd.f32 %v7374_v34, %v4422_v32  ;;  %v1962_v50 = vpop.permute.xlu2 %1961  ;;  %v3277_v59 = vpop.permute.xlu1 %3276 }
 0x231   : > { %v9476_v18 = vmax.f32 %v7474_v37, 0.0  ;;  %2161 = vst.msk [vmem:[#allocation2 + $0x198] sm:$0xff] %vm2143_vm6, %v1962_v50  ;;  %5489 = vmatmul.msk.f32.gmra.mxu0 %vm381_vm1, %v338_v23  ;;  %v3724_v38 = vld [vmem:[#allocation2 + $0xf8] sm:$0xff]  ;;  %v2250_v0 = vpop.permute.xlu0 %2249  ;;  %v7487_v32 = vpop.f32.mrf.mxu3  ;;  %v3773_v50 = vld [vmem:[#allocation2 + $0x280] sm:$0xff]  ;;  %v7491_v23 = vsel %vm1300_vm3, %v1364_v1, %v1365_v33 }
 0x232   : > { %v4866_v26 = vmax.f32 %v4655_v20, 0.0  ;;  %3481 = vst.msk [vmem:[#allocation2 + $0x110] sm:$0xff] %vm2435_vm7, %v3277_v59  ;;  %4444 = vmatmul.f32.gmra.mxu2 %v3724_v38  ;;  %v339_v38 = vld [vmem:[%s5851_s16 + $0x220] sm:$0xff] }
 0x233   : > { %v1848_v34 = vrot.slane %v9476_v18, 2  ;;  %2451 = vst.msk [vmem:[#allocation2 + $0x168] sm:$0xff] %vm2435_vm7, %v2250_v0  ;;  %5552 = vmatmul.msk.f32.gmra.mxu3 %vm1131_vm2, %v3773_v50 }
 0x234   : > { %4939 = vst.msk [vmem:[#allocation3 + $0x10] sm:$0xff] %vm4936_vm8, %v4866_v26 }
 0x235   : > { %v7494_v20 = vsel %vm1758_vm4, %v1846_v57, %v1848_v34  ;;  %2612 = vst.msk [vmem:[#allocation2 + $0x248] sm:$0xff] %vm1131_vm2, %v7491_v23  ;;  %v4191_v57 = vpop.f32.mrf.mxu1 }
 0x236   : > { %9616 = vst [vmem:[#allocation54_spill] sm:$0xff] %v7494_v20  ;;  %v871_v59 = vpop.f32.mrf.mxu0  ;;  %2705 = vrot.lane.b32.xlu2 %v6952_v41, %s5772_s17  ;;  %1519 = vrot.lane.b32.xlu1 %v7367_v16, %s5772_s17 }
 0x237   : > { %3653 = vst.msk [vmem:[#allocation2 + $0x310] sm:$0xff] %vm1131_vm2, %v7494_v20  ;;  %v872_v26 = vadd.f32 %v7259_v4, %v871_v59  ;;  %1517 = vrot.lane.b32.xlu0 %v7331_v35, %s5772_s17  ;;  %v1367_v59 = vrot.slane %v7134_v10, 1  ;;  %v4192_v35 = vadd.f32 %v7333_v53, %v4191_v57  ;;  %v340_v57 = vld [vmem:[%s5851_s16 + $0x228] sm:$0xff] }
 0x238   : > { %v2696_v0 = vpop.permute.xlu2 %2695  ;;  %v2252_v34 = vpop.permute.xlu1 %2251 }
 0x239   : > { %v7510_v1 = vmax.f32 %v872_v26, 0.0  ;;  %2897 = vst.msk [vmem:[#allocation2 + $0x158] sm:$0xff] %vm1685_vm5, %v2696_v0  ;;  %5490 = vmatmul.msk.f32.gmra.mxu0 %vm381_vm1, %v339_v38  ;;  %v3727_v41 = vld [vmem:[#allocation2 + $0x110] sm:$0xff]  ;;  %v2983_v50 = vpop.permute.xlu0 %2982  ;;  %v3776_v0 = vld [vmem:[#allocation2 + $0x298] sm:$0xff]  ;;  %v7521_v18 = vsel %vm1300_vm3, %v1365_v33, %v1367_v59 }
 0x23a   : > { %2452 = vst.msk [vmem:[#allocation2 + $0x180] sm:$0xff] %vm2435_vm7, %v2252_v34  ;;  %4447 = vmatmul.f32.gmra.mxu2 %v3727_v41  ;;  %v3738_v26 = vld [vmem:[#allocation2 + $0x168] sm:$0xff]  ;;  %v7526_v34 = vpop.f32.mrf.mxu3 }
 0x23b   : > { %1171 = vst.msk [vmem:[#allocation2 + $0x3a8] sm:$0xff] %vm1131_vm2, %v7510_v1  ;;  %4226 = vmatmul.f32.gmra.mxu1 %v3738_v26  ;;  %5553 = vmatmul.msk.f32.gmra.mxu3 %vm1131_vm2, %v3776_v0 }
 0x23c   : > { %3186 = vst.msk [vmem:[#allocation2 + $0x128] sm:$0xff] %vm2143_vm6, %v2983_v50  ;;  %v9617_v50 = vmax.f32 %v7154_v15, 0.0 }
 0x23d   : > { %v4424_v38 = vpop.f32.mrf.mxu2  ;;  %2613 = vst.msk [vmem:[#allocation2 + $0x260] sm:$0xff] %vm1131_vm2, %v7521_v18 }
 0x23e   : > { %v4425_v41 = vadd.f32 %v4424_v38, %v4192_v35  ;;  %v874_v58 = vpop.f32.mrf.mxu0  ;;  %2265 = vrot.lane.b32.xlu2 %v7035_v51, %s5774_s20  ;;  %1977 = vrot.lane.b32.xlu1 %v7045_v44, %s5773_s19  ;;  %v1369_v26 = vrot.slane %v9617_v50, 1  ;;  %v1850_v35 = vrot.slane %v7510_v1, 2 }
 0x23f   : > { %v875_v33 = vadd.f32 %v7259_v4, %v874_v58  ;;  %1975 = vrot.lane.b32.xlu0 %v7016_v43, %s5773_s19 }
 0x240   : > { %v4658_v0 = vadd.f32 %v7401_v49, %v4425_v41  ;;  %v2698_v2 = vpop.permute.xlu2 %2697  ;;  %v3279_v24 = vpop.permute.xlu1 %3278  ;;  %v3779_v49 = vld [vmem:[#allocation2 + $0x2b0] sm:$0xff]  ;;  %v7550_v41 = vsel %vm1300_vm3, %v1367_v59, %v1369_v26 }
 0x241   : > { %v7540_v38 = vmax.f32 %v875_v33, 0.0  ;;  %2898 = vst.msk [vmem:[#allocation2 + $0x170] sm:$0xff] %vm1685_vm5, %v2698_v2  ;;  %5491 = vmatmul.msk.f32.gmra.mxu0 %vm381_vm1, %v340_v57  ;;  %v2985_v58 = vpop.permute.xlu0 %2984  ;;  %v3741_v36 = vld [vmem:[#allocation2 + $0x180] sm:$0xff] }
 0x242   : > { %v4867_v56 = vmax.f32 %v4658_v0, 0.0  ;;  %3482 = vst.msk [vmem:[#allocation2 + $0x128] sm:$0xff] %vm2435_vm7, %v3279_v24  ;;  %v7557_v24 = vpop.f32.mrf.mxu3  ;;  %v3782_v0 = vld [vmem:[#allocation2 + $0x2c8] sm:$0xff] }
 0x243   : > { %9618 = vst [vmem:[#allocation55_spill] sm:$0xff] %v7540_v38  ;;  %v1851_v15 = vrot.slane %v7540_v38, 2  ;;  %4229 = vmatmul.f32.gmra.mxu1 %v3741_v36  ;;  %5554 = vmatmul.msk.f32.gmra.mxu3 %vm1131_vm2, %v3779_v49 }
 0x244   : > { %1172 = vst.msk [vmem:[#allocation2 + $0x3c0] sm:$0xff] %vm1131_vm2, %v7540_v38 }
 0x245   : > { %4940 = vst.msk [vmem:[#allocation3 + $0x18] sm:$0xff] %vm4936_vm8, %v4867_v56  ;;  %v7553_v2 = vsel %vm1758_vm4, %v1850_v35, %v1851_v15  ;;  %v341_v56 = vld [vmem:[%s5851_s16 + $0x230] sm:$0xff] }
 0x246   : > { %9619 = vst [vmem:[#allocation56_spill] sm:$0xff] %v7553_v2  ;;  %v877_v57 = vpop.f32.mrf.mxu0  ;;  %1521 = vrot.lane.b32.xlu2 %v7408_v54, %s5772_s17  ;;  %3292 = vrot.lane.b32.xlu1 %v7367_v16, %s5774_s20 }
 0x247   : > { %3187 = vst.msk [vmem:[#allocation2 + $0x140] sm:$0xff] %vm2143_vm6, %v2985_v58  ;;  %v878_v59 = vadd.f32 %v7259_v4, %v877_v57  ;;  %2998 = vrot.lane.b32.xlu0 %v7035_v51, %s5773_s19  ;;  %v342_v57 = vld [vmem:[%s5851_s16 + $0x238] sm:$0xff] }
 0x248   : > { %3654 = vst.msk [vmem:[#allocation2 + $0x328] sm:$0xff] %vm1131_vm2, %v7553_v2  ;;  %v2254_v36 = vpop.permute.xlu2 %2253  ;;  %v1508_v50 = vpop.permute.xlu1 %1507 }
 0x249   : > { %2614 = vst.msk [vmem:[#allocation2 + $0x278] sm:$0xff] %vm1131_vm2, %v7550_v41  ;;  %v7571_v33 = vmax.f32 %v878_v59, 0.0  ;;  %5492 = vmatmul.msk.f32.gmra.mxu0 %vm381_vm1, %v341_v56  ;;  %v3730_v26 = vld [vmem:[#allocation2 + $0x128] sm:$0xff]  ;;  %v1506_v16 = vpop.permute.xlu0 %1505 }
 0x24a   : > { %2453 = vst.msk [vmem:[#allocation2 + $0x198] sm:$0xff] %vm2435_vm7, %v2254_v36  ;;  %4450 = vmatmul.f32.gmra.mxu2 %v3730_v26  ;;  %v7584_v58 = vpop.f32.mrf.mxu3  ;;  %v4194_v36 = vpop.f32.mrf.mxu1 }
 0x24b   : > { %9620 = vst [vmem:[#allocation57_spill] sm:$0xff] %v7571_v33  ;;  %v1853_v51 = vrot.slane %v7571_v33, 2  ;;  %5555 = vmatmul.msk.f32.gmra.mxu3 %vm1131_vm2, %v3782_v0  ;;  %v1372_v0 = vrot.slane %v7209_v42, 1  ;;  %v4195_v21 = vadd.f32 %v7333_v53, %v4194_v36  ;;  %v343_v36 = vld [vmem:[%s5851_s16 + $0x240] sm:$0xff] }
 0x24c   : > { %1705 = vst.msk [vmem:[#allocation2 + $0x1c8] sm:$0xff] %vm1685_vm5, %v1508_v50 }
 0x24d   : > { %1173 = vst.msk [vmem:[#allocation2 + $0x3d8] sm:$0xff] %vm1131_vm2, %v7571_v33  ;;  %v7581_v35 = vsel %vm1758_vm4, %v1851_v15, %v1853_v51 }
 0x24e   : > { %1704 = vst.msk [vmem:[#allocation2 + $0x1b0] sm:$0xff] %vm1685_vm5, %v1506_v16  ;;  %v880_v49 = vpop.f32.mrf.mxu0  ;;  %1979 = vrot.lane.b32.xlu2 %v7074_v27, %s5773_s19  ;;  %3294 = vrot.lane.b32.xlu1 %v7408_v54, %s5774_s20  ;;  %v1371_v16 = vrot.slane %v7185_v63, 1 }
 0x24f   : > { %9621 = vst [vmem:[#allocation58_spill] sm:$0xff] %v7581_v35  ;;  %v7594_v56 = vadd.f32 %v7259_v4, %v880_v49  ;;  %2267 = vrot.lane.b32.xlu0 %v7089_v40, %s5774_s20 }
 0x250   : > { %3655 = vst.msk [vmem:[#allocation2 + $0x340] sm:$0xff] %vm1131_vm2, %v7581_v35  ;;  %v2700_v15 = vpop.permute.xlu2 %2699  ;;  %v1966_v26 = vpop.permute.xlu1 %1965  ;;  %v7609_v55 = vsel %vm1300_vm3, %v1371_v16, %v1372_v0 }
 0x251   : > { %v3744_v59 = vld [vmem:[#allocation2 + $0x198] sm:$0xff]  ;;  %v9487_v50 = vmax.f32 %v7594_v56, 0.0  ;;  %2899 = vst.msk [vmem:[#allocation2 + $0x188] sm:$0xff] %vm1685_vm5, %v2700_v15  ;;  %5493 = vmatmul.msk.f32.gmra.mxu0 %vm381_vm1, %v342_v57  ;;  %v1964_v54 = vpop.permute.xlu0 %1963  ;;  %v3785_v15 = vld [vmem:[#allocation2 + $0x2e0] sm:$0xff] }
 0x252   : > { %4232 = vmatmul.f32.gmra.mxu1 %v3744_v59  ;;  %2163 = vst.msk [vmem:[#allocation2 + $0x1c8] sm:$0xff] %vm2143_vm6, %v1966_v26  ;;  %v7627_v16 = vpop.f32.mrf.mxu3 }
 0x253   : > { %v1855_v49 = vrot.slane %v9487_v50, 2  ;;  %2162 = vst.msk [vmem:[#allocation2 + $0x1b0] sm:$0xff] %vm2143_vm6, %v1964_v54  ;;  %5556 = vmatmul.msk.f32.gmra.mxu3 %vm1131_vm2, %v3785_v15  ;;  %v4197_v50 = vpop.f32.mrf.mxu1 }
 0x254   : > { %2615 = vst.msk [vmem:[#allocation2 + $0x290] sm:$0xff] %vm1131_vm2, %v7609_v55 }
 0x255   : > { %v7612_v57 = vsel %vm1758_vm4, %v1853_v51, %v1855_v49  ;;  %v4427_v59 = vpop.f32.mrf.mxu2 }
 0x256   : > { %9622 = vst [vmem:[#allocation59_spill] sm:$0xff] %v7612_v57  ;;  %v4428_v26 = vadd.f32 %v4427_v59, %v4195_v21  ;;  %v883_v54 = vpop.f32.mrf.mxu0  ;;  %2707 = vrot.lane.b32.xlu2 %v6976_v62, %s5772_s17  ;;  %2269 = vrot.lane.b32.xlu1 %v7111_v9, %s5774_s20 }
 0x257   : > { %3656 = vst.msk [vmem:[#allocation2 + $0x358] sm:$0xff] %vm1131_vm2, %v7612_v57  ;;  %v884_v51 = vadd.f32 %v7259_v4, %v883_v54  ;;  %1523 = vrot.lane.b32.xlu0 %v7491_v23, %s5772_s17 }
 0x258   : > { %v4661_v49 = vadd.f32 %v7430_v52, %v4428_v26  ;;  %v1510_v15 = vpop.permute.xlu2 %1509  ;;  %v3281_v62 = vpop.permute.xlu1 %3280  ;;  %v3788_v52 = vld [vmem:[#allocation2 + $0x2f8] sm:$0xff]  ;;  %v4198_v26 = vadd.f32 %v7333_v53, %v4197_v50 }
 0x259   : > { %v7630_v21 = vmax.f32 %v884_v51, 0.0  ;;  %1706 = vst.msk [vmem:[#allocation2 + $0x1e0] sm:$0xff] %vm1685_vm5, %v1510_v15  ;;  %5494 = vmatmul.msk.f32.gmra.mxu0 %vm381_vm1, %v343_v36  ;;  %v2987_v54 = vpop.permute.xlu0 %2986  ;;  %v7641_v51 = vsel %vm1300_vm3, %v1372_v0, %v1374_v14  ;;  %v9624_v0 = vmax.f32 %v7262_v3, 0.0 }
 0x25a   : > { %v4868_v59 = vmax.f32 %v4661_v49, 0.0  ;;  %3483 = vst.msk [vmem:[#allocation2 + $0x140] sm:$0xff] %vm2435_vm7, %v3281_v62  ;;  %v344_v62 = vld [vmem:[%s5851_s16 + $0x248] sm:$0xff] }
 0x25b   : > { %9623 = vst [vmem:[#allocation60_spill] sm:$0xff] %v7630_v21  ;;  %5557 = vmatmul.msk.f32.gmra.mxu3 %vm1131_vm2, %v3788_v52 }
 0x25c   : > { %1174 = vst.msk [vmem:[#allocation2 + $0x3f0] sm:$0xff] %vm1131_vm2, %v7630_v21 }
 0x25d   : > { %4941 = vst.msk [vmem:[#allocation3 + $0x20] sm:$0xff] %vm4936_vm8, %v4868_v59  ;;  %v4430_v36 = vpop.f32.mrf.mxu2  ;;  %v1376_v59 = vrot.slane %v9624_v0, 1 }
 0x25e   : > { %3188 = vst.msk [vmem:[#allocation2 + $0x158] sm:$0xff] %vm2143_vm6, %v2987_v54  ;;  %v4431_v49 = vadd.f32 %v4430_v36, %v4198_v26  ;;  %v886_v15 = vpop.f32.mrf.mxu0  ;;  %2271 = vrot.lane.b32.xlu2 %v7134_v10, %s5774_s20  ;;  %1525 = vrot.lane.b32.xlu1 %v7521_v18, %s5772_s17  ;;  %v7657_v54 = vpop.f32.mrf.mxu3  ;;  %v1857_v36 = vrot.slane %v7630_v21, 2 }
 0x25f   : > { %2616 = vst.msk [vmem:[#allocation2 + $0x2a8] sm:$0xff] %vm1131_vm2, %v7641_v51  ;;  %v887_v50 = vadd.f32 %v7259_v4, %v886_v15  ;;  %1981 = vrot.lane.b32.xlu0 %v7121_v31, %s5773_s19 }
 0x260   : > { %v4664_v52 = vadd.f32 %v7457_v45, %v4431_v49  ;;  %v1968_v26 = vpop.permute.xlu2 %1967  ;;  %v3283_v39 = vpop.permute.xlu1 %3282  ;;  %v3791_v45 = vld [vmem:[#allocation2 + $0x310] sm:$0xff]  ;;  %v7671_v49 = vsel %vm1300_vm3, %v1374_v14, %v1376_v59 }
 0x261   : > { %v7661_v61 = vmax.f32 %v887_v50, 0.0  ;;  %2164 = vst.msk [vmem:[#allocation2 + $0x1e0] sm:$0xff] %vm2143_vm6, %v1968_v26  ;;  %5495 = vmatmul.msk.f32.gmra.mxu0 %vm381_vm1, %v344_v62  ;;  %v3733_v15 = vld [vmem:[#allocation2 + $0x140] sm:$0xff]  ;;  %v2256_v3 = vpop.permute.xlu0 %2255  ;;  %v5011_v14 = vld [vmem:[#allocation3 + $0x10] ss:$2 sm:$0xff] }
 0x262   : > { %v4869_v35 = vmax.f32 %v4664_v52, 0.0  ;;  %3484 = vst.msk [vmem:[#allocation2 + $0x158] sm:$0xff] %vm2435_vm7, %v3283_v39  ;;  %4453 = vmatmul.f32.gmra.mxu2 %v3733_v15  ;;  %v5083_v50 = vld [vmem:[#allocation3 + $0x11] ss:$2 sm:$0xff] }
 0x263   : > { %9625 = vst [vmem:[#allocation61_spill] sm:$0xff] %v7661_v61  ;;  %v1858_v0 = vrot.slane %v7661_v61, 2  ;;  %5558 = vmatmul.msk.f32.gmra.mxu3 %vm1131_vm2, %v3791_v45 }
 0x264   : > { %1175 = vst.msk [vmem:[#allocation2 + $0x408] sm:$0xff] %vm1131_vm2, %v7661_v61  ;;  %v5081_v61 = vld [vmem:[#allocation3 + $0x1] ss:$2 sm:$0xff] }
 0x265   : > { %4942 = vst.msk [vmem:[#allocation3 + $0x28] sm:$0xff] %vm4936_vm8, %v4869_v35  ;;  %v7674_v62 = vsel %vm1758_vm4, %v1857_v36, %v1858_v0  ;;  %v345_v35 = vld [vmem:[%s5851_s16 + $0x250] sm:$0xff]  ;;  %v4200_v36 = vpop.f32.mrf.mxu1 }
 0x266   : > { %9626 = vst [vmem:[#allocation62_spill] sm:$0xff] %v7674_v62  ;;  %v889_v39 = vpop.f32.mrf.mxu0  ;;  %1527 = vrot.lane.b32.xlu2 %v7550_v41, %s5772_s17  ;;  %1983 = vrot.lane.b32.xlu1 %v7144_v46, %s5773_s19  ;;  %v7690_v52 = vpop.f32.mrf.mxu3 }
 0x267   : > { %2454 = vst.msk [vmem:[#allocation2 + $0x1b0] sm:$0xff] %vm2435_vm7, %v2256_v3  ;;  %v890_v59 = vadd.f32 %v7259_v4, %v889_v39  ;;  %3000 = vrot.lane.b32.xlu0 %v7089_v40, %s5773_s19  ;;  %v5153_v39 = vmax.f32 %v5011_v14, %v5083_v50  ;;  %v3794_v14 = vld [vmem:[#allocation2 + $0x328] sm:$0xff] }
 0x268   : > { %3657 = vst.msk [vmem:[#allocation2 + $0x370] sm:$0xff] %vm1131_vm2, %v7674_v62  ;;  %v2702_v26 = vpop.permute.xlu2 %2701  ;;  %v2258_v3 = vpop.permute.xlu1 %2257  ;;  %v5009_v62 = vld [vmem:[#allocation3] ss:$2 sm:$0xff] }
 0x269   : > { %2617 = vst.msk [vmem:[#allocation2 + $0x2c0] sm:$0xff] %vm1131_vm2, %v7671_v49  ;;  %v7692_v15 = vmax.f32 %v890_v59, 0.0  ;;  %5496 = vmatmul.msk.f32.gmra.mxu0 %vm381_vm1, %v345_v35  ;;  %v3736_v45 = vld [vmem:[#allocation2 + $0x158] sm:$0xff]  ;;  %v2989_v40 = vpop.permute.xlu0 %2988 }
 0x26a   : > { %9627 = vst [vmem:[#allocation63_spill] sm:$0xff] %v7690_v52  ;;  %4456 = vmatmul.f32.gmra.mxu2 %v3736_v45  ;;  %v5213_v45 = vrot.slane %v5153_v39, 4 }
 0x26b   : > { %9628 = vst [vmem:[#allocation64_spill] sm:$0xff] %v7692_v15  ;;  %v1860_v59 = vrot.slane %v7692_v15, 2  ;;  %5559 = vmatmul.msk.f32.gmra.mxu3 %vm1131_vm2, %v3794_v14 }
 0x26c   : > { %2900 = vst.msk [vmem:[#allocation2 + $0x1a0] sm:$0xff] %vm1685_vm5, %v2702_v26  ;;  %v5013_v57 = vld [vmem:[#allocation3 + $0x20] ss:$2 sm:$0xff]  ;;  %v5085_v2 = vld [vmem:[#allocation3 + $0x21] ss:$2 sm:$0xff]  ;;  %v4201_v26 = vadd.f32 %v7333_v53, %v4200_v36 }
 0x26d   : > { %2455 = vst.msk [vmem:[#allocation2 + $0x1c8] sm:$0xff] %vm2435_vm7, %v2258_v3  ;;  %v5154_v21 = vmax.f32 %v5013_v57, %v5085_v2  ;;  %v4433_v50 = vpop.f32.mrf.mxu2  ;;  %v7704_v3 = vsel %vm1758_vm4, %v1858_v0, %v1860_v59  ;;  %v346_v2 = vld [vmem:[%s5851_s16 + $0x258] sm:$0xff]  ;;  %v5152_v57 = vmax.f32 %v5009_v62, %v5081_v61 }
 0x26e   : > { %1176 = vst.msk [vmem:[#allocation2 + $0x420] sm:$0xff] %vm1131_vm2, %v7692_v15  ;;  %v3747_v35 = vld [vmem:[#allocation2 + $0x1b0] sm:$0xff]  ;;  %v4434_v15 = vadd.f32 %v4433_v50, %v4201_v26  ;;  %v892_v7 = vpop.f32.mrf.mxu0  ;;  %1985 = vrot.lane.b32.xlu2 %v7166_v60, %s5773_s19  ;;  %3296 = vrot.lane.b32.xlu1 %v7491_v23, %s5774_s20 }
 0x26f   : > { %3189 = vst.msk [vmem:[#allocation2 + $0x170] sm:$0xff] %vm2143_vm6, %v2989_v40  ;;  %4235 = vmatmul.f32.gmra.mxu1 %v3747_v35  ;;  %v5214_v52 = vrot.slane %v5154_v21, 4  ;;  %v7720_v21 = vadd.f32 %v7259_v4, %v892_v7  ;;  %2273 = vrot.lane.b32.xlu0 %v7185_v63, %s5774_s20  ;;  %v7729_v7 = vpop.f32.mrf.mxu3 }
 0x270   : > { %9629 = vst [vmem:[#allocation65_spill] sm:$0xff] %v7704_v3  ;;  %v4667_v23 = vadd.f32 %v7487_v32, %v4434_v15  ;;  %v2704_v61 = vpop.permute.xlu2 %2703  ;;  %v3285_v26 = vpop.permute.xlu1 %3284 }
 0x271   : > { %3658 = vst.msk [vmem:[#allocation2 + $0x388] sm:$0xff] %vm1131_vm2, %v7704_v3  ;;  %v5215_v0 = vsel %vm5212_vm9, %v5213_v45, %v5214_v52  ;;  %v5274_v36 = vmax.f32 %v5153_v39, %v5214_v52  ;;  %v9510_v40 = vmax.f32 %v7720_v21, 0.0  ;;  %5497 = vmatmul.msk.f32.gmra.mxu0 %vm381_vm1, %v346_v2  ;;  %v2991_v14 = vpop.permute.xlu0 %2990  ;;  %v3797_v52 = vld [vmem:[#allocation2 + $0x340] sm:$0xff]  ;;  %v1378_v39 = vrot.slane %v7287_v29, 1 }
 0x272   : > { %v5273_v62 = vmax.f32 %v5152_v57, %v5215_v0  ;;  %2901 = vst.msk [vmem:[#allocation2 + $0x1b8] sm:$0xff] %vm1685_vm5, %v2704_v61  ;;  %v4870_v35 = vmax.f32 %v4667_v23, 0.0  ;;  %v1379_v45 = vrot.slane %v7305_v8, 1 }
 0x273   : > { %5299 = vst.msk [vmem:[%s7717_s14 + $0x8] sm:$0xf] %vm5298_vm10, %v5274_v36  ;;  %v1862_v32 = vrot.slane %v9510_v40, 2  ;;  %5560 = vmatmul.msk.f32.gmra.mxu3 %vm1131_vm2, %v3797_v52 }
 0x274   : > { %v3750_v50 = vld [vmem:[#allocation2 + $0x1c8] sm:$0xff]  ;;  %5297 = vst.msk [vmem:[%s7717_s14] sm:$0xff] %vm4936_vm8, %v5273_v62  ;;  %v7757_v0 = vsel %vm1300_vm3, %v1378_v39, %v1379_v45 }
 0x275   : > { %4943 = vst.msk [vmem:[#allocation3 + $0x30] sm:$0xff] %vm4936_vm8, %v4870_v35  ;;  %v7739_v15 = vsel %vm1758_vm4, %v1860_v59, %v1862_v32  ;;  %v347_v59 = vld [vmem:[%s5851_s16 + $0x260] sm:$0xff]  ;;  %v348_v32 = vld [vmem:[%s5851_s16 + $0x268] sm:$0xff] }
 0x276   : > { %9630 = vst [vmem:[#allocation66_spill] sm:$0xff] %v7739_v15  ;;  %v895_v2 = vpop.f32.mrf.mxu0  ;;  %2709 = vrot.lane.b32.xlu2 %v7016_v43, %s5772_s17  ;;  %2275 = vrot.lane.b32.xlu1 %v7209_v42, %s5774_s20 }
 0x277   : > { %3485 = vst.msk [vmem:[#allocation2 + $0x170] sm:$0xff] %vm2435_vm7, %v3285_v26  ;;  %4238 = vmatmul.f32.gmra.mxu1 %v3750_v50  ;;  %v896_v57 = vadd.f32 %v7259_v4, %v895_v2  ;;  %1529 = vrot.lane.b32.xlu0 %v7609_v55, %s5772_s17  ;;  %v7765_v61 = vpop.f32.mrf.mxu3  ;;  %v3800_v26 = vld [vmem:[#allocation2 + $0x358] sm:$0xff] }
 0x278   : > { %3659 = vst.msk [vmem:[#allocation2 + $0x3a0] sm:$0xff] %vm1131_vm2, %v7739_v15  ;;  %v2260_v36 = vpop.permute.xlu2 %2259  ;;  %v1514_v43 = vpop.permute.xlu1 %1513 }
 0x279   : > { %3190 = vst.msk [vmem:[#allocation2 + $0x188] sm:$0xff] %vm2143_vm6, %v2991_v14  ;;  %v7761_v23 = vmax.f32 %v896_v57, 0.0  ;;  %5498 = vmatmul.msk.f32.gmra.mxu0 %vm381_vm1, %v347_v59  ;;  %v1512_v62 = vpop.permute.xlu0 %1511  ;;  %v1381_v14 = vrot.slane %v7337_v28, 1  ;;  %v4203_v57 = vpop.f32.mrf.mxu1 }
 0x27a   : > { %2618 = vst.msk [vmem:[#allocation2 + $0x2d8] sm:$0xff] %vm1131_vm2, %v7757_v0 }
 0x27b   : > { %9631 = vst [vmem:[#allocation67_spill] sm:$0xff] %v7761_v23  ;;  %5561 = vmatmul.msk.f32.gmra.mxu3 %vm1131_vm2, %v3800_v26  ;;  %v7782_v39 = vsel %vm1300_vm3, %v1379_v45, %v1381_v14 }
 0x27c   : > { %2456 = vst.msk [vmem:[#allocation2 + $0x1e0] sm:$0xff] %vm2435_vm7, %v2260_v36  ;;  %v1864_v36 = vrot.slane %v7761_v23, 2 }
 0x27d   : > { %1708 = vst.msk [vmem:[#allocation2 + $0x210] sm:$0xff] %vm1685_vm5, %v1514_v43 }
 0x27e   : > { %1177 = vst.msk [vmem:[#allocation2 + $0x438] sm:$0xff] %vm1131_vm2, %v7761_v23  ;;  %v3739_v35 = vld [vmem:[#allocation2 + $0x170] sm:$0xff]  ;;  %v898_v50 = vpop.f32.mrf.mxu0  ;;  %2277 = vrot.lane.b32.xlu2 %v7234_v11, %s5774_s20  ;;  %1531 = vrot.lane.b32.xlu1 %v7641_v51, %s5772_s17 }
 0x27f   : > { %1707 = vst.msk [vmem:[#allocation2 + $0x1f8] sm:$0xff] %vm1685_vm5, %v1512_v62  ;;  %4459 = vmatmul.f32.gmra.mxu2 %v3739_v35  ;;  %v899_v52 = vadd.f32 %v7259_v4, %v898_v50  ;;  %1987 = vrot.lane.b32.xlu0 %v7219_v30, %s5773_s19  ;;  %v7791_v4 = vpop.f32.mrf.mxu3  ;;  %v4204_v35 = vadd.f32 %v7333_v53, %v4203_v57  ;;  %v3803_v50 = vld [vmem:[#allocation2 + $0x370] sm:$0xff] }
 0x280   : > { %v1516_v2 = vpop.permute.xlu2 %1515  ;;  %2619 = vst.msk [vmem:[#allocation2 + $0x2f0] sm:$0xff] %vm1131_vm2, %v7782_v39  ;;  %v1972_v62 = vpop.permute.xlu1 %1971  ;;  %v349_v57 = vld [vmem:[%s5851_s16 + $0x270] sm:$0xff] }
 0x281   : > { %v7787_v43 = vmax.f32 %v899_v52, 0.0  ;;  %1709 = vst.msk [vmem:[#allocation2 + $0x228] sm:$0xff] %vm1685_vm5, %v1516_v2  ;;  %5499 = vmatmul.msk.f32.gmra.mxu0 %vm381_vm1, %v348_v32  ;;  %v1970_v45 = vpop.permute.xlu0 %1969  ;;  %v4206_v40 = vpop.f32.mrf.mxu1 }
 0x282   : > { %2166 = vst.msk [vmem:[#allocation2 + $0x210] sm:$0xff] %vm2143_vm6, %v1972_v62  ;;  %v7810_v62 = vld [vmem:[#allocation6] ss:$0 sm:$0xff] }
 0x283   : > { %v3753_v59 = vld [vmem:[#allocation2 + $0x1e0] sm:$0xff]  ;;  %9632 = vst [vmem:[#allocation68_spill] sm:$0xff] %v7787_v43  ;;  %v1865_v26 = vrot.slane %v7787_v43, 2  ;;  %5562 = vmatmul.msk.f32.gmra.mxu3 %vm1131_vm2, %v3803_v50 }
 0x284   : > { %4241 = vmatmul.f32.gmra.mxu1 %v3753_v59  ;;  %1178 = vst.msk [vmem:[#allocation2 + $0x450] sm:$0xff] %vm1131_vm2, %v7787_v43 }
 0x285   : > { %2165 = vst.msk [vmem:[#allocation2 + $0x1f8] sm:$0xff] %vm2143_vm6, %v1970_v45  ;;  %v7800_v52 = vsel %vm1758_vm4, %v1864_v36, %v1865_v26  ;;  %v4436_v32 = vpop.f32.mrf.mxu2  ;;  %v9634_v45 = vmax.f32 %v7362_v6, 0.0  ;;  %v4207_v6 = vadd.f32 %v7333_v53, %v4206_v40  ;;  %v350_v53 = vld [vmem:[%s5851_s16 + $0x278] sm:$0xff] }
 0x286   : > { %9633 = vst [vmem:[#allocation69_spill] sm:$0xff] %v7800_v52  ;;  %v4437_v2 = vadd.f32 %v4436_v32, %v4204_v35  ;;  %v901_v59 = vpop.f32.mrf.mxu0  ;;  %1533 = vrot.lane.b32.xlu2 %v7671_v49, %s5772_s17  ;;  %1989 = vrot.lane.b32.xlu1 %v7247_v19, %s5773_s19 }
 0x287   : > { %3660 = vst.msk [vmem:[#allocation2 + $0x3b8] sm:$0xff] %vm1131_vm2, %v7800_v52  ;;  %v902_v36 = vadd.f32 %v7810_v62, %v901_v59  ;;  %3002 = vrot.lane.b32.xlu0 %v7111_v9, %s5773_s19  ;;  %v1383_v50 = vrot.slane %v9634_v45, 1 }
 0x288   : > { %v4670_v35 = vadd.f32 %v7526_v34, %v4437_v2  ;;  %v1974_v32 = vpop.permute.xlu2 %1973  ;;  %v3287_v3 = vpop.permute.xlu1 %3286  ;;  %v3806_v2 = vld [vmem:[#allocation2 + $0x388] sm:$0xff] }
 0x289   : > { %v7818_v52 = vmax.f32 %v902_v36, 0.0  ;;  %2167 = vst.msk [vmem:[#allocation2 + $0x228] sm:$0xff] %vm2143_vm6, %v1974_v32  ;;  %5500 = vmatmul.msk.f32.gmra.mxu0 %vm381_vm1, %v349_v57  ;;  %v2993_v59 = vpop.permute.xlu0 %2992  ;;  %v7827_v34 = vpop.f32.mrf.mxu3  ;;  %v7831_v36 = vsel %vm1300_vm3, %v1381_v14, %v1383_v50 }
 0x28a   : > { %v4871_v15 = vmax.f32 %v4670_v35, 0.0  ;;  %3486 = vst.msk [vmem:[#allocation2 + $0x188] sm:$0xff] %vm2435_vm7, %v3287_v3 }
 0x28b   : > { %9635 = vst [vmem:[#allocation70_spill] sm:$0xff] %v7818_v52  ;;  %v1867_v9 = vrot.slane %v7818_v52, 2  ;;  %5563 = vmatmul.msk.f32.gmra.mxu3 %vm1131_vm2, %v3806_v2 }
 0x28c   : > { %1179 = vst.msk [vmem:[#allocation2 + $0x468] sm:$0xff] %vm1131_vm2, %v7818_v52 }
 0x28d   : > { %4944 = vst.msk [vmem:[#allocation3 + $0x38] sm:$0xff] %vm4936_vm8, %v4871_v15  ;;  %v4439_v3 = vpop.f32.mrf.mxu2  ;;  %v7835_v57 = vsel %vm1758_vm4, %v1865_v26, %v1867_v9 }
 0x28e   : > { %3191 = vst.msk [vmem:[#allocation2 + $0x1a0] sm:$0xff] %vm2143_vm6, %v2993_v59  ;;  %v4440_v45 = vadd.f32 %v4439_v3, %v4207_v6  ;;  %v904_v35 = vpop.f32.mrf.mxu0  ;;  %1991 = vrot.lane.b32.xlu2 %v7274_v12, %s5773_s19  ;;  %3298 = vrot.lane.b32.xlu1 %v7521_v18, %s5774_s20 }
 0x28f   : > { %9636 = vst [vmem:[#allocation71_spill] sm:$0xff] %v7835_v57  ;;  %v7846_v40 = vadd.f32 %v7810_v62, %v904_v35  ;;  %2279 = vrot.lane.b32.xlu0 %v7287_v29, %s5774_s20  ;;  %v351_v35 = vld [vmem:[%s5851_s16 + $0x280] sm:$0xff] }
 0x290   : > { %3661 = vst.msk [vmem:[#allocation2 + $0x3d0] sm:$0xff] %vm1131_vm2, %v7835_v57  ;;  %v4673_v15 = vadd.f32 %v7557_v24, %v4440_v45  ;;  %v2706_v14 = vpop.permute.xlu2 %2705  ;;  %v3289_v50 = vpop.permute.xlu1 %3288  ;;  %v3809_v24 = vld [vmem:[#allocation2 + $0x3a0] sm:$0xff] }
 0x291   : > { %2620 = vst.msk [vmem:[#allocation2 + $0x308] sm:$0xff] %vm1131_vm2, %v7831_v36  ;;  %v9517_v26 = vmax.f32 %v7846_v40, 0.0  ;;  %5501 = vmatmul.msk.f32.gmra.mxu0 %vm381_vm1, %v350_v53  ;;  %v3742_v18 = vld [vmem:[#allocation2 + $0x188] sm:$0xff]  ;;  %v2262_v59 = vpop.permute.xlu0 %2261  ;;  %v7865_v3 = vpop.f32.mrf.mxu3 }
 0x292   : > { %2902 = vst.msk [vmem:[#allocation2 + $0x1d0] sm:$0xff] %vm1685_vm5, %v2706_v14  ;;  %v4872_v32 = vmax.f32 %v4673_v15, 0.0  ;;  %4462 = vmatmul.f32.gmra.mxu2 %v3742_v18  ;;  %v4209_v15 = vpop.f32.mrf.mxu1 }
 0x293   : > { %3487 = vst.msk [vmem:[#allocation2 + $0x1a0] sm:$0xff] %vm2435_vm7, %v3289_v50  ;;  %v1869_v6 = vrot.slane %v9517_v26, 2  ;;  %5564 = vmatmul.msk.f32.gmra.mxu3 %vm1131_vm2, %v3809_v24  ;;  %v7889_v24 = vld [vmem:[#allocation8] ss:$0 sm:$0xff] }
 0x294   : > { %4945 = vst.msk [vmem:[#allocation3 + $0x40] sm:$0xff] %vm4936_vm8, %v4872_v32  ;;  %v1386_v32 = vrot.slane %v7422_v22, 1 }
 0x295   : > { %v7861_v2 = vsel %vm1758_vm4, %v1867_v9, %v1869_v6  ;;  %2457 = vst.msk [vmem:[#allocation2 + $0x1f8] sm:$0xff] %vm2435_vm7, %v2262_v59 }
 0x296   : > { %3662 = vst.msk [vmem:[#allocation2 + $0x3e8] sm:$0xff] %vm1131_vm2, %v7861_v2  ;;  %v907_v45 = vpop.f32.mrf.mxu0  ;;  %2711 = vrot.lane.b32.xlu2 %v7045_v44, %s5772_s17  ;;  %2281 = vrot.lane.b32.xlu1 %v7305_v8, %s5774_s20  ;;  %v1385_v44 = vrot.slane %v7397_v5, 1 }
 0x297   : > { %v908_v9 = vadd.f32 %v7810_v62, %v907_v45  ;;  %1535 = vrot.lane.b32.xlu0 %v7757_v0, %s5772_s17  ;;  %v4210_v45 = vadd.f32 %v7889_v24, %v4209_v15  ;;  %v352_v15 = vld [vmem:[%s5851_s16 + $0x288] sm:$0xff] }
 0x298   : > { %v2266_v53 = vpop.permute.xlu2 %2265  ;;  %v2264_v50 = vpop.permute.xlu1 %2263  ;;  %v7887_v6 = vsel %vm1300_vm3, %v1385_v44, %v1386_v32 }
 0x299   : > { %v7877_v14 = vmax.f32 %v908_v9, 0.0  ;;  %2459 = vst.msk [vmem:[#allocation2 + $0x228] sm:$0xff] %vm2435_vm7, %v2266_v53  ;;  %5502 = vmatmul.msk.f32.gmra.mxu0 %vm381_vm1, %v351_v35  ;;  %v2995_v59 = vpop.permute.xlu0 %2994  ;;  %v3812_v9 = vld [vmem:[#allocation2 + $0x3b8] sm:$0xff] }
 0x29a   : > { %v3745_v18 = vld [vmem:[#allocation2 + $0x1a0] sm:$0xff]  ;;  %2458 = vst.msk [vmem:[#allocation2 + $0x210] sm:$0xff] %vm2435_vm7, %v2264_v50 }
 0x29b   : > { %9637 = vst [vmem:[#allocation72_spill] sm:$0xff] %v7877_v14  ;;  %4465 = vmatmul.f32.gmra.mxu2 %v3745_v18  ;;  %5565 = vmatmul.msk.f32.gmra.mxu3 %vm1131_vm2, %v3812_v9 }
 0x29c   : > { %1180 = vst.msk [vmem:[#allocation2 + $0x480] sm:$0xff] %vm1131_vm2, %v7877_v14  ;;  %v3756_v35 = vld [vmem:[#allocation2 + $0x1f8] sm:$0xff] }
 0x29d   : > { %3192 = vst.msk [vmem:[#allocation2 + $0x1b8] sm:$0xff] %vm2143_vm6, %v2995_v59  ;;  %4244 = vmatmul.f32.gmra.mxu1 %v3756_v35  ;;  %v4442_v53 = vpop.f32.mrf.mxu2  ;;  %v7904_v59 = vpop.f32.mrf.mxu3 }
 0x29e   : > { %2621 = vst.msk [vmem:[#allocation2 + $0x320] sm:$0xff] %vm1131_vm2, %v7887_v6  ;;  %v4443_v50 = vadd.f32 %v4442_v53, %v4210_v45  ;;  %v910_v18 = vpop.f32.mrf.mxu0  ;;  %2713 = vrot.lane.b32.xlu2 %v7074_v27, %s5772_s17  ;;  %3300 = vrot.lane.b32.xlu1 %v7550_v41, %s5774_s20  ;;  %v1871_v45 = vrot.slane %v7877_v14, 2  ;;  %v1388_v41 = vrot.slane %v7449_v47, 1 }
 0x29f   : > { %v911_v44 = vadd.f32 %v7810_v62, %v910_v18  ;;  %1993 = vrot.lane.b32.xlu0 %v7315_v25, %s5773_s19  ;;  %9638 = vst [vmem:[#allocation73_spill] sm:$0xff] %v7904_v59 }
 0x2a0   : > { %v4676_v35 = vadd.f32 %v7584_v58, %v4443_v50  ;;  %v1522_v9 = vpop.permute.xlu2 %1521  ;;  %v3291_v27 = vpop.permute.xlu1 %3290  ;;  %v3815_v58 = vld [vmem:[#allocation2 + $0x3d0] sm:$0xff]  ;;  %v7919_v50 = vsel %vm1300_vm3, %v1386_v32, %v1388_v41  ;;  %v9641_v32 = vmax.f32 %v7474_v37, 0.0 }
 0x2a1   : > { %v7908_v53 = vmax.f32 %v911_v44, 0.0  ;;  %1712 = vst.msk [vmem:[#allocation2 + $0x270] sm:$0xff] %vm1685_vm5, %v1522_v9  ;;  %5503 = vmatmul.msk.f32.gmra.mxu0 %vm381_vm1, %v352_v15  ;;  %v2997_v26 = vpop.permute.xlu0 %2996  ;;  %v3759_v57 = vld [vmem:[#allocation2 + $0x210] sm:$0xff] }
 0x2a2   : > { %v4873_v18 = vmax.f32 %v4676_v35, 0.0  ;;  %3488 = vst.msk [vmem:[#allocation2 + $0x1b8] sm:$0xff] %vm2435_vm7, %v3291_v27  ;;  %v1390_v35 = vrot.slane %v9641_v32, 1  ;;  %v3818_v32 = vld [vmem:[#allocation2 + $0x3e8] sm:$0xff] }
 0x2a3   : > { %9639 = vst [vmem:[#allocation74_spill] sm:$0xff] %v7908_v53  ;;  %v1872_v59 = vrot.slane %v7908_v53, 2  ;;  %5566 = vmatmul.msk.f32.gmra.mxu3 %vm1131_vm2, %v3815_v58 }
 0x2a4   : > { %1181 = vst.msk [vmem:[#allocation2 + $0x498] sm:$0xff] %vm1131_vm2, %v7908_v53  ;;  %v7949_v58 = vsel %vm1300_vm3, %v1388_v41, %v1390_v35  ;;  %v4212_v35 = vpop.f32.mrf.mxu1 }
 0x2a5   : > { %4946 = vst.msk [vmem:[#allocation3 + $0x48] sm:$0xff] %vm4936_vm8, %v4873_v18  ;;  %v7922_v15 = vsel %vm1758_vm4, %v1871_v45, %v1872_v59  ;;  %4247 = vmatmul.f32.gmra.mxu1 %v3759_v57  ;;  %v7942_v18 = vpop.f32.mrf.mxu3 }
 0x2a6   : > { %9640 = vst [vmem:[#allocation75_spill] sm:$0xff] %v7922_v15  ;;  %v913_v44 = vpop.f32.mrf.mxu0  ;;  %1539 = vrot.lane.b32.xlu2 %v7831_v36, %s5772_s17  ;;  %1537 = vrot.lane.b32.xlu1 %v7782_v39, %s5772_s17 }
 0x2a7   : > { %3193 = vst.msk [vmem:[#allocation2 + $0x1d0] sm:$0xff] %vm2143_vm6, %v2997_v26  ;;  %v914_v9 = vadd.f32 %v7810_v62, %v913_v44  ;;  %3004 = vrot.lane.b32.xlu0 %v7134_v10, %s5773_s19  ;;  %v3762_v44 = vld [vmem:[#allocation2 + $0x228] sm:$0xff] }
 0x2a8   : > { %3663 = vst.msk [vmem:[#allocation2 + $0x400] sm:$0xff] %vm1131_vm2, %v7922_v15  ;;  %v1980_v57 = vpop.permute.xlu2 %1979  ;;  %v1520_v45 = vpop.permute.xlu1 %1519 }
 0x2a9   : > { %2622 = vst.msk [vmem:[#allocation2 + $0x338] sm:$0xff] %vm1131_vm2, %v7919_v50  ;;  %v7939_v26 = vmax.f32 %v914_v9, 0.0  ;;  %v3748_v27 = vld [vmem:[#allocation2 + $0x1b8] sm:$0xff]  ;;  %v1518_v37 = vpop.permute.xlu0 %1517 }
 0x2aa   : > { %2170 = vst.msk [vmem:[#allocation2 + $0x270] sm:$0xff] %vm2143_vm6, %v1980_v57  ;;  %4468 = vmatmul.f32.gmra.mxu2 %v3748_v27 }
 0x2ab   : > { %9642 = vst [vmem:[#allocation76_spill] sm:$0xff] %v7939_v26  ;;  %v1874_v10 = vrot.slane %v7939_v26, 2  ;;  %5567 = vmatmul.msk.f32.gmra.mxu3 %vm1131_vm2, %v3818_v32  ;;  %v4213_v32 = vadd.f32 %v7889_v24, %v4212_v35 }
 0x2ac   : > { %9643 = vst [vmem:[#allocation77_spill] sm:$0xff] %v7942_v18 }
 0x2ad   : > { %1711 = vst.msk [vmem:[#allocation2 + $0x258] sm:$0xff] %vm1685_vm5, %v1520_v45  ;;  %4250 = vmatmul.f32.gmra.mxu1 %v3762_v44  ;;  %v7953_v9 = vsel %vm1758_vm4, %v1872_v59, %v1874_v10 }
 0x2ae   : > { %1182 = vst.msk [vmem:[#allocation2 + $0x4b0] sm:$0xff] %vm1131_vm2, %v7939_v26  ;;  %v916_v57 = vpop.f32.mrf.mxu0  ;;  %1997 = vrot.lane.b32.xlu2 %v7382_v48, %s5773_s19  ;;  %1995 = vrot.lane.b32.xlu1 %v7350_v13, %s5773_s19 }
 0x2af   : > { %1710 = vst.msk [vmem:[#allocation2 + $0x240] sm:$0xff] %vm1685_vm5, %v1518_v37  ;;  %v7965_v41 = vadd.f32 %v7810_v62, %v916_v57  ;;  %3006 = vrot.lane.b32.xlu0 %v7185_v63, %s5773_s19  ;;  %v7976_v57 = vpop.f32.mrf.mxu3  ;;  %v3821_v63 = vld [vmem:[#allocation2 + $0x400] sm:$0xff] }
 0x2b0   : > { %9644 = vst [vmem:[#allocation78_spill] sm:$0xff] %v7953_v9  ;;  %v2708_v59 = vpop.permute.xlu2 %2707  ;;  %v1978_v27 = vpop.permute.xlu1 %1977 }
 0x2b1   : > { %2623 = vst.msk [vmem:[#allocation2 + $0x350] sm:$0xff] %vm1131_vm2, %v7949_v58  ;;  %v9522_v45 = vmax.f32 %v7965_v41, 0.0  ;;  %v1976_v37 = vpop.permute.xlu0 %1975 }
 0x2b2   : > { %3664 = vst.msk [vmem:[#allocation2 + $0x418] sm:$0xff] %vm1131_vm2, %v7953_v9 }
 0x2b3   : > { %2903 = vst.msk [vmem:[#allocation2 + $0x1e8] sm:$0xff] %vm1685_vm5, %v2708_v59  ;;  %v1876_v44 = vrot.slane %v9522_v45, 2  ;;  %5568 = vmatmul.msk.f32.gmra.mxu3 %vm1131_vm2, %v3821_v63 }
 0x2b4   : > { %2169 = vst.msk [vmem:[#allocation2 + $0x258] sm:$0xff] %vm2143_vm6, %v1978_v27 }
 0x2b5   : > { %2168 = vst.msk [vmem:[#allocation2 + $0x240] sm:$0xff] %vm2143_vm6, %v1976_v37  ;;  %v7979_v9 = vsel %vm1758_vm4, %v1874_v10, %v1876_v44  ;;  %v4445_v18 = vpop.f32.mrf.mxu2  ;;  %v4215_v44 = vpop.f32.mrf.mxu1 }
 0x2b6   : > { %9645 = vst [vmem:[#allocation79_spill] sm:$0xff] %v7976_v57  ;;  %v4446_v59 = vadd.f32 %v4445_v18, %v4213_v32  ;;  %v919_v27 = vpop.f32.mrf.mxu0  ;;  %2715 = vrot.lane.b32.xlu2 %v7121_v31, %s5772_s17  ;;  %3302 = vrot.lane.b32.xlu1 %v7609_v55, %s5774_s20  ;;  %v1392_v32 = vrot.slane %v7510_v1, 1  ;;  %v1393_v31 = vrot.slane %v7540_v38, 1 }
 0x2b7   : > { %9646 = vst [vmem:[#allocation80_spill] sm:$0xff] %v7979_v9  ;;  %v920_v35 = vadd.f32 %v7810_v62, %v919_v27  ;;  %1541 = vrot.lane.b32.xlu0 %v7887_v6, %s5772_s17 }
 0x2b8   : > { %3665 = vst.msk [vmem:[#allocation2 + $0x430] sm:$0xff] %vm1131_vm2, %v7979_v9  ;;  %v4679_v10 = vadd.f32 %v7627_v16, %v4446_v59  ;;  %v2272_v37 = vpop.permute.xlu2 %2271  ;;  %v3293_v18 = vpop.permute.xlu1 %3292  ;;  %v8001_v16 = vsel %vm1300_vm3, %v1392_v32, %v1393_v31  ;;  %v4216_v59 = vadd.f32 %v7889_v24, %v4215_v44  ;;  %v5087_v9 = vld [vmem:[#allocation3 + $0x31] ss:$2 sm:$0xff] }
 0x2b9   : > { %v7992_v63 = vmax.f32 %v920_v35, 0.0  ;;  %2462 = vst.msk [vmem:[#allocation2 + $0x270] sm:$0xff] %vm2435_vm7, %v2272_v37  ;;  %v2999_v55 = vpop.permute.xlu0 %2998  ;;  %v3824_v27 = vld [vmem:[#allocation2 + $0x418] sm:$0xff] }
 0x2ba   : > { %v4874_v45 = vmax.f32 %v4679_v10, 0.0  ;;  %3489 = vst.msk [vmem:[#allocation2 + $0x1d0] sm:$0xff] %vm2435_vm7, %v3293_v18  ;;  %v8007_v10 = vpop.f32.mrf.mxu3 }
 0x2bb   : > { %1183 = vst.msk [vmem:[#allocation2 + $0x4c8] sm:$0xff] %vm1131_vm2, %v7992_v63  ;;  %5569 = vmatmul.msk.f32.gmra.mxu3 %vm1131_vm2, %v3824_v27 }
 0x2bc   : > { %4947 = vst.msk [vmem:[#allocation3 + $0x50] sm:$0xff] %vm4936_vm8, %v4874_v45 }
 0x2bd   : > { %3194 = vst.msk [vmem:[#allocation2 + $0x1e8] sm:$0xff] %vm2143_vm6, %v2999_v55  ;;  %v4448_v35 = vpop.f32.mrf.mxu2  ;;  %v1878_v55 = vrot.slane %v7992_v63, 2 }
 0x2be   : > { %9647 = vst [vmem:[#allocation81_spill] sm:$0xff] %v8007_v10  ;;  %v4449_v37 = vadd.f32 %v4448_v35, %v4216_v59  ;;  %v922_v18 = vpop.f32.mrf.mxu0  ;;  %2717 = vrot.lane.b32.xlu2 %v7144_v46, %s5772_s17  ;;  %3304 = vrot.lane.b32.xlu1 %v7641_v51, %s5774_s20  ;;  %v1395_v51 = vrot.slane %v7571_v33, 1 }
 0x2bf   : > { %2624 = vst.msk [vmem:[#allocation2 + $0x368] sm:$0xff] %vm1131_vm2, %v8001_v16  ;;  %v923_v45 = vadd.f32 %v7810_v62, %v922_v18  ;;  %1999 = vrot.lane.b32.xlu0 %v7435_v17, %s5773_s19 }
 0x2c0   : > { %v4682_v44 = vadd.f32 %v7657_v54, %v4449_v37  ;;  %v1528_v32 = vpop.permute.xlu2 %1527  ;;  %v3295_v46 = vpop.permute.xlu1 %3294  ;;  %v3827_v54 = vld [vmem:[#allocation2 + $0x430] sm:$0xff]  ;;  %v8030_v37 = vsel %vm1300_vm3, %v1393_v31, %v1395_v51  ;;  %v9649_v31 = vmax.f32 %v7594_v56, 0.0 }
 0x2c1   : > { %v8020_v27 = vmax.f32 %v923_v45, 0.0  ;;  %1715 = vst.msk [vmem:[#allocation2 + $0x2b8] sm:$0xff] %vm1685_vm5, %v1528_v32  ;;  %v3751_v59 = vld [vmem:[#allocation2 + $0x1d0] sm:$0xff]  ;;  %v2268_v18 = vpop.permute.xlu0 %2267 }
 0x2c2   : > { %v4875_v35 = vmax.f32 %v4682_v44, 0.0  ;;  %3490 = vst.msk [vmem:[#allocation2 + $0x1e8] sm:$0xff] %vm2435_vm7, %v3295_v46  ;;  %4471 = vmatmul.f32.gmra.mxu2 %v3751_v59  ;;  %v1397_v32 = vrot.slane %v9649_v31, 1  ;;  %v5017_v46 = vld [vmem:[#allocation3 + $0x40] ss:$2 sm:$0xff] }
 0x2c3   : > { %v1879_v10 = vrot.slane %v8020_v27, 2  ;;  %1184 = vst.msk [vmem:[#allocation2 + $0x4e0] sm:$0xff] %vm1131_vm2, %v8020_v27  ;;  %5570 = vmatmul.msk.f32.gmra.mxu3 %vm1131_vm2, %v3827_v54  ;;  %v4218_v54 = vpop.f32.mrf.mxu1 }
 0x2c4   : > { %4948 = vst.msk [vmem:[#allocation3 + $0x58] sm:$0xff] %vm4936_vm8, %v4875_v35  ;;  %v8050_v35 = vpop.f32.mrf.mxu3  ;;  %v8060_v57 = vsel %vm1300_vm3, %v1395_v51, %v1397_v32 }
 0x2c5   : > { %v8033_v45 = vsel %vm1758_vm4, %v1878_v55, %v1879_v10  ;;  %2460 = vst.msk [vmem:[#allocation2 + $0x240] sm:$0xff] %vm2435_vm7, %v2268_v18  ;;  %v5089_v55 = vld [vmem:[#allocation3 + $0x41] ss:$2 sm:$0xff] }
 0x2c6   : > { %9648 = vst [vmem:[#allocation82_spill] sm:$0xff] %v8033_v45  ;;  %v925_v44 = vpop.f32.mrf.mxu0  ;;  %1545 = vrot.lane.b32.xlu2 %v7949_v58, %s5772_s17  ;;  %1543 = vrot.lane.b32.xlu1 %v7919_v50, %s5772_s17 }
 0x2c7   : > { %3666 = vst.msk [vmem:[#allocation2 + $0x448] sm:$0xff] %vm1131_vm2, %v8033_v45  ;;  %v926_v59 = vadd.f32 %v7810_v62, %v925_v44  ;;  %3008 = vrot.lane.b32.xlu0 %v7209_v42, %s5773_s19  ;;  %v5156_v45 = vmax.f32 %v5017_v46, %v5089_v55 }
 0x2c8   : > { %2625 = vst.msk [vmem:[#allocation2 + $0x380] sm:$0xff] %vm1131_vm2, %v8030_v37  ;;  %v1986_v18 = vpop.permute.xlu2 %1985  ;;  %v2270_v56 = vpop.permute.xlu1 %2269 }
 0x2c9   : > { %9650 = vst [vmem:[#allocation83_spill] sm:$0xff] %v8050_v35  ;;  %v8052_v33 = vmax.f32 %v926_v59, 0.0  ;;  %v3754_v31 = vld [vmem:[#allocation2 + $0x1e8] sm:$0xff]  ;;  %v1524_v44 = vpop.permute.xlu0 %1523  ;;  %v5015_v59 = vld [vmem:[#allocation3 + $0x30] ss:$2 sm:$0xff] }
 0x2ca   : > { %2173 = vst.msk [vmem:[#allocation2 + $0x2b8] sm:$0xff] %vm2143_vm6, %v1986_v18  ;;  %4474 = vmatmul.f32.gmra.mxu2 %v3754_v31  ;;  %v4219_v18 = vadd.f32 %v7889_v24, %v4218_v54 }
 0x2cb   : > { %9651 = vst [vmem:[#allocation84_spill] sm:$0xff] %v8052_v33  ;;  %v5019_v38 = vld [vmem:[#allocation3 + $0x50] ss:$2 sm:$0xff]  ;;  %v5091_v42 = vld [vmem:[#allocation3 + $0x51] ss:$2 sm:$0xff]  ;;  %v1881_v35 = vrot.slane %v8052_v33, 2 }
 0x2cc   : > { %2461 = vst.msk [vmem:[#allocation2 + $0x258] sm:$0xff] %vm2435_vm7, %v2270_v56  ;;  %v5157_v17 = vmax.f32 %v5019_v38, %v5091_v42  ;;  %v3765_v46 = vld [vmem:[#allocation2 + $0x240] sm:$0xff]  ;;  %v9654_v42 = vld [vmem:[#allocation63_spill] sm:$0xff] }
 0x2cd   : > { %1185 = vst.msk [vmem:[#allocation2 + $0x4f8] sm:$0xff] %vm1131_vm2, %v8052_v33  ;;  %4253 = vmatmul.f32.gmra.mxu1 %v3765_v46  ;;  %v4451_v55 = vpop.f32.mrf.mxu2  ;;  %v8065_v56 = vsel %vm1758_vm4, %v1879_v10, %v1881_v35  ;;  %v5216_v33 = vrot.slane %v5156_v45, 4  ;;  %v9653_v38 = vld [vmem:[#allocation53_spill] sm:$0xff]  ;;  %v5155_v10 = vmax.f32 %v5015_v59, %v5087_v9 }
 0x2ce   : > { %1713 = vst.msk [vmem:[#allocation2 + $0x288] sm:$0xff] %vm1685_vm5, %v1524_v44  ;;  %v3830_v31 = vld [vmem:[#allocation2 + $0x448] sm:$0xff]  ;;  %v5217_v51 = vrot.slane %v5157_v17, 4  ;;  %v4452_v32 = vadd.f32 %v4451_v55, %v4219_v18  ;;  %v928_v15 = vpop.f32.mrf.mxu0  ;;  %2003 = vrot.lane.b32.xlu2 %v7494_v20, %s5773_s19  ;;  %2001 = vrot.lane.b32.xlu1 %v9653_v38, %s5773_s19 }
 0x2cf   : > { %9652 = vst [vmem:[#allocation85_spill] sm:$0xff] %v8065_v56  ;;  %v8076_v54 = vadd.f32 %v7810_v62, %v928_v15  ;;  %3010 = vrot.lane.b32.xlu0 %v7234_v11, %s5773_s19  ;;  %5571 = vmatmul.msk.f32.gmra.mxu3 %vm1131_vm2, %v3830_v31  ;;  %v8085_v15 = vpop.f32.mrf.mxu3 }
 0x2d0   : > { %2626 = vst.msk [vmem:[#allocation2 + $0x398] sm:$0xff] %vm1131_vm2, %v8060_v57  ;;  %v5218_v17 = vsel %vm5212_vm9, %v5216_v33, %v5217_v51  ;;  %v5276_v44 = vmax.f32 %v5156_v45, %v5217_v51  ;;  %v4685_v18 = vadd.f32 %v9654_v42, %v4452_v32  ;;  %v2710_v46 = vpop.permute.xlu2 %2709  ;;  %v1526_v9 = vpop.permute.xlu1 %1525 }
 0x2d1   : > { %3667 = vst.msk [vmem:[#allocation2 + $0x460] sm:$0xff] %vm1131_vm2, %v8065_v56  ;;  %v5275_v55 = vmax.f32 %v5155_v10, %v5218_v17  ;;  %v9539_v20 = vmax.f32 %v8076_v54, 0.0  ;;  %v1982_v11 = vpop.permute.xlu0 %1981  ;;  %v9656_v17 = vld [vmem:[#allocation60_spill] sm:$0xff] }
 0x2d2   : > { %2904 = vst.msk [vmem:[#allocation2 + $0x200] sm:$0xff] %vm1685_vm5, %v2710_v46  ;;  %v4876_v59 = vmax.f32 %v4685_v18, 0.0 }
 0x2d3   : > { %9655 = vst [vmem:[#allocation53_spill] sm:$0xff] %v8085_v15  ;;  %v3768_v56 = vld [vmem:[#allocation2 + $0x258] sm:$0xff]  ;;  %v1883_v33 = vrot.slane %v9539_v20, 2 }
 0x2d4   : > { %5301 = vst.msk [vmem:[%s7717_s14 + $0x18] sm:$0xf] %vm5298_vm10, %v5276_v44  ;;  %v9657_v44 = vld [vmem:[#allocation61_spill] sm:$0xff] }
 0x2d5   : > { %5300 = vst.msk [vmem:[%s7717_s14 + $0x10] sm:$0xff] %vm4936_vm8, %v5275_v55  ;;  %v8095_v45 = vsel %vm1758_vm4, %v1881_v35, %v1883_v33  ;;  %4256 = vmatmul.f32.gmra.mxu1 %v3768_v56  ;;  %v1400_v42 = vrot.slane %v9657_v44, 1  ;;  %v3771_v55 = vld [vmem:[#allocation2 + $0x270] sm:$0xff]  ;;  %v9659_v33 = vld [vmem:[#allocation56_spill] sm:$0xff] }
 0x2d6   : > { %4949 = vst.msk [vmem:[#allocation3 + $0x60] sm:$0xff] %vm4936_vm8, %v4876_v59  ;;  %v931_v51 = vpop.f32.mrf.mxu0  ;;  %2719 = vrot.lane.b32.xlu2 %v7166_v60, %s5772_s17  ;;  %3306 = vrot.lane.b32.xlu1 %v7671_v49, %s5774_s20  ;;  %v1399_v60 = vrot.slane %v9656_v17, 1 }
 0x2d7   : > { %1714 = vst.msk [vmem:[#allocation2 + $0x2a0] sm:$0xff] %vm1685_vm5, %v1526_v9  ;;  %v932_v32 = vadd.f32 %v7810_v62, %v931_v51  ;;  %1547 = vrot.lane.b32.xlu0 %v8001_v16, %s5772_s17  ;;  %v8120_v46 = vpop.f32.mrf.mxu3  ;;  %v4221_v51 = vpop.f32.mrf.mxu1 }
 0x2d8   : > { %v3833_v31 = vld [vmem:[#allocation2 + $0x460] sm:$0xff]  ;;  %3668 = vst.msk [vmem:[#allocation2 + $0x478] sm:$0xff] %vm1131_vm2, %v8095_v45  ;;  %v2278_v35 = vpop.permute.xlu2 %2277  ;;  %v1984_v10 = vpop.permute.xlu1 %1983  ;;  %v8118_v18 = vsel %vm1300_vm3, %v1399_v60, %v1400_v42 }
 0x2d9   : > { %2171 = vst.msk [vmem:[#allocation2 + $0x288] sm:$0xff] %vm2143_vm6, %v1982_v11  ;;  %5572 = vmatmul.msk.f32.gmra.mxu3 %vm1131_vm2, %v3833_v31  ;;  %v8109_v56 = vmax.f32 %v932_v32, 0.0  ;;  %v3001_v49 = vpop.permute.xlu0 %3000 }
 0x2da   : > { %2465 = vst.msk [vmem:[#allocation2 + $0x2b8] sm:$0xff] %vm2435_vm7, %v2278_v35 }
 0x2db   : > { %2172 = vst.msk [vmem:[#allocation2 + $0x2a0] sm:$0xff] %vm2143_vm6, %v1984_v10  ;;  %v1885_v32 = vrot.slane %v8109_v56, 2 }
 0x2dc   : > { %1186 = vst.msk [vmem:[#allocation2 + $0x510] sm:$0xff] %vm1131_vm2, %v8109_v56 }
 0x2dd   : > { %9658 = vst [vmem:[#allocation63_spill] sm:$0xff] %v8120_v46  ;;  %4259 = vmatmul.f32.gmra.mxu1 %v3771_v55 }
 0x2de   : > { %3195 = vst.msk [vmem:[#allocation2 + $0x200] sm:$0xff] %vm2143_vm6, %v3001_v49  ;;  %v934_v59 = vpop.f32.mrf.mxu0  ;;  %2721 = vrot.lane.b32.xlu2 %v7219_v30, %s5772_s17  ;;  %3308 = vrot.lane.b32.xlu1 %v7757_v0, %s5774_s20  ;;  %v9660_v30 = vld [vmem:[#allocation64_spill] sm:$0xff] }
 0x2df   : > { %v3836_v9 = vld [vmem:[#allocation2 + $0x478] sm:$0xff]  ;;  %2627 = vst.msk [vmem:[#allocation2 + $0x3b0] sm:$0xff] %vm1131_vm2, %v8118_v18  ;;  %v935_v11 = vadd.f32 %v7810_v62, %v934_v59  ;;  %2005 = vrot.lane.b32.xlu0 %v9659_v33, %s5773_s19  ;;  %v1402_v60 = vrot.slane %v9660_v30, 1  ;;  %v4224_v46 = vpop.f32.mrf.mxu1 }
 0x2e0   : > { %v1534_v31 = vpop.permute.xlu2 %1533  ;;  %v3297_v10 = vpop.permute.xlu1 %3296 }
 0x2e1   : > { %5573 = vmatmul.msk.f32.gmra.mxu3 %vm1131_vm2, %v3836_v9  ;;  %v8134_v35 = vmax.f32 %v935_v11, 0.0  ;;  %1718 = vst.msk [vmem:[#allocation2 + $0x300] sm:$0xff] %vm1685_vm5, %v1534_v31  ;;  %v2274_v0 = vpop.permute.xlu0 %2273  ;;  %v8143_v55 = vsel %vm1300_vm3, %v1400_v42, %v1402_v60  ;;  %v4222_v9 = vadd.f32 %v7889_v24, %v4221_v51  ;;  %v8152_v31 = vpop.f32.mrf.mxu3  ;;  %v9662_v51 = vmax.f32 %v7720_v21, 0.0 }
 0x2e2   : > { %3491 = vst.msk [vmem:[#allocation2 + $0x200] sm:$0xff] %vm2435_vm7, %v3297_v10 }
 0x2e3   : > { %v1886_v49 = vrot.slane %v8134_v35, 2  ;;  %1187 = vst.msk [vmem:[#allocation2 + $0x528] sm:$0xff] %vm1131_vm2, %v8134_v35 }
 0x2e4   : > { %2463 = vst.msk [vmem:[#allocation2 + $0x288] sm:$0xff] %vm2435_vm7, %v2274_v0 }
 0x2e5   : > { %v8148_v59 = vsel %vm1758_vm4, %v1885_v32, %v1886_v49  ;;  %v4454_v11 = vpop.f32.mrf.mxu2  ;;  %2628 = vst.msk [vmem:[#allocation2 + $0x3c8] sm:$0xff] %vm1131_vm2, %v8143_v55  ;;  %v1404_v32 = vrot.slane %v9662_v51, 1 }
 0x2e6   : > { %9661 = vst [vmem:[#allocation60_spill] sm:$0xff] %v8152_v31  ;;  %v4455_v10 = vadd.f32 %v4454_v11, %v4222_v9  ;;  %v937_v20 = vpop.f32.mrf.mxu0  ;;  %1551 = vrot.lane.b32.xlu2 %v8060_v57, %s5772_s17  ;;  %1549 = vrot.lane.b32.xlu1 %v8030_v37, %s5772_s17 }
 0x2e7   : > { %3669 = vst.msk [vmem:[#allocation2 + $0x490] sm:$0xff] %vm1131_vm2, %v8148_v59  ;;  %v938_v42 = vadd.f32 %v7810_v62, %v937_v20  ;;  %3012 = vrot.lane.b32.xlu0 %v7287_v29, %s5773_s19 }
 0x2e8   : > { %v4688_v0 = vadd.f32 %v7729_v7, %v4455_v10  ;;  %v1992_v31 = vpop.permute.xlu2 %1991  ;;  %v2276_v11 = vpop.permute.xlu1 %2275  ;;  %v4225_v7 = vadd.f32 %v7889_v24, %v4224_v46  ;;  %v9665_v46 = vld [vmem:[#allocation59_spill] sm:$0xff] }
 0x2e9   : > { %v8166_v9 = vmax.f32 %v938_v42, 0.0  ;;  %2176 = vst.msk [vmem:[#allocation2 + $0x300] sm:$0xff] %vm2143_vm6, %v1992_v31  ;;  %v3757_v30 = vld [vmem:[#allocation2 + $0x200] sm:$0xff]  ;;  %v1530_v20 = vpop.permute.xlu0 %1529  ;;  %v8176_v31 = vsel %vm1300_vm3, %v1402_v60, %v1404_v32 }
 0x2ea   : > { %v4877_v15 = vmax.f32 %v4688_v0, 0.0  ;;  %2464 = vst.msk [vmem:[#allocation2 + $0x2a0] sm:$0xff] %vm2435_vm7, %v2276_v11  ;;  %4477 = vmatmul.f32.gmra.mxu2 %v3757_v30 }
 0x2eb   : > { %9663 = vst [vmem:[#allocation61_spill] sm:$0xff] %v8166_v9  ;;  %v3774_v29 = vld [vmem:[#allocation2 + $0x288] sm:$0xff]  ;;  %v1888_v21 = vrot.slane %v8166_v9, 2 }
 0x2ec   : > { %1188 = vst.msk [vmem:[#allocation2 + $0x540] sm:$0xff] %vm1131_vm2, %v8166_v9  ;;  %4262 = vmatmul.f32.gmra.mxu1 %v3774_v29 }
 0x2ed   : > { %4950 = vst.msk [vmem:[#allocation3 + $0x68] sm:$0xff] %vm4936_vm8, %v4877_v15  ;;  %v4457_v10 = vpop.f32.mrf.mxu2  ;;  %v8180_v42 = vsel %vm1758_vm4, %v1886_v49, %v1888_v21  ;;  %v9666_v15 = vld [vmem:[#allocation58_spill] sm:$0xff]  ;;  %v8196_v49 = vpop.f32.mrf.mxu3 }
 0x2ee   : > { %9664 = vst [vmem:[#allocation56_spill] sm:$0xff] %v8176_v31  ;;  %v3839_v30 = vld [vmem:[#allocation2 + $0x490] sm:$0xff]  ;;  %v4458_v51 = vadd.f32 %v4457_v10, %v4225_v7  ;;  %v940_v0 = vpop.f32.mrf.mxu0  ;;  %2009 = vrot.lane.b32.xlu2 %v9665_v46, %s5773_s19  ;;  %2007 = vrot.lane.b32.xlu1 %v9666_v15, %s5773_s19 }
 0x2ef   : > { %1716 = vst.msk [vmem:[#allocation2 + $0x2d0] sm:$0xff] %vm1685_vm5, %v1530_v20  ;;  %v8189_v60 = vadd.f32 %v7810_v62, %v940_v0  ;;  %3014 = vrot.lane.b32.xlu0 %v7305_v8, %s5773_s19  ;;  %5574 = vmatmul.msk.f32.gmra.mxu3 %vm1131_vm2, %v3839_v30 }
 0x2f0   : > { %3670 = vst.msk [vmem:[#allocation2 + $0x4a8] sm:$0xff] %vm1131_vm2, %v8180_v42  ;;  %v4691_v32 = vadd.f32 %v7765_v61, %v4458_v51  ;;  %v2712_v11 = vpop.permute.xlu2 %2711  ;;  %v1532_v29 = vpop.permute.xlu1 %1531 }
 0x2f1   : > { %2629 = vst.msk [vmem:[#allocation2 + $0x3e0] sm:$0xff] %vm1131_vm2, %v8176_v31  ;;  %v9540_v20 = vmax.f32 %v8189_v60, 0.0  ;;  %v3777_v7 = vld [vmem:[#allocation2 + $0x2a0] sm:$0xff]  ;;  %v1988_v8 = vpop.permute.xlu0 %1987 }
 0x2f2   : > { %9667 = vst [vmem:[#allocation59_spill] sm:$0xff] %v8196_v49  ;;  %v4878_v10 = vmax.f32 %v4691_v32, 0.0 }
 0x2f3   : > { %2905 = vst.msk [vmem:[#allocation2 + $0x218] sm:$0xff] %vm1685_vm5, %v2712_v11  ;;  %v1890_v30 = vrot.slane %v9540_v20, 2 }
 0x2f4   : > { %1717 = vst.msk [vmem:[#allocation2 + $0x2e8] sm:$0xff] %vm1685_vm5, %v1532_v29  ;;  %4265 = vmatmul.f32.gmra.mxu1 %v3777_v7  ;;  %v1406_v7 = vrot.slane %v7761_v23, 1 }
 0x2f5   : > { %4951 = vst.msk [vmem:[#allocation3 + $0x70] sm:$0xff] %vm4936_vm8, %v4878_v10  ;;  %v8206_v0 = vsel %vm1758_vm4, %v1888_v21, %v1890_v30  ;;  %v8224_v10 = vpop.f32.mrf.mxu3 }
 0x2f6   : > { %2174 = vst.msk [vmem:[#allocation2 + $0x2d0] sm:$0xff] %vm2143_vm6, %v1988_v8  ;;  %v943_v51 = vpop.f32.mrf.mxu0  ;;  %2723 = vrot.lane.b32.xlu2 %v7247_v19, %s5772_s17  ;;  %3310 = vrot.lane.b32.xlu1 %v7782_v39, %s5774_s20  ;;  %v1407_v19 = vrot.slane %v7787_v43, 1  ;;  %v3780_v8 = vld [vmem:[#allocation2 + $0x2b8] sm:$0xff] }
 0x2f7   : > { %v3842_v61 = vld [vmem:[#allocation2 + $0x4a8] sm:$0xff]  ;;  %3671 = vst.msk [vmem:[#allocation2 + $0x4c0] sm:$0xff] %vm1131_vm2, %v8206_v0  ;;  %v944_v32 = vadd.f32 %v7810_v62, %v943_v51  ;;  %1553 = vrot.lane.b32.xlu0 %v8118_v18, %s5772_s17 }
 0x2f8   : > { %5575 = vmatmul.msk.f32.gmra.mxu3 %vm1131_vm2, %v3842_v61  ;;  %v2714_v21 = vpop.permute.xlu2 %2713  ;;  %v1990_v29 = vpop.permute.xlu1 %1989  ;;  %9668 = vst [vmem:[#allocation58_spill] sm:$0xff] %v8224_v10  ;;  %v8230_v30 = vsel %vm1300_vm3, %v1406_v7, %v1407_v19  ;;  %v9669_v7 = vld [vmem:[#allocation62_spill] sm:$0xff] }
 0x2f9   : > { %v8219_v11 = vmax.f32 %v944_v32, 0.0  ;;  %2906 = vst.msk [vmem:[#allocation2 + $0x230] sm:$0xff] %vm1685_vm5, %v2714_v21  ;;  %v3003_v39 = vpop.permute.xlu0 %3002  ;;  %v4227_v61 = vpop.f32.mrf.mxu1 }
 0x2fa   : > { %2175 = vst.msk [vmem:[#allocation2 + $0x2e8] sm:$0xff] %vm2143_vm6, %v1990_v29  ;;  %v4228_v21 = vadd.f32 %v7889_v24, %v4227_v61 }
 0x2fb   : > { %1189 = vst.msk [vmem:[#allocation2 + $0x558] sm:$0xff] %vm1131_vm2, %v8219_v11  ;;  %v1892_v20 = vrot.slane %v8219_v11, 2 }
 0x2fc   : > { %3196 = vst.msk [vmem:[#allocation2 + $0x218] sm:$0xff] %vm2143_vm6, %v3003_v39  ;;  %4268 = vmatmul.f32.gmra.mxu1 %v3780_v8 }
 0x2fd   : > { %2630 = vst.msk [vmem:[#allocation2 + $0x3f8] sm:$0xff] %vm1131_vm2, %v8230_v30 }
 0x2fe   : > { %v3845_v51 = vld [vmem:[#allocation2 + $0x4c0] sm:$0xff]  ;;  %v946_v32 = vpop.f32.mrf.mxu0  ;;  %2725 = vrot.lane.b32.xlu2 %v7274_v12, %s5772_s17  ;;  %3312 = vrot.lane.b32.xlu1 %v7831_v36, %s5774_s20  ;;  %v1409_v36 = vrot.slane %v7818_v52, 1 }
 0x2ff   : > { %v947_v29 = vadd.f32 %v7810_v62, %v946_v32  ;;  %2011 = vrot.lane.b32.xlu0 %v9669_v7, %s5773_s19 }
 0x300   : > { %5576 = vmatmul.msk.f32.gmra.mxu3 %vm1131_vm2, %v3845_v51  ;;  %v1540_v8 = vpop.permute.xlu2 %1539  ;;  %v3299_v12 = vpop.permute.xlu1 %3298  ;;  %v8255_v51 = vsel %vm1300_vm3, %v1407_v19, %v1409_v36  ;;  %v9671_v19 = vmax.f32 %v7846_v40, 0.0 }
 0x301   : > { %v8245_v49 = vmax.f32 %v947_v29, 0.0  ;;  %1721 = vst.msk [vmem:[#allocation2 + $0x348] sm:$0xff] %vm1685_vm5, %v1540_v8  ;;  %v2280_v61 = vpop.permute.xlu0 %2279 }
 0x302   : > { %v4460_v39 = vpop.f32.mrf.mxu2  ;;  %3492 = vst.msk [vmem:[#allocation2 + $0x218] sm:$0xff] %vm2435_vm7, %v3299_v12 }
 0x303   : > { %v4461_v10 = vadd.f32 %v4460_v39, %v4228_v21  ;;  %v1893_v23 = vrot.slane %v8245_v49, 2  ;;  %1190 = vst.msk [vmem:[#allocation2 + $0x570] sm:$0xff] %vm1131_vm2, %v8245_v49  ;;  %v8257_v21 = vpop.f32.mrf.mxu3 }
 0x304   : > { %9670 = vst [vmem:[#allocation86_spill] sm:$0xff] %v8257_v21 }
 0x305   : > { %v4694_v32 = vadd.f32 %v7791_v4, %v4461_v10  ;;  %2466 = vst.msk [vmem:[#allocation2 + $0x2d0] sm:$0xff] %vm2435_vm7, %v2280_v61  ;;  %v8261_v39 = vsel %vm1758_vm4, %v1892_v20, %v1893_v23  ;;  %v1411_v10 = vrot.slane %v9671_v19, 1 }
 0x306   : > { %2631 = vst.msk [vmem:[#allocation2 + $0x410] sm:$0xff] %vm1131_vm2, %v8255_v51  ;;  %v949_v4 = vpop.f32.mrf.mxu0  ;;  %1557 = vrot.lane.b32.xlu2 %v8176_v31, %s5772_s17  ;;  %1555 = vrot.lane.b32.xlu1 %v8143_v55, %s5772_s17 }
 0x307   : > { %v4879_v29 = vmax.f32 %v4694_v32, 0.0  ;;  %3672 = vst.msk [vmem:[#allocation2 + $0x4d8] sm:$0xff] %vm1131_vm2, %v8261_v39  ;;  %v950_v20 = vadd.f32 %v7810_v62, %v949_v4  ;;  %3016 = vrot.lane.b32.xlu0 %v7337_v28, %s5773_s19  ;;  %v8285_v4 = vsel %vm1300_vm3, %v1409_v36, %v1411_v10  ;;  %v9675_v36 = vld [vmem:[#allocation65_spill] sm:$0xff]  ;;  %v4230_v10 = vpop.f32.mrf.mxu1 }
 0x308   : > { %v1998_v8 = vpop.permute.xlu2 %1997  ;;  %v2282_v61 = vpop.permute.xlu1 %2281  ;;  %2632 = vst.msk [vmem:[#allocation2 + $0x428] sm:$0xff] %vm1131_vm2, %v8285_v4 }
 0x309   : > { %4952 = vst.msk [vmem:[#allocation3 + $0x78] sm:$0xff] %vm4936_vm8, %v4879_v29  ;;  %v8277_v12 = vmax.f32 %v950_v20, 0.0  ;;  %v3760_v32 = vld [vmem:[#allocation2 + $0x218] sm:$0xff]  ;;  %v1536_v21 = vpop.permute.xlu0 %1535 }
 0x30a   : > { %2179 = vst.msk [vmem:[#allocation2 + $0x348] sm:$0xff] %vm2143_vm6, %v1998_v8  ;;  %4480 = vmatmul.f32.gmra.mxu2 %v3760_v32  ;;  %v9674_v32 = vld [vmem:[#allocation66_spill] sm:$0xff] }
 0x30b   : > { %2467 = vst.msk [vmem:[#allocation2 + $0x2e8] sm:$0xff] %vm2435_vm7, %v2282_v61  ;;  %v1895_v29 = vrot.slane %v8277_v12, 2  ;;  %v8293_v8 = vpop.f32.mrf.mxu3 }
 0x30c   : > { %1191 = vst.msk [vmem:[#allocation2 + $0x588] sm:$0xff] %vm1131_vm2, %v8277_v12  ;;  %v3783_v40 = vld [vmem:[#allocation2 + $0x2d0] sm:$0xff] }
 0x30d   : > { %1719 = vst.msk [vmem:[#allocation2 + $0x318] sm:$0xff] %vm1685_vm5, %v1536_v21  ;;  %4271 = vmatmul.f32.gmra.mxu1 %v3783_v40  ;;  %v8289_v19 = vsel %vm1758_vm4, %v1893_v23, %v1895_v29 }
 0x30e   : > { %9672 = vst [vmem:[#allocation87_spill] sm:$0xff] %v8289_v19  ;;  %v3848_v20 = vld [vmem:[#allocation2 + $0x4d8] sm:$0xff]  ;;  %v952_v61 = vpop.f32.mrf.mxu0  ;;  %2015 = vrot.lane.b32.xlu2 %v9674_v32, %s5773_s19  ;;  %2013 = vrot.lane.b32.xlu1 %v9675_v36, %s5773_s19 }
 0x30f   : > { %9673 = vst [vmem:[#allocation88_spill] sm:$0xff] %v8293_v8  ;;  %v8302_v21 = vadd.f32 %v7810_v62, %v952_v61  ;;  %3018 = vrot.lane.b32.xlu0 %v7397_v5, %s5773_s19  ;;  %5577 = vmatmul.msk.f32.gmra.mxu3 %vm1131_vm2, %v3848_v20  ;;  %v4231_v61 = vadd.f32 %v7889_v24, %v4230_v10  ;;  %v1413_v10 = vrot.slane %v7877_v14, 1 }
 0x310   : > { %3673 = vst.msk [vmem:[#allocation2 + $0x4f0] sm:$0xff] %vm1131_vm2, %v8289_v19  ;;  %v2716_v23 = vpop.permute.xlu2 %2715  ;;  %v3301_v8 = vpop.permute.xlu1 %3300 }
 0x311   : > { %v9548_v40 = vmax.f32 %v8302_v21, 0.0  ;;  %2907 = vst.msk [vmem:[#allocation2 + $0x248] sm:$0xff] %vm1685_vm5, %v2716_v23  ;;  %v1994_v32 = vpop.permute.xlu0 %1993 }
 0x312   : > { %v3786_v52 = vld [vmem:[#allocation2 + $0x2e8] sm:$0xff]  ;;  %2177 = vst.msk [vmem:[#allocation2 + $0x318] sm:$0xff] %vm2143_vm6, %v1994_v32 }
 0x313   : > { %v1897_v36 = vrot.slane %v9548_v40, 2 }
 0x315   : > { %4274 = vmatmul.f32.gmra.mxu1 %v3786_v52  ;;  %v8314_v43 = vsel %vm1758_vm4, %v1895_v29, %v1897_v36  ;;  %v4463_v20 = vpop.f32.mrf.mxu2  ;;  %v8326_v52 = vpop.f32.mrf.mxu3 }
 0x316   : > { %9676 = vst [vmem:[#allocation89_spill] sm:$0xff] %v8314_v43  ;;  %v4464_v23 = vadd.f32 %v4463_v20, %v4231_v61  ;;  %v955_v31 = vpop.f32.mrf.mxu0  ;;  %2727 = vrot.lane.b32.xlu2 %v7315_v25, %s5772_s17  ;;  %3314 = vrot.lane.b32.xlu1 %v7887_v6, %s5774_s20  ;;  %v1414_v61 = vrot.slane %v7908_v53, 1  ;;  %v4233_v25 = vpop.f32.mrf.mxu1 }
 0x317   : > { %v3851_v7 = vld [vmem:[#allocation2 + $0x4f0] sm:$0xff]  ;;  %3674 = vst.msk [vmem:[#allocation2 + $0x508] sm:$0xff] %vm1131_vm2, %v8314_v43  ;;  %v956_v32 = vadd.f32 %v7810_v62, %v955_v31  ;;  %1559 = vrot.lane.b32.xlu0 %v8230_v30, %s5772_s17 }
 0x318   : > { %5578 = vmatmul.msk.f32.gmra.mxu3 %vm1131_vm2, %v3851_v7  ;;  %9677 = vst [vmem:[#allocation90_spill] sm:$0xff] %v8326_v52  ;;  %v4697_v29 = vadd.f32 %v7827_v34, %v4464_v23  ;;  %v2718_v36 = vpop.permute.xlu2 %2717  ;;  %v1538_v6 = vpop.permute.xlu1 %1537  ;;  %v4234_v34 = vadd.f32 %v7889_v24, %v4233_v25  ;;  %v8340_v7 = vsel %vm1300_vm3, %v1413_v10, %v1414_v61 }
 0x319   : > { %v8331_v20 = vmax.f32 %v956_v32, 0.0  ;;  %2908 = vst.msk [vmem:[#allocation2 + $0x260] sm:$0xff] %vm1685_vm5, %v2718_v36  ;;  %v3005_v40 = vpop.permute.xlu0 %3004 }
 0x31a   : > { %v4880_v31 = vmax.f32 %v4697_v29, 0.0  ;;  %1720 = vst.msk [vmem:[#allocation2 + $0x330] sm:$0xff] %vm1685_vm5, %v1538_v6  ;;  %v9679_v6 = vld [vmem:[#allocation69_spill] sm:$0xff] }
 0x31b   : > { %9678 = vst [vmem:[#allocation91_spill] sm:$0xff] %v8331_v20  ;;  %v1899_v10 = vrot.slane %v8331_v20, 2 }
 0x31c   : > { %1192 = vst.msk [vmem:[#allocation2 + $0x5a0] sm:$0xff] %vm1131_vm2, %v8331_v20 }
 0x31d   : > { %4953 = vst.msk [vmem:[#allocation3 + $0x80] sm:$0xff] %vm4936_vm8, %v4880_v31 }
 0x31e   : > { %3197 = vst.msk [vmem:[#allocation2 + $0x230] sm:$0xff] %vm2143_vm6, %v3005_v40  ;;  %v4466_v23 = vpop.f32.mrf.mxu2  ;;  %v3854_v32 = vld [vmem:[#allocation2 + $0x508] sm:$0xff]  ;;  %v958_v36 = vpop.f32.mrf.mxu0  ;;  %2729 = vrot.lane.b32.xlu2 %v7350_v13, %s5772_s17  ;;  %3316 = vrot.lane.b32.xlu1 %v7919_v50, %s5774_s20 }
 0x31f   : > { %3493 = vst.msk [vmem:[#allocation2 + $0x230] sm:$0xff] %vm2435_vm7, %v3301_v8  ;;  %v4467_v29 = vadd.f32 %v4466_v23, %v4234_v34  ;;  %v959_v25 = vadd.f32 %v7810_v62, %v958_v36  ;;  %2017 = vrot.lane.b32.xlu0 %v9679_v6, %s5773_s19  ;;  %v1416_v62 = vrot.slane %v7939_v26, 1  ;;  %v8360_v50 = vpop.f32.mrf.mxu3  ;;  %v5093_v6 = vld [vmem:[#allocation3 + $0x61] ss:$2 sm:$0xff] }
 0x320   : > { %5579 = vmatmul.msk.f32.gmra.mxu3 %vm1131_vm2, %v3854_v32  ;;  %2633 = vst.msk [vmem:[#allocation2 + $0x440] sm:$0xff] %vm1131_vm2, %v8340_v7  ;;  %v1546_v40 = vpop.permute.xlu2 %1545  ;;  %v1996_v13 = vpop.permute.xlu1 %1995 }
 0x321   : > { %v4700_v8 = vadd.f32 %v7865_v3, %v4467_v29  ;;  %v8356_v31 = vmax.f32 %v959_v25, 0.0  ;;  %1724 = vst.msk [vmem:[#allocation2 + $0x390] sm:$0xff] %vm1685_vm5, %v1546_v40  ;;  %v3007_v23 = vpop.permute.xlu0 %3006  ;;  %v9682_v29 = vld [vmem:[#allocation11_spill] sm:$0xff]  ;;  %v8377_v40 = vsel %vm1300_vm3, %v1414_v61, %v1416_v62 }
 0x322   : > { %9681 = vst [vmem:[#allocation93_spill] sm:$0xff] %v8360_v50  ;;  %v9683_v36 = vrot.slane %v9682_v29, 2 }
 0x323   : > { %9680 = vst [vmem:[#allocation92_spill] sm:$0xff] %v8356_v31  ;;  %v4881_v34 = vmax.f32 %v4700_v8, 0.0  ;;  %v1900_v32 = vrot.slane %v8356_v31, 2  ;;  %v9686_v50 = vrot.slane %v8356_v31, 1 }
 0x324   : > { %2178 = vst.msk [vmem:[#allocation2 + $0x330] sm:$0xff] %vm2143_vm6, %v1996_v13  ;;  %v9684_v13 = vmax.f32 %v7965_v41, 0.0 }
 0x325   : > { %1193 = vst.msk [vmem:[#allocation2 + $0x5b8] sm:$0xff] %vm1131_vm2, %v8356_v31  ;;  %v8368_v3 = vsel %vm1758_vm4, %v1899_v10, %v1900_v32  ;;  %v8373_v25 = vsel %vm1758_vm4, %v1900_v32, %v9683_v36  ;;  %v5023_v32 = vld [vmem:[#allocation3 + $0x70] ss:$2 sm:$0xff]  ;;  %v5095_v36 = vld [vmem:[#allocation3 + $0x71] ss:$2 sm:$0xff]  ;;  %v9685_v10 = vrot.slane %v9682_v29, 1 }
 0x326   : > { %4954 = vst.msk [vmem:[#allocation3 + $0x88] sm:$0xff] %vm4936_vm8, %v4881_v34  ;;  %v3763_v8 = vld [vmem:[#allocation2 + $0x230] sm:$0xff]  ;;  %1563 = vrot.lane.b32.xlu2 %v8285_v4, %s5772_s17  ;;  %v1418_v34 = vrot.slane %v9684_v13, 1  ;;  %1561 = vrot.lane.b32.xlu1 %v8255_v51, %s5772_s17 }
 0x327   : > { %3198 = vst.msk [vmem:[#allocation2 + $0x248] sm:$0xff] %vm2143_vm6, %v3007_v23  ;;  %4483 = vmatmul.f32.gmra.mxu2 %v3763_v8  ;;  %3020 = vrot.lane.b32.xlu0 %v7422_v22, %s5773_s19  ;;  %v4236_v23 = vpop.f32.mrf.mxu1  ;;  %v5159_v8 = vmax.f32 %v5023_v32, %v5095_v36  ;;  %v8401_v52 = vsel %vm1300_vm3, %v9686_v50, %v9685_v10  ;;  %v8408_v36 = vpop.f32.mrf.mxu3 }
 0x328   : > { %3675 = vst.msk [vmem:[#allocation2 + $0x520] sm:$0xff] %vm1131_vm2, %v8368_v3  ;;  %v2004_v61 = vpop.permute.xlu2 %2003  ;;  %v3303_v41 = vpop.permute.xlu1 %3302  ;;  %v8405_v53 = vsel %vm1300_vm3, %v1416_v62, %v1418_v34  ;;  %v4237_v32 = vadd.f32 %v7889_v24, %v4236_v23  ;;  %v9689_v23 = vld [vmem:[#allocation73_spill] sm:$0xff] }
 0x329   : > { %3676 = vst.msk [vmem:[#allocation2 + $0x538] sm:$0xff] %vm1131_vm2, %v8373_v25  ;;  %v1542_v13 = vpop.permute.xlu0 %1541  ;;  %v5219_v10 = vrot.slane %v5159_v8, 4 }
 0x32a   : > { %2634 = vst.msk [vmem:[#allocation2 + $0x458] sm:$0xff] %vm1131_vm2, %v8377_v40 }
 0x32b   : > { %2182 = vst.msk [vmem:[#allocation2 + $0x390] sm:$0xff] %vm2143_vm6, %v2004_v61  ;;  %v5021_v61 = vld [vmem:[#allocation3 + $0x60] ss:$2 sm:$0xff] }
 0x32c   : > { %3494 = vst.msk [vmem:[#allocation2 + $0x248] sm:$0xff] %vm2435_vm7, %v3303_v41  ;;  %v5158_v24 = vmax.f32 %v5021_v61, %v5093_v6 }
 0x32d   : > { %v5025_v26 = vld [vmem:[#allocation3 + $0x80] ss:$2 sm:$0xff]  ;;  %v5097_v14 = vld [vmem:[#allocation3 + $0x81] ss:$2 sm:$0xff]  ;;  %1722 = vst.msk [vmem:[#allocation2 + $0x360] sm:$0xff] %vm1685_vm5, %v1542_v13  ;;  %v4469_v29 = vpop.f32.mrf.mxu2 }
 0x32e   : > { %9687 = vst [vmem:[#allocation94_spill] sm:$0xff] %v8408_v36  ;;  %v5160_v41 = vmax.f32 %v5025_v26, %v5097_v14  ;;  %v4470_v62 = vadd.f32 %v4469_v29, %v4237_v32  ;;  %2021 = vrot.lane.b32.xlu2 %v7861_v2, %s5773_s19  ;;  %v9688_v14 = vld [vmem:[#allocation71_spill] sm:$0xff] }
 0x32f   : > { %2635 = vst.msk [vmem:[#allocation2 + $0x470] sm:$0xff] %vm1131_vm2, %v8405_v53  ;;  %v3857_v50 = vld [vmem:[#allocation2 + $0x520] sm:$0xff]  ;;  %2019 = vrot.lane.b32.xlu1 %v9688_v14, %s5773_s19  ;;  %3022 = vrot.lane.b32.xlu0 %v7449_v47, %s5773_s19 }
 0x330   : > { %2646 = vst.msk [vmem:[#allocation2 + $0x578] sm:$0xff] %vm1131_vm2, %v8401_v52  ;;  %v5220_v13 = vrot.slane %v5160_v41, 4  ;;  %5580 = vmatmul.msk.f32.gmra.mxu3 %vm1131_vm2, %v3857_v50  ;;  %v4703_v36 = vadd.f32 %v9689_v23, %v4470_v62  ;;  %v2720_v41 = vpop.permute.xlu2 %2719  ;;  %v3305_v32 = vpop.permute.xlu1 %3304 }
 0x331   : > { %2909 = vst.msk [vmem:[#allocation2 + $0x278] sm:$0xff] %vm1685_vm5, %v2720_v41  ;;  %v2000_v61 = vpop.permute.xlu0 %1999 }
 0x332   : > { %v5221_v26 = vsel %vm5212_vm9, %v5219_v10, %v5220_v13  ;;  %v5278_v34 = vmax.f32 %v5159_v8, %v5220_v13  ;;  %v4882_v6 = vmax.f32 %v4703_v36, 0.0  ;;  %2180 = vst.msk [vmem:[#allocation2 + $0x360] sm:$0xff] %vm2143_vm6, %v2000_v61  ;;  %v3860_v8 = vld [vmem:[#allocation2 + $0x538] sm:$0xff]  ;;  %v8430_v10 = vpop.f32.mrf.mxu3  ;;  %v1420_v36 = vrot.slane %v7992_v63, 1 }
 0x333   : > { %v5277_v29 = vmax.f32 %v5158_v24, %v5221_v26  ;;  %v3766_v50 = vld [vmem:[#allocation2 + $0x248] sm:$0xff]  ;;  %9690 = vst [vmem:[#allocation71_spill] sm:$0xff] %v8430_v10  ;;  %v1421_v13 = vrot.slane %v8020_v27, 1  ;;  %v9694_v61 = vmax.f32 %v8076_v54, 0.0 }
 0x334   : > { %5303 = vst.msk [vmem:[%s7717_s14 + $0x28] sm:$0xf] %vm5298_vm10, %v5278_v34  ;;  %4486 = vmatmul.f32.gmra.mxu2 %v3766_v50  ;;  %v9693_v50 = vld [vmem:[#allocation84_spill] sm:$0xff]  ;;  %v3866_v54 = vld [vmem:[#allocation2 + $0x568] sm:$0xff] }
 0x335   : > { %5302 = vst.msk [vmem:[%s7717_s14 + $0x20] sm:$0xff] %vm4936_vm8, %v5277_v29  ;;  %v8444_v34 = vsel %vm1300_vm3, %v1420_v36, %v1421_v13  ;;  %v4239_v29 = vpop.f32.mrf.mxu1 }
 0x336   : > { %4955 = vst.msk [vmem:[#allocation3 + $0x90] sm:$0xff] %vm4936_vm8, %v4882_v6  ;;  %2731 = vrot.lane.b32.xlu2 %v7382_v48, %s5772_s17  ;;  %v3863_v48 = vld [vmem:[#allocation2 + $0x550] sm:$0xff]  ;;  %v1423_v6 = vrot.slane %v9693_v50, 1 }
 0x337   : > { %3318 = vrot.lane.b32.xlu1 %v7949_v58, %s5774_s20  ;;  %1565 = vrot.lane.b32.xlu0 %v8340_v7, %s5772_s17  ;;  %2636 = vst.msk [vmem:[#allocation2 + $0x488] sm:$0xff] %vm1131_vm2, %v8444_v34  ;;  %v9691_v58 = vld [vmem:[#allocation75_spill] sm:$0xff] }
 0x338   : > { %5581 = vmatmul.msk.f32.gmra.mxu3 %vm1131_vm2, %v3860_v8  ;;  %v2722_v62 = vpop.permute.xlu2 %2721  ;;  %v1544_v24 = vpop.permute.xlu1 %1543  ;;  %v1425_v8 = vrot.slane %v9694_v61, 1 }
 0x339   : > { %2910 = vst.msk [vmem:[#allocation2 + $0x290] sm:$0xff] %vm1685_vm5, %v2722_v62  ;;  %v3009_v26 = vpop.permute.xlu0 %3008  ;;  %v8466_v62 = vsel %vm1300_vm3, %v1421_v13, %v1423_v6  ;;  %v9695_v13 = vld [vmem:[#allocation52_spill] sm:$0xff] }
 0x33a   : > { %1723 = vst.msk [vmem:[#allocation2 + $0x378] sm:$0xff] %vm1685_vm5, %v1544_v24  ;;  %v8457_v23 = vpop.f32.mrf.mxu3  ;;  %v8468_v24 = vld [vmem:[#allocation8] ss:$0 sm:$0xff] }
 0x33b   : > { %3199 = vst.msk [vmem:[#allocation2 + $0x260] sm:$0xff] %vm2143_vm6, %v3009_v26  ;;  %v4240_v26 = vadd.f32 %v8468_v24, %v4239_v29  ;;  %v9696_v29 = vld [vmem:[#allocation77_spill] sm:$0xff] }
 0x33c   : > { %3495 = vst.msk [vmem:[#allocation2 + $0x260] sm:$0xff] %vm2435_vm7, %v3305_v32 }
 0x33d   : > { %9692 = vst [vmem:[#allocation73_spill] sm:$0xff] %v8457_v23  ;;  %v3869_v23 = vld [vmem:[#allocation2 + $0x580] sm:$0xff] }
 0x33e   : > { %2283 = vrot.lane.b32.xlu2 %v7337_v28, %s5774_s20  ;;  %2637 = vst.msk [vmem:[#allocation2 + $0x4a0] sm:$0xff] %vm1131_vm2, %v8466_v62 }
 0x33f   : > { %3024 = vrot.lane.b32.xlu1 %v7510_v1, %s5773_s19  ;;  %2023 = vrot.lane.b32.xlu0 %v9691_v58, %s5773_s19 }
 0x340   : > { %5582 = vmatmul.msk.f32.gmra.mxu3 %vm1131_vm2, %v3863_v48  ;;  %v1552_v41 = vpop.permute.xlu2 %1551  ;;  %v2002_v32 = vpop.permute.xlu1 %2001 }
 0x341   : > { %1727 = vst.msk [vmem:[#allocation2 + $0x3d8] sm:$0xff] %vm1685_vm5, %v1552_v41  ;;  %v3011_v28 = vpop.permute.xlu0 %3010 }
 0x342   : > { %2181 = vst.msk [vmem:[#allocation2 + $0x378] sm:$0xff] %vm2143_vm6, %v2002_v32  ;;  %v8477_v32 = vsel %vm1300_vm3, %v1423_v6, %v1425_v8 }
 0x343   : > { %3200 = vst.msk [vmem:[#allocation2 + $0x278] sm:$0xff] %vm2143_vm6, %v3011_v28  ;;  %v3769_v36 = vld [vmem:[#allocation2 + $0x260] sm:$0xff] }
 0x344   : > { %4489 = vmatmul.f32.gmra.mxu2 %v3769_v36  ;;  %2638 = vst.msk [vmem:[#allocation2 + $0x4b8] sm:$0xff] %vm1131_vm2, %v8477_v32  ;;  %v4242_v36 = vpop.f32.mrf.mxu1 }
 0x345   : > { %v4472_v48 = vpop.f32.mrf.mxu2 }
 0x346   : > { %v4473_v41 = vadd.f32 %v4472_v48, %v4240_v26  ;;  %1569 = vrot.lane.b32.xlu2 %v8405_v53, %s5772_s17  ;;  %v8487_v48 = vpop.f32.mrf.mxu3 }
 0x347   : > { %1567 = vrot.lane.b32.xlu1 %v8377_v40, %s5772_s17  ;;  %2733 = vrot.lane.b32.xlu0 %v9695_v13, %s5772_s17  ;;  %9697 = vst [vmem:[#allocation75_spill] sm:$0xff] %v8487_v48 }
 0x348   : > { %5583 = vmatmul.msk.f32.gmra.mxu3 %vm1131_vm2, %v3866_v54  ;;  %v4706_v61 = vadd.f32 %v9696_v29, %v4473_v41  ;;  %v2010_v28 = vpop.permute.xlu2 %2009  ;;  %v3307_v26 = vpop.permute.xlu1 %3306  ;;  %v4243_v54 = vadd.f32 %v8468_v24, %v4242_v36  ;;  %v9698_v29 = vld [vmem:[#allocation80_spill] sm:$0xff] }
 0x349   : > { %2185 = vst.msk [vmem:[#allocation2 + $0x3d8] sm:$0xff] %vm2143_vm6, %v2010_v28  ;;  %v1548_v8 = vpop.permute.xlu0 %1547  ;;  %v9699_v28 = vld [vmem:[#allocation78_spill] sm:$0xff] }
 0x34a   : > { %v4883_v6 = vmax.f32 %v4706_v61, 0.0  ;;  %3496 = vst.msk [vmem:[#allocation2 + $0x278] sm:$0xff] %vm2435_vm7, %v3307_v26  ;;  %v9700_v61 = vld [vmem:[#allocation79_spill] sm:$0xff] }
 0x34b   : > { %1725 = vst.msk [vmem:[#allocation2 + $0x3a8] sm:$0xff] %vm1685_vm5, %v1548_v8 }
 0x34c   : > { %4956 = vst.msk [vmem:[#allocation3 + $0x98] sm:$0xff] %vm4936_vm8, %v4883_v6 }
 0x34d   : > { %v4475_v13 = vpop.f32.mrf.mxu2 }
 0x34e   : > { %v4476_v41 = vadd.f32 %v4475_v13, %v4243_v54  ;;  %2027 = vrot.lane.b32.xlu2 %v9698_v29, %s5773_s19  ;;  %v3872_v13 = vld [vmem:[#allocation2 + $0x598] sm:$0xff] }
 0x34f   : > { %2025 = vrot.lane.b32.xlu1 %v9699_v28, %s5773_s19  ;;  %2285 = vrot.lane.b32.xlu0 %v7397_v5, %s5774_s20 }
 0x350   : > { %5584 = vmatmul.msk.f32.gmra.mxu3 %vm1131_vm2, %v3869_v23  ;;  %v4709_v26 = vadd.f32 %v9700_v61, %v4476_v41  ;;  %v2724_v8 = vpop.permute.xlu2 %2723  ;;  %v3309_v36 = vpop.permute.xlu1 %3308  ;;  %v1427_v61 = vrot.slane %v8109_v56, 1 }
 0x351   : > { %2911 = vst.msk [vmem:[#allocation2 + $0x2a8] sm:$0xff] %vm1685_vm5, %v2724_v8  ;;  %v3772_v6 = vld [vmem:[#allocation2 + $0x278] sm:$0xff]  ;;  %v2006_v54 = vpop.permute.xlu0 %2005  ;;  %v8503_v23 = vpop.f32.mrf.mxu3 }
 0x352   : > { %v4884_v48 = vmax.f32 %v4709_v26, 0.0  ;;  %4492 = vmatmul.f32.gmra.mxu2 %v3772_v6  ;;  %2183 = vst.msk [vmem:[#allocation2 + $0x3a8] sm:$0xff] %vm2143_vm6, %v2006_v54  ;;  %v9703_v6 = vld [vmem:[#allocation55_spill] sm:$0xff]  ;;  %v9704_v54 = vld [vmem:[#allocation82_spill] sm:$0xff] }
 0x353   : > { %9701 = vst [vmem:[#allocation84_spill] sm:$0xff] %v8503_v23 }
 0x354   : > { %4957 = vst.msk [vmem:[#allocation3 + $0xa0] sm:$0xff] %vm4936_vm8, %v4884_v48  ;;  %v1428_v48 = vrot.slane %v8134_v35, 1 }
 0x356   : > { %3320 = vrot.lane.b32.xlu2 %v8001_v16, %s5774_s20  ;;  %v8519_v16 = vsel %vm1300_vm3, %v1427_v61, %v1428_v48 }
 0x357   : > { %2735 = vrot.lane.b32.xlu1 %v9653_v38, %s5772_s17  ;;  %1571 = vrot.lane.b32.xlu0 %v8444_v34, %s5772_s17  ;;  %v3875_v38 = vld [vmem:[#allocation2 + $0x5b0] sm:$0xff]  ;;  %2639 = vst.msk [vmem:[#allocation2 + $0x4d0] sm:$0xff] %vm1131_vm2, %v8519_v16 }
 0x358   : > { %5585 = vmatmul.msk.f32.gmra.mxu3 %vm1131_vm2, %v3872_v13  ;;  %v2726_v5 = vpop.permute.xlu2 %2725  ;;  %v1550_v41 = vpop.permute.xlu1 %1549 }
 0x359   : > { %2912 = vst.msk [vmem:[#allocation2 + $0x2c0] sm:$0xff] %vm1685_vm5, %v2726_v5  ;;  %v3013_v26 = vpop.permute.xlu0 %3012  ;;  %v8524_v8 = vpop.f32.mrf.mxu3  ;;  %v1430_v5 = vrot.slane %v8166_v9, 1  ;;  %v9711_v9 = vld [vmem:[#allocation54_spill] sm:$0xff] }
 0x35a   : > { %1726 = vst.msk [vmem:[#allocation2 + $0x3c0] sm:$0xff] %vm1685_vm5, %v1550_v41  ;;  %v9705_v41 = vmax.f32 %v8189_v60, 0.0 }
 0x35b   : > { %3201 = vst.msk [vmem:[#allocation2 + $0x290] sm:$0xff] %vm2143_vm6, %v3013_v26 }
 0x35c   : > { %3497 = vst.msk [vmem:[#allocation2 + $0x290] sm:$0xff] %vm2435_vm7, %v3309_v36  ;;  %v1432_v61 = vrot.slane %v9705_v41, 1  ;;  %v4245_v41 = vpop.f32.mrf.mxu1 }
 0x35d   : > { %9702 = vst [vmem:[#allocation52_spill] sm:$0xff] %v8524_v8 }
 0x35e   : > { %3026 = vrot.lane.b32.xlu2 %v9703_v6, %s5773_s19  ;;  %v8548_v60 = vsel %vm1300_vm3, %v1430_v5, %v1432_v61  ;;  %v4246_v61 = vadd.f32 %v8468_v24, %v4245_v41 }
 0x35f   : > { %2287 = vrot.lane.b32.xlu1 %v7422_v22, %s5774_s20  ;;  %2029 = vrot.lane.b32.xlu0 %v9704_v54, %s5773_s19  ;;  %v8540_v22 = vsel %vm1300_vm3, %v1428_v48, %v1430_v5  ;;  %2641 = vst.msk [vmem:[#allocation2 + $0x500] sm:$0xff] %vm1131_vm2, %v8548_v60 }
 0x360   : > { %5586 = vmatmul.msk.f32.gmra.mxu3 %vm1131_vm2, %v3875_v38  ;;  %v1558_v13 = vpop.permute.xlu2 %1557  ;;  %v2008_v36 = vpop.permute.xlu1 %2007  ;;  %2640 = vst.msk [vmem:[#allocation2 + $0x4e8] sm:$0xff] %vm1131_vm2, %v8540_v22 }
 0x361   : > { %1730 = vst.msk [vmem:[#allocation2 + $0x420] sm:$0xff] %vm1685_vm5, %v1558_v13  ;;  %v3015_v26 = vpop.permute.xlu0 %3014  ;;  %v3878_v13 = vld [vmem:[#allocation2 + $0x5c8] sm:$0xff]  ;;  %v8556_v48 = vpop.f32.mrf.mxu3 }
 0x362   : > { %2184 = vst.msk [vmem:[#allocation2 + $0x3c0] sm:$0xff] %vm2143_vm6, %v2008_v36 }
 0x363   : > { %3202 = vst.msk [vmem:[#allocation2 + $0x2a8] sm:$0xff] %vm2143_vm6, %v3015_v26  ;;  %v3775_v38 = vld [vmem:[#allocation2 + $0x290] sm:$0xff] }
 0x364   : > { %4495 = vmatmul.f32.gmra.mxu2 %v3775_v38  ;;  %9706 = vst [vmem:[#allocation77_spill] sm:$0xff] %v8556_v48  ;;  %v9707_v48 = vld [vmem:[#allocation85_spill] sm:$0xff] }
 0x366   : > { %1575 = vrot.lane.b32.xlu2 %v8477_v32, %s5772_s17 }
 0x367   : > { %1573 = vrot.lane.b32.xlu1 %v8466_v62, %s5772_s17  ;;  %3322 = vrot.lane.b32.xlu0 %v8030_v37, %s5774_s20 }
 0x368   : > { %5587 = vmatmul.msk.f32.gmra.mxu3 %vm1131_vm2, %v3878_v13  ;;  %v2016_v36 = vpop.permute.xlu2 %2015  ;;  %v3311_v26 = vpop.permute.xlu1 %3310  ;;  %v3881_v13 = vld [vmem:[#allocation2 + $0x5e0] sm:$0xff] }
 0x369   : > { %2188 = vst.msk [vmem:[#allocation2 + $0x420] sm:$0xff] %vm2143_vm6, %v2016_v36  ;;  %v1554_v5 = vpop.permute.xlu0 %1553  ;;  %v9708_v36 = vld [vmem:[#allocation57_spill] sm:$0xff]  ;;  %v8571_v10 = vpop.f32.mrf.mxu3 }
 0x36a   : > { %3498 = vst.msk [vmem:[#allocation2 + $0x2a8] sm:$0xff] %vm2435_vm7, %v3311_v26  ;;  %v9709_v26 = vld [vmem:[#allocation81_spill] sm:$0xff] }
 0x36b   : > { %1728 = vst.msk [vmem:[#allocation2 + $0x3f0] sm:$0xff] %vm1685_vm5, %v1554_v5 }
 0x36c   : > { %9710 = vst [vmem:[#allocation80_spill] sm:$0xff] %v8571_v10 }
 0x36d   : > { %v4478_v38 = vpop.f32.mrf.mxu2 }
 0x36e   : > { %v4479_v37 = vadd.f32 %v4478_v38, %v4246_v61  ;;  %2033 = vrot.lane.b32.xlu2 %v8095_v45, %s5773_s19 }
 0x36f   : > { %2031 = vrot.lane.b32.xlu1 %v9707_v48, %s5773_s19  ;;  %3028 = vrot.lane.b32.xlu0 %v9708_v36, %s5773_s19 }
 0x370   : > { %5588 = vmatmul.msk.f32.gmra.mxu3 %vm1131_vm2, %v3881_v13  ;;  %v4712_v8 = vadd.f32 %v9709_v26, %v4479_v37  ;;  %v2728_v23 = vpop.permute.xlu2 %2727  ;;  %v3313_v41 = vpop.permute.xlu1 %3312  ;;  %v3884_v13 = vld [vmem:[#allocation2 + $0x5f8] sm:$0xff] }
 0x371   : > { %2913 = vst.msk [vmem:[#allocation2 + $0x2d8] sm:$0xff] %vm1685_vm5, %v2728_v23  ;;  %v3778_v5 = vld [vmem:[#allocation2 + $0x2a8] sm:$0xff]  ;;  %v2012_v38 = vpop.permute.xlu0 %2011  ;;  %v1434_v23 = vrot.slane %v8219_v11, 1 }
 0x372   : > { %v4885_v61 = vmax.f32 %v4712_v8, 0.0  ;;  %4498 = vmatmul.f32.gmra.mxu2 %v3778_v5  ;;  %2186 = vst.msk [vmem:[#allocation2 + $0x3f0] sm:$0xff] %vm2143_vm6, %v2012_v38  ;;  %v1435_v8 = vrot.slane %v8245_v49, 1 }
 0x374   : > { %4958 = vst.msk [vmem:[#allocation3 + $0xa8] sm:$0xff] %vm4936_vm8, %v4885_v61  ;;  %v8587_v61 = vsel %vm1300_vm3, %v1434_v23, %v1435_v8 }
 0x375   : > { %2642 = vst.msk [vmem:[#allocation2 + $0x518] sm:$0xff] %vm1131_vm2, %v8587_v61 }
 0x376   : > { %2737 = vrot.lane.b32.xlu2 %v9711_v9, %s5772_s17  ;;  %v3887_v9 = vld [vmem:[#allocation2 + $0x610] sm:$0xff] }
 0x377   : > { %3324 = vrot.lane.b32.xlu1 %v8060_v57, %s5774_s20  ;;  %1577 = vrot.lane.b32.xlu0 %v8519_v16, %s5772_s17  ;;  %v8590_v57 = vpop.f32.mrf.mxu3 }
 0x378   : > { %5589 = vmatmul.msk.f32.gmra.mxu3 %vm1131_vm2, %v3884_v13  ;;  %v2730_v37 = vpop.permute.xlu2 %2729  ;;  %v1556_v26 = vpop.permute.xlu1 %1555  ;;  %9712 = vst [vmem:[#allocation78_spill] sm:$0xff] %v8590_v57  ;;  %v3896_v57 = vld [vmem:[#allocation2 + $0x658] sm:$0xff] }
 0x379   : > { %2914 = vst.msk [vmem:[#allocation2 + $0x2f0] sm:$0xff] %vm1685_vm5, %v2730_v37  ;;  %v3017_v5 = vpop.permute.xlu0 %3016 }
 0x37a   : > { %1729 = vst.msk [vmem:[#allocation2 + $0x408] sm:$0xff] %vm1685_vm5, %v1556_v26  ;;  %v3890_v26 = vld [vmem:[#allocation2 + $0x628] sm:$0xff] }
 0x37b   : > { %3203 = vst.msk [vmem:[#allocation2 + $0x2c0] sm:$0xff] %vm2143_vm6, %v3017_v5 }
 0x37c   : > { %3499 = vst.msk [vmem:[#allocation2 + $0x2c0] sm:$0xff] %vm2435_vm7, %v3313_v41  ;;  %v1437_v41 = vrot.slane %v8277_v12, 1 }
 0x37e   : > { %2289 = vrot.lane.b32.xlu2 %v7449_v47, %s5774_s20  ;;  %v8607_v47 = vsel %vm1300_vm3, %v1435_v8, %v1437_v41 }
 0x37f   : > { %3030 = vrot.lane.b32.xlu1 %v9656_v17, %s5773_s19  ;;  %2035 = vrot.lane.b32.xlu0 %v8148_v59, %s5773_s19  ;;  %2643 = vst.msk [vmem:[#allocation2 + $0x530] sm:$0xff] %vm1131_vm2, %v8607_v47  ;;  %v8611_v5 = vpop.f32.mrf.mxu3 }
 0x380   : > { %5590 = vmatmul.msk.f32.gmra.mxu3 %vm1131_vm2, %v3887_v9  ;;  %v1564_v38 = vpop.permute.xlu2 %1563  ;;  %v2014_v13 = vpop.permute.xlu1 %2013  ;;  %9713 = vst [vmem:[#allocation79_spill] sm:$0xff] %v8611_v5  ;;  %v9714_v9 = vmax.f32 %v8302_v21, 0.0 }
 0x381   : > { %1733 = vst.msk [vmem:[#allocation2 + $0x468] sm:$0xff] %vm1685_vm5, %v1564_v38  ;;  %v3019_v23 = vpop.permute.xlu0 %3018 }
 0x382   : > { %2187 = vst.msk [vmem:[#allocation2 + $0x408] sm:$0xff] %vm2143_vm6, %v2014_v13  ;;  %v1439_v38 = vrot.slane %v9714_v9, 1  ;;  %v4248_v13 = vpop.f32.mrf.mxu1 }
 0x383   : > { %3204 = vst.msk [vmem:[#allocation2 + $0x2d8] sm:$0xff] %vm2143_vm6, %v3019_v23  ;;  %v3781_v37 = vld [vmem:[#allocation2 + $0x2c0] sm:$0xff]  ;;  %v4249_v21 = vadd.f32 %v8468_v24, %v4248_v13 }
 0x384   : > { %4501 = vmatmul.f32.gmra.mxu2 %v3781_v37 }
 0x386   : > { %1581 = vrot.lane.b32.xlu2 %v8548_v60, %s5772_s17 }
 0x387   : > { %1579 = vrot.lane.b32.xlu1 %v8540_v22, %s5772_s17  ;;  %2739 = vrot.lane.b32.xlu0 %v9659_v33, %s5772_s17 }
 0x388   : > { %5591 = vmatmul.msk.f32.gmra.mxu3 %vm1131_vm2, %v3890_v26  ;;  %v2022_v8 = vpop.permute.xlu2 %2021  ;;  %v3315_v23 = vpop.permute.xlu1 %3314  ;;  %v8626_v26 = vsel %vm1300_vm3, %v1437_v41, %v1439_v38 }
 0x389   : > { %2191 = vst.msk [vmem:[#allocation2 + $0x468] sm:$0xff] %vm2143_vm6, %v2022_v8  ;;  %v1560_v37 = vpop.permute.xlu0 %1559  ;;  %v9715_v8 = vld [vmem:[#allocation83_spill] sm:$0xff] }
 0x38a   : > { %3500 = vst.msk [vmem:[#allocation2 + $0x2d8] sm:$0xff] %vm2435_vm7, %v3315_v23 }
 0x38b   : > { %1731 = vst.msk [vmem:[#allocation2 + $0x438] sm:$0xff] %vm1685_vm5, %v1560_v37 }
 0x38c   : > { %2644 = vst.msk [vmem:[#allocation2 + $0x548] sm:$0xff] %vm1131_vm2, %v8626_v26 }
 0x38d   : > { %v4481_v9 = vpop.f32.mrf.mxu2 }
 0x38e   : > { %v4482_v33 = vadd.f32 %v4481_v9, %v4249_v21  ;;  %2039 = vrot.lane.b32.xlu2 %v8206_v0, %s5773_s19  ;;  %v1441_v9 = vrot.slane %v8331_v20, 1 }
 0x38f   : > { %2037 = vrot.lane.b32.xlu1 %v8180_v42, %s5773_s19  ;;  %2291 = vrot.lane.b32.xlu0 %v7510_v1, %s5774_s20 }
 0x390   : > { %v4715_v23 = vadd.f32 %v9715_v8, %v4482_v33  ;;  %v2732_v41 = vpop.permute.xlu2 %2731  ;;  %v3317_v38 = vpop.permute.xlu1 %3316  ;;  %v9716_v33 = vld [vmem:[#allocation41_spill] sm:$0xff] }
 0x391   : > { %2915 = vst.msk [vmem:[#allocation2 + $0x308] sm:$0xff] %vm1685_vm5, %v2732_v41  ;;  %v3784_v13 = vld [vmem:[#allocation2 + $0x2d8] sm:$0xff]  ;;  %v2018_v5 = vpop.permute.xlu0 %2017  ;;  %v2509_v8 = vrot.slane %v9716_v33, 1  ;;  %v4251_v33 = vpop.f32.mrf.mxu1 }
 0x392   : > { %v4886_v37 = vmax.f32 %v4715_v23, 0.0  ;;  %4504 = vmatmul.f32.gmra.mxu2 %v3784_v13  ;;  %2189 = vst.msk [vmem:[#allocation2 + $0x438] sm:$0xff] %vm2143_vm6, %v2018_v5  ;;  %v9717_v23 = vld [vmem:[#allocation42_spill] sm:$0xff] }
 0x393   : > { %v2510_v41 = vrot.slane %v9717_v23, 1 }
 0x394   : > { %4959 = vst.msk [vmem:[#allocation3 + $0xb0] sm:$0xff] %vm4936_vm8, %v4886_v37  ;;  %v8664_v37 = vpop.f32.mrf.mxu3 }
 0x395   : > { %v8660_v13 = vsel %vm1300_vm3, %v2509_v8, %v2510_v41  ;;  %9720 = vst [vmem:[#allocation82_spill] sm:$0xff] %v8664_v37  ;;  %v9721_v8 = vld [vmem:[#allocation44_spill] sm:$0xff] }
 0x396   : > { %3326 = vrot.lane.b32.xlu2 %v8118_v18, %s5774_s20  ;;  %v9718_v18 = vrot.slane %v8356_v31, 1  ;;  %9719 = vst [vmem:[#allocation55_spill] sm:$0xff] %v8660_v13 }
 0x397   : > { %2741 = vrot.lane.b32.xlu1 %v9666_v15, %s5772_s17  ;;  %1583 = vrot.lane.b32.xlu0 %v8587_v61, %s5772_s17  ;;  %2657 = vst.msk [vmem:[#allocation2 + $0x680] sm:$0xff] %vm1131_vm2, %v8660_v13  ;;  %v9726_v13 = vld [vmem:[#allocation53_spill] sm:$0xff] }
 0x398   : > { %v2284_v1 = vpop.permute.xlu2 %2283  ;;  %v1562_v21 = vpop.permute.xlu1 %1561  ;;  %v8656_v15 = vsel %vm1300_vm3, %v1441_v9, %v9718_v18  ;;  %v2512_v18 = vrot.slane %v9721_v8, 1 }
 0x399   : > { %2468 = vst.msk [vmem:[#allocation2 + $0x300] sm:$0xff] %vm2435_vm7, %v2284_v1  ;;  %v3021_v5 = vpop.permute.xlu0 %3020 }
 0x39a   : > { %1732 = vst.msk [vmem:[#allocation2 + $0x450] sm:$0xff] %vm1685_vm5, %v1562_v21  ;;  %v3893_v21 = vld [vmem:[#allocation2 + $0x640] sm:$0xff]  ;;  %v8680_v37 = vsel %vm1300_vm3, %v2510_v41, %v2512_v18 }
 0x39b   : > { %3205 = vst.msk [vmem:[#allocation2 + $0x2f0] sm:$0xff] %vm2143_vm6, %v3021_v5  ;;  %5592 = vmatmul.msk.f32.gmra.mxu3 %vm1131_vm2, %v3893_v21 }
 0x39c   : > { %3501 = vst.msk [vmem:[#allocation2 + $0x2f0] sm:$0xff] %vm2435_vm7, %v3317_v38  ;;  %v8693_v41 = vpop.f32.mrf.mxu3 }
 0x39d   : > { %2645 = vst.msk [vmem:[#allocation2 + $0x560] sm:$0xff] %vm1131_vm2, %v8656_v15 }
 0x39e   : > { %3032 = vrot.lane.b32.xlu2 %v9657_v44, %s5773_s19  ;;  %9722 = vst [vmem:[#allocation85_spill] sm:$0xff] %v8680_v37 }
 0x39f   : > { %2293 = vrot.lane.b32.xlu1 %v9703_v6, %s5774_s20  ;;  %2041 = vrot.lane.b32.xlu0 %v8261_v39, %s5773_s19  ;;  %2658 = vst.msk [vmem:[#allocation2 + $0x698] sm:$0xff] %vm1131_vm2, %v8680_v37 }
 0x3a0   : > { %v1570_v38 = vpop.permute.xlu2 %1569  ;;  %v3789_v1 = vld [vmem:[#allocation2 + $0x300] sm:$0xff]  ;;  %9725 = vst [vmem:[#allocation57_spill] sm:$0xff] %v8693_v41 }
 0x3a1   : > { %1736 = vst.msk [vmem:[#allocation2 + $0x4b0] sm:$0xff] %vm1685_vm5, %v1570_v38  ;;  %v2020_v9 = vpop.permute.xlu1 %2019  ;;  %4277 = vmatmul.f32.gmra.mxu1 %v3789_v1  ;;  %v3023_v5 = vpop.permute.xlu0 %3022  ;;  %v9723_v38 = vld [vmem:[#allocation46_spill] sm:$0xff] }
 0x3a2   : > { %2190 = vst.msk [vmem:[#allocation2 + $0x450] sm:$0xff] %vm2143_vm6, %v2020_v9  ;;  %v9724_v1 = vmax.f32 %v9723_v38, 0.0  ;;  %v4252_v9 = vadd.f32 %v8468_v24, %v4251_v33 }
 0x3a3   : > { %3206 = vst.msk [vmem:[#allocation2 + $0x308] sm:$0xff] %vm2143_vm6, %v3023_v5  ;;  %v3787_v6 = vld [vmem:[#allocation2 + $0x2f0] sm:$0xff]  ;;  %5593 = vmatmul.msk.f32.gmra.mxu3 %vm1131_vm2, %v3896_v57 }
 0x3a4   : > { %4507 = vmatmul.f32.gmra.mxu2 %v3787_v6  ;;  %v2514_v21 = vrot.slane %v9724_v1, 1  ;;  %v8712_v1 = vpop.f32.mrf.mxu3 }
 0x3a5   : > { %9729 = vst [vmem:[#allocation54_spill] sm:$0xff] %v8712_v1  ;;  %v5099_v1 = vld [vmem:[#allocation3 + $0x91] ss:$2 sm:$0xff] }
 0x3a6   : > { %1587 = vrot.lane.b32.xlu2 %v8626_v26, %s5772_s17  ;;  %v8700_v38 = vsel %vm1300_vm3, %v2512_v18, %v2514_v21  ;;  %v5029_v21 = vld [vmem:[#allocation3 + $0xa0] ss:$2 sm:$0xff] }
 0x3a7   : > { %1585 = vrot.lane.b32.xlu1 %v8607_v47, %s5772_s17  ;;  %3328 = vrot.lane.b32.xlu0 %v8143_v55, %s5774_s20  ;;  %9727 = vst [vmem:[#allocation81_spill] sm:$0xff] %v8700_v38 }
 0x3a8   : > { %v2028_v5 = vpop.permute.xlu2 %2027  ;;  %2659 = vst.msk [vmem:[#allocation2 + $0x6b0] sm:$0xff] %vm1131_vm2, %v8700_v38 }
 0x3a9   : > { %2194 = vst.msk [vmem:[#allocation2 + $0x4b0] sm:$0xff] %vm2143_vm6, %v2028_v5  ;;  %v3319_v8 = vpop.permute.xlu1 %3318  ;;  %v1566_v23 = vpop.permute.xlu0 %1565 }
 0x3aa   : > { %v4484_v6 = vpop.f32.mrf.mxu2  ;;  %3502 = vst.msk [vmem:[#allocation2 + $0x308] sm:$0xff] %vm2435_vm7, %v3319_v8 }
 0x3ab   : > { %v4485_v37 = vadd.f32 %v4484_v6, %v4252_v9  ;;  %1734 = vst.msk [vmem:[#allocation2 + $0x480] sm:$0xff] %vm1685_vm5, %v1566_v23  ;;  %v9728_v23 = vld [vmem:[#allocation64_spill] sm:$0xff]  ;;  %v3899_v6 = vld [vmem:[#allocation2 + $0x670] sm:$0xff] }
 0x3ac   : > { %v5101_v9 = vld [vmem:[#allocation3 + $0xa1] ss:$2 sm:$0xff]  ;;  %5594 = vmatmul.msk.f32.gmra.mxu3 %vm1131_vm2, %v3899_v6 }
 0x3ad   : > { %v4718_v55 = vadd.f32 %v9726_v13, %v4485_v37  ;;  %v4254_v37 = vpop.f32.mrf.mxu1  ;;  %v5162_v38 = vmax.f32 %v5029_v21, %v5101_v9 }
 0x3ae   : > { %2045 = vrot.lane.b32.xlu2 %v8314_v43, %s5773_s19  ;;  %v4255_v5 = vadd.f32 %v8468_v24, %v4254_v37 }
 0x3af   : > { %v4887_v33 = vmax.f32 %v4718_v55, 0.0  ;;  %2043 = vrot.lane.b32.xlu1 %v8289_v19, %s5773_s19  ;;  %3034 = vrot.lane.b32.xlu0 %v9728_v23, %s5773_s19  ;;  %v9731_v19 = vld [vmem:[#allocation63_spill] sm:$0xff]  ;;  %v5222_v21 = vrot.slane %v5162_v38, 4 }
 0x3b0   : > { %v3321_v13 = vpop.permute.xlu2 %3320 }
 0x3b1   : > { %4960 = vst.msk [vmem:[#allocation3 + $0xb8] sm:$0xff] %vm4936_vm8, %v4887_v33  ;;  %v3025_v8 = vpop.permute.xlu1 %3024  ;;  %v3790_v18 = vld [vmem:[#allocation2 + $0x308] sm:$0xff]  ;;  %v2024_v57 = vpop.permute.xlu0 %2023 }
 0x3b2   : > { %4510 = vmatmul.f32.gmra.mxu2 %v3790_v18  ;;  %2192 = vst.msk [vmem:[#allocation2 + $0x480] sm:$0xff] %vm2143_vm6, %v2024_v57  ;;  %v9730_v18 = vld [vmem:[#allocation56_spill] sm:$0xff] }
 0x3b3   : > { %v5027_v57 = vld [vmem:[#allocation3 + $0x90] ss:$2 sm:$0xff] }
 0x3b6   : > { %2743 = vrot.lane.b32.xlu2 %v9665_v46, %s5772_s17 }
 0x3b7   : > { %v4487_v55 = vpop.f32.mrf.mxu2  ;;  %3330 = vrot.lane.b32.xlu1 %v9730_v18, %s5774_s20  ;;  %1589 = vrot.lane.b32.xlu0 %v8656_v15, %s5772_s17 }
 0x3b8   : > { %v4488_v33 = vadd.f32 %v4487_v55, %v4255_v5  ;;  %v5031_v41 = vld [vmem:[#allocation3 + $0xb0] ss:$2 sm:$0xff]  ;;  %v5103_v10 = vld [vmem:[#allocation3 + $0xb1] ss:$2 sm:$0xff]  ;;  %v3027_v20 = vpop.permute.xlu2 %3026  ;;  %v5161_v55 = vmax.f32 %v5027_v57, %v5099_v1 }
 0x3b9   : > { %v5163_v37 = vmax.f32 %v5031_v41, %v5103_v10  ;;  %v1568_v6 = vpop.permute.xlu1 %1567  ;;  %v2734_v5 = vpop.permute.xlu0 %2733  ;;  %v3902_v10 = vld [vmem:[#allocation2 + $0x688] sm:$0xff] }
 0x3ba   : > { %v4721_v43 = vadd.f32 %v9731_v19, %v4488_v33  ;;  %1735 = vst.msk [vmem:[#allocation2 + $0x498] sm:$0xff] %vm1685_vm5, %v1568_v6  ;;  %v8728_v19 = vpop.f32.mrf.mxu3  ;;  %5595 = vmatmul.msk.f32.gmra.mxu3 %vm1131_vm2, %v3902_v10  ;;  %v9734_v10 = vld [vmem:[#allocation68_spill] sm:$0xff] }
 0x3bb   : > { %v5223_v9 = vrot.slane %v5163_v37, 4  ;;  %2916 = vst.msk [vmem:[#allocation2 + $0x320] sm:$0xff] %vm1685_vm5, %v2734_v5 }
 0x3bc   : > { %v4888_v46 = vmax.f32 %v4721_v43, 0.0  ;;  %3207 = vst.msk [vmem:[#allocation2 + $0x320] sm:$0xff] %vm2143_vm6, %v3025_v8  ;;  %v4257_v8 = vpop.f32.mrf.mxu1 }
 0x3bd   : > { %v5224_v18 = vsel %vm5212_vm9, %v5222_v21, %v5223_v9  ;;  %v5280_v31 = vmax.f32 %v5162_v38, %v5223_v9  ;;  %3503 = vst.msk [vmem:[#allocation2 + $0x320] sm:$0xff] %vm2435_vm7, %v3321_v13  ;;  %v9732_v13 = vld [vmem:[#allocation62_spill] sm:$0xff]  ;;  %v9733_v21 = vld [vmem:[#allocation60_spill] sm:$0xff] }
 0x3be   : > { %4961 = vst.msk [vmem:[#allocation3 + $0xc0] sm:$0xff] %vm4936_vm8, %v4888_v46  ;;  %v5279_v41 = vmax.f32 %v5161_v55, %v5224_v18  ;;  %2295 = vrot.lane.b32.xlu2 %v9708_v36, %s5774_s20  ;;  %v4258_v36 = vadd.f32 %v8468_v24, %v4257_v8  ;;  %v3905_v18 = vld [vmem:[#allocation2 + $0x6a0] sm:$0xff] }
 0x3bf   : > { %5305 = vst.msk [vmem:[%s7717_s14 + $0x38] sm:$0xf] %vm5298_vm10, %v5280_v31  ;;  %1591 = vrot.lane.b32.xlu1 %v8401_v52, %s5772_s17  ;;  %2047 = vrot.lane.b32.xlu0 %v8368_v3, %s5773_s19 }
 0x3c0   : > { %5304 = vst.msk [vmem:[%s7717_s14 + $0x30] sm:$0xff] %vm4936_vm8, %v5279_v41  ;;  %v1576_v43 = vpop.permute.xlu2 %1575  ;;  %v9735_v41 = vld [vmem:[#allocation67_spill] sm:$0xff] }
 0x3c1   : > { %1739 = vst.msk [vmem:[#allocation2 + $0x4f8] sm:$0xff] %vm1685_vm5, %v1576_v43  ;;  %v2026_v38 = vpop.permute.xlu1 %2025  ;;  %v2286_v31 = vpop.permute.xlu0 %2285 }
 0x3c2   : > { %2193 = vst.msk [vmem:[#allocation2 + $0x498] sm:$0xff] %vm2143_vm6, %v2026_v38  ;;  %v8756_v5 = vpop.f32.mrf.mxu3  ;;  %5596 = vmatmul.msk.f32.gmra.mxu3 %vm1131_vm2, %v3905_v18 }
 0x3c3   : > { %2469 = vst.msk [vmem:[#allocation2 + $0x318] sm:$0xff] %vm2435_vm7, %v2286_v31 }
 0x3c4   : > { %v3793_v1 = vld [vmem:[#allocation2 + $0x320] sm:$0xff] }
 0x3c5   : > { %4513 = vmatmul.f32.gmra.mxu2 %v3793_v1 }
 0x3c6   : > { %3332 = vrot.lane.b32.xlu2 %v8230_v30, %s5774_s20 }
 0x3c7   : > { %v4490_v33 = vpop.f32.mrf.mxu2  ;;  %2049 = vrot.lane.b32.xlu1 %v8373_v25, %s5773_s19  ;;  %2745 = vrot.lane.b32.xlu0 %v9732_v13, %s5772_s17 }
 0x3c8   : > { %v4491_v57 = vadd.f32 %v4490_v33, %v4258_v36  ;;  %v2034_v37 = vpop.permute.xlu2 %2033  ;;  %v3908_v36 = vld [vmem:[#allocation2 + $0x6b8] sm:$0xff] }
 0x3c9   : > { %2197 = vst.msk [vmem:[#allocation2 + $0x4f8] sm:$0xff] %vm2143_vm6, %v2034_v37  ;;  %v2736_v6 = vpop.permute.xlu1 %2735  ;;  %v1572_v46 = vpop.permute.xlu0 %1571  ;;  %v9738_v37 = vld [vmem:[#allocation59_spill] sm:$0xff] }
 0x3ca   : > { %v4724_v9 = vadd.f32 %v9733_v21, %v4491_v57  ;;  %2917 = vst.msk [vmem:[#allocation2 + $0x338] sm:$0xff] %vm1685_vm5, %v2736_v6  ;;  %v3792_v30 = vld [vmem:[#allocation2 + $0x318] sm:$0xff]  ;;  %v8772_v1 = vpop.f32.mrf.mxu3  ;;  %5597 = vmatmul.msk.f32.gmra.mxu3 %vm1131_vm2, %v3908_v36  ;;  %v9737_v57 = vld [vmem:[#allocation65_spill] sm:$0xff] }
 0x3cb   : > { %3208 = vst.msk [vmem:[#allocation2 + $0x338] sm:$0xff] %vm2143_vm6, %v3027_v20  ;;  %4280 = vmatmul.f32.gmra.mxu1 %v3792_v30  ;;  %v4260_v20 = vpop.f32.mrf.mxu1  ;;  %v9740_v36 = vld [vmem:[#allocation69_spill] sm:$0xff] }
 0x3cc   : > { %v4889_v55 = vmax.f32 %v4724_v9, 0.0  ;;  %1737 = vst.msk [vmem:[#allocation2 + $0x4c8] sm:$0xff] %vm1685_vm5, %v1572_v46  ;;  %v4261_v8 = vadd.f32 %v8468_v24, %v4260_v20 }
 0x3ce   : > { %4962 = vst.msk [vmem:[#allocation3 + $0xc8] sm:$0xff] %vm4936_vm8, %v4889_v55  ;;  %3038 = vrot.lane.b32.xlu2 %v9734_v10, %s5773_s19 }
 0x3cf   : > { %3036 = vrot.lane.b32.xlu1 %v9735_v41, %s5773_s19  ;;  %2297 = vrot.lane.b32.xlu0 %v9656_v17, %s5774_s20  ;;  %v9736_v17 = vld [vmem:[#allocation66_spill] sm:$0xff] }
 0x3d0   : > { %v2738_v43 = vpop.permute.xlu2 %2737 }
 0x3d1   : > { %2918 = vst.msk [vmem:[#allocation2 + $0x350] sm:$0xff] %vm1685_vm5, %v2738_v43  ;;  %v2288_v38 = vpop.permute.xlu1 %2287  ;;  %v2030_v31 = vpop.permute.xlu0 %2029 }
 0x3d2   : > { %2470 = vst.msk [vmem:[#allocation2 + $0x330] sm:$0xff] %vm2435_vm7, %v2288_v38 }
 0x3d3   : > { %2195 = vst.msk [vmem:[#allocation2 + $0x4c8] sm:$0xff] %vm2143_vm6, %v2030_v31 }
 0x3d5   : > { %v4493_v33 = vpop.f32.mrf.mxu2 }
 0x3d6   : > { %v4494_v13 = vadd.f32 %v4493_v33, %v4261_v8  ;;  %2749 = vrot.lane.b32.xlu2 %v9736_v17, %s5772_s17  ;;  %v4263_v8 = vpop.f32.mrf.mxu1 }
 0x3d7   : > { %2747 = vrot.lane.b32.xlu1 %v9737_v57, %s5772_s17  ;;  %3334 = vrot.lane.b32.xlu0 %v8255_v51, %s5774_s20  ;;  %v9739_v51 = vld [vmem:[#allocation70_spill] sm:$0xff] }
 0x3d8   : > { %v4727_v6 = vadd.f32 %v9738_v37, %v4494_v13  ;;  %v2290_v21 = vpop.permute.xlu2 %2289  ;;  %v9741_v57 = vld [vmem:[#allocation58_spill] sm:$0xff] }
 0x3d9   : > { %2471 = vst.msk [vmem:[#allocation2 + $0x348] sm:$0xff] %vm2435_vm7, %v2290_v21  ;;  %v1574_v9 = vpop.permute.xlu1 %1573  ;;  %v3795_v46 = vld [vmem:[#allocation2 + $0x330] sm:$0xff]  ;;  %v3323_v55 = vpop.permute.xlu0 %3322  ;;  %v9743_v21 = vld [vmem:[#allocation72_spill] sm:$0xff] }
 0x3da   : > { %v4890_v30 = vmax.f32 %v4727_v6, 0.0  ;;  %1738 = vst.msk [vmem:[#allocation2 + $0x4e0] sm:$0xff] %vm1685_vm5, %v1574_v9  ;;  %4283 = vmatmul.f32.gmra.mxu1 %v3795_v46 }
 0x3db   : > { %3504 = vst.msk [vmem:[#allocation2 + $0x338] sm:$0xff] %vm2435_vm7, %v3323_v55 }
 0x3dc   : > { %4963 = vst.msk [vmem:[#allocation3 + $0xd0] sm:$0xff] %vm4936_vm8, %v4890_v30 }
 0x3de   : > { %2301 = vrot.lane.b32.xlu2 %v9728_v23, %s5774_s20  ;;  %v4264_v23 = vadd.f32 %v8468_v24, %v4263_v8  ;;  %v4266_v46 = vpop.f32.mrf.mxu1 }
 0x3df   : > { %2299 = vrot.lane.b32.xlu1 %v9657_v44, %s5774_s20  ;;  %3040 = vrot.lane.b32.xlu0 %v9739_v51, %s5773_s19 }
 0x3e0   : > { %v1582_v18 = vpop.permute.xlu2 %1581  ;;  %v3798_v43 = vld [vmem:[#allocation2 + $0x348] sm:$0xff] }
 0x3e1   : > { %1742 = vst.msk [vmem:[#allocation2 + $0x540] sm:$0xff] %vm1685_vm5, %v1582_v18  ;;  %v2032_v20 = vpop.permute.xlu1 %2031  ;;  %v3029_v38 = vpop.permute.xlu0 %3028 }
 0x3e2   : > { %2196 = vst.msk [vmem:[#allocation2 + $0x4e0] sm:$0xff] %vm2143_vm6, %v2032_v20  ;;  %4286 = vmatmul.f32.gmra.mxu1 %v3798_v43  ;;  %v3796_v31 = vld [vmem:[#allocation2 + $0x338] sm:$0xff]  ;;  %v4267_v43 = vadd.f32 %v8468_v24, %v4266_v46 }
 0x3e3   : > { %3209 = vst.msk [vmem:[#allocation2 + $0x350] sm:$0xff] %vm2143_vm6, %v3029_v38  ;;  %4516 = vmatmul.f32.gmra.mxu2 %v3796_v31 }
 0x3e6   : > { %3338 = vrot.lane.b32.xlu2 %v8340_v7, %s5774_s20 }
 0x3e7   : > { %v4496_v44 = vpop.f32.mrf.mxu2  ;;  %3336 = vrot.lane.b32.xlu1 %v8285_v4, %s5774_s20  ;;  %2751 = vrot.lane.b32.xlu0 %v9740_v36, %s5772_s17  ;;  %v9742_v4 = vld [vmem:[#allocation74_spill] sm:$0xff] }
 0x3e8   : > { %v4497_v33 = vadd.f32 %v4496_v44, %v4264_v23  ;;  %v2040_v13 = vpop.permute.xlu2 %2039 }
 0x3e9   : > { %2200 = vst.msk [vmem:[#allocation2 + $0x540] sm:$0xff] %vm2143_vm6, %v2040_v13  ;;  %v3325_v17 = vpop.permute.xlu1 %3324  ;;  %v1578_v6 = vpop.permute.xlu0 %1577 }
 0x3ea   : > { %v4730_v37 = vadd.f32 %v9741_v57, %v4497_v33  ;;  %3505 = vst.msk [vmem:[#allocation2 + $0x350] sm:$0xff] %vm2435_vm7, %v3325_v17  ;;  %v4269_v13 = vpop.f32.mrf.mxu1 }
 0x3eb   : > { %1740 = vst.msk [vmem:[#allocation2 + $0x510] sm:$0xff] %vm1685_vm5, %v1578_v6  ;;  %v4270_v57 = vadd.f32 %v8468_v24, %v4269_v13  ;;  %v9747_v13 = vld [vmem:[#allocation90_spill] sm:$0xff] }
 0x3ec   : > { %v4891_v7 = vmax.f32 %v4730_v37, 0.0 }
 0x3ee   : > { %4964 = vst.msk [vmem:[#allocation3 + $0xd8] sm:$0xff] %vm4936_vm8, %v4891_v7  ;;  %3044 = vrot.lane.b32.xlu2 %v9742_v4, %s5773_s19  ;;  %v9746_v7 = vld [vmem:[#allocation88_spill] sm:$0xff] }
 0x3ef   : > { %3042 = vrot.lane.b32.xlu1 %v9743_v21, %s5773_s19  ;;  %2303 = vrot.lane.b32.xlu0 %v9735_v41, %s5774_s20  ;;  %v9744_v41 = vld [vmem:[#allocation86_spill] sm:$0xff] }
 0x3f0   : > { %v3327_v9 = vpop.permute.xlu2 %3326 }
 0x3f1   : > { %v3031_v30 = vpop.permute.xlu1 %3030  ;;  %v3799_v55 = vld [vmem:[#allocation2 + $0x350] sm:$0xff]  ;;  %v2036_v18 = vpop.permute.xlu0 %2035 }
 0x3f2   : > { %4519 = vmatmul.f32.gmra.mxu2 %v3799_v55  ;;  %2198 = vst.msk [vmem:[#allocation2 + $0x510] sm:$0xff] %vm2143_vm6, %v2036_v18 }
 0x3f5   : > { %v4499_v20 = vpop.f32.mrf.mxu2  ;;  %v5035_v55 = vld [vmem:[#allocation3 + $0xd0] ss:$2 sm:$0xff]  ;;  %v5107_v18 = vld [vmem:[#allocation3 + $0xd1] ss:$2 sm:$0xff] }
 0x3f6   : > { %v4500_v38 = vadd.f32 %v4499_v20, %v4267_v43  ;;  %2755 = vrot.lane.b32.xlu2 %v7861_v2, %s5772_s17  ;;  %v9745_v2 = vld [vmem:[#allocation76_spill] sm:$0xff] }
 0x3f7   : > { %2753 = vrot.lane.b32.xlu1 %v9688_v14, %s5772_s17  ;;  %3340 = vrot.lane.b32.xlu0 %v8377_v40, %s5774_s20 }
 0x3f8   : > { %v4733_v31 = vadd.f32 %v9744_v41, %v4500_v38  ;;  %v3033_v8 = vpop.permute.xlu2 %3032  ;;  %v5165_v41 = vmax.f32 %v5035_v55, %v5107_v18 }
 0x3f9   : > { %v1580_v23 = vpop.permute.xlu1 %1579  ;;  %v2740_v36 = vpop.permute.xlu0 %2739 }
 0x3fa   : > { %v4892_v44 = vmax.f32 %v4733_v31, 0.0  ;;  %1741 = vst.msk [vmem:[#allocation2 + $0x528] sm:$0xff] %vm1685_vm5, %v1580_v23 }
 0x3fb   : > { %2919 = vst.msk [vmem:[#allocation2 + $0x368] sm:$0xff] %vm1685_vm5, %v2740_v36 }
 0x3fc   : > { %4965 = vst.msk [vmem:[#allocation3 + $0xe0] sm:$0xff] %vm4936_vm8, %v4892_v44  ;;  %v5033_v44 = vld [vmem:[#allocation3 + $0xc0] ss:$2 sm:$0xff] }
 0x3fd   : > { %3210 = vst.msk [vmem:[#allocation2 + $0x368] sm:$0xff] %vm2143_vm6, %v3031_v30 }
 0x3fe   : > { %3506 = vst.msk [vmem:[#allocation2 + $0x368] sm:$0xff] %vm2435_vm7, %v3327_v9  ;;  %2307 = vrot.lane.b32.xlu2 %v9739_v51, %s5774_s20 }
 0x3ff   : > { %2305 = vrot.lane.b32.xlu1 %v9734_v10, %s5774_s20  ;;  %3046 = vrot.lane.b32.xlu0 %v9745_v2, %s5773_s19 }
 0x400   : > { %v1588_v40 = vpop.permute.xlu2 %1587 }
 0x401   : > { %1745 = vst.msk [vmem:[#allocation2 + $0x588] sm:$0xff] %vm1685_vm5, %v1588_v40  ;;  %v2038_v14 = vpop.permute.xlu1 %2037  ;;  %v2292_v33 = vpop.permute.xlu0 %2291 }
 0x402   : > { %2199 = vst.msk [vmem:[#allocation2 + $0x528] sm:$0xff] %vm2143_vm6, %v2038_v14  ;;  %v5225_v14 = vrot.slane %v5165_v41, 4 }
 0x403   : > { %2472 = vst.msk [vmem:[#allocation2 + $0x360] sm:$0xff] %vm2435_vm7, %v2292_v33 }
 0x405   : > { %v3802_v17 = vld [vmem:[#allocation2 + $0x368] sm:$0xff] }
 0x406   : > { %4522 = vmatmul.f32.gmra.mxu2 %v3802_v17  ;;  %3344 = vrot.lane.b32.xlu2 %v8444_v34, %s5774_s20 }
 0x407   : > { %v4502_v10 = vpop.f32.mrf.mxu2  ;;  %3342 = vrot.lane.b32.xlu1 %v8405_v53, %s5774_s20  ;;  %2757 = vrot.lane.b32.xlu0 %v9691_v58, %s5772_s17  ;;  %v4272_v58 = vpop.f32.mrf.mxu1 }
 0x408   : > { %v4503_v51 = vadd.f32 %v4502_v10, %v4270_v57  ;;  %v2046_v37 = vpop.permute.xlu2 %2045  ;;  %v4273_v38 = vadd.f32 %v8468_v24, %v4272_v58 }
 0x409   : > { %2203 = vst.msk [vmem:[#allocation2 + $0x588] sm:$0xff] %vm2143_vm6, %v2046_v37  ;;  %v2742_v6 = vpop.permute.xlu1 %2741  ;;  %v1584_v46 = vpop.permute.xlu0 %1583 }
 0x40a   : > { %v4736_v9 = vadd.f32 %v9746_v7, %v4503_v51  ;;  %2920 = vst.msk [vmem:[#allocation2 + $0x380] sm:$0xff] %vm1685_vm5, %v2742_v6  ;;  %v3801_v30 = vld [vmem:[#allocation2 + $0x360] sm:$0xff] }
 0x40b   : > { %3211 = vst.msk [vmem:[#allocation2 + $0x380] sm:$0xff] %vm2143_vm6, %v3033_v8  ;;  %4289 = vmatmul.f32.gmra.mxu1 %v3801_v30 }
 0x40c   : > { %v4893_v34 = vmax.f32 %v4736_v9, 0.0  ;;  %1743 = vst.msk [vmem:[#allocation2 + $0x558] sm:$0xff] %vm1685_vm5, %v1584_v46 }
 0x40e   : > { %4966 = vst.msk [vmem:[#allocation3 + $0xe8] sm:$0xff] %vm4936_vm8, %v4893_v34  ;;  %3050 = vrot.lane.b32.xlu2 %v8020_v27, %s5773_s19 }
 0x40f   : > { %3048 = vrot.lane.b32.xlu1 %v7992_v63, %s5773_s19  ;;  %2309 = vrot.lane.b32.xlu0 %v9743_v21, %s5774_s20  ;;  %v5105_v21 = vld [vmem:[#allocation3 + $0xc1] ss:$2 sm:$0xff]  ;;  %v4275_v58 = vpop.f32.mrf.mxu1 }
 0x410   : > { %v2744_v53 = vpop.permute.xlu2 %2743  ;;  %v5164_v10 = vmax.f32 %v5033_v44, %v5105_v21 }
 0x411   : > { %2921 = vst.msk [vmem:[#allocation2 + $0x398] sm:$0xff] %vm1685_vm5, %v2744_v53  ;;  %v2294_v43 = vpop.permute.xlu1 %2293  ;;  %v2042_v20 = vpop.permute.xlu0 %2041 }
 0x412   : > { %2473 = vst.msk [vmem:[#allocation2 + $0x378] sm:$0xff] %vm2435_vm7, %v2294_v43 }
 0x413   : > { %2201 = vst.msk [vmem:[#allocation2 + $0x558] sm:$0xff] %vm2143_vm6, %v2042_v20  ;;  %v9748_v20 = vld [vmem:[#allocation93_spill] sm:$0xff] }
 0x415   : > { %v5037_v31 = vld [vmem:[#allocation3 + $0xe0] ss:$2 sm:$0xff]  ;;  %v5109_v8 = vld [vmem:[#allocation3 + $0xe1] ss:$2 sm:$0xff]  ;;  %v4505_v23 = vpop.f32.mrf.mxu2 }
 0x416   : > { %v5166_v36 = vmax.f32 %v5037_v31, %v5109_v8  ;;  %v4506_v40 = vadd.f32 %v4505_v23, %v4273_v38  ;;  %2761 = vrot.lane.b32.xlu2 %v9698_v29, %s5772_s17 }
 0x417   : > { %2759 = vrot.lane.b32.xlu1 %v9699_v28, %s5772_s17  ;;  %3346 = vrot.lane.b32.xlu0 %v8466_v62, %s5774_s20 }
 0x418   : > { %v5226_v33 = vrot.slane %v5166_v36, 4  ;;  %v4739_v17 = vadd.f32 %v9747_v13, %v4506_v40  ;;  %v2296_v57 = vpop.permute.xlu2 %2295 }
 0x419   : > { %2474 = vst.msk [vmem:[#allocation2 + $0x390] sm:$0xff] %vm2435_vm7, %v2296_v57  ;;  %v1586_v51 = vpop.permute.xlu1 %1585  ;;  %v3804_v37 = vld [vmem:[#allocation2 + $0x378] sm:$0xff]  ;;  %v3329_v28 = vpop.permute.xlu0 %3328  ;;  %v8932_v57 = vld [vmem:[#allocation8] ss:$0 sm:$0xff] }
 0x41a   : > { %v5227_v29 = vsel %vm5212_vm9, %v5225_v14, %v5226_v33  ;;  %v5282_v6 = vmax.f32 %v5165_v41, %v5226_v33  ;;  %v4894_v7 = vmax.f32 %v4739_v17, 0.0  ;;  %1744 = vst.msk [vmem:[#allocation2 + $0x570] sm:$0xff] %vm1685_vm5, %v1586_v51  ;;  %4292 = vmatmul.f32.gmra.mxu1 %v3804_v37 }
 0x41b   : > { %v5281_v62 = vmax.f32 %v5164_v10, %v5227_v29  ;;  %3507 = vst.msk [vmem:[#allocation2 + $0x380] sm:$0xff] %vm2435_vm7, %v3329_v28 }
 0x41c   : > { %5307 = vst.msk [vmem:[%s7717_s14 + $0x48] sm:$0xf] %vm5298_vm10, %v5282_v6 }
 0x41d   : > { %5306 = vst.msk [vmem:[%s7717_s14 + $0x40] sm:$0xff] %vm4936_vm8, %v5281_v62 }
 0x41e   : > { %4967 = vst.msk [vmem:[#allocation3 + $0xf0] sm:$0xff] %vm4936_vm8, %v4894_v7  ;;  %2313 = vrot.lane.b32.xlu2 %v9745_v2, %s5774_s20  ;;  %v4276_v2 = vadd.f32 %v8468_v24, %v4275_v58 }
 0x41f   : > { %2311 = vrot.lane.b32.xlu1 %v9742_v4, %s5774_s20  ;;  %3052 = vrot.lane.b32.xlu0 %v9693_v50, %s5773_s19 }
 0x420   : > { %v3333_v9 = vpop.permute.xlu2 %3332  ;;  %v3807_v46 = vld [vmem:[#allocation2 + $0x390] sm:$0xff] }
 0x421   : > { %v2044_v30 = vpop.permute.xlu1 %2043  ;;  %v3035_v34 = vpop.permute.xlu0 %3034 }
 0x422   : > { %2202 = vst.msk [vmem:[#allocation2 + $0x570] sm:$0xff] %vm2143_vm6, %v2044_v30  ;;  %4295 = vmatmul.f32.gmra.mxu1 %v3807_v46  ;;  %v3805_v53 = vld [vmem:[#allocation2 + $0x380] sm:$0xff] }
 0x423   : > { %3212 = vst.msk [vmem:[#allocation2 + $0x398] sm:$0xff] %vm2143_vm6, %v3035_v34  ;;  %4525 = vmatmul.f32.gmra.mxu2 %v3805_v53 }
 0x426   : > { %3350 = vrot.lane.b32.xlu2 %v8519_v16, %s5774_s20  ;;  %v4278_v16 = vpop.f32.mrf.mxu1 }
 0x427   : > { %v4508_v4 = vpop.f32.mrf.mxu2  ;;  %3348 = vrot.lane.b32.xlu1 %v8477_v32, %s5774_s20  ;;  %2763 = vrot.lane.b32.xlu0 %v9704_v54, %s5772_s17  ;;  %v4279_v44 = vadd.f32 %v8468_v24, %v4278_v16 }
 0x428   : > { %v4509_v55 = vadd.f32 %v4508_v4, %v4276_v2  ;;  %v3039_v18 = vpop.permute.xlu2 %3038 }
 0x429   : > { %v3331_v43 = vpop.permute.xlu1 %3330  ;;  %v1590_v41 = vpop.permute.xlu0 %1589 }
 0x42a   : > { %v4742_v38 = vadd.f32 %v9748_v20, %v4509_v55  ;;  %3508 = vst.msk [vmem:[#allocation2 + $0x398] sm:$0xff] %vm2435_vm7, %v3331_v43 }
 0x42b   : > { %1746 = vst.msk [vmem:[#allocation2 + $0x5a0] sm:$0xff] %vm1685_vm5, %v1590_v41 }
 0x42c   : > { %v4895_v31 = vmax.f32 %v4742_v38, 0.0  ;;  %v9752_v38 = vld [vmem:[#allocation73_spill] sm:$0xff] }
 0x42e   : > { %4968 = vst.msk [vmem:[#allocation3 + $0xf8] sm:$0xff] %vm4936_vm8, %v4895_v31  ;;  %3056 = vrot.lane.b32.xlu2 %v8134_v35, %s5773_s19 }
 0x42f   : > { %3054 = vrot.lane.b32.xlu1 %v8109_v56, %s5773_s19  ;;  %2315 = vrot.lane.b32.xlu0 %v7992_v63, %s5774_s20  ;;  %v9749_v63 = vld [vmem:[#allocation94_spill] sm:$0xff] }
 0x430   : > { %v2750_v32 = vpop.permute.xlu2 %2749 }
 0x431   : > { %2924 = vst.msk [vmem:[#allocation2 + $0x3e0] sm:$0xff] %vm1685_vm5, %v2750_v32  ;;  %v1592_v54 = vpop.permute.xlu1 %1591  ;;  %v3808_v8 = vld [vmem:[#allocation2 + $0x398] sm:$0xff]  ;;  %v2048_v23 = vpop.permute.xlu0 %2047 }
 0x432   : > { %1747 = vst.msk [vmem:[#allocation2 + $0x5b8] sm:$0xff] %vm1685_vm5, %v1592_v54  ;;  %4528 = vmatmul.f32.gmra.mxu2 %v3808_v8 }
 0x433   : > { %2204 = vst.msk [vmem:[#allocation2 + $0x5a0] sm:$0xff] %vm2143_vm6, %v2048_v23 }
 0x435   : > { %v4511_v21 = vpop.f32.mrf.mxu2 }
 0x436   : > { %v4512_v36 = vadd.f32 %v4511_v21, %v4279_v44  ;;  %2767 = vrot.lane.b32.xlu2 %v8095_v45, %s5772_s17  ;;  %v9750_v45 = vld [vmem:[#allocation61_spill] sm:$0xff] }
 0x437   : > { %2765 = vrot.lane.b32.xlu1 %v9707_v48, %s5772_s17  ;;  %3352 = vrot.lane.b32.xlu0 %v8540_v22, %s5774_s20 }
 0x438   : > { %v4745_v40 = vadd.f32 %v9749_v63, %v4512_v36  ;;  %v2302_v14 = vpop.permute.xlu2 %2301 }
 0x439   : > { %2477 = vst.msk [vmem:[#allocation2 + $0x3d8] sm:$0xff] %vm2435_vm7, %v2302_v14  ;;  %v2050_v33 = vpop.permute.xlu1 %2049  ;;  %v2746_v24 = vpop.permute.xlu0 %2745 }
 0x43a   : > { %v4896_v13 = vmax.f32 %v4745_v40, 0.0  ;;  %2205 = vst.msk [vmem:[#allocation2 + $0x5b8] sm:$0xff] %vm2143_vm6, %v2050_v33  ;;  %v9755_v33 = vld [vmem:[#allocation89_spill] sm:$0xff] }
 0x43b   : > { %2922 = vst.msk [vmem:[#allocation2 + $0x3b0] sm:$0xff] %vm1685_vm5, %v2746_v24 }
 0x43c   : > { %4969 = vst.msk [vmem:[#allocation3 + $0x100] sm:$0xff] %vm4936_vm8, %v4896_v13  ;;  %v9757_v13 = vld [vmem:[#allocation75_spill] sm:$0xff] }
 0x43e   : > { %2319 = vrot.lane.b32.xlu2 %v9693_v50, %s5774_s20 }
 0x43f   : > { %2317 = vrot.lane.b32.xlu1 %v8020_v27, %s5774_s20  ;;  %3058 = vrot.lane.b32.xlu0 %v9750_v45, %s5773_s19 }
 0x440   : > { %v3339_v22 = vpop.permute.xlu2 %3338  ;;  %v3816_v55 = vld [vmem:[#allocation2 + $0x3d8] sm:$0xff] }
 0x441   : > { %v3037_v48 = vpop.permute.xlu1 %3036  ;;  %v2298_v17 = vpop.permute.xlu0 %2297 }
 0x442   : > { %3213 = vst.msk [vmem:[#allocation2 + $0x3b0] sm:$0xff] %vm2143_vm6, %v3037_v48 }
 0x443   : > { %3509 = vst.msk [vmem:[#allocation2 + $0x3b0] sm:$0xff] %vm2435_vm7, %v3333_v9 }
 0x444   : > { %2475 = vst.msk [vmem:[#allocation2 + $0x3a8] sm:$0xff] %vm2435_vm7, %v2298_v17 }
 0x446   : > { %3356 = vrot.lane.b32.xlu2 %v8587_v61, %s5774_s20 }
 0x447   : > { %3354 = vrot.lane.b32.xlu1 %v8548_v60, %s5774_s20  ;;  %2769 = vrot.lane.b32.xlu0 %v8148_v59, %s5772_s17  ;;  %v9751_v59 = vld [vmem:[#allocation71_spill] sm:$0xff] }
 0x448   : > { %v4281_v27 = vpop.f32.mrf.mxu1  ;;  %v8930_v50 = vpop.permute.xlu2 %3044 }
 0x449   : > { %v4282_v10 = vadd.f32 %v8932_v57, %v4281_v27  ;;  %v2748_v51 = vpop.permute.xlu1 %2747  ;;  %v3335_v37 = vpop.permute.xlu0 %3334 }
 0x44a   : > { %2923 = vst.msk [vmem:[#allocation2 + $0x3c8] sm:$0xff] %vm1685_vm5, %v2748_v51  ;;  %v3811_v29 = vld [vmem:[#allocation2 + $0x3b0] sm:$0xff]  ;;  %v4514_v6 = vpop.f32.mrf.mxu2 }
 0x44b   : > { %3214 = vst.msk [vmem:[#allocation2 + $0x3c8] sm:$0xff] %vm2143_vm6, %v3039_v18  ;;  %v3810_v61 = vld [vmem:[#allocation2 + $0x3a8] sm:$0xff]  ;;  %4531 = vmatmul.f32.gmra.mxu2 %v3811_v29  ;;  %v4515_v60 = vadd.f32 %v4514_v6, %v4282_v10  ;;  %v9758_v10 = vld [vmem:[#allocation11_spill] sm:$0xff] }
 0x44c   : > { %3510 = vst.msk [vmem:[#allocation2 + $0x3c8] sm:$0xff] %vm2435_vm7, %v3335_v37  ;;  %4298 = vmatmul.f32.gmra.mxu1 %v3810_v61 }
 0x44d   : > { %v4748_v7 = vadd.f32 %v9751_v59, %v4515_v60 }
 0x44e   : > { %3062 = vrot.lane.b32.xlu2 %v8245_v49, %s5773_s19 }
 0x44f   : > { %3060 = vrot.lane.b32.xlu1 %v8219_v11, %s5773_s19  ;;  %2321 = vrot.lane.b32.xlu0 %v8109_v56, %s5774_s20  ;;  %v4897_v28 = vmax.f32 %v4748_v7, 0.0  ;;  %v5111_v7 = vld [vmem:[#allocation3 + $0xf1] ss:$2 sm:$0xff] }
 0x450   : > { %v2756_v62 = vpop.permute.xlu2 %2755 }
 0x451   : > { %2927 = vst.msk [vmem:[#allocation2 + $0x428] sm:$0xff] %vm1685_vm5, %v2756_v62  ;;  %v2300_v9 = vpop.permute.xlu1 %2299  ;;  %v3041_v46 = vpop.permute.xlu0 %3040 }
 0x452   : > { %4970 = vst.msk [vmem:[#allocation3 + $0x108] sm:$0xff] %vm4936_vm8, %v4897_v28 }
 0x453   : > { %2476 = vst.msk [vmem:[#allocation2 + $0x3c0] sm:$0xff] %vm2435_vm7, %v2300_v9  ;;  %v3814_v30 = vld [vmem:[#allocation2 + $0x3c8] sm:$0xff] }
 0x454   : > { %3215 = vst.msk [vmem:[#allocation2 + $0x3e0] sm:$0xff] %vm2143_vm6, %v3041_v46  ;;  %4534 = vmatmul.f32.gmra.mxu2 %v3814_v30  ;;  %v9759_v46 = vld [vmem:[#allocation20_spill] sm:$0xff] }
 0x456   : > { %2773 = vrot.lane.b32.xlu2 %v8206_v0, %s5772_s17 }
 0x457   : > { %2771 = vrot.lane.b32.xlu1 %v8180_v42, %s5772_s17  ;;  %3358 = vrot.lane.b32.xlu0 %v8607_v47, %s5774_s20  ;;  %v4284_v2 = vpop.f32.mrf.mxu1 }
 0x458   : > { %v2308_v56 = vpop.permute.xlu2 %2307 }
 0x459   : > { %2480 = vst.msk [vmem:[#allocation2 + $0x420] sm:$0xff] %vm2435_vm7, %v2308_v56  ;;  %v3337_v34 = vpop.permute.xlu1 %3336  ;;  %v2752_v53 = vpop.permute.xlu0 %2751  ;;  %v9760_v56 = vld [vmem:[#allocation13_spill] sm:$0xff] }
 0x45a   : > { %3511 = vst.msk [vmem:[#allocation2 + $0x3e0] sm:$0xff] %vm2435_vm7, %v3337_v34  ;;  %v3813_v58 = vld [vmem:[#allocation2 + $0x3c0] sm:$0xff] }
 0x45b   : > { %2925 = vst.msk [vmem:[#allocation2 + $0x3f8] sm:$0xff] %vm1685_vm5, %v2752_v53  ;;  %4301 = vmatmul.f32.gmra.mxu1 %v3813_v58 }
 0x45e   : > { %2325 = vrot.lane.b32.xlu2 %v9750_v45, %s5774_s20 }
 0x45f   : > { %2323 = vrot.lane.b32.xlu1 %v8134_v35, %s5774_s20  ;;  %3064 = vrot.lane.b32.xlu0 %v8277_v12, %s5773_s19  ;;  %v4285_v35 = vadd.f32 %v8932_v57, %v4284_v2  ;;  %v4287_v23 = vpop.f32.mrf.mxu1 }
 0x460   : > { %v8964_v42 = vpop.permute.xlu2 %3344  ;;  %v4288_v63 = vadd.f32 %v8932_v57, %v4287_v23  ;;  %v3825_v29 = vld [vmem:[#allocation2 + $0x420] sm:$0xff] }
 0x461   : > { %v3043_v0 = vpop.permute.xlu1 %3042  ;;  %v3817_v47 = vld [vmem:[#allocation2 + $0x3e0] sm:$0xff]  ;;  %v2304_v4 = vpop.permute.xlu0 %2303 }
 0x462   : > { %3216 = vst.msk [vmem:[#allocation2 + $0x3f8] sm:$0xff] %vm2143_vm6, %v3043_v0  ;;  %4537 = vmatmul.f32.gmra.mxu2 %v3817_v47 }
 0x463   : > { %3512 = vst.msk [vmem:[#allocation2 + $0x3f8] sm:$0xff] %vm2435_vm7, %v3339_v22  ;;  %4304 = vmatmul.f32.gmra.mxu1 %v3816_v55 }
 0x464   : > { %2478 = vst.msk [vmem:[#allocation2 + $0x3f0] sm:$0xff] %vm2435_vm7, %v2304_v4 }
 0x466   : > { %v4517_v18 = vpop.f32.mrf.mxu2  ;;  %3362 = vrot.lane.b32.xlu2 %v8656_v15, %s5774_s20 }
 0x467   : > { %v4518_v43 = vadd.f32 %v4517_v18, %v4285_v35  ;;  %3360 = vrot.lane.b32.xlu1 %v8626_v26, %s5774_s20  ;;  %2775 = vrot.lane.b32.xlu0 %v8261_v39, %s5772_s17  ;;  %v9753_v39 = vld [vmem:[#allocation92_spill] sm:$0xff]  ;;  %v9754_v26 = vld [vmem:[#allocation91_spill] sm:$0xff] }
 0x468   : > { %v8976_v20 = vpop.permute.xlu2 %3050 }
 0x469   : > { %v4751_v41 = vadd.f32 %v9752_v38, %v4518_v43  ;;  %v2754_v31 = vpop.permute.xlu1 %2753  ;;  %v3341_v32 = vpop.permute.xlu0 %3340 }
 0x46a   : > { %2926 = vst.msk [vmem:[#allocation2 + $0x410] sm:$0xff] %vm1685_vm5, %v2754_v31  ;;  %v3820_v16 = vld [vmem:[#allocation2 + $0x3f8] sm:$0xff] }
 0x46b   : > { %v4898_v54 = vmax.f32 %v4751_v41, 0.0  ;;  %3217 = vst.msk [vmem:[#allocation2 + $0x410] sm:$0xff] %vm2143_vm6, %v8930_v50  ;;  %v3819_v15 = vld [vmem:[#allocation2 + $0x3f0] sm:$0xff]  ;;  %4540 = vmatmul.f32.gmra.mxu2 %v3820_v16  ;;  %v5113_v50 = vld [vmem:[#allocation3 + $0x101] ss:$2 sm:$0xff] }
 0x46c   : > { %3513 = vst.msk [vmem:[#allocation2 + $0x410] sm:$0xff] %vm2435_vm7, %v3341_v32  ;;  %4307 = vmatmul.f32.gmra.mxu1 %v3819_v15  ;;  %v9762_v41 = vld [vmem:[#allocation18_spill] sm:$0xff]  ;;  %v9763_v32 = vld [vmem:[#allocation15_spill] sm:$0xff] }
 0x46d   : > { %4971 = vst.msk [vmem:[#allocation3 + $0x110] sm:$0xff] %vm4936_vm8, %v4898_v54 }
 0x46e   : > { %3068 = vrot.lane.b32.xlu2 %v9753_v39, %s5773_s19 }
 0x46f   : > { %3066 = vrot.lane.b32.xlu1 %v9754_v26, %s5773_s19  ;;  %2327 = vrot.lane.b32.xlu0 %v8219_v11, %s5774_s20  ;;  %v9756_v11 = vld [vmem:[#allocation87_spill] sm:$0xff] }
 0x470   : > { %v2762_v8 = vpop.permute.xlu2 %2761 }
 0x471   : > { %2930 = vst.msk [vmem:[#allocation2 + $0x470] sm:$0xff] %vm1685_vm5, %v2762_v8  ;;  %v2306_v44 = vpop.permute.xlu1 %2305  ;;  %v3047_v21 = vpop.permute.xlu0 %3046  ;;  %v9764_v8 = vld [vmem:[#allocation14_spill] sm:$0xff] }
 0x472   : > { %2479 = vst.msk [vmem:[#allocation2 + $0x408] sm:$0xff] %vm2435_vm7, %v2306_v44 }
 0x473   : > { %3218 = vst.msk [vmem:[#allocation2 + $0x428] sm:$0xff] %vm2143_vm6, %v3047_v21  ;;  %v3823_v36 = vld [vmem:[#allocation2 + $0x410] sm:$0xff] }
 0x474   : > { %4543 = vmatmul.f32.gmra.mxu2 %v3823_v36 }
 0x475   : > { %v4520_v40 = vpop.f32.mrf.mxu2 }
 0x476   : > { %v4521_v14 = vadd.f32 %v4520_v40, %v4288_v63  ;;  %2779 = vrot.lane.b32.xlu2 %v9755_v33, %s5772_s17 }
 0x477   : > { %2777 = vrot.lane.b32.xlu1 %v9756_v11, %s5772_s17  ;;  %3364 = vrot.lane.b32.xlu0 %v8401_v52, %s5774_s20  ;;  %v5041_v52 = vld [vmem:[#allocation3 + $0x100] ss:$2 sm:$0xff] }
 0x478   : > { %v4754_v24 = vadd.f32 %v9757_v13, %v4521_v14  ;;  %v2314_v45 = vpop.permute.xlu2 %2313  ;;  %v5168_v61 = vmax.f32 %v5041_v52, %v5113_v50  ;;  %v9770_v52 = vld [vmem:[#allocation52_spill] sm:$0xff] }
 0x479   : > { %2483 = vst.msk [vmem:[#allocation2 + $0x468] sm:$0xff] %vm2435_vm7, %v2314_v45  ;;  %v3343_v22 = vpop.permute.xlu1 %3342  ;;  %v3822_v48 = vld [vmem:[#allocation2 + $0x408] sm:$0xff]  ;;  %v2758_v27 = vpop.permute.xlu0 %2757 }
 0x47a   : > { %v4899_v17 = vmax.f32 %v4754_v24, 0.0  ;;  %3514 = vst.msk [vmem:[#allocation2 + $0x428] sm:$0xff] %vm2435_vm7, %v3343_v22  ;;  %4310 = vmatmul.f32.gmra.mxu1 %v3822_v48  ;;  %v5228_v62 = vrot.slane %v5168_v61, 4  ;;  %v9767_v45 = vld [vmem:[#allocation37_spill] sm:$0xff] }
 0x47b   : > { %2928 = vst.msk [vmem:[#allocation2 + $0x440] sm:$0xff] %vm1685_vm5, %v2758_v27  ;;  %v9768_v48 = vld [vmem:[#allocation29_spill] sm:$0xff] }
 0x47c   : > { %4972 = vst.msk [vmem:[#allocation3 + $0x118] sm:$0xff] %vm4936_vm8, %v4899_v17  ;;  %v9769_v17 = vld [vmem:[#allocation21_spill] sm:$0xff] }
 0x47e   : > { %2331 = vrot.lane.b32.xlu2 %v8277_v12, %s5774_s20 }
 0x47f   : > { %2329 = vrot.lane.b32.xlu1 %v8245_v49, %s5774_s20  ;;  %3070 = vrot.lane.b32.xlu0 %v9758_v10, %s5773_s19  ;;  %v5039_v49 = vld [vmem:[#allocation3 + $0xf0] ss:$2 sm:$0xff] }
 0x480   : > { %v9011_v51 = vpop.permute.xlu2 %3350  ;;  %v5167_v30 = vmax.f32 %v5039_v49, %v5111_v7  ;;  %v3834_v13 = vld [vmem:[#allocation2 + $0x468] sm:$0xff] }
 0x481   : > { %v3049_v37 = vpop.permute.xlu1 %3048  ;;  %v3826_v6 = vld [vmem:[#allocation2 + $0x428] sm:$0xff]  ;;  %v2310_v60 = vpop.permute.xlu0 %2309 }
 0x482   : > { %3219 = vst.msk [vmem:[#allocation2 + $0x440] sm:$0xff] %vm2143_vm6, %v3049_v37  ;;  %4313 = vmatmul.f32.gmra.mxu1 %v3825_v29  ;;  %4546 = vmatmul.f32.gmra.mxu2 %v3826_v6 }
 0x483   : > { %v5043_v12 = vld [vmem:[#allocation3 + $0x110] ss:$2 sm:$0xff]  ;;  %v5115_v59 = vld [vmem:[#allocation3 + $0x111] ss:$2 sm:$0xff]  ;;  %3515 = vst.msk [vmem:[#allocation2 + $0x440] sm:$0xff] %vm2435_vm7, %v8964_v42 }
 0x484   : > { %v5169_v28 = vmax.f32 %v5043_v12, %v5115_v59  ;;  %2481 = vst.msk [vmem:[#allocation2 + $0x438] sm:$0xff] %vm2435_vm7, %v2310_v60  ;;  %v9772_v60 = vld [vmem:[#allocation34_spill] sm:$0xff] }
 0x486   : > { %v5229_v9 = vrot.slane %v5169_v28, 4  ;;  %3368 = vrot.lane.b32.xlu2 %v9759_v46, %s5774_s20 }
 0x487   : > { %3366 = vrot.lane.b32.xlu1 %v9760_v56, %s5774_s20  ;;  %2781 = vrot.lane.b32.xlu0 %v8368_v3, %s5772_s17  ;;  %v9761_v3 = vld [vmem:[#allocation84_spill] sm:$0xff]  ;;  %v9774_v56 = vld [vmem:[#allocation25_spill] sm:$0xff] }
 0x488   : > { %v5230_v34 = vsel %vm5212_vm9, %v5228_v62, %v5229_v9  ;;  %v5284_v53 = vmax.f32 %v5168_v61, %v5229_v9  ;;  %v4290_v58 = vpop.f32.mrf.mxu1  ;;  %v9024_v42 = vpop.permute.xlu2 %3056  ;;  %v9771_v61 = vld [vmem:[#allocation36_spill] sm:$0xff] }
 0x489   : > { %v5283_v0 = vmax.f32 %v5167_v30, %v5230_v34  ;;  %v4291_v47 = vadd.f32 %v8932_v57, %v4290_v58  ;;  %v2760_v2 = vpop.permute.xlu1 %2759  ;;  %v4523_v4 = vpop.f32.mrf.mxu2  ;;  %v9773_v30 = vld [vmem:[#allocation35_spill] sm:$0xff]  ;;  %v9775_v34 = vld [vmem:[#allocation38_spill] sm:$0xff] }
 0x48a   : > { %5309 = vst.msk [vmem:[%s7717_s14 + $0x58] sm:$0xf] %vm5298_vm10, %v5284_v53  ;;  %v3347_v55 = vpop.permute.xlu0 %3346  ;;  %v3829_v35 = vld [vmem:[#allocation2 + $0x440] sm:$0xff] }
 0x48b   : > { %5308 = vst.msk [vmem:[%s7717_s14 + $0x50] sm:$0xff] %vm4936_vm8, %v5283_v0  ;;  %v4524_v18 = vadd.f32 %v4523_v4, %v4291_v47  ;;  %v3828_v43 = vld [vmem:[#allocation2 + $0x438] sm:$0xff]  ;;  %4549 = vmatmul.f32.gmra.mxu2 %v3829_v35  ;;  %v9776_v53 = vld [vmem:[#allocation77_spill] sm:$0xff] }
 0x48c   : > { %2929 = vst.msk [vmem:[#allocation2 + $0x458] sm:$0xff] %vm1685_vm5, %v2760_v2  ;;  %4316 = vmatmul.f32.gmra.mxu1 %v3828_v43 }
 0x48d   : > { %v4757_v38 = vadd.f32 %v9761_v3, %v4524_v18  ;;  %3220 = vst.msk [vmem:[#allocation2 + $0x458] sm:$0xff] %vm2143_vm6, %v8976_v20 }
 0x48e   : > { %3516 = vst.msk [vmem:[#allocation2 + $0x458] sm:$0xff] %vm2435_vm7, %v3347_v55  ;;  %3074 = vrot.lane.b32.xlu2 %v9762_v41, %s5773_s19  ;;  %v9777_v55 = vld [vmem:[#allocation12_spill] sm:$0xff] }
 0x48f   : > { %v4900_v31 = vmax.f32 %v4757_v38, 0.0  ;;  %3072 = vrot.lane.b32.xlu1 %v9763_v32, %s5773_s19  ;;  %2333 = vrot.lane.b32.xlu0 %v9754_v26, %s5774_s20  ;;  %v9765_v26 = vld [vmem:[#allocation24_spill] sm:$0xff] }
 0x490   : > { %v2768_v16 = vpop.permute.xlu2 %2767 }
 0x491   : > { %4973 = vst.msk [vmem:[#allocation3 + $0x120] sm:$0xff] %vm4936_vm8, %v4900_v31  ;;  %v2312_v54 = vpop.permute.xlu1 %2311  ;;  %v9779_v31 = vld [vmem:[#allocation16_spill] sm:$0xff] }
 0x492   : > { %2933 = vst.msk [vmem:[#allocation2 + $0x4b8] sm:$0xff] %vm1685_vm5, %v2768_v16  ;;  %v3053_v15 = vpop.permute.xlu0 %3052 }
 0x493   : > { %2482 = vst.msk [vmem:[#allocation2 + $0x450] sm:$0xff] %vm2435_vm7, %v2312_v54 }
 0x494   : > { %3221 = vst.msk [vmem:[#allocation2 + $0x470] sm:$0xff] %vm2143_vm6, %v3053_v15 }
 0x495   : > { %v3832_v20 = vld [vmem:[#allocation2 + $0x458] sm:$0xff] }
 0x496   : > { %4552 = vmatmul.f32.gmra.mxu2 %v3832_v20  ;;  %2785 = vrot.lane.b32.xlu2 %v9764_v8, %s5772_s17 }
 0x497   : > { %2783 = vrot.lane.b32.xlu1 %v8373_v25, %s5772_s17  ;;  %3370 = vrot.lane.b32.xlu0 %v9765_v26, %s5774_s20  ;;  %v9766_v25 = vld [vmem:[#allocation22_spill] sm:$0xff]  ;;  %v4293_v33 = vpop.f32.mrf.mxu1 }
 0x498   : > { %v2320_v23 = vpop.permute.xlu2 %2319 }
 0x499   : > { %2486 = vst.msk [vmem:[#allocation2 + $0x4b0] sm:$0xff] %vm2435_vm7, %v2320_v23  ;;  %v3349_v44 = vpop.permute.xlu1 %3348 }
 0x49a   : > { %3517 = vst.msk [vmem:[#allocation2 + $0x470] sm:$0xff] %vm2435_vm7, %v3349_v44  ;;  %v2764_v21 = vpop.permute.xlu0 %2763  ;;  %v3831_v36 = vld [vmem:[#allocation2 + $0x450] sm:$0xff] }
 0x49b   : > { %2931 = vst.msk [vmem:[#allocation2 + $0x488] sm:$0xff] %vm1685_vm5, %v2764_v21  ;;  %4319 = vmatmul.f32.gmra.mxu1 %v3831_v36  ;;  %v9781_v21 = vld [vmem:[#allocation23_spill] sm:$0xff] }
 0x49e   : > { %2337 = vrot.lane.b32.xlu2 %v9758_v10, %s5774_s20 }
 0x49f   : > { %2335 = vrot.lane.b32.xlu1 %v9753_v39, %s5774_s20  ;;  %3076 = vrot.lane.b32.xlu0 %v9766_v25, %s5773_s19  ;;  %v4294_v39 = vadd.f32 %v8932_v57, %v4293_v33  ;;  %v4296_v59 = vpop.f32.mrf.mxu1 }
 0x4a0   : > { %v9061_v63 = vpop.permute.xlu2 %3356  ;;  %v4297_v62 = vadd.f32 %v8932_v57, %v4296_v59  ;;  %v3843_v43 = vld [vmem:[#allocation2 + $0x4b0] sm:$0xff] }
 0x4a1   : > { %v3055_v40 = vpop.permute.xlu1 %3054  ;;  %v3835_v14 = vld [vmem:[#allocation2 + $0x470] sm:$0xff] }
 0x4a2   : > { %3222 = vst.msk [vmem:[#allocation2 + $0x488] sm:$0xff] %vm2143_vm6, %v3055_v40  ;;  %v2316_v11 = vpop.permute.xlu0 %2315  ;;  %4555 = vmatmul.f32.gmra.mxu2 %v3835_v14  ;;  %v9783_v40 = vld [vmem:[#allocation80_spill] sm:$0xff] }
 0x4a3   : > { %3518 = vst.msk [vmem:[#allocation2 + $0x488] sm:$0xff] %vm2435_vm7, %v9011_v51  ;;  %4322 = vmatmul.f32.gmra.mxu1 %v3834_v13 }
 0x4a4   : > { %2484 = vst.msk [vmem:[#allocation2 + $0x480] sm:$0xff] %vm2435_vm7, %v2316_v11 }
 0x4a6   : > { %v4526_v24 = vpop.f32.mrf.mxu2  ;;  %3374 = vrot.lane.b32.xlu2 %v9767_v45, %s5774_s20  ;;  %v9785_v45 = vld [vmem:[#allocation40_spill] sm:$0xff] }
 0x4a7   : > { %v4527_v22 = vadd.f32 %v4526_v24, %v4294_v39  ;;  %3372 = vrot.lane.b32.xlu1 %v9768_v48, %s5774_s20  ;;  %2787 = vrot.lane.b32.xlu0 %v9769_v17, %s5772_s17  ;;  %v9784_v24 = vld [vmem:[#allocation17_spill] sm:$0xff] }
 0x4a8   : > { %v9074_v27 = vpop.permute.xlu2 %3062 }
 0x4a9   : > { %v4760_v50 = vadd.f32 %v9770_v52, %v4527_v22  ;;  %v2766_v10 = vpop.permute.xlu1 %2765  ;;  %v9786_v22 = vld [vmem:[#allocation32_spill] sm:$0xff] }
 0x4aa   : > { %2932 = vst.msk [vmem:[#allocation2 + $0x4a0] sm:$0xff] %vm1685_vm5, %v2766_v10  ;;  %v3353_v51 = vpop.permute.xlu0 %3352  ;;  %v3838_v37 = vld [vmem:[#allocation2 + $0x488] sm:$0xff] }
 0x4ab   : > { %v4901_v29 = vmax.f32 %v4760_v50, 0.0  ;;  %3223 = vst.msk [vmem:[#allocation2 + $0x4a0] sm:$0xff] %vm2143_vm6, %v9024_v42  ;;  %v3837_v6 = vld [vmem:[#allocation2 + $0x480] sm:$0xff]  ;;  %4558 = vmatmul.f32.gmra.mxu2 %v3838_v37 }
 0x4ac   : > { %3519 = vst.msk [vmem:[#allocation2 + $0x4a0] sm:$0xff] %vm2435_vm7, %v3353_v51  ;;  %4325 = vmatmul.f32.gmra.mxu1 %v3837_v6 }
 0x4ad   : > { %4974 = vst.msk [vmem:[#allocation3 + $0x128] sm:$0xff] %vm4936_vm8, %v4901_v29  ;;  %v9787_v29 = vld [vmem:[#allocation78_spill] sm:$0xff] }
 0x4ae   : > { %3080 = vrot.lane.b32.xlu2 %v9771_v61, %s5773_s19 }
 0x4af   : > { %3078 = vrot.lane.b32.xlu1 %v9772_v60, %s5773_s19  ;;  %2339 = vrot.lane.b32.xlu0 %v9763_v32, %s5774_s20  ;;  %v9780_v32 = vld [vmem:[#allocation39_spill] sm:$0xff] }
 0x4b0   : > { %v2774_v12 = vpop.permute.xlu2 %2773 }
 0x4b1   : > { %2936 = vst.msk [vmem:[#allocation2 + $0x500] sm:$0xff] %vm1685_vm5, %v2774_v12  ;;  %v2318_v49 = vpop.permute.xlu1 %2317  ;;  %v9788_v12 = vld [vmem:[#allocation28_spill] sm:$0xff] }
 0x4b2   : > { %2485 = vst.msk [vmem:[#allocation2 + $0x498] sm:$0xff] %vm2435_vm7, %v2318_v49  ;;  %v3059_v7 = vpop.permute.xlu0 %3058 }
 0x4b3   : > { %3224 = vst.msk [vmem:[#allocation2 + $0x4b8] sm:$0xff] %vm2143_vm6, %v3059_v7  ;;  %v3841_v28 = vld [vmem:[#allocation2 + $0x4a0] sm:$0xff] }
 0x4b4   : > { %4561 = vmatmul.f32.gmra.mxu2 %v3841_v28 }
 0x4b5   : > { %v4529_v9 = vpop.f32.mrf.mxu2 }
 0x4b6   : > { %v4530_v46 = vadd.f32 %v4529_v9, %v4297_v62  ;;  %2791 = vrot.lane.b32.xlu2 %v9773_v30, %s5772_s17 }
 0x4b7   : > { %2789 = vrot.lane.b32.xlu1 %v9774_v56, %s5772_s17  ;;  %3376 = vrot.lane.b32.xlu0 %v9775_v34, %s5774_s20  ;;  %v9789_v56 = vld [vmem:[#allocation55_spill] sm:$0xff]  ;;  %v9790_v34 = vld [vmem:[#allocation30_spill] sm:$0xff] }
 0x4b8   : > { %v4763_v58 = vadd.f32 %v9776_v53, %v4530_v46  ;;  %v2326_v42 = vpop.permute.xlu2 %2325  ;;  %v9791_v53 = vld [vmem:[#allocation27_spill] sm:$0xff] }
 0x4b9   : > { %2489 = vst.msk [vmem:[#allocation2 + $0x4f8] sm:$0xff] %vm2435_vm7, %v2326_v42  ;;  %v3355_v0 = vpop.permute.xlu1 %3354  ;;  %v3840_v47 = vld [vmem:[#allocation2 + $0x498] sm:$0xff] }
 0x4ba   : > { %v4902_v2 = vmax.f32 %v4763_v58, 0.0  ;;  %3520 = vst.msk [vmem:[#allocation2 + $0x4b8] sm:$0xff] %vm2435_vm7, %v3355_v0  ;;  %v2770_v4 = vpop.permute.xlu0 %2769  ;;  %4328 = vmatmul.f32.gmra.mxu1 %v3840_v47  ;;  %v9792_v58 = vld [vmem:[#allocation79_spill] sm:$0xff] }
 0x4bb   : > { %2934 = vst.msk [vmem:[#allocation2 + $0x4d0] sm:$0xff] %vm1685_vm5, %v2770_v4 }
 0x4bc   : > { %4975 = vst.msk [vmem:[#allocation3 + $0x130] sm:$0xff] %vm4936_vm8, %v4902_v2 }
 0x4be   : > { %2343 = vrot.lane.b32.xlu2 %v9766_v25, %s5774_s20  ;;  %v9782_v25 = vld [vmem:[#allocation19_spill] sm:$0xff] }
 0x4bf   : > { %2341 = vrot.lane.b32.xlu1 %v9762_v41, %s5774_s20  ;;  %3082 = vrot.lane.b32.xlu0 %v9777_v55, %s5773_s19  ;;  %v9778_v41 = vld [vmem:[#allocation26_spill] sm:$0xff] }
 0x4c0   : > { %v9109_v35 = vpop.permute.xlu2 %3362  ;;  %v3852_v28 = vld [vmem:[#allocation2 + $0x4f8] sm:$0xff] }
 0x4c1   : > { %v3061_v18 = vpop.permute.xlu1 %3060  ;;  %v3844_v3 = vld [vmem:[#allocation2 + $0x4b8] sm:$0xff] }
 0x4c2   : > { %3225 = vst.msk [vmem:[#allocation2 + $0x4d0] sm:$0xff] %vm2143_vm6, %v3061_v18  ;;  %v2322_v38 = vpop.permute.xlu0 %2321  ;;  %4331 = vmatmul.f32.gmra.mxu1 %v3843_v43  ;;  %4564 = vmatmul.f32.gmra.mxu2 %v3844_v3 }
 0x4c3   : > { %3521 = vst.msk [vmem:[#allocation2 + $0x4d0] sm:$0xff] %vm2435_vm7, %v9061_v63 }
 0x4c4   : > { %2487 = vst.msk [vmem:[#allocation2 + $0x4c8] sm:$0xff] %vm2435_vm7, %v2322_v38  ;;  %v9793_v38 = vld [vmem:[#allocation42_spill] sm:$0xff] }
 0x4c6   : > { %3380 = vrot.lane.b32.xlu2 %v9778_v41, %s5774_s20 }
 0x4c7   : > { %3378 = vrot.lane.b32.xlu1 %v9779_v31, %s5774_s20  ;;  %2793 = vrot.lane.b32.xlu0 %v9780_v32, %s5772_s17 }
 0x4c8   : > { %v9121_v16 = vpop.permute.xlu2 %3068 }
 0x4c9   : > { %v2772_v54 = vpop.permute.xlu1 %2771  ;;  %v4299_v15 = vpop.f32.mrf.mxu1 }
 0x4ca   : > { %2935 = vst.msk [vmem:[#allocation2 + $0x4e8] sm:$0xff] %vm1685_vm5, %v2772_v54  ;;  %v3359_v20 = vpop.permute.xlu0 %3358  ;;  %v3847_v8 = vld [vmem:[#allocation2 + $0x4d0] sm:$0xff]  ;;  %v4300_v23 = vadd.f32 %v8932_v57, %v4299_v15  ;;  %v9794_v54 = vld [vmem:[#allocation41_spill] sm:$0xff] }
 0x4cb   : > { %3226 = vst.msk [vmem:[#allocation2 + $0x4e8] sm:$0xff] %vm2143_vm6, %v9074_v27  ;;  %v3846_v26 = vld [vmem:[#allocation2 + $0x4c8] sm:$0xff]  ;;  %4567 = vmatmul.f32.gmra.mxu2 %v3847_v8 }
 0x4cc   : > { %3522 = vst.msk [vmem:[#allocation2 + $0x4e8] sm:$0xff] %vm2435_vm7, %v3359_v20  ;;  %4334 = vmatmul.f32.gmra.mxu1 %v3846_v26  ;;  %v9795_v15 = vld [vmem:[#allocation82_spill] sm:$0xff] }
 0x4ce   : > { %v4532_v44 = vpop.f32.mrf.mxu2  ;;  %3086 = vrot.lane.b32.xlu2 %v9781_v21, %s5773_s19 }
 0x4cf   : > { %v4533_v36 = vadd.f32 %v4532_v44, %v4300_v23  ;;  %3084 = vrot.lane.b32.xlu1 %v9782_v25, %s5773_s19  ;;  %2345 = vrot.lane.b32.xlu0 %v9772_v60, %s5774_s20 }
 0x4d0   : > { %v2780_v63 = vpop.permute.xlu2 %2779 }
 0x4d1   : > { %v4766_v14 = vadd.f32 %v9783_v40, %v4533_v36  ;;  %2939 = vst.msk [vmem:[#allocation2 + $0x548] sm:$0xff] %vm1685_vm5, %v2780_v63  ;;  %v2324_v33 = vpop.permute.xlu1 %2323  ;;  %v5045_v40 = vld [vmem:[#allocation3 + $0x120] ss:$2 sm:$0xff] }
 0x4d2   : > { %2488 = vst.msk [vmem:[#allocation2 + $0x4e0] sm:$0xff] %vm2435_vm7, %v2324_v33  ;;  %v3065_v11 = vpop.permute.xlu0 %3064 }
 0x4d3   : > { %v4903_v13 = vmax.f32 %v4766_v14, 0.0  ;;  %3227 = vst.msk [vmem:[#allocation2 + $0x500] sm:$0xff] %vm2143_vm6, %v3065_v11  ;;  %v3850_v39 = vld [vmem:[#allocation2 + $0x4e8] sm:$0xff] }
 0x4d4   : > { %4570 = vmatmul.f32.gmra.mxu2 %v3850_v39  ;;  %v5117_v14 = vld [vmem:[#allocation3 + $0x121] ss:$2 sm:$0xff]  ;;  %v9796_v39 = vld [vmem:[#allocation31_spill] sm:$0xff] }
 0x4d5   : > { %4976 = vst.msk [vmem:[#allocation3 + $0x138] sm:$0xff] %vm4936_vm8, %v4903_v13 }
 0x4d6   : > { %2797 = vrot.lane.b32.xlu2 %v9784_v24, %s5772_s17  ;;  %v5170_v24 = vmax.f32 %v5045_v40, %v5117_v14 }
 0x4d7   : > { %2795 = vrot.lane.b32.xlu1 %v9785_v45, %s5772_s17  ;;  %3382 = vrot.lane.b32.xlu0 %v9786_v22, %s5774_s20  ;;  %v4535_v10 = vpop.f32.mrf.mxu2  ;;  %v9797_v45 = vld [vmem:[#allocation33_spill] sm:$0xff] }
 0x4d8   : > { %v4302_v48 = vpop.f32.mrf.mxu1  ;;  %v2332_v17 = vpop.permute.xlu2 %2331  ;;  %v9798_v22 = vld [vmem:[#allocation85_spill] sm:$0xff] }
 0x4d9   : > { %v4303_v27 = vadd.f32 %v8932_v57, %v4302_v48  ;;  %2492 = vst.msk [vmem:[#allocation2 + $0x540] sm:$0xff] %vm2435_vm7, %v2332_v17  ;;  %v3361_v52 = vpop.permute.xlu1 %3360  ;;  %v3849_v50 = vld [vmem:[#allocation2 + $0x4e0] sm:$0xff] }
 0x4da   : > { %3523 = vst.msk [vmem:[#allocation2 + $0x500] sm:$0xff] %vm2435_vm7, %v3361_v52  ;;  %v2776_v51 = vpop.permute.xlu0 %2775  ;;  %4337 = vmatmul.f32.gmra.mxu1 %v3849_v50 }
 0x4db   : > { %v4536_v37 = vadd.f32 %v4535_v10, %v4303_v27  ;;  %2937 = vst.msk [vmem:[#allocation2 + $0x518] sm:$0xff] %vm1685_vm5, %v2776_v51 }
 0x4dc   : > { %v5047_v41 = vld [vmem:[#allocation3 + $0x130] ss:$2 sm:$0xff]  ;;  %v5119_v31 = vld [vmem:[#allocation3 + $0x131] ss:$2 sm:$0xff] }
 0x4dd   : > { %v4769_v6 = vadd.f32 %v9787_v29, %v4536_v37  ;;  %v5171_v26 = vmax.f32 %v5047_v41, %v5119_v31 }
 0x4de   : > { %2349 = vrot.lane.b32.xlu2 %v9777_v55, %s5774_s20 }
 0x4df   : > { %v4904_v60 = vmax.f32 %v4769_v6, 0.0  ;;  %2347 = vrot.lane.b32.xlu1 %v9771_v61, %s5774_s20  ;;  %3088 = vrot.lane.b32.xlu0 %v9788_v12, %s5773_s19 }
 0x4e0   : > { %v4305_v59 = vpop.f32.mrf.mxu1  ;;  %v9156_v49 = vpop.permute.xlu2 %3368 }
 0x4e1   : > { %4977 = vst.msk [vmem:[#allocation3 + $0x140] sm:$0xff] %vm4936_vm8, %v4904_v60  ;;  %v3067_v7 = vpop.permute.xlu1 %3066  ;;  %v3853_v62 = vld [vmem:[#allocation2 + $0x500] sm:$0xff]  ;;  %v4306_v61 = vadd.f32 %v8932_v57, %v4305_v59 }
 0x4e2   : > { %3228 = vst.msk [vmem:[#allocation2 + $0x518] sm:$0xff] %vm2143_vm6, %v3067_v7  ;;  %v2328_v9 = vpop.permute.xlu0 %2327  ;;  %4340 = vmatmul.f32.gmra.mxu1 %v3852_v28  ;;  %4573 = vmatmul.f32.gmra.mxu2 %v3853_v62  ;;  %v9799_v59 = vld [vmem:[#allocation57_spill] sm:$0xff]  ;;  %v9800_v62 = vld [vmem:[#allocation44_spill] sm:$0xff] }
 0x4e3   : > { %3524 = vst.msk [vmem:[#allocation2 + $0x518] sm:$0xff] %vm2435_vm7, %v9109_v35 }
 0x4e4   : > { %2490 = vst.msk [vmem:[#allocation2 + $0x510] sm:$0xff] %vm2435_vm7, %v2328_v9 }
 0x4e5   : > { %v4538_v46 = vpop.f32.mrf.mxu2 }
 0x4e6   : > { %v4539_v30 = vadd.f32 %v4538_v46, %v4306_v61  ;;  %3386 = vrot.lane.b32.xlu2 %v9789_v56, %s5774_s20  ;;  %v9801_v46 = vld [vmem:[#allocation48_spill] sm:$0xff]  ;;  %v9802_v56 = vld [vmem:[#allocation49_spill] sm:$0xff] }
 0x4e7   : > { %3384 = vrot.lane.b32.xlu1 %v9790_v34, %s5774_s20  ;;  %2799 = vrot.lane.b32.xlu0 %v9791_v53, %s5772_s17  ;;  %v3248_v34 = vrot.slane %v9802_v56, 1 }
 0x4e8   : > { %v4772_v42 = vadd.f32 %v9792_v58, %v4539_v30  ;;  %v9171_v0 = vpop.permute.xlu2 %3074  ;;  %v3247_v30 = vrot.slane %v9801_v46, 1  ;;  %v3861_v58 = vld [vmem:[#allocation2 + $0x540] sm:$0xff] }
 0x4e9   : > { %v2778_v47 = vpop.permute.xlu1 %2777  ;;  %v4308_v4 = vpop.f32.mrf.mxu1 }
 0x4ea   : > { %v4905_v2 = vmax.f32 %v4772_v42, 0.0  ;;  %2938 = vst.msk [vmem:[#allocation2 + $0x530] sm:$0xff] %vm1685_vm5, %v2778_v47  ;;  %v3365_v55 = vpop.permute.xlu0 %3364  ;;  %v3856_v35 = vld [vmem:[#allocation2 + $0x518] sm:$0xff]  ;;  %v4309_v43 = vadd.f32 %v8932_v57, %v4308_v4 }
 0x4eb   : > { %3229 = vst.msk [vmem:[#allocation2 + $0x530] sm:$0xff] %vm2143_vm6, %v9121_v16  ;;  %v3855_v18 = vld [vmem:[#allocation2 + $0x510] sm:$0xff]  ;;  %4576 = vmatmul.f32.gmra.mxu2 %v3856_v35 }
 0x4ec   : > { %4978 = vst.msk [vmem:[#allocation3 + $0x148] sm:$0xff] %vm4936_vm8, %v4905_v2  ;;  %4343 = vmatmul.f32.gmra.mxu1 %v3855_v18  ;;  %v3249_v2 = vsel %vm1300_vm3, %v3247_v30, %v3248_v34  ;;  %v9804_v35 = vld [vmem:[#allocation43_spill] sm:$0xff]  ;;  %v9805_v18 = vld [vmem:[#allocation54_spill] sm:$0xff] }
 0x4ed   : > { %3525 = vst.msk [vmem:[#allocation2 + $0x530] sm:$0xff] %vm2435_vm7, %v3365_v55  ;;  %v9803_v55 = vld [vmem:[#allocation81_spill] sm:$0xff] }
 0x4ee   : > { %v4541_v3 = vpop.f32.mrf.mxu2  ;;  %3092 = vrot.lane.b32.xlu2 %v9793_v38, %s5773_s19 }
 0x4ef   : > { %v4542_v32 = vadd.f32 %v4541_v3, %v4309_v43  ;;  %3090 = vrot.lane.b32.xlu1 %v9794_v54, %s5773_s19  ;;  %2351 = vrot.lane.b32.xlu0 %v9782_v25, %s5774_s20  ;;  %v5231_v25 = vrot.slane %v5171_v26, 4 }
 0x4f0   : > { %v2786_v16 = vpop.permute.xlu2 %2785 }
 0x4f1   : > { %v4775_v20 = vadd.f32 %v9795_v15, %v4542_v32  ;;  %2942 = vst.msk [vmem:[#allocation2 + $0x590] sm:$0xff] %vm1685_vm5, %v2786_v16  ;;  %v2330_v8 = vpop.permute.xlu1 %2329 }
 0x4f2   : > { %2491 = vst.msk [vmem:[#allocation2 + $0x528] sm:$0xff] %vm2435_vm7, %v2330_v8  ;;  %v3071_v23 = vpop.permute.xlu0 %3070 }
 0x4f3   : > { %v5049_v44 = vld [vmem:[#allocation3 + $0x140] ss:$2 sm:$0xff]  ;;  %v5121_v36 = vld [vmem:[#allocation3 + $0x141] ss:$2 sm:$0xff]  ;;  %v4906_v63 = vmax.f32 %v4775_v20, 0.0  ;;  %3230 = vst.msk [vmem:[#allocation2 + $0x548] sm:$0xff] %vm2143_vm6, %v3071_v23 }
 0x4f4   : > { %v5172_v33 = vmax.f32 %v5049_v44, %v5121_v36  ;;  %v3859_v11 = vld [vmem:[#allocation2 + $0x530] sm:$0xff] }
 0x4f5   : > { %4979 = vst.msk [vmem:[#allocation3 + $0x150] sm:$0xff] %vm4936_vm8, %v4906_v63  ;;  %4579 = vmatmul.f32.gmra.mxu2 %v3859_v11  ;;  %v9806_v36 = vld [vmem:[#allocation50_spill] sm:$0xff]  ;;  %v9808_v11 = vld [vmem:[#allocation45_spill] sm:$0xff] }
 0x4f6   : > { %v5232_v13 = vrot.slane %v5172_v33, 4  ;;  %2803 = vrot.lane.b32.xlu2 %v9796_v39, %s5772_s17  ;;  %v3250_v63 = vrot.slane %v9806_v36, 1 }
 0x4f7   : > { %2801 = vrot.lane.b32.xlu1 %v9797_v45, %s5772_s17  ;;  %3388 = vrot.lane.b32.xlu0 %v9798_v22, %s5774_s20  ;;  %v4311_v48 = vpop.f32.mrf.mxu1  ;;  %v4544_v51 = vpop.f32.mrf.mxu2 }
 0x4f8   : > { %v5233_v17 = vsel %vm5212_vm9, %v5231_v25, %v5232_v13  ;;  %v5286_v27 = vmax.f32 %v5171_v26, %v5232_v13  ;;  %v4312_v52 = vadd.f32 %v8932_v57, %v4311_v48  ;;  %v2338_v50 = vpop.permute.xlu2 %2337 }
 0x4f9   : > { %v5285_v10 = vmax.f32 %v5170_v24, %v5233_v17  ;;  %2495 = vst.msk [vmem:[#allocation2 + $0x588] sm:$0xff] %vm2435_vm7, %v2338_v50  ;;  %v3367_v37 = vpop.permute.xlu1 %3366  ;;  %v3858_v29 = vld [vmem:[#allocation2 + $0x528] sm:$0xff] }
 0x4fa   : > { %5311 = vst.msk [vmem:[%s7717_s14 + $0x68] sm:$0xf] %vm5298_vm10, %v5286_v27  ;;  %v4545_v6 = vadd.f32 %v4544_v51, %v4312_v52  ;;  %v2782_v60 = vpop.permute.xlu0 %2781  ;;  %4346 = vmatmul.f32.gmra.mxu1 %v3858_v29 }
 0x4fb   : > { %5310 = vst.msk [vmem:[%s7717_s14 + $0x60] sm:$0xff] %vm4936_vm8, %v5285_v10 }
 0x4fc   : > { %v4778_v7 = vadd.f32 %v9799_v59, %v4545_v6  ;;  %3526 = vst.msk [vmem:[#allocation2 + $0x548] sm:$0xff] %vm2435_vm7, %v3367_v37  ;;  %v9809_v6 = vld [vmem:[#allocation51_spill] sm:$0xff] }
 0x4fd   : > { %2940 = vst.msk [vmem:[#allocation2 + $0x560] sm:$0xff] %vm1685_vm5, %v2782_v60 }
 0x4fe   : > { %v4907_v28 = vmax.f32 %v4778_v7, 0.0  ;;  %2355 = vrot.lane.b32.xlu2 %v9788_v12, %s5774_s20 }
 0x4ff   : > { %2353 = vrot.lane.b32.xlu1 %v9781_v21, %s5774_s20  ;;  %3094 = vrot.lane.b32.xlu0 %v9800_v62, %s5773_s19  ;;  %v4314_v9 = vpop.f32.mrf.mxu1 }
 0x500   : > { %4980 = vst.msk [vmem:[#allocation3 + $0x158] sm:$0xff] %vm4936_vm8, %v4907_v28  ;;  %v9213_v61 = vpop.permute.xlu2 %3374  ;;  %v4315_v42 = vadd.f32 %v8932_v57, %v4314_v9  ;;  %v3870_v37 = vld [vmem:[#allocation2 + $0x588] sm:$0xff] }
 0x501   : > { %v3073_v53 = vpop.permute.xlu1 %3072 }
 0x502   : > { %3231 = vst.msk [vmem:[#allocation2 + $0x560] sm:$0xff] %vm2143_vm6, %v3073_v53  ;;  %v2334_v12 = vpop.permute.xlu0 %2333  ;;  %4349 = vmatmul.f32.gmra.mxu1 %v3861_v58 }
 0x503   : > { %3527 = vst.msk [vmem:[#allocation2 + $0x560] sm:$0xff] %vm2435_vm7, %v9156_v49  ;;  %v3862_v21 = vld [vmem:[#allocation2 + $0x548] sm:$0xff] }
 0x504   : > { %2493 = vst.msk [vmem:[#allocation2 + $0x558] sm:$0xff] %vm2435_vm7, %v2334_v12  ;;  %4582 = vmatmul.f32.gmra.mxu2 %v3862_v21 }
 0x505   : > { %v4547_v47 = vpop.f32.mrf.mxu2 }
 0x506   : > { %v4548_v4 = vadd.f32 %v4547_v47, %v4315_v42  ;;  %3392 = vrot.lane.b32.xlu2 %v3249_v2, %s5774_s20  ;;  %v4792_v2 = vpop.f32.mrf.mxu3 }
 0x507   : > { %3390 = vrot.lane.b32.xlu1 %v9803_v55, %s5774_s20  ;;  %2805 = vrot.lane.b32.xlu0 %v9804_v35, %s5772_s17 }
 0x508   : > { %v4781_v49 = vadd.f32 %v9805_v18, %v4548_v4  ;;  %v9229_v43 = vpop.permute.xlu2 %3080 }
 0x509   : > { %v2784_v3 = vpop.permute.xlu1 %2783  ;;  %v4317_v31 = vpop.f32.mrf.mxu1 }
 0x50a   : > { %v4908_v41 = vmax.f32 %v4781_v49, 0.0  ;;  %2941 = vst.msk [vmem:[#allocation2 + $0x578] sm:$0xff] %vm1685_vm5, %v2784_v3  ;;  %v3371_v32 = vpop.permute.xlu0 %3370  ;;  %v3865_v16 = vld [vmem:[#allocation2 + $0x560] sm:$0xff]  ;;  %v4318_v20 = vadd.f32 %v8932_v57, %v4317_v31  ;;  %v5123_v31 = vld [vmem:[#allocation3 + $0x151] ss:$2 sm:$0xff] }
 0x50b   : > { %3232 = vst.msk [vmem:[#allocation2 + $0x578] sm:$0xff] %vm2143_vm6, %v9171_v0  ;;  %v3864_v15 = vld [vmem:[#allocation2 + $0x558] sm:$0xff] }
 0x50c   : > { %4981 = vst.msk [vmem:[#allocation3 + $0x160] sm:$0xff] %vm4936_vm8, %v4908_v41  ;;  %4352 = vmatmul.f32.gmra.mxu1 %v3864_v15  ;;  %4585 = vmatmul.f32.gmra.mxu2 %v3865_v16 }
 0x50d   : > { %3528 = vst.msk [vmem:[#allocation2 + $0x578] sm:$0xff] %vm2435_vm7, %v3371_v32 }
 0x50e   : > { %v4550_v8 = vpop.f32.mrf.mxu2  ;;  %3098 = vrot.lane.b32.xlu2 %v9802_v56, %s5773_s19 }
 0x50f   : > { %v4551_v26 = vadd.f32 %v4550_v8, %v4318_v20  ;;  %3096 = vrot.lane.b32.xlu1 %v9801_v46, %s5773_s19  ;;  %2357 = vrot.lane.b32.xlu0 %v9794_v54, %s5774_s20  ;;  %v9807_v54 = vld [vmem:[#allocation47_spill] sm:$0xff] }
 0x510   : > { %v2792_v0 = vpop.permute.xlu2 %2791 }
 0x511   : > { %v4784_v23 = vadd.f32 %v8728_v19, %v4551_v26  ;;  %2945 = vst.msk [vmem:[#allocation2 + $0x5d8] sm:$0xff] %vm1685_vm5, %v2792_v0  ;;  %v2336_v44 = vpop.permute.xlu1 %2335  ;;  %v3251_v19 = vsel %vm1300_vm3, %v3248_v34, %v3250_v63 }
 0x512   : > { %2494 = vst.msk [vmem:[#allocation2 + $0x570] sm:$0xff] %vm2435_vm7, %v2336_v44  ;;  %v3077_v40 = vpop.permute.xlu0 %3076  ;;  %v9292_v44 = vld [vmem:[#allocation8] ss:$0 sm:$0xff] }
 0x513   : > { %v4909_v14 = vmax.f32 %v4784_v23, 0.0  ;;  %3233 = vst.msk [vmem:[#allocation2 + $0x590] sm:$0xff] %vm2143_vm6, %v3077_v40 }
 0x514   : > { %v3868_v33 = vld [vmem:[#allocation2 + $0x578] sm:$0xff] }
 0x515   : > { %4982 = vst.msk [vmem:[#allocation3 + $0x168] sm:$0xff] %vm4936_vm8, %v4909_v14  ;;  %4588 = vmatmul.f32.gmra.mxu2 %v3868_v33 }
 0x516   : > { %2809 = vrot.lane.b32.xlu2 %v9807_v54, %s5772_s17 }
 0x517   : > { %2807 = vrot.lane.b32.xlu1 %v9808_v11, %s5772_s17  ;;  %3394 = vrot.lane.b32.xlu0 %v3251_v19, %s5774_s20 }
 0x518   : > { %v4320_v25 = vpop.f32.mrf.mxu1  ;;  %v2344_v13 = vpop.permute.xlu2 %2343 }
 0x519   : > { %v4321_v39 = vadd.f32 %v8932_v57, %v4320_v25  ;;  %2498 = vst.msk [vmem:[#allocation2 + $0x5d0] sm:$0xff] %vm2435_vm7, %v2344_v13  ;;  %v3373_v24 = vpop.permute.xlu1 %3372  ;;  %v3867_v45 = vld [vmem:[#allocation2 + $0x570] sm:$0xff]  ;;  %v4553_v22 = vpop.f32.mrf.mxu2 }
 0x51a   : > { %3529 = vst.msk [vmem:[#allocation2 + $0x590] sm:$0xff] %vm2435_vm7, %v3373_v24  ;;  %v2788_v48 = vpop.permute.xlu0 %2787  ;;  %4355 = vmatmul.f32.gmra.mxu1 %v3867_v45  ;;  %v4795_v25 = vpop.f32.mrf.mxu3 }
 0x51b   : > { %v4554_v17 = vadd.f32 %v4553_v22, %v4321_v39  ;;  %2943 = vst.msk [vmem:[#allocation2 + $0x5a8] sm:$0xff] %vm1685_vm5, %v2788_v48 }
 0x51c   : > { %v5053_v21 = vld [vmem:[#allocation3 + $0x160] ss:$2 sm:$0xff]  ;;  %v5125_v42 = vld [vmem:[#allocation3 + $0x161] ss:$2 sm:$0xff] }
 0x51d   : > { %v4787_v27 = vadd.f32 %v8756_v5, %v4554_v17  ;;  %v9810_v5 = vmax.f32 %v9809_v6, 0.0  ;;  %v5174_v18 = vmax.f32 %v5053_v21, %v5125_v42 }
 0x51e   : > { %2361 = vrot.lane.b32.xlu2 %v9800_v62, %s5774_s20 }
 0x51f   : > { %v4910_v52 = vmax.f32 %v4787_v27, 0.0  ;;  %2359 = vrot.lane.b32.xlu1 %v9793_v38, %s5774_s20  ;;  %3100 = vrot.lane.b32.xlu0 %v9806_v36, %s5773_s19  ;;  %v3252_v60 = vrot.slane %v9810_v5, 1  ;;  %v5234_v15 = vrot.slane %v5174_v18, 4 }
 0x520   : > { %v4323_v50 = vpop.f32.mrf.mxu1  ;;  %v9266_v10 = vpop.permute.xlu2 %3380  ;;  %v3879_v48 = vld [vmem:[#allocation2 + $0x5d0] sm:$0xff] }
 0x521   : > { %4983 = vst.msk [vmem:[#allocation3 + $0x170] sm:$0xff] %vm4936_vm8, %v4910_v52  ;;  %v3079_v51 = vpop.permute.xlu1 %3078  ;;  %v3871_v29 = vld [vmem:[#allocation2 + $0x590] sm:$0xff]  ;;  %v4324_v38 = vadd.f32 %v8932_v57, %v4323_v50  ;;  %v3253_v62 = vsel %vm1300_vm3, %v3250_v63, %v3252_v60 }
 0x522   : > { %3234 = vst.msk [vmem:[#allocation2 + $0x5a8] sm:$0xff] %vm2143_vm6, %v3079_v51  ;;  %v2340_v59 = vpop.permute.xlu0 %2339  ;;  %4358 = vmatmul.f32.gmra.mxu1 %v3870_v37  ;;  %4591 = vmatmul.f32.gmra.mxu2 %v3871_v29  ;;  %v4798_v51 = vpop.f32.mrf.mxu3 }
 0x523   : > { %3530 = vst.msk [vmem:[#allocation2 + $0x5a8] sm:$0xff] %vm2435_vm7, %v9213_v61 }
 0x524   : > { %2496 = vst.msk [vmem:[#allocation2 + $0x5a0] sm:$0xff] %vm2435_vm7, %v2340_v59 }
 0x525   : > { %v4556_v7 = vpop.f32.mrf.mxu2 }
 0x526   : > { %v4557_v28 = vadd.f32 %v4556_v7, %v4324_v38 }
 0x527   : > { %3396 = vrot.lane.b32.xlu1 %v3253_v62, %s5774_s20 }
 0x528   : > { %v4790_v9 = vadd.f32 %v8772_v1, %v4557_v28  ;;  %v9279_v46 = vpop.permute.xlu2 %3086 }
 0x529   : > { %v2790_v30 = vpop.permute.xlu1 %2789  ;;  %v4326_v34 = vpop.f32.mrf.mxu1 }
 0x52a   : > { %v4911_v56 = vmax.f32 %v4790_v9, 0.0  ;;  %2944 = vst.msk [vmem:[#allocation2 + $0x5c0] sm:$0xff] %vm1685_vm5, %v2790_v30  ;;  %v3377_v61 = vpop.permute.xlu0 %3376  ;;  %v3874_v53 = vld [vmem:[#allocation2 + $0x5a8] sm:$0xff]  ;;  %v4327_v12 = vadd.f32 %v8932_v57, %v4326_v34  ;;  %v5051_v57 = vld [vmem:[#allocation3 + $0x150] ss:$2 sm:$0xff]  ;;  %v4801_v30 = vpop.f32.mrf.mxu3 }
 0x52b   : > { %3235 = vst.msk [vmem:[#allocation2 + $0x5c0] sm:$0xff] %vm2143_vm6, %v9229_v43  ;;  %v3873_v58 = vld [vmem:[#allocation2 + $0x5a0] sm:$0xff]  ;;  %4594 = vmatmul.f32.gmra.mxu2 %v3874_v53  ;;  %v5173_v8 = vmax.f32 %v5051_v57, %v5123_v31 }
 0x52c   : > { %4984 = vst.msk [vmem:[#allocation3 + $0x178] sm:$0xff] %vm4936_vm8, %v4911_v56  ;;  %4361 = vmatmul.f32.gmra.mxu1 %v3873_v58 }
 0x52d   : > { %3531 = vst.msk [vmem:[#allocation2 + $0x5c0] sm:$0xff] %vm2435_vm7, %v3377_v61 }
 0x52e   : > { %v4559_v1 = vpop.f32.mrf.mxu2 }
 0x52f   : > { %v4560_v47 = vadd.f32 %v4559_v1, %v4327_v12 }
 0x530   : > { %v2798_v4 = vpop.permute.xlu2 %2797 }
 0x531   : > { %v4793_v55 = vadd.f32 %v4792_v2, %v4560_v47  ;;  %2948 = vst.msk [vmem:[#allocation2 + $0x620] sm:$0xff] %vm1685_vm5, %v2798_v4  ;;  %v2342_v35 = vpop.permute.xlu1 %2341 }
 0x532   : > { %2497 = vst.msk [vmem:[#allocation2 + $0x5b8] sm:$0xff] %vm2435_vm7, %v2342_v35  ;;  %v3083_v49 = vpop.permute.xlu0 %3082  ;;  %v4804_v35 = vpop.f32.mrf.mxu3 }
 0x533   : > { %v5055_v43 = vld [vmem:[#allocation3 + $0x170] ss:$2 sm:$0xff]  ;;  %v5127_v3 = vld [vmem:[#allocation3 + $0x171] ss:$2 sm:$0xff]  ;;  %v4912_v41 = vmax.f32 %v4793_v55, 0.0  ;;  %3236 = vst.msk [vmem:[#allocation2 + $0x5d8] sm:$0xff] %vm2143_vm6, %v3083_v49 }
 0x534   : > { %v5175_v32 = vmax.f32 %v5055_v43, %v5127_v3  ;;  %v3877_v16 = vld [vmem:[#allocation2 + $0x5c0] sm:$0xff] }
 0x535   : > { %4985 = vst.msk [vmem:[#allocation3 + $0x180] sm:$0xff] %vm4936_vm8, %v4912_v41  ;;  %4597 = vmatmul.f32.gmra.mxu2 %v3877_v16 }
 0x536   : > { %v5235_v20 = vrot.slane %v5175_v32, 4 }
 0x537   : > { %v4329_v26 = vpop.f32.mrf.mxu1  ;;  %v4562_v14 = vpop.f32.mrf.mxu2 }
 0x538   : > { %v5236_v0 = vsel %vm5212_vm9, %v5234_v15, %v5235_v20  ;;  %v5288_v23 = vmax.f32 %v5174_v18, %v5235_v20  ;;  %v4330_v36 = vadd.f32 %v9292_v44, %v4329_v26  ;;  %v2350_v63 = vpop.permute.xlu2 %2349 }
 0x539   : > { %v5287_v40 = vmax.f32 %v5173_v8, %v5236_v0  ;;  %2501 = vst.msk [vmem:[#allocation2 + $0x618] sm:$0xff] %vm2435_vm7, %v2350_v63  ;;  %v3379_v33 = vpop.permute.xlu1 %3378  ;;  %v3876_v54 = vld [vmem:[#allocation2 + $0x5b8] sm:$0xff] }
 0x53a   : > { %5313 = vst.msk [vmem:[%s7717_s14 + $0x78] sm:$0xf] %vm5298_vm10, %v5288_v23  ;;  %v4563_v19 = vadd.f32 %v4562_v14, %v4330_v36  ;;  %v2794_v11 = vpop.permute.xlu0 %2793  ;;  %4364 = vmatmul.f32.gmra.mxu1 %v3876_v54  ;;  %v4807_v20 = vpop.f32.mrf.mxu3 }
 0x53b   : > { %5312 = vst.msk [vmem:[%s7717_s14 + $0x70] sm:$0xff] %vm4936_vm8, %v5287_v40 }
 0x53c   : > { %v4796_v13 = vadd.f32 %v4795_v25, %v4563_v19  ;;  %3532 = vst.msk [vmem:[#allocation2 + $0x5d8] sm:$0xff] %vm2435_vm7, %v3379_v33 }
 0x53d   : > { %2946 = vst.msk [vmem:[#allocation2 + $0x5f0] sm:$0xff] %vm1685_vm5, %v2794_v11 }
 0x53e   : > { %v4913_v39 = vmax.f32 %v4796_v13, 0.0 }
 0x53f   : > { %v4332_v24 = vpop.f32.mrf.mxu1 }
 0x540   : > { %4986 = vst.msk [vmem:[#allocation3 + $0x188] sm:$0xff] %vm4936_vm8, %v4913_v39  ;;  %v9303_v45 = vpop.permute.xlu2 %3386  ;;  %v4333_v52 = vadd.f32 %v9292_v44, %v4332_v24  ;;  %v3888_v57 = vld [vmem:[#allocation2 + $0x618] sm:$0xff] }
 0x541   : > { %v3085_v22 = vpop.permute.xlu1 %3084 }
 0x542   : > { %3237 = vst.msk [vmem:[#allocation2 + $0x5f0] sm:$0xff] %vm2143_vm6, %v3085_v22  ;;  %v2346_v17 = vpop.permute.xlu0 %2345  ;;  %4367 = vmatmul.f32.gmra.mxu1 %v3879_v48  ;;  %v4810_v39 = vpop.f32.mrf.mxu3 }
 0x543   : > { %3533 = vst.msk [vmem:[#allocation2 + $0x5f0] sm:$0xff] %vm2435_vm7, %v9266_v10  ;;  %v3880_v27 = vld [vmem:[#allocation2 + $0x5d8] sm:$0xff] }
 0x544   : > { %2499 = vst.msk [vmem:[#allocation2 + $0x5e8] sm:$0xff] %vm2435_vm7, %v2346_v17  ;;  %4600 = vmatmul.f32.gmra.mxu2 %v3880_v27 }
 0x545   : > { %v4565_v50 = vpop.f32.mrf.mxu2 }
 0x546   : > { %v4566_v37 = vadd.f32 %v4565_v50, %v4333_v52 }
 0x548   : > { %v4799_v29 = vadd.f32 %v4798_v51, %v4566_v37  ;;  %v9310_v6 = vpop.permute.xlu2 %3092  ;;  %v5057_v51 = vld [vmem:[#allocation3 + $0x180] ss:$2 sm:$0xff]  ;;  %v5129_v37 = vld [vmem:[#allocation3 + $0x181] ss:$2 sm:$0xff] }
 0x549   : > { %v2796_v5 = vpop.permute.xlu1 %2795  ;;  %v4335_v59 = vpop.f32.mrf.mxu1 }
 0x54a   : > { %v4914_v60 = vmax.f32 %v4799_v29, 0.0  ;;  %2947 = vst.msk [vmem:[#allocation2 + $0x608] sm:$0xff] %vm1685_vm5, %v2796_v5  ;;  %v3383_v38 = vpop.permute.xlu0 %3382  ;;  %v3883_v7 = vld [vmem:[#allocation2 + $0x5f0] sm:$0xff]  ;;  %v4336_v28 = vadd.f32 %v9292_v44, %v4335_v59  ;;  %v5176_v59 = vmax.f32 %v5057_v51, %v5129_v37 }
 0x54b   : > { %3238 = vst.msk [vmem:[#allocation2 + $0x608] sm:$0xff] %vm2143_vm6, %v9279_v46  ;;  %v3882_v10 = vld [vmem:[#allocation2 + $0x5e8] sm:$0xff] }
 0x54c   : > { %4987 = vst.msk [vmem:[#allocation3 + $0x190] sm:$0xff] %vm4936_vm8, %v4914_v60  ;;  %4370 = vmatmul.f32.gmra.mxu1 %v3882_v10  ;;  %4603 = vmatmul.f32.gmra.mxu2 %v3883_v7 }
 0x54d   : > { %3534 = vst.msk [vmem:[#allocation2 + $0x608] sm:$0xff] %vm2435_vm7, %v3383_v38 }
 0x54e   : > { %v4568_v62 = vpop.f32.mrf.mxu2 }
 0x54f   : > { %v4569_v9 = vadd.f32 %v4568_v62, %v4336_v28 }
 0x550   : > { %v2804_v56 = vpop.permute.xlu2 %2803 }
 0x551   : > { %v4802_v34 = vadd.f32 %v4801_v30, %v4569_v9  ;;  %2951 = vst.msk [vmem:[#allocation2 + $0x668] sm:$0xff] %vm1685_vm5, %v2804_v56  ;;  %v2348_v61 = vpop.permute.xlu1 %2347 }
 0x552   : > { %2500 = vst.msk [vmem:[#allocation2 + $0x600] sm:$0xff] %vm2435_vm7, %v2348_v61  ;;  %v3089_v46 = vpop.permute.xlu0 %3088 }
 0x553   : > { %v4915_v53 = vmax.f32 %v4802_v34, 0.0  ;;  %3239 = vst.msk [vmem:[#allocation2 + $0x620] sm:$0xff] %vm2143_vm6, %v3089_v46 }
 0x554   : > { %v3886_v58 = vld [vmem:[#allocation2 + $0x608] sm:$0xff] }
 0x555   : > { %4988 = vst.msk [vmem:[#allocation3 + $0x198] sm:$0xff] %vm4936_vm8, %v4915_v53  ;;  %4606 = vmatmul.f32.gmra.mxu2 %v3886_v58  ;;  %v4813_v53 = vpop.f32.mrf.mxu3 }
 0x557   : > { %v4338_v12 = vpop.f32.mrf.mxu1  ;;  %v4571_v42 = vpop.f32.mrf.mxu2 }
 0x558   : > { %v4339_v1 = vadd.f32 %v9292_v44, %v4338_v12  ;;  %v2356_v21 = vpop.permute.xlu2 %2355 }
 0x559   : > { %2504 = vst.msk [vmem:[#allocation2 + $0x660] sm:$0xff] %vm2435_vm7, %v2356_v21  ;;  %v3385_v47 = vpop.permute.xlu1 %3384  ;;  %v3885_v2 = vld [vmem:[#allocation2 + $0x600] sm:$0xff] }
 0x55a   : > { %v4572_v4 = vadd.f32 %v4571_v42, %v4339_v1  ;;  %3535 = vst.msk [vmem:[#allocation2 + $0x620] sm:$0xff] %vm2435_vm7, %v3385_v47  ;;  %v2800_v55 = vpop.permute.xlu0 %2799  ;;  %4373 = vmatmul.f32.gmra.mxu1 %v3885_v2 }
 0x55b   : > { %2949 = vst.msk [vmem:[#allocation2 + $0x638] sm:$0xff] %vm1685_vm5, %v2800_v55 }
 0x55c   : > { %v4805_v18 = vadd.f32 %v4804_v35, %v4572_v4  ;;  %v5059_v11 = vld [vmem:[#allocation3 + $0x190] ss:$2 sm:$0xff]  ;;  %v5131_v25 = vld [vmem:[#allocation3 + $0x191] ss:$2 sm:$0xff] }
 0x55d   : > { %v5177_v48 = vmax.f32 %v5059_v11, %v5131_v25  ;;  %v4816_v55 = vpop.f32.mrf.mxu3 }
 0x55e   : > { %v4916_v49 = vmax.f32 %v4805_v18, 0.0 }
 0x55f   : > { %v4341_v43 = vpop.f32.mrf.mxu1  ;;  %v5237_v5 = vrot.slane %v5177_v48, 4 }
 0x560   : > { %4989 = vst.msk [vmem:[#allocation3 + $0x1a0] sm:$0xff] %vm4936_vm8, %v4916_v49  ;;  %v9327_v3 = vpop.permute.xlu2 %3392  ;;  %v4342_v16 = vadd.f32 %v9292_v44, %v4341_v43  ;;  %v3897_v42 = vld [vmem:[#allocation2 + $0x660] sm:$0xff] }
 0x561   : > { %v3091_v41 = vpop.permute.xlu1 %3090  ;;  %v3889_v31 = vld [vmem:[#allocation2 + $0x620] sm:$0xff] }
 0x562   : > { %3240 = vst.msk [vmem:[#allocation2 + $0x638] sm:$0xff] %vm2143_vm6, %v3091_v41  ;;  %v2352_v32 = vpop.permute.xlu0 %2351  ;;  %4376 = vmatmul.f32.gmra.mxu1 %v3888_v57  ;;  %4609 = vmatmul.f32.gmra.mxu2 %v3889_v31 }
 0x563   : > { %3536 = vst.msk [vmem:[#allocation2 + $0x638] sm:$0xff] %vm2435_vm7, %v9303_v45 }
 0x564   : > { %2502 = vst.msk [vmem:[#allocation2 + $0x630] sm:$0xff] %vm2435_vm7, %v2352_v32 }
 0x565   : > { %v4574_v15 = vpop.f32.mrf.mxu2 }
 0x566   : > { %v4575_v8 = vadd.f32 %v4574_v15, %v4342_v16 }
 0x568   : > { %v4808_v26 = vadd.f32 %v4807_v20, %v4575_v8  ;;  %v9334_v0 = vpop.permute.xlu2 %3098  ;;  %v4819_v8 = vpop.f32.mrf.mxu3 }
 0x569   : > { %v2802_v23 = vpop.permute.xlu1 %2801  ;;  %v4344_v63 = vpop.f32.mrf.mxu1 }
 0x56a   : > { %v4917_v36 = vmax.f32 %v4808_v26, 0.0  ;;  %2950 = vst.msk [vmem:[#allocation2 + $0x650] sm:$0xff] %vm1685_vm5, %v2802_v23  ;;  %v3389_v40 = vpop.permute.xlu0 %3388  ;;  %v3892_v14 = vld [vmem:[#allocation2 + $0x638] sm:$0xff]  ;;  %v4345_v54 = vadd.f32 %v9292_v44, %v4344_v63 }
 0x56b   : > { %3241 = vst.msk [vmem:[#allocation2 + $0x650] sm:$0xff] %vm2143_vm6, %v9310_v6  ;;  %v3891_v33 = vld [vmem:[#allocation2 + $0x630] sm:$0xff]  ;;  %4612 = vmatmul.f32.gmra.mxu2 %v3892_v14 }
 0x56c   : > { %4990 = vst.msk [vmem:[#allocation3 + $0x1a8] sm:$0xff] %vm4936_vm8, %v4917_v36  ;;  %4379 = vmatmul.f32.gmra.mxu1 %v3891_v33 }
 0x56d   : > { %3537 = vst.msk [vmem:[#allocation2 + $0x650] sm:$0xff] %vm2435_vm7, %v3389_v40 }
 0x56e   : > { %v4577_v19 = vpop.f32.mrf.mxu2 }
 0x56f   : > { %v4578_v13 = vadd.f32 %v4577_v19, %v4345_v54 }
 0x570   : > { %v2810_v24 = vpop.permute.xlu2 %2809  ;;  %v4822_v25 = vpop.f32.mrf.mxu3 }
 0x571   : > { %v4811_v45 = vadd.f32 %v4810_v39, %v4578_v13  ;;  %2954 = vst.msk [vmem:[#allocation2 + $0x6b0] sm:$0xff] %vm1685_vm5, %v2810_v24  ;;  %v2354_v22 = vpop.permute.xlu1 %2353 }
 0x572   : > { %2503 = vst.msk [vmem:[#allocation2 + $0x648] sm:$0xff] %vm2435_vm7, %v2354_v22  ;;  %v3095_v17 = vpop.permute.xlu0 %3094 }
 0x573   : > { %v5061_v27 = vld [vmem:[#allocation3 + $0x1a0] ss:$2 sm:$0xff]  ;;  %v5133_v52 = vld [vmem:[#allocation3 + $0x1a1] ss:$2 sm:$0xff]  ;;  %v4918_v50 = vmax.f32 %v4811_v45, 0.0  ;;  %3242 = vst.msk [vmem:[#allocation2 + $0x668] sm:$0xff] %vm2143_vm6, %v3095_v17 }
 0x574   : > { %v5178_v29 = vmax.f32 %v5061_v27, %v5133_v52  ;;  %v3895_v6 = vld [vmem:[#allocation2 + $0x650] sm:$0xff] }
 0x575   : > { %4991 = vst.msk [vmem:[#allocation3 + $0x1b0] sm:$0xff] %vm4936_vm8, %v4918_v50  ;;  %4615 = vmatmul.f32.gmra.mxu2 %v3895_v6 }
 0x576   : > { %v5238_v60 = vrot.slane %v5178_v29, 4 }
 0x577   : > { %v4347_v38 = vpop.f32.mrf.mxu1 }
 0x578   : > { %v5239_v7 = vsel %vm5212_vm9, %v5237_v5, %v5238_v60  ;;  %v5290_v10 = vmax.f32 %v5177_v48, %v5238_v60  ;;  %v4348_v28 = vadd.f32 %v9292_v44, %v4347_v38  ;;  %v2362_v62 = vpop.permute.xlu2 %2361  ;;  %v4580_v30 = vpop.f32.mrf.mxu2 }
 0x579   : > { %v5289_v9 = vmax.f32 %v5176_v59, %v5239_v7  ;;  %2507 = vst.msk [vmem:[#allocation2 + $0x6a8] sm:$0xff] %vm2435_vm7, %v2362_v62  ;;  %v3391_v56 = vpop.permute.xlu1 %3390  ;;  %v3894_v34 = vld [vmem:[#allocation2 + $0x648] sm:$0xff]  ;;  %v4825_v27 = vpop.f32.mrf.mxu3 }
 0x57a   : > { %5315 = vst.msk [vmem:[%s7717_s14 + $0x88] sm:$0xf] %vm5298_vm10, %v5290_v10  ;;  %v4581_v61 = vadd.f32 %v4580_v30, %v4348_v28  ;;  %v2806_v46 = vpop.permute.xlu0 %2805  ;;  %4382 = vmatmul.f32.gmra.mxu1 %v3894_v34 }
 0x57b   : > { %5314 = vst.msk [vmem:[%s7717_s14 + $0x80] sm:$0xff] %vm4936_vm8, %v5289_v9 }
 0x57c   : > { %v4814_v58 = vadd.f32 %v4813_v53, %v4581_v61  ;;  %3538 = vst.msk [vmem:[#allocation2 + $0x668] sm:$0xff] %vm2435_vm7, %v3391_v56 }
 0x57d   : > { %2952 = vst.msk [vmem:[#allocation2 + $0x680] sm:$0xff] %vm1685_vm5, %v2806_v46 }
 0x57e   : > { %v4919_v12 = vmax.f32 %v4814_v58, 0.0 }
 0x57f   : > { %v4350_v1 = vpop.f32.mrf.mxu1 }
 0x580   : > { %4992 = vst.msk [vmem:[#allocation3 + $0x1b8] sm:$0xff] %vm4936_vm8, %v4919_v12  ;;  %v4351_v4 = vadd.f32 %v9292_v44, %v4350_v1  ;;  %v3906_v45 = vld [vmem:[#allocation2 + $0x6a8] sm:$0xff] }
 0x581   : > { %v3097_v21 = vpop.permute.xlu1 %3096  ;;  %v4828_v38 = vpop.f32.mrf.mxu3 }
 0x582   : > { %3243 = vst.msk [vmem:[#allocation2 + $0x680] sm:$0xff] %vm2143_vm6, %v3097_v21  ;;  %v2358_v47 = vpop.permute.xlu0 %2357  ;;  %4385 = vmatmul.f32.gmra.mxu1 %v3897_v42 }
 0x583   : > { %3539 = vst.msk [vmem:[#allocation2 + $0x680] sm:$0xff] %vm2435_vm7, %v9327_v3  ;;  %v3898_v2 = vld [vmem:[#allocation2 + $0x668] sm:$0xff] }
 0x584   : > { %2505 = vst.msk [vmem:[#allocation2 + $0x678] sm:$0xff] %vm2435_vm7, %v2358_v47  ;;  %4618 = vmatmul.f32.gmra.mxu2 %v3898_v2 }
 0x587   : > { %v4583_v35 = vpop.f32.mrf.mxu2  ;;  %v5063_v30 = vld [vmem:[#allocation3 + $0x1b0] ss:$2 sm:$0xff]  ;;  %v5135_v56 = vld [vmem:[#allocation3 + $0x1b1] ss:$2 sm:$0xff] }
 0x588   : > { %v4584_v18 = vadd.f32 %v4583_v35, %v4351_v4  ;;  %v5179_v53 = vmax.f32 %v5063_v30, %v5135_v56 }
 0x589   : > { %v2808_v49 = vpop.permute.xlu1 %2807  ;;  %v4353_v31 = vpop.f32.mrf.mxu1 }
 0x58a   : > { %v4817_v43 = vadd.f32 %v4816_v55, %v4584_v18  ;;  %2953 = vst.msk [vmem:[#allocation2 + $0x698] sm:$0xff] %vm1685_vm5, %v2808_v49  ;;  %v3395_v41 = vpop.permute.xlu0 %3394  ;;  %v3901_v57 = vld [vmem:[#allocation2 + $0x680] sm:$0xff]  ;;  %v4354_v16 = vadd.f32 %v9292_v44, %v4353_v31  ;;  %v4831_v4 = vpop.f32.mrf.mxu3 }
 0x58b   : > { %3244 = vst.msk [vmem:[#allocation2 + $0x698] sm:$0xff] %vm2143_vm6, %v9334_v0  ;;  %v3900_v3 = vld [vmem:[#allocation2 + $0x678] sm:$0xff] }
 0x58c   : > { %v4920_v32 = vmax.f32 %v4817_v43, 0.0  ;;  %3540 = vst.msk [vmem:[#allocation2 + $0x698] sm:$0xff] %vm2435_vm7, %v3395_v41  ;;  %4388 = vmatmul.f32.gmra.mxu1 %v3900_v3  ;;  %4621 = vmatmul.f32.gmra.mxu2 %v3901_v57 }
 0x58e   : > { %4993 = vst.msk [vmem:[#allocation3 + $0x1c0] sm:$0xff] %vm4936_vm8, %v4920_v32 }
 0x58f   : > { %v4586_v15 = vpop.f32.mrf.mxu2 }
 0x590   : > { %v4587_v20 = vadd.f32 %v4586_v15, %v4354_v16 }
 0x591   : > { %v2360_v26 = vpop.permute.xlu1 %2359 }
 0x592   : > { %v4820_v23 = vadd.f32 %v4819_v8, %v4587_v20  ;;  %2506 = vst.msk [vmem:[#allocation2 + $0x690] sm:$0xff] %vm2435_vm7, %v2360_v26  ;;  %v3101_v36 = vpop.permute.xlu0 %3100  ;;  %v4834_v43 = vpop.f32.mrf.mxu3 }
 0x593   : > { %3245 = vst.msk [vmem:[#allocation2 + $0x6b0] sm:$0xff] %vm2143_vm6, %v3101_v36  ;;  %v3904_v0 = vld [vmem:[#allocation2 + $0x698] sm:$0xff] }
 0x594   : > { %v4921_v63 = vmax.f32 %v4820_v23, 0.0  ;;  %4624 = vmatmul.f32.gmra.mxu2 %v3904_v0 }
 0x596   : > { %4994 = vst.msk [vmem:[#allocation3 + $0x1c8] sm:$0xff] %vm4936_vm8, %v4921_v63 }
 0x597   : > { %v4356_v40 = vpop.f32.mrf.mxu1 }
 0x598   : > { %v4357_v14 = vadd.f32 %v9292_v44, %v4356_v40  ;;  %v4589_v33 = vpop.f32.mrf.mxu2 }
 0x599   : > { %v3397_v54 = vpop.permute.xlu1 %3396  ;;  %v3903_v19 = vld [vmem:[#allocation2 + $0x690] sm:$0xff] }
 0x59a   : > { %v4590_v11 = vadd.f32 %v4589_v33, %v4357_v14  ;;  %3541 = vst.msk [vmem:[#allocation2 + $0x6b0] sm:$0xff] %vm2435_vm7, %v3397_v54  ;;  %4391 = vmatmul.f32.gmra.mxu1 %v3903_v19  ;;  %v4837_v8 = vpop.f32.mrf.mxu3 }
 0x59c   : > { %v4823_v13 = vadd.f32 %v4822_v25, %v4590_v11 }
 0x59d   : > { %v5065_v5 = vld [vmem:[#allocation3 + $0x1c0] ss:$2 sm:$0xff]  ;;  %v5137_v60 = vld [vmem:[#allocation3 + $0x1c1] ss:$2 sm:$0xff] }
 0x59e   : > { %v4922_v39 = vmax.f32 %v4823_v13, 0.0  ;;  %v5180_v10 = vmax.f32 %v5065_v5, %v5137_v60 }
 0x59f   : > { %v4359_v24 = vpop.f32.mrf.mxu1 }
 0x5a0   : > { %4995 = vst.msk [vmem:[#allocation3 + $0x1d0] sm:$0xff] %vm4936_vm8, %v4922_v39  ;;  %v4360_v48 = vadd.f32 %v9292_v44, %v4359_v24  ;;  %v5240_v61 = vrot.slane %v5180_v10, 4 }
 0x5a1   : > { %v3907_v22 = vld [vmem:[#allocation2 + $0x6b0] sm:$0xff] }
 0x5a2   : > { %4394 = vmatmul.f32.gmra.mxu1 %v3906_v45  ;;  %4627 = vmatmul.f32.gmra.mxu2 %v3907_v22  ;;  %v4840_v14 = vpop.f32.mrf.mxu3 }
 0x5a5   : > { %v4592_v17 = vpop.f32.mrf.mxu2 }
 0x5a6   : > { %v4593_v52 = vadd.f32 %v4592_v17, %v4360_v48 }
 0x5a8   : > { %v4826_v50 = vadd.f32 %v4825_v27, %v4593_v52 }
 0x5a9   : > { %v4362_v37 = vpop.f32.mrf.mxu1 }
 0x5aa   : > { %v4923_v51 = vmax.f32 %v4826_v50, 0.0  ;;  %v4363_v29 = vadd.f32 %v9292_v44, %v4362_v37  ;;  %v4843_v39 = vpop.f32.mrf.mxu3 }
 0x5ac   : > { %4996 = vst.msk [vmem:[#allocation3 + $0x1d8] sm:$0xff] %vm4936_vm8, %v4923_v51 }
 0x5ae   : > { %v4595_v6 = vpop.f32.mrf.mxu2 }
 0x5af   : > { %v4596_v59 = vadd.f32 %v4595_v6, %v4363_v29 }
 0x5b1   : > { %v4829_v7 = vadd.f32 %v4828_v38, %v4596_v59 }
 0x5b2   : > { %v4846_v51 = vpop.f32.mrf.mxu3 }
 0x5b3   : > { %v5067_v28 = vld [vmem:[#allocation3 + $0x1d0] ss:$2 sm:$0xff]  ;;  %v5139_v62 = vld [vmem:[#allocation3 + $0x1d1] ss:$2 sm:$0xff]  ;;  %v4924_v9 = vmax.f32 %v4829_v7, 0.0 }
 0x5b4   : > { %v5181_v34 = vmax.f32 %v5067_v28, %v5139_v62 }
 0x5b5   : > { %4997 = vst.msk [vmem:[#allocation3 + $0x1e0] sm:$0xff] %vm4936_vm8, %v4924_v9 }
 0x5b6   : > { %v5241_v46 = vrot.slane %v5181_v34, 4 }
 0x5b7   : > { %v4365_v58 = vpop.f32.mrf.mxu1 }
 0x5b8   : > { %v5242_v12 = vsel %vm5212_vm9, %v5240_v61, %v5241_v46  ;;  %v5292_v1 = vmax.f32 %v5180_v10, %v5241_v46  ;;  %v4366_v21 = vadd.f32 %v9292_v44, %v4365_v58  ;;  %v4598_v47 = vpop.f32.mrf.mxu2 }
 0x5b9   : > { %v5291_v42 = vmax.f32 %v5179_v53, %v5242_v12 }
 0x5ba   : > { %5317 = vst.msk [vmem:[%s7717_s14 + $0x98] sm:$0xf] %vm5298_vm10, %v5292_v1  ;;  %v4599_v2 = vadd.f32 %v4598_v47, %v4366_v21  ;;  %v4849_v58 = vpop.f32.mrf.mxu3 }
 0x5bb   : > { %5316 = vst.msk [vmem:[%s7717_s14 + $0x90] sm:$0xff] %vm4936_vm8, %v5291_v42 }
 0x5bc   : > { %v4832_v55 = vadd.f32 %v4831_v4, %v4599_v2 }
 0x5be   : > { %v4925_v35 = vmax.f32 %v4832_v55, 0.0 }
 0x5bf   : > { %v4368_v18 = vpop.f32.mrf.mxu1 }
 0x5c0   : > { %4998 = vst.msk [vmem:[#allocation3 + $0x1e8] sm:$0xff] %vm4936_vm8, %v4925_v35  ;;  %v4369_v49 = vadd.f32 %v9292_v44, %v4368_v18 }
 0x5c2   : > { %v4852_v4 = vpop.f32.mrf.mxu3 }
 0x5c7   : > { %v4601_v41 = vpop.f32.mrf.mxu2  ;;  %v5069_v59 = vld [vmem:[#allocation3 + $0x1e0] ss:$2 sm:$0xff]  ;;  %v5141_v38 = vld [vmem:[#allocation3 + $0x1e1] ss:$2 sm:$0xff] }
 0x5c8   : > { %v4602_v57 = vadd.f32 %v4601_v41, %v4369_v49  ;;  %v5182_v62 = vmax.f32 %v5069_v59, %v5141_v38 }
 0x5c9   : > { %v4371_v3 = vpop.f32.mrf.mxu1 }
 0x5ca   : > { %v4835_v31 = vadd.f32 %v4834_v43, %v4602_v57  ;;  %v4372_v16 = vadd.f32 %v9292_v44, %v4371_v3  ;;  %v4855_v57 = vpop.f32.mrf.mxu3 }
 0x5cc   : > { %v4926_v32 = vmax.f32 %v4835_v31, 0.0 }
 0x5ce   : > { %4999 = vst.msk [vmem:[#allocation3 + $0x1f0] sm:$0xff] %vm4936_vm8, %v4926_v32 }
 0x5cf   : > { %v4604_v15 = vpop.f32.mrf.mxu2 }
 0x5d0   : > { %v4605_v20 = vadd.f32 %v4604_v15, %v4372_v16 }
 0x5d2   : > { %v4838_v26 = vadd.f32 %v4837_v8, %v4605_v20  ;;  %v4858_v8 = vpop.f32.mrf.mxu3 }
 0x5d4   : > { %v4927_v23 = vmax.f32 %v4838_v26, 0.0 }
 0x5d6   : > { %5000 = vst.msk [vmem:[#allocation3 + $0x1f8] sm:$0xff] %vm4936_vm8, %v4927_v23 }
 0x5d7   : > { %v4374_v36 = vpop.f32.mrf.mxu1 }
 0x5d8   : > { %v4375_v0 = vadd.f32 %v9292_v44, %v4374_v36  ;;  %v4607_v63 = vpop.f32.mrf.mxu2 }
 0x5da   : > { %v4608_v40 = vadd.f32 %v4607_v63, %v4375_v0 }
 0x5dc   : > { %v4841_v33 = vadd.f32 %v4840_v14, %v4608_v40  ;;  %v4861_v14 = vpop.f32.mrf.mxu3 }
 0x5dd   : > { %v5071_v27 = vld [vmem:[#allocation3 + $0x1f0] ss:$2 sm:$0xff]  ;;  %v5143_v52 = vld [vmem:[#allocation3 + $0x1f1] ss:$2 sm:$0xff] }
 0x5de   : > { %v4928_v54 = vmax.f32 %v4841_v33, 0.0  ;;  %v5183_v29 = vmax.f32 %v5071_v27, %v5143_v52 }
 0x5df   : > { %v4377_v19 = vpop.f32.mrf.mxu1 }
 0x5e0   : > { %5001 = vst.msk [vmem:[#allocation3 + $0x200] sm:$0xff] %vm4936_vm8, %v4928_v54  ;;  %v4378_v11 = vadd.f32 %v9292_v44, %v4377_v19  ;;  %v5243_v10 = vrot.slane %v5183_v29, 4 }
 0x5e5   : > { %v4610_v25 = vpop.f32.mrf.mxu2 }
 0x5e6   : > { %v4611_v13 = vadd.f32 %v4610_v25, %v4378_v11 }
 0x5e8   : > { %v4844_v24 = vadd.f32 %v4843_v39, %v4611_v13 }
 0x5e9   : > { %v4380_v22 = vpop.f32.mrf.mxu1 }
 0x5ea   : > { %v4929_v45 = vmax.f32 %v4844_v24, 0.0  ;;  %v4381_v48 = vadd.f32 %v9292_v44, %v4380_v22 }
 0x5ec   : > { %5002 = vst.msk [vmem:[#allocation3 + $0x208] sm:$0xff] %vm4936_vm8, %v4929_v45 }
 0x5ee   : > { %v4613_v17 = vpop.f32.mrf.mxu2 }
 0x5ef   : > { %v4614_v50 = vadd.f32 %v4613_v17, %v4381_v48 }
 0x5f1   : > { %v4847_v37 = vadd.f32 %v4846_v51, %v4614_v50 }
 0x5f3   : > { %v5073_v6 = vld [vmem:[#allocation3 + $0x200] ss:$2 sm:$0xff]  ;;  %v5145_v5 = vld [vmem:[#allocation3 + $0x201] ss:$2 sm:$0xff]  ;;  %v4930_v60 = vmax.f32 %v4847_v37, 0.0 }
 0x5f4   : > { %v5184_v7 = vmax.f32 %v5073_v6, %v5145_v5 }
 0x5f5   : > { %5003 = vst.msk [vmem:[#allocation3 + $0x210] sm:$0xff] %vm4936_vm8, %v4930_v60 }
 0x5f6   : > { %v5244_v28 = vrot.slane %v5184_v7, 4 }
 0x5f7   : > { %v4383_v9 = vpop.f32.mrf.mxu1 }
 0x5f8   : > { %v5245_v30 = vsel %vm5212_vm9, %v5243_v10, %v5244_v28  ;;  %v5294_v56 = vmax.f32 %v5183_v29, %v5244_v28  ;;  %v4384_v34 = vadd.f32 %v9292_v44, %v4383_v9  ;;  %v4616_v46 = vpop.f32.mrf.mxu2 }
 0x5f9   : > { %v5293_v61 = vmax.f32 %v5182_v62, %v5245_v30 }
 0x5fa   : > { %5319 = vst.msk [vmem:[%s7717_s14 + $0xa8] sm:$0xf] %vm5298_vm10, %v5294_v56  ;;  %v4617_v53 = vadd.f32 %v4616_v46, %v4384_v34 }
 0x5fb   : > { %5318 = vst.msk [vmem:[%s7717_s14 + $0xa0] sm:$0xff] %vm4936_vm8, %v5293_v61 }
 0x5fc   : > { %v4850_v12 = vadd.f32 %v4849_v58, %v4617_v53 }
 0x5fe   : > { %v4931_v1 = vmax.f32 %v4850_v12, 0.0 }
 0x5ff   : > { %v4386_v21 = vpop.f32.mrf.mxu1 }
 0x600   : > { %5004 = vst.msk [vmem:[#allocation3 + $0x218] sm:$0xff] %vm4936_vm8, %v4931_v1  ;;  %v4387_v42 = vadd.f32 %v9292_v44, %v4386_v21 }
 0x607   : > { %v4619_v47 = vpop.f32.mrf.mxu2  ;;  %v5075_v24 = vld [vmem:[#allocation3 + $0x210] ss:$2 sm:$0xff]  ;;  %v5147_v45 = vld [vmem:[#allocation3 + $0x211] ss:$2 sm:$0xff] }
 0x608   : > { %v4620_v2 = vadd.f32 %v4619_v47, %v4387_v42 }
 0x609   : > { %v4389_v35 = vpop.f32.mrf.mxu1 }
 0x60a   : > { %v4853_v55 = vadd.f32 %v4852_v4, %v4620_v2  ;;  %v4390_v49 = vadd.f32 %v9292_v44, %v4389_v35 }
 0x60c   : > { %v4932_v18 = vmax.f32 %v4853_v55, 0.0 }
 0x60e   : > { %5005 = vst.msk [vmem:[#allocation3 + $0x220] sm:$0xff] %vm4936_vm8, %v4932_v18 }
 0x60f   : > { %v4622_v43 = vpop.f32.mrf.mxu2 }
 0x610   : > { %v4623_v41 = vadd.f32 %v4622_v43, %v4390_v49 }
 0x612   : > { %v4856_v31 = vadd.f32 %v4855_v57, %v4623_v41 }
 0x614   : > { %v4933_v3 = vmax.f32 %v4856_v31, 0.0 }
 0x616   : > { %5006 = vst.msk [vmem:[#allocation3 + $0x228] sm:$0xff] %vm4936_vm8, %v4933_v3 }
 0x617   : > { %v4392_v32 = vpop.f32.mrf.mxu1  ;;  %v4625_v15 = vpop.f32.mrf.mxu2 }
 0x618   : > { %v4393_v16 = vadd.f32 %v9292_v44, %v4392_v32 }
 0x61a   : > { %v4626_v20 = vadd.f32 %v4625_v15, %v4393_v16 }
 0x61c   : > { %v4859_v26 = vadd.f32 %v4858_v8, %v4626_v20 }
 0x61d   : > { %v5077_v19 = vld [vmem:[#allocation3 + $0x220] ss:$2 sm:$0xff]  ;;  %v5149_v11 = vld [vmem:[#allocation3 + $0x221] ss:$2 sm:$0xff] }
 0x61e   : > { %v4934_v23 = vmax.f32 %v4859_v26, 0.0  ;;  %v5186_v25 = vmax.f32 %v5077_v19, %v5149_v11 }
 0x61f   : > { %v4395_v36 = vpop.f32.mrf.mxu1 }
 0x620   : > { %5007 = vst.msk [vmem:[#allocation3 + $0x230] sm:$0xff] %vm4936_vm8, %v4934_v23  ;;  %v4396_v0 = vadd.f32 %v9292_v44, %v4395_v36  ;;  %v5246_v48 = vrot.slane %v5186_v25, 4  ;;  %v5185_v44 = vmax.f32 %v5075_v24, %v5147_v45 }
 0x625   : > { %v4628_v63 = vpop.f32.mrf.mxu2 }
 0x626   : > { %v4629_v40 = vadd.f32 %v4628_v63, %v4396_v0 }
 0x628   : > { %v4862_v33 = vadd.f32 %v4861_v14, %v4629_v40 }
 0x62a   : > { %v4935_v54 = vmax.f32 %v4862_v33, 0.0 }
 0x62c   : > { %5008 = vst.msk [vmem:[#allocation3 + $0x238] sm:$0xff] %vm4936_vm8, %v4935_v54 }
 0x633   : > { %v5079_v13 = vld [vmem:[#allocation3 + $0x230] ss:$2 sm:$0xff]  ;;  %v5151_v39 = vld [vmem:[#allocation3 + $0x231] ss:$2 sm:$0xff] }
 0x634   : > { %v5187_v22 = vmax.f32 %v5079_v13, %v5151_v39 }
 0x636   : > { %v5247_v17 = vrot.slane %v5187_v22, 4 }
 0x638   : > { %v5248_v27 = vsel %vm5212_vm9, %v5246_v48, %v5247_v17  ;;  %v5296_v52 = vmax.f32 %v5186_v25, %v5247_v17 }
 0x639   : > { %v5295_v50 = vmax.f32 %v5185_v44, %v5248_v27 }
 0x63a   : > { %5321 = vst.msk [vmem:[%s7717_s14 + $0xb8] sm:$0xf] %vm5298_vm10, %v5296_v52 }
 0x63b   : > { %5320 = vst.msk [vmem:[%s7717_s14 + $0xb0] sm:$0xff] %vm4936_vm8, %v5295_v50 }
 0x63c PF: > { %s17_s18 = sadd.s32 1, %s5765_s18  }
 0x63d   : > { %p14_p7 = scmp.ge.s32.totalorder %s17_s18, 4  }
 0x63f   :  { %16 = sbr.rel (!%p14_p7) target bundleno = 2 (0x2), region = 154 }
 0x644   :  { %5343 = vsyncpa [#allocation5], 1 }
 0x645   :  { %5345 = vsyncpa [#allocation5 + $0x1], 1 }
 0x646   :  { %5346 = vsyncpa [#allocation7], 1 }

</bundles_post_ra>
